<compile_context>
chip_gen: v7x
topology: tpu7x:2x2x1
jax: 0.10.0
libtpu: 0.0.40
codegen_flags: <defaults>
</compile_context>

<pallas_src>
import functools

import jax
import jax.numpy as jnp
from jax import lax
from jax.experimental import pallas as pl
from jax.experimental.pallas import tpu as pltpu


def _vgg_block_kernel(x_ref, w1_ref, b1_ref, w2_ref, b2_ref, o_ref, h1_ref,
                      *, h, w, wp, lout):
    """Fused conv3x3+ReLU -> conv3x3+ReLU -> maxpool2x2 for one batch element.

    x_ref : (1, Lin, Cin)   flattened zero-padded input slab, Lin = (H+3)*Wp
    w1_ref: (9*Cin,  Cout)  conv1 weights, 9 taps packed into the contraction dim
    b1_ref: (1, Cout)
    w2_ref: (9*Cout, Cout)  conv2 weights, 9 taps packed
    b2_ref: (1, Cout)
    o_ref : (1, H//2, W//2, Cout)
    h1_ref: (Lin, Cout) VMEM scratch: conv1 output laid out as conv2's padded slab
    """
    cout = w1_ref.shape[-1]
    lin = h1_ref.shape[0]

    def conv3x3(load_tap, w_ref):
        # Pack all 9 shifted views along lanes -> a single MXU matmul, K = 9*C.
        taps = [load_tap(ky * wp + kx) for ky in range(3) for kx in range(3)]
        patch = jnp.concatenate(taps, axis=-1)                 # (Lout, 9*C)
        return jnp.dot(patch, w_ref[...],
                       preferred_element_type=jnp.float32)     # (Lout, Cout) f32

    # ---------------- conv1 + bias + ReLU ----------------
    a1 = jnp.maximum(
        conv3x3(lambda off: x_ref[0, pl.ds(off, lout), :], w1_ref) + b1_ref[...],
        0.0)
    # Zero the 2 junk columns of every slab row; once the slab is shifted by
    # Wp+1 those positions land exactly on conv2's zero-padding border.
    col = lax.broadcasted_iota(jnp.int32, (lout, 1), 0) % wp
    a1 = jnp.where(col < w, a1, 0.0)

    # Zero ONLY the padding rows of the slab (top Wp+1 rows, bottom 2*Wp-1 rows);
    # the data region [Wp+1, Wp+1+Lout) is fully overwritten right below, so
    # pre-zeroing it (as before) was wasted VMEM store bandwidth.
    h1_ref[pl.ds(0, wp + 1), :] = jnp.zeros((wp + 1, cout), h1_ref.dtype)
    h1_ref[pl.ds(wp + 1 + lout, 2 * wp - 1), :] = jnp.zeros(
        (2 * wp - 1, cout), h1_ref.dtype)
    h1_ref[pl.ds(wp + 1, lout), :] = a1.astype(h1_ref.dtype)

    # ---------------- conv2 + bias + ReLU ----------------
    a2 = jnp.maximum(
        conv3x3(lambda off: h1_ref[pl.ds(off, lout), :], w2_ref) + b2_ref[...],
        0.0)

    # ---------------- fused 2x2 / stride-2 maxpool epilogue ----------------
    # Lout = H*Wp with Wp even, so flattened-index parity == column parity.
    # The junk column pair (cols W, W+1) pools into the last column, dropped below.
    a2 = a2.reshape(h // 2, 2, wp // 2, 2, cout)
    pooled = jnp.max(jnp.max(a2, axis=3), axis=1)              # (H/2, Wp/2, C)
    o_ref[0] = pooled[:, : w // 2, :].astype(o_ref.dtype)


def vgg_block_forward(x_nchw, params, *, mxu_dtype=jnp.bfloat16):
    """Pallas implementation of VGGBlock.forward (batch_norm=False path)."""
    # TODO(synk): batch_norm=True path (nn.BatchNorm2d) not implemented; the
    # default-constructed module uses the identity no-op, which is what runs here.
    n, cin, h, w = x_nchw.shape
    cout = params["w1"].shape[-1]
    assert h % 2 == 0 and w % 2 == 0, "maxpool 2x2/2 needs even spatial dims"
    wp = w + 2                    # padded row width
    lin = (h + 3) * wp            # pad rows (1, 2), cols (1, 1), flattened
    lout = h * wp                 # flattened conv-output slab length

    x = jnp.transpose(x_nchw, (0, 2, 3, 1))                      # NCHW -> NHWC
    xf = jnp.pad(x, ((0, 0), (1, 2), (1, 1), (0, 0))).astype(mxu_dtype)
    xf = xf.reshape(n, lin, cin)
    w1p = params["w1"].reshape(9 * cin, cout).astype(mxu_dtype)  # taps -> K
    w2p = params["w2"].reshape(9 * cout, cout).astype(mxu_dtype)
    b1 = params["b1"].reshape(1, cout).astype(jnp.float32)
    b2 = params["b2"].reshape(1, cout).astype(jnp.float32)

    out = pl.pallas_call(
        functools.partial(_vgg_block_kernel, h=h, w=w, wp=wp, lout=lout),
        out_shape=jax.ShapeDtypeStruct((n, h // 2, w // 2, cout), jnp.float32),
        grid=(n,),
        in_specs=[
            pl.BlockSpec((1, lin, cin), lambda i: (i, 0, 0)),
            pl.BlockSpec((9 * cin, cout), lambda i: (0, 0)),
            pl.BlockSpec((1, cout), lambda i: (0, 0)),
            pl.BlockSpec((9 * cout, cout), lambda i: (0, 0)),
            pl.BlockSpec((1, cout), lambda i: (0, 0)),
        ],
        out_specs=pl.BlockSpec((1, h // 2, w // 2, cout),
                               lambda i: (i, 0, 0, 0)),
        scratch_shapes=[pltpu.VMEM((lin, cout), mxu_dtype)],
        compiler_params=pltpu.CompilerParams(
            dimension_semantics=("parallel",),
            vmem_limit_bytes=32 * 1024 * 1024,
        ),
    )(xf, w1p, b1, w2p, b2)
    return jnp.transpose(out, (0, 3, 1, 2))                      # NHWC -> NCHW


def init_params(key, in_channels, out_channels):
    # deterministic, PyTorch-style uniform(-1/sqrt(fan_in), 1/sqrt(fan_in))
    k1, k2, k3, k4 = jax.random.split(key, 4)
    b1 = 1.0 / jnp.sqrt(in_channels * 9.0)
    b2 = 1.0 / jnp.sqrt(out_channels * 9.0)
    return {
        "w1": jax.random.uniform(k1, (3, 3, in_channels, out_channels),
                                 jnp.float32, -b1, b1),
        "b1": jax.random.uniform(k2, (out_channels,), jnp.float32, -b1, b1),
        "w2": jax.random.uniform(k3, (3, 3, out_channels, out_channels),
                                 jnp.float32, -b2, b2),
        "b2": jax.random.uniform(k4, (out_channels,), jnp.float32, -b2, b2),
    }


def reference_forward(x_nchw, params):
    dn = ("NCHW", "OIHW", "NCHW")
    w1 = jnp.transpose(params["w1"], (3, 2, 0, 1))
    w2 = jnp.transpose(params["w2"], (3, 2, 0, 1))
    y = lax.conv_general_dilated(x_nchw, w1, (1, 1), ((1, 1), (1, 1)),
                                 dimension_numbers=dn)
    y = jax.nn.relu(y + params["b1"][None, :, None, None])
    y = lax.conv_general_dilated(y, w2, (1, 1), ((1, 1), (1, 1)),
                                 dimension_numbers=dn)
    y = jax.nn.relu(y + params["b2"][None, :, None, None])
    y = lax.reduce_window(y, -jnp.inf, lax.max, (1, 1, 2, 2), (1, 1, 2, 2),
                          "VALID")
    return y


if __name__ == "__main__":
    key = jax.random.PRNGKey(0)
    kx, kp = jax.random.split(key)
    N, Cin, Cout, H, W = 2, 4, 8, 16, 16
    x = jax.random.normal(kx, (N, Cin, H, W), jnp.float32)
    params = init_params(kp, Cin, Cout)

    out = jax.block_until_ready(vgg_block_forward(x, params))
    ref = jax.block_until_ready(reference_forward(x, params))

    assert out.shape == (N, Cout, H // 2, W // 2), out.shape
    # bf16 MXU operands (f32 accumulation) vs f32 reference -> loosened tolerance.
    max_err = float(jnp.max(jnp.abs(out - ref)))
    assert bool(jnp.allclose(out, ref, atol=5e-2, rtol=5e-2)), max_err
    print("KERNEL_OK")
</pallas_src>

<mosaic_0001>
module attributes {stable_mosaic.version = 11 : i64} {
  func.func @_vgg_block_kernel(%arg0: i32, %arg1: memref<1x342x4xbf16, #tpu.memory_space<vmem>>, %arg2: memref<36x8xbf16, #tpu.memory_space<vmem>>, %arg3: memref<1x8xf32, #tpu.memory_space<vmem>>, %arg4: memref<72x8xbf16, #tpu.memory_space<vmem>>, %arg5: memref<1x8xf32, #tpu.memory_space<vmem>>, %arg6: memref<1x8x8x8xf32, #tpu.memory_space<vmem>>, %arg7: memref<342x8xbf16, #tpu.memory_space<vmem>>) attributes {dimension_semantics = [#tpu.dimension_semantics<parallel>], iteration_bounds = array<i64: 2>, scalar_prefetch = 0 : i64, scratch_operands = 1 : i64, tpu.core_type = #tpu.core_type<tc>, window_params = [{transform_indices = @transform_0, window_bounds = array<i64: 1, 342, 4>}, {pipeline_mode = #tpu.pipeline_mode<synchronous>, transform_indices = @transform_1, window_bounds = array<i64: 36, 8>}, {pipeline_mode = #tpu.pipeline_mode<synchronous>, transform_indices = @transform_2, window_bounds = array<i64: 1, 8>}, {pipeline_mode = #tpu.pipeline_mode<synchronous>, transform_indices = @transform_3, window_bounds = array<i64: 72, 8>}, {pipeline_mode = #tpu.pipeline_mode<synchronous>, transform_indices = @transform_4, window_bounds = array<i64: 1, 8>}, {transform_indices = @transform_5, window_bounds = array<i64: 1, 8, 8, 8>}]} {
    %c0 = arith.constant 0 : index
    %c0_0 = arith.constant 0 : index
    %c0_1 = arith.constant 0 : index
    %0 = vector.load %arg1[%c0, %c0_0, %c0_1] : memref<1x342x4xbf16, #tpu.memory_space<vmem>>, vector<1x288x4xbf16>
    %1 = vector.shape_cast %0 : vector<1x288x4xbf16> to vector<288x4xbf16>
    %c0_2 = arith.constant 0 : index
    %c1 = arith.constant 1 : index
    %c0_3 = arith.constant 0 : index
    %2 = vector.load %arg1[%c0_2, %c1, %c0_3] : memref<1x342x4xbf16, #tpu.memory_space<vmem>>, vector<1x288x4xbf16>
    %3 = vector.shape_cast %2 : vector<1x288x4xbf16> to vector<288x4xbf16>
    %c0_4 = arith.constant 0 : index
    %c2 = arith.constant 2 : index
    %c0_5 = arith.constant 0 : index
    %4 = vector.load %arg1[%c0_4, %c2, %c0_5] : memref<1x342x4xbf16, #tpu.memory_space<vmem>>, vector<1x288x4xbf16>
    %5 = vector.shape_cast %4 : vector<1x288x4xbf16> to vector<288x4xbf16>
    %c0_6 = arith.constant 0 : index
    %c18 = arith.constant 18 : index
    %c0_7 = arith.constant 0 : index
    %6 = vector.load %arg1[%c0_6, %c18, %c0_7] : memref<1x342x4xbf16, #tpu.memory_space<vmem>>, vector<1x288x4xbf16>
    %7 = vector.shape_cast %6 : vector<1x288x4xbf16> to vector<288x4xbf16>
    %c0_8 = arith.constant 0 : index
    %c19 = arith.constant 19 : index
    %c0_9 = arith.constant 0 : index
    %8 = vector.load %arg1[%c0_8, %c19, %c0_9] : memref<1x342x4xbf16, #tpu.memory_space<vmem>>, vector<1x288x4xbf16>
    %9 = vector.shape_cast %8 : vector<1x288x4xbf16> to vector<288x4xbf16>
    %c0_10 = arith.constant 0 : index
    %c20 = arith.constant 20 : index
    %c0_11 = arith.constant 0 : index
    %10 = vector.load %arg1[%c0_10, %c20, %c0_11] : memref<1x342x4xbf16, #tpu.memory_space<vmem>>, vector<1x288x4xbf16>
    %11 = vector.shape_cast %10 : vector<1x288x4xbf16> to vector<288x4xbf16>
    %c0_12 = arith.constant 0 : index
    %c36 = arith.constant 36 : index
    %c0_13 = arith.constant 0 : index
    %12 = vector.load %arg1[%c0_12, %c36, %c0_13] : memref<1x342x4xbf16, #tpu.memory_space<vmem>>, vector<1x288x4xbf16>
    %13 = vector.shape_cast %12 : vector<1x288x4xbf16> to vector<288x4xbf16>
    %c0_14 = arith.constant 0 : index
    %c37 = arith.constant 37 : index
    %c0_15 = arith.constant 0 : index
    %14 = vector.load %arg1[%c0_14, %c37, %c0_15] : memref<1x342x4xbf16, #tpu.memory_space<vmem>>, vector<1x288x4xbf16>
    %15 = vector.shape_cast %14 : vector<1x288x4xbf16> to vector<288x4xbf16>
    %c0_16 = arith.constant 0 : index
    %c38 = arith.constant 38 : index
    %c0_17 = arith.constant 0 : index
    %16 = vector.load %arg1[%c0_16, %c38, %c0_17] : memref<1x342x4xbf16, #tpu.memory_space<vmem>>, vector<1x288x4xbf16>
    %17 = vector.shape_cast %16 : vector<1x288x4xbf16> to vector<288x4xbf16>
    %18 = tpu.concatenate %1, %3, %5, %7, %9, %11, %13, %15, %17 in 1 : vector<288x4xbf16>, vector<288x4xbf16>, vector<288x4xbf16>, vector<288x4xbf16>, vector<288x4xbf16>, vector<288x4xbf16>, vector<288x4xbf16>, vector<288x4xbf16>, vector<288x4xbf16> -> vector<288x36xbf16>
    %c0_18 = arith.constant 0 : index
    %c0_19 = arith.constant 0 : index
    %19 = vector.load %arg2[%c0_18, %c0_19] : memref<36x8xbf16, #tpu.memory_space<vmem>>, vector<36x8xbf16>
    %cst = arith.constant dense<0.000000e+00> : vector<288x8xf32>
    %20 = tpu.matmul %18, %19, %cst {dimension_numbers = #tpu.dot_dimension_numbers<[1], [0], [0], [1], [0, 0, 1, 1], [], []>} : vector<288x36xbf16>, vector<36x8xbf16>, vector<288x8xf32> -> vector<288x8xf32>
    %c0_20 = arith.constant 0 : index
    %c0_21 = arith.constant 0 : index
    %21 = vector.load %arg3[%c0_20, %c0_21] : memref<1x8xf32, #tpu.memory_space<vmem>>, vector<1x8xf32>
    %22 = vector.broadcast %21 : vector<1x8xf32> to vector<288x8xf32>
    %23 = arith.addf %20, %22 : vector<288x8xf32>
    %cst_22 = arith.constant 0.000000e+00 : f32
    %24 = vector.broadcast %cst_22 : f32 to vector<288x8xf32>
    %25 = arith.maximumf %23, %24 : vector<288x8xf32>
    %26 = tpu.iota {dimensions = array<i32: 0>} : vector<288x1xi32>
    %c18_i32 = arith.constant 18 : i32
    %c0_i32 = arith.constant 0 : i32
    %27 = arith.cmpi eq, %c18_i32, %c0_i32 : i32
    %c1_i32 = arith.constant 1 : i32
    %28 = arith.select %27, %c1_i32, %c18_i32 : i32
    %29 = vector.broadcast %28 : i32 to vector<288x1xi32>
    %30 = arith.remsi %26, %29 : vector<288x1xi32>
    %c0_i32_23 = arith.constant 0 : i32
    %31 = vector.broadcast %c0_i32_23 : i32 to vector<288x1xi32>
    %32 = arith.cmpi ne, %30, %31 : vector<288x1xi32>
    %c0_i32_24 = arith.constant 0 : i32
    %33 = vector.broadcast %c0_i32_24 : i32 to vector<288x1xi32>
    %34 = arith.cmpi slt, %30, %33 : vector<288x1xi32>
    %c0_i32_25 = arith.constant 0 : i32
    %35 = arith.cmpi slt, %28, %c0_i32_25 : i32
    %36 = vector.broadcast %35 : i1 to vector<288x1xi1>
    %37 = vector.broadcast %36 : vector<288x1xi1> to vector<288x1xi1>
    %38 = arith.xori %34, %37 : vector<288x1xi1>
    %39 = arith.andi %38, %32 : vector<288x1xi1>
    %40 = vector.broadcast %28 : i32 to vector<288x1xi32>
    %41 = arith.addi %30, %40 : vector<288x1xi32>
    %42 = arith.select %39, %41, %30 : vector<288x1xi1>, vector<288x1xi32>
    %c16_i32 = arith.constant 16 : i32
    %43 = vector.broadcast %c16_i32 : i32 to vector<288x1xi32>
    %44 = arith.cmpi slt, %42, %43 : vector<288x1xi32>
    %cst_26 = arith.constant 0.000000e+00 : f32
    %45 = vector.shape_cast %44 : vector<288x1xi1> to vector<288x1xi1>
    %46 = vector.broadcast %45 : vector<288x1xi1> to vector<288x8xi1>
    %47 = vector.broadcast %cst_26 : f32 to vector<288x8xf32>
    %48 = arith.select %46, %25, %47 : vector<288x8xi1>, vector<288x8xf32>
    %cst_27 = arith.constant 0.000000e+00 : bf16
    %49 = vector.broadcast %cst_27 : bf16 to vector<19x8xbf16>
    %c0_28 = arith.constant 0 : index
    %c0_29 = arith.constant 0 : index
    %50 = vector.load %arg7[%c0_28, %c0_29] : memref<342x8xbf16, #tpu.memory_space<vmem>>, vector<19x8xbf16>
    tpu.vector_store %arg7[%c0_28, %c0_29], %49 {strides = array<i32>} : memref<342x8xbf16, #tpu.memory_space<vmem>>, vector<19x8xbf16>,
    %cst_30 = arith.constant 0.000000e+00 : bf16
    %51 = vector.broadcast %cst_30 : bf16 to vector<35x8xbf16>
    %c307 = arith.constant 307 : index
    %c0_31 = arith.constant 0 : index
    %52 = vector.load %arg7[%c307, %c0_31] : memref<342x8xbf16, #tpu.memory_space<vmem>>, vector<35x8xbf16>
    tpu.vector_store %arg7[%c307, %c0_31], %51 {strides = array<i32>} : memref<342x8xbf16, #tpu.memory_space<vmem>>, vector<35x8xbf16>,
    %53 = arith.truncf %48 : vector<288x8xf32> to vector<288x8xbf16>
    %c19_32 = arith.constant 19 : index
    %c0_33 = arith.constant 0 : index
    %54 = vector.load %arg7[%c19_32, %c0_33] : memref<342x8xbf16, #tpu.memory_space<vmem>>, vector<288x8xbf16>
    tpu.vector_store %arg7[%c19_32, %c0_33], %53 {strides = array<i32>} : memref<342x8xbf16, #tpu.memory_space<vmem>>, vector<288x8xbf16>,
    %c0_34 = arith.constant 0 : index
    %c0_35 = arith.constant 0 : index
    %55 = vector.load %arg7[%c0_34, %c0_35] : memref<342x8xbf16, #tpu.memory_space<vmem>>, vector<288x8xbf16>
    %c1_36 = arith.constant 1 : index
    %c0_37 = arith.constant 0 : index
    %56 = vector.load %arg7[%c1_36, %c0_37] : memref<342x8xbf16, #tpu.memory_space<vmem>>, vector<288x8xbf16>
    %c2_38 = arith.constant 2 : index
    %c0_39 = arith.constant 0 : index
    %57 = vector.load %arg7[%c2_38, %c0_39] : memref<342x8xbf16, #tpu.memory_space<vmem>>, vector<288x8xbf16>
    %c18_40 = arith.constant 18 : index
    %c0_41 = arith.constant 0 : index
    %58 = vector.load %arg7[%c18_40, %c0_41] : memref<342x8xbf16, #tpu.memory_space<vmem>>, vector<288x8xbf16>
    %c19_42 = arith.constant 19 : index
    %c0_43 = arith.constant 0 : index
    %59 = vector.load %arg7[%c19_42, %c0_43] : memref<342x8xbf16, #tpu.memory_space<vmem>>, vector<288x8xbf16>
    %c20_44 = arith.constant 20 : index
    %c0_45 = arith.constant 0 : index
    %60 = vector.load %arg7[%c20_44, %c0_45] : memref<342x8xbf16, #tpu.memory_space<vmem>>, vector<288x8xbf16>
    %c36_46 = arith.constant 36 : index
    %c0_47 = arith.constant 0 : index
    %61 = vector.load %arg7[%c36_46, %c0_47] : memref<342x8xbf16, #tpu.memory_space<vmem>>, vector<288x8xbf16>
    %c37_48 = arith.constant 37 : index
    %c0_49 = arith.constant 0 : index
    %62 = vector.load %arg7[%c37_48, %c0_49] : memref<342x8xbf16, #tpu.memory_space<vmem>>, vector<288x8xbf16>
    %c38_50 = arith.constant 38 : index
    %c0_51 = arith.constant 0 : index
    %63 = vector.load %arg7[%c38_50, %c0_51] : memref<342x8xbf16, #tpu.memory_space<vmem>>, vector<288x8xbf16>
    %64 = tpu.concatenate %55, %56, %57, %58, %59, %60, %61, %62, %63 in 1 : vector<288x8xbf16>, vector<288x8xbf16>, vector<288x8xbf16>, vector<288x8xbf16>, vector<288x8xbf16>, vector<288x8xbf16>, vector<288x8xbf16>, vector<288x8xbf16>, vector<288x8xbf16> -> vector<288x72xbf16>
    %c0_52 = arith.constant 0 : index
    %c0_53 = arith.constant 0 : index
    %65 = vector.load %arg4[%c0_52, %c0_53] : memref<72x8xbf16, #tpu.memory_space<vmem>>, vector<72x8xbf16>
    %cst_54 = arith.constant dense<0.000000e+00> : vector<288x8xf32>
    %66 = tpu.matmul %64, %65, %cst_54 {dimension_numbers = #tpu.dot_dimension_numbers<[1], [0], [0], [1], [0, 0, 1, 1], [], []>} : vector<288x72xbf16>, vector<72x8xbf16>, vector<288x8xf32> -> vector<288x8xf32>
    %c0_55 = arith.constant 0 : index
    %c0_56 = arith.constant 0 : index
    %67 = vector.load %arg5[%c0_55, %c0_56] : memref<1x8xf32, #tpu.memory_space<vmem>>, vector<1x8xf32>
    %68 = vector.broadcast %67 : vector<1x8xf32> to vector<288x8xf32>
    %69 = arith.addf %66, %68 : vector<288x8xf32>
    %cst_57 = arith.constant 0.000000e+00 : f32
    %70 = vector.broadcast %cst_57 : f32 to vector<288x8xf32>
    %71 = arith.maximumf %69, %70 : vector<288x8xf32>
    %72 = vector.shape_cast %71 : vector<288x8xf32> to vector<8x2x9x2x8xf32>
    %cst_58 = arith.constant dense<0xFF800000> : vector<8x2x9x8xf32>
    %73 = vector.multi_reduction <maximumf>, %72, %cst_58 [3] : vector<8x2x9x2x8xf32> to vector<8x2x9x8xf32>
    %cst_59 = arith.constant dense<0xFF800000> : vector<8x9x8xf32>
    %74 = vector.multi_reduction <maximumf>, %73, %cst_59 [1] : vector<8x2x9x8xf32> to vector<8x9x8xf32>
    %75 = vector.extract_strided_slice %74 {offsets = [0, 0, 0], sizes = [8, 8, 8], strides = [1, 1, 1]} : vector<8x9x8xf32> to vector<8x8x8xf32>
    %c0_60 = arith.constant 0 : index
    %c0_61 = arith.constant 0 : index
    %c0_62 = arith.constant 0 : index
    %c0_63 = arith.constant 0 : index
    %76 = vector.load %arg6[%c0_60, %c0_61, %c0_62, %c0_63] : memref<1x8x8x8xf32, #tpu.memory_space<vmem>>, vector<1x8x8x8xf32>
    %77 = vector.shape_cast %76 : vector<1x8x8x8xf32> to vector<8x8x8xf32>
    %78 = vector.shape_cast %75 : vector<8x8x8xf32> to vector<1x8x8x8xf32>
    tpu.vector_store %arg6[%c0_60, %c0_61, %c0_62, %c0_63], %78 {strides = array<i32>} : memref<1x8x8x8xf32, #tpu.memory_space<vmem>>, vector<1x8x8x8xf32>,
    return
  }
  func.func @transform_0(%arg0: i32) -> (i32, i32, i32) {
    %c0_i32 = arith.constant 0 : i32
    %c0_i32_0 = arith.constant 0 : i32
    %c0_i32_1 = arith.constant 0 : i32
    return %arg0, %c0_i32, %c0_i32_0 : i32, i32, i32
  }
  func.func @transform_1(%arg0: i32) -> (i32, i32) {
    %c0_i32 = arith.constant 0 : i32
    %c0_i32_0 = arith.constant 0 : i32
    %c0_i32_1 = arith.constant 0 : i32
    return %c0_i32, %c0_i32_0 : i32, i32
  }
  func.func @transform_2(%arg0: i32) -> (i32, i32) {
    %c0_i32 = arith.constant 0 : i32
    %c0_i32_0 = arith.constant 0 : i32
    %c0_i32_1 = arith.constant 0 : i32
    return %c0_i32, %c0_i32_0 : i32, i32
  }
  func.func @transform_3(%arg0: i32) -> (i32, i32) {
    %c0_i32 = arith.constant 0 : i32
    %c0_i32_0 = arith.constant 0 : i32
    %c0_i32_1 = arith.constant 0 : i32
    return %c0_i32, %c0_i32_0 : i32, i32
  }
  func.func @transform_4(%arg0: i32) -> (i32, i32) {
    %c0_i32 = arith.constant 0 : i32
    %c0_i32_0 = arith.constant 0 : i32
    %c0_i32_1 = arith.constant 0 : i32
    return %c0_i32, %c0_i32_0 : i32, i32
  }
  func.func @transform_5(%arg0: i32) -> (i32, i32, i32, i32) {
    %c0_i32 = arith.constant 0 : i32
    %c0_i32_0 = arith.constant 0 : i32
    %c0_i32_1 = arith.constant 0 : i32
    %c0_i32_2 = arith.constant 0 : i32
    return %arg0, %c0_i32, %c0_i32_0, %c0_i32_1 : i32, i32, i32, i32
  }
}

</mosaic_0001>

<bundles_post_ra>
// kernel: tpu_custom_call.1
= control target key start
LH: loop header
LB: loop body
LE: loop exit
PB: predicated region body
PF: predicated region fallthrough
CT: control target
= control target key end

     0   :  { %10 = vsyncpa [#allocation4], 0  ;;  %s11876_s0 = inlined_call_operand.vmem [shape: bf16[2,342,4], index: 0, kind: input, shape index: {}]   ;;  %s11877_s1 = inlined_call_operand.vmem [shape: bf16[36,8], index: 1, kind: input, shape index: {}]   ;;  %s11878_s2 = inlined_call_operand.vmem [shape: f32[1,8], index: 2, kind: input, shape index: {}]   ;;  %s11879_s3 = inlined_call_operand.vmem [shape: bf16[72,8], index: 3, kind: input, shape index: {}]   ;;  %s11880_s4 = inlined_call_operand.vmem [shape: f32[1,8], index: 4, kind: input, shape index: {}]   ;;  %s11881_s5 = inlined_call_operand.hbm [shape: f32[2,8,8,8], index: 5, kind: output, shape index: {}]  }
   0x1   :  { %12 = vsyncpa [#allocation4 + $0x1], 0  ;;  %s7279_s18 = smov 0   ;;  %s7281_s19 = smov 0  }
   0x2   :  { %s7283_s20 = smov 0   ;;  %s7285_s21 = smov 0  }
   0x3 LB: > { %s7300_s22 = sadd.s32 4294967295, %s7231_s21   ;;  %s6634_s23 = sadd.s32 4294967294, %s7231_s21   ;;  %s7231_s21 = sphi %s7285_s21, %s12584_s21   ;;  %s7227_s20 = sphi %s7283_s20, %s12583_s20   ;;  %s7223_s19 = sphi %s7281_s19, %s12582_s19   ;;  %s7219_s18 = sphi %s7279_s18, %s12581_s18  }
   0x4   : > { %s7304_s24 = sadd.s32 1, %s7231_s21   ;;  %s135_s25 = sadd.s32 1, %s7227_s20 }
   0x5   : > { %s132_s26 = ssub.s32 %s7231_s21, %s7304_s24  ;;  %p145_p0 = scmp.ne.s32.totalorder %s7227_s20, %s7223_s19 }
   0x6   : > { %p133_p1 = scmp.eq.s32.totalorder %s132_s26, 0  ;;  %p146_p2 = scmp.eq.s32.totalorder %s7300_s22, 1 }
   0x7   : > { %p151_p3 = scmp.ne.s32.totalorder %s7223_s19, %s7219_s18  ;;  %p152_p4 = scmp.eq.s32.totalorder %s6634_s23, 1 }
   0x8   : > { %s7315_s27 = scalar_select %p133_p1, %s7227_s20, %s135_s25  }
   0x9   : > { %p7317_p5 = por %p146_p2, %p145_p0  ;;  %p7321_p6 = por %p152_p4, %p151_p3 }
   0xa   : > { %p6637_p7 = scmp.ge.s32.totalorder %s7231_s21, 1  ;;  %p190_p8 = scmp.lt.s32.totalorder %s7231_s21, 3 }
   0xc   : > { %p191_p9 = pnand %p6637_p7, %p190_p8 }
   0xd   : > { %p218_p10 = scmp.lt.s32.totalorder (!%p191_p9), %s7300_s22, 1  ;;  %vm11891_vm0 = vcmask (!%p191_p9), 1046528   ;;  %vm11890_vm1 = vcmask (!%p191_p9), 1045504   ;;  %vm11888_vm2 = vsmask.f32 (!%p191_p9), 7424  ;;  %s7233_s10 = smov (!%p191_p9), 12  }
   0xe   : > { %194 = sbr.rel (%p191_p9) target bundleno = 1213 (0x4bd), region = 40  ;;  %s7234_s11 = smov (!%p191_p9), 8   ;;  %vm11882_vm3 = vsmask.f32 (!%p191_p9), 6400  ;;  %v7101_v59 = vld [vmem:[%s11877_s1] sm:$0xff] (!%p191_p9)   ;;  %vm11889_vm5 = vcmask (!%p191_p9), 1044480  }
   0xf   : > { %s7235_s12 = smov (!%p191_p9), 20   ;;  %s7236_s13 = smov (!%p191_p9), 4   ;;  %6868 = vmatprep.subr.bf16.mxu0 (!%p191_p9), %v7101_v59  ;;  %vm11887_vm4 = vsmask.f32 (!%p191_p9), 5376  ;;  %vm1509_vm6 = vcmask (!%p191_p9), 1041408   ;;  %vm1149_vm7 = vcmask (!%p191_p9), 31744  }
  0x10   : > { %6869 = vmatpush3.bf16.msra.mxu0 (!%p191_p9), %v7101_v59  ;;  %s7237_s23 = smov (!%p191_p9), 16   ;;  %s7238_s25 = smov (!%p191_p9), 24   ;;  %vm11883_vm8 = vcmask (!%p191_p9), 64512   ;;  %vm1223_vm9 = vcmask (!%p191_p9), 97280   ;;  %vm1260_vm10 = vcmask (!%p191_p9), 130048   ;;  %vm11896_vm11 = vcmask (!%p191_p9), 162816  }
  0x11   : > { %s7239_s26 = smov (!%p191_p9), 28   ;;  %vm11895_vm12 = vcmask (!%p191_p9), 195584   ;;  %vm11894_vm13 = vcmask (!%p191_p9), 228352   ;;  %vm11893_vm14 = vcmask (!%p191_p9), 261120   ;;  %vm11886_vm15 = vcmask (!%p191_p9), 293888   ;;  %s7243_s14 = smov (!%p191_p9), 48  }
  0x12   : > { %s7244_s15 = smov (!%p191_p9), 64  }
  0x15   : > { %s219_s30 = scalar_select %p218_p10, %s7300_s22, 1 }
  0x17   : > { %s6958_s6 = smul.u32 172, %s219_s30  ;;  %s7240_s30 = smov 32  }
  0x19   : > { %s7332_s9 = scalar_lea.vmem %s11876_s0, %s6958_s6 }
  0x1a   : > { %v227_v0 = vld [vmem:[%s7332_s9 + $0xc] sm:$0xf]  ;;  %v228_v1 = vld [vmem:[%s7332_s9 + $0x10] sm:$0xf]  ;;  %v7337_v2 = vld [vmem:[%s7332_s9 + $0x14] sm:$0xf] }
  0x1b   : > { %v262_v3 = vld [vmem:[%s7332_s9 + $0x8] sm:$0xe]  ;;  %v7341_v4 = vcombine.low %v228_v1, %v7337_v2  ;;  %v225_v5 = vld [vmem:[%s7332_s9 + $0x4] sm:$0xf]  ;;  %v261_v8 = vld [vmem:[%s7332_s9] sm:$0xe] }
  0x1c   : > { %v226_v6 = vld [vmem:[%s7332_s9 + $0x8] sm:$0xf]  ;;  %v6660_v7 = vcombine.low %v262_v3, %v227_v0  ;;  %v224_v10 = vld [vmem:[%s7332_s9] sm:$0xf]  ;;  %v6659_v13 = vcombine.low %v261_v8, %v225_v5  ;;  %v7354_v16 = vld [vmem:[%s7332_s9 + $0x18] sm:$0xff]  }
  0x1d   : > { %v7346_v9 = vcombine.low %v226_v6, %v227_v0  ;;  %v267_v11 = vld [vmem:[%s7332_s9 + $0x8] sm:$0xc]  ;;  %v559_v12 = vrot.slane %v7341_v4, 1  ;;  %v7351_v14 = vcombine.low %v224_v10, %v225_v5  ;;  %v817_v19 = vrot.slane %v7341_v4, 2  ;;  %v268_v34 = vld [vmem:[%s7332_s9 + $0x10] sm:$0xc] }
  0x1e   : > { %v6664_v15 = vcombine.low %v267_v11, %v227_v0  ;;  %v640_v17 = vrot.slane %v6660_v7, 1  ;;  %v556_v21 = vrot.slane %v6659_v13, 1  ;;  %v561_v28 = vrot.slane %v7354_v16, 1  ;;  %v7385_v45 = vld [vmem:[%s7332_s9 + $0x20] sm:$0xff]   ;;  %v7103_v1 = vld [vmem:[%s11877_s1 + $0x8] sm:$0xff]  }
  0x1f   : > { %v557_v18 = vrot.slane %v7346_v9, 1  ;;  %v376_v20 = vshll.u32 %v7346_v9, 16  ;;  %v369_v24 = vshrl.u32 %v7351_v14, 16  ;;  %v371_v25 = vshll.u32 %v7351_v14, 16  ;;  %v273_v6 = vld [vmem:[%s7332_s9 + $0x10] sm:$0x8]  ;;  %6870 = vmatprep.subr.bf16.mxu0 %v7103_v1 }
  0x20   : > { %v816_v22 = vrot.slane %v6664_v15, 2  ;;  %v641_v23 = vsel %vm11891_vm0, %v640_v17, %v559_v12  ;;  %v380_v31 = vshrl.u32 %v7346_v9, 16  ;;  %v384_v32 = vshll.u32 %v7341_v4, 16  ;;  %6871 = vmatpush3.bf16.msra.mxu0 %v7103_v1 }
  0x21   : > { %646 = vrot.lane.b32.xlu0 %v641_v23, %s7233_s10  ;;  %v558_v26 = vsel %vm11891_vm0, %v556_v21, %v557_v18  ;;  %v378_v29 = vrot.slane %v376_v20, 1  ;;  %v373_v30 = vrot.slane %v371_v25, 1  ;;  %v388_v33 = vshrl.u32 %v7341_v4, 16 }
  0x22   : > { %v818_v27 = vsel %vm11890_vm1, %v816_v22, %v817_v19  ;;  %593 = vrot.lane.b32.xlu1 %v558_v26, %s7234_s11  ;;  %v560_v35 = vsel %vm11891_vm0, %v557_v18, %v559_v12  ;;  %v7373_v36 = vshll.u32 %v7354_v16, 16  ;;  %v7376_v37 = vshrl.u32 %v7354_v16, 16 }
  0x23   : > { %v687_v38 = vshrl.u32 %v6660_v7, 16  ;;  %v374_v39 = vor.u32 %v373_v30, %v369_v24  ;;  %v819_v40 = vrot.slane %v7354_v16, 2  ;;  %v382_v41 = vor.u32 %v380_v31, %v378_v29 }
  0x24   : > { %v7380_v42 = vrot.slane %v384_v32, 1  ;;  %v694_v43 = vrot.slane %v388_v33, 1  ;;  %v695_v44 = vrot.slane %v384_v32, 2  ;;  %v690_v48 = vshll.u32 %v6660_v7, 16 }
  0x25   : > { %853 = vrot.lane.b32.xlu0 %v818_v27, %s7235_s12  ;;  %v379_v46 = vsel %vm11888_vm2, %v374_v39, %v378_v29  ;;  %v689_v47 = vrot.slane %v687_v38, 1  ;;  %v7392_v49 = vsel %vm11891_vm0, %v559_v12, %v561_v28  ;;  %v698_v50 = vrot.slane %v7376_v37, 1 }
  0x26   : > { %595 = vrot.lane.b32.xlu1 %v560_v35, %s7234_s11  ;;  %v699_v51 = vrot.slane %v7373_v36, 2  ;;  %v6665_v52 = vcombine.low %v268_v34, %v7337_v2  ;;  %v692_v53 = vrot.slane %v690_v48, 2  ;;  %v387_v54 = vsel %vm11888_vm2, %v382_v41, %v7380_v42  ;;  %v7455_v35 = vld [vmem:[%s7332_s9 + $0x28] sm:$0xff]  }
  0x27   : > { %v696_v55 = vor.u32 %v695_v44, %v694_v43  ;;  %v820_v60 = vsel %vm11890_vm1, %v817_v19, %v819_v40  ;;  %v7409_v62 = vshll.u32 %v7385_v45, 16  ;;  %v7412_v63 = vshrl.u32 %v7385_v45, 16 }
  0x28   : > { %v693_v56 = vor.u32 %v692_v53, %v689_v47  ;;  %v947_v57 = vshrl.u32 %v6665_v52, 16  ;;  %v950_v58 = vshll.u32 %v6665_v52, 16  ;;  %v7406_v61 = vor.u32 %v699_v51, %v698_v50  ;;  %v7479_v51 = vld [vmem:[%s7332_s9 + $0x30] sm:$0xff]  }
  0x29   : > { %516 = vrot.lane.b32.xlu0 %v379_v46, %s7236_s13  ;;  %v954_v0 = vrot.slane %v7376_v37, 2  ;;  %v900_v3 = vrot.slane %v6665_v52, 2  ;;  %v955_v5 = vrot.slane %v7373_v36, 3  ;;  %v821_v12 = vrot.slane %v7385_v45, 2 }
  0x2a   : > { %648 = vrot.lane.b32.xlu1 %v7392_v49, %s7233_s10  ;;  %v697_v7 = vsel %vm11882_vm3, %v693_v56, %v696_v55  ;;  %v949_v8 = vrot.slane %v947_v57, 2  ;;  %v952_v10 = vrot.slane %v950_v58, 3  ;;  %v701_v11 = vsel %vm11882_vm3, %v696_v55, %v7406_v61  ;;  %v7104_v55 = vld [vmem:[%s11877_s1 + $0x10] ss:$0 sps:$4 sm:$0x33]  }
  0x2b   : > { %v958_v13 = vrot.slane %v7412_v63, 2  ;;  %v959_v15 = vrot.slane %v7409_v62, 3  ;;  %v901_v17 = vsel %vm11890_vm1, %v900_v3, %v819_v40  ;;  %v956_v18 = vor.u32 %v955_v5, %v954_v0  ;;  %6956 = vmatprep.subr.msk.bf16.mxu0 %vm1509_vm6, %v7104_v55 }
  0x2c   : > { %v953_v19 = vor.u32 %v952_v10, %v949_v8  ;;  %v6669_v20 = vcombine.low %v273_v6, %v7337_v2  ;;  %v822_v21 = vsel %vm11890_vm1, %v819_v40, %v821_v12  ;;  %v1077_v25 = vrot.slane %v7354_v16, 3 }
  0x2d   : > { %518 = vrot.lane.b32.xlu0 %v387_v54, %s7236_s13  ;;  %v7435_v22 = vor.u32 %v959_v15, %v958_v13  ;;  %v390_v26 = vor.u32 %v388_v33, %v7380_v42  ;;  %v394_v27 = vrot.slane %v7373_v36, 1  ;;  %v1079_v30 = vrot.slane %v7385_v45, 3 }
  0x2e   : > { %855 = vrot.lane.b32.xlu1 %v820_v60, %s7235_s12  ;;  %v957_v23 = vsel %vm11887_vm4, %v953_v19, %v956_v18  ;;  %v1076_v24 = vrot.slane %v6669_v20, 3  ;;  %v402_v34 = vrot.slane %v7409_v62, 1  ;;  %v563_v38 = vrot.slane %v7385_v45, 1 }
  0x2f   : > { %v961_v2 = vsel %vm11887_vm4, %v956_v18, %v7435_v22  ;;  %v395_v31 = vsel %vm11888_vm2, %v390_v26, %v394_v27  ;;  %v398_v32 = vor.u32 %v7376_v37, %v394_v27  ;;  %v1080_v33 = vsel %vm11889_vm5, %v1077_v25, %v1079_v30  ;;  %v7522_v18 = vld [vmem:[%s7332_s9 + $0x38] sm:$0xff]  }
  0x30   : > { %v1078_v29 = vsel %vm11889_vm5, %v1076_v24, %v1077_v25  ;;  %v408_v39 = vshll.u32 %v7455_v35, 16  ;;  %v412_v37 = vshrl.u32 %v7455_v35, 16  ;;  %v702_v40 = vrot.slane %v7412_v63, 1 }
  0x31   : > { %776 = vrot.lane.b32.xlu0 %v697_v7, %s7237_s23  ;;  %v403_v36 = vsel %vm11888_vm2, %v398_v32, %v402_v34  ;;  %v703_v41 = vrot.slane %v7409_v62, 2  ;;  %v564_v42 = vsel %vm11891_vm0, %v561_v28, %v563_v38  ;;  %v565_v43 = vrot.slane %v7455_v35, 1  ;;  %v7541_v32 = vld [vmem:[%s7332_s9 + $0x40] sm:$0xff]  }
  0x32   : > { %778 = vrot.lane.b32.xlu1 %v701_v11, %s7237_s23  ;;  %v706_v44 = vrot.slane %v412_v37, 1  ;;  %v707_v46 = vrot.slane %v408_v39, 2  ;;  %v7489_v53 = vshll.u32 %v7479_v51, 16  ;;  %v7492_v54 = vshrl.u32 %v7479_v51, 16 }
  0x33   : > { %v704_v47 = vor.u32 %v703_v41, %v702_v40  ;;  %v566_v48 = vsel %vm11891_vm0, %v563_v38, %v565_v43  ;;  %v962_v56 = vrot.slane %v412_v37, 2  ;;  %v963_v57 = vrot.slane %v408_v39, 3 }
  0x34   : > { %v7476_v50 = vor.u32 %v707_v46, %v706_v44  ;;  %v825_v59 = vrot.slane %v7479_v51, 2  ;;  %v966_v60 = vrot.slane %v7492_v54, 2  ;;  %v1511_v0 = vsel %vm1509_vm6, %v7104_v55, 0 }
  0x35   : > { %906 = vrot.lane.b32.xlu0 %v901_v17, %s7238_s25  ;;  %v705_v28 = vsel %vm11882_vm3, %v7406_v61, %v704_v47  ;;  %v967_v61 = vrot.slane %v7489_v53, 3  ;;  %v964_v62 = vor.u32 %v963_v57, %v962_v56  ;;  %6873 = vmatpush3.bf16.msra.mxu0 %v1511_v0  ;;  %v1081_v6 = vrot.slane %v7455_v35, 3 }
  0x36   : > { %908 = vrot.lane.b32.xlu1 %v822_v21, %s7238_s25  ;;  %v709_v52 = vsel %vm11882_vm3, %v704_v47, %v7476_v50  ;;  %v406_v8 = vor.u32 %v7412_v63, %v402_v34  ;;  %v410_v10 = vrot.slane %v408_v39, 1  ;;  %v418_v17 = vrot.slane %v7489_v53, 1 }
  0x37   : > { %v968_v3 = vor.u32 %v967_v61, %v966_v60  ;;  %v965_v5 = vsel %vm11887_vm4, %v7435_v22, %v964_v62  ;;  %v1082_v11 = vsel %vm11889_vm5, %v1079_v30, %v1081_v6  ;;  %v567_v20 = vrot.slane %v7479_v51, 1  ;;  %v7577_v60 = vld [vmem:[%s7332_s9 + $0x48] sm:$0xff]  }
  0x38   : > { %v411_v13 = vsel %vm11888_vm2, %v406_v8, %v410_v10  ;;  %v414_v15 = vor.u32 %v412_v37, %v410_v10  ;;  %v428_v22 = vshrl.u32 %v7522_v18, 16  ;;  %v711_v24 = vrot.slane %v7489_v53, 2 }
  0x39   : > { %1036 = vrot.lane.b32.xlu0 %v957_v23, %s7239_s26  ;;  %v969_v7 = vsel %vm11887_vm4, %v964_v62, %v968_v3  ;;  %v710_v23 = vrot.slane %v7492_v54, 1  ;;  %v568_v25 = vsel %vm11891_vm0, %v565_v43, %v567_v20  ;;  %v7550_v38 = vshll.u32 %v7541_v32, 16 }
  0x3a   : > { %1038 = vrot.lane.b32.xlu1 %v961_v2, %s7239_s26  ;;  %v419_v19 = vsel %vm11888_vm2, %v414_v15, %v418_v17  ;;  %v569_v2 = vrot.slane %v7522_v18, 1  ;;  %v714_v26 = vrot.slane %v428_v22, 1  ;;  %v7553_v39 = vshrl.u32 %v7541_v32, 16  ;;  %v7602_v15 = vld [vmem:[%s7332_s9 + $0x50] sm:$0xff]  }
  0x3b   : > { %v970_v37 = vrot.slane %v428_v22, 2  ;;  %v975_v44 = vrot.slane %v7550_v38, 3  ;;  %v1087_v56 = vrot.slane %v7541_v32, 3  ;;  %v571_v62 = vrot.slane %v7541_v32, 1 }
  0x3c   : > { %v570_v30 = vsel %vm11891_vm0, %v567_v20, %v569_v2  ;;  %v974_v43 = vrot.slane %v7553_v39, 2  ;;  %v440_v0 = vshll.u32 %v7577_v60, 16  ;;  %v7612_v20 = vshll.u32 %v7602_v15, 16 }
  0x3d   : > { %1113 = vrot.lane.b32.xlu0 %v1078_v29, %s7240_s30  ;;  %v712_v29 = vor.u32 %v711_v24, %v710_v23  ;;  %vm11884_vm6 = vcmask 58368  }
  0x3e   : > { %520 = vrot.lane.b32.xlu1 %v395_v31, %s7236_s13  ;;  %v723_v10 = vrot.slane %v440_v0, 2  ;;  %v979_v23 = vrot.slane %v440_v0, 3 }
  0x3f   : > { %v713_v34 = vsel %vm11882_vm3, %v7476_v50, %v712_v29 }
  0x41   : > { %1115 = vrot.lane.b32.xlu0 %v1080_v33, %s7240_s30 }
  0x42   : > { %522 = vrot.lane.b32.xlu1 %v403_v36, %s7236_s13  ;;  %v827_v36 = vrot.slane %v7522_v18, 2 }
  0x44   : > { %v828_v41 = vsel %vm11890_vm1, %v825_v59, %v827_v36 }
  0x45   : > { %597 = vrot.lane.b32.xlu0 %v7392_v49, %s7234_s11  ;;  %v823_v49 = vrot.slane %v7455_v35, 2 }
  0x46   : > { %599 = vrot.lane.b32.xlu1 %v564_v42, %s7234_s11 }
  0x47   : > { %v824_v58 = vsel %vm11890_vm1, %v821_v12, %v823_v49  ;;  %v826_v1 = vsel %vm11890_vm1, %v823_v49, %v825_v59  ;;  %v1083_v12 = vrot.slane %v7479_v51, 3  ;;  %v422_v49 = vor.u32 %v7492_v54, %v418_v17 }
  0x48   : > { %v434_v59 = vrot.slane %v7550_v38, 1 }
  0x49   : > { %650 = vrot.lane.b32.xlu0 %v564_v42, %s7233_s10  ;;  %v1084_v63 = vsel %vm11889_vm5, %v1081_v6, %v1083_v12  ;;  %v829_v42 = vrot.slane %v7541_v32, 2  ;;  %v572_v6 = vsel %vm11891_vm0, %v569_v2, %v571_v62 }
  0x4a   : > { %652 = vrot.lane.b32.xlu1 %v566_v48, %s7233_s10 }
  0x4b   : > { %v830_v47 = vsel %vm11890_vm1, %v827_v36, %v829_v42 }
  0x4d   : > { %780 = vrot.lane.b32.xlu0 %v705_v28, %s7237_s23  ;;  %v1085_v28 = vrot.slane %v7522_v18, 3 }
  0x4e   : > { %782 = vrot.lane.b32.xlu1 %v709_v52, %s7237_s23 }
  0x4f   : > { %v1086_v55 = vsel %vm11889_vm5, %v1083_v12, %v1085_v28  ;;  %v1088_v54 = vsel %vm11889_vm5, %v1085_v28, %v1087_v56 }
  0x51   : > { %857 = vrot.lane.b32.xlu0 %v822_v21, %s7235_s12  ;;  %v424_v21 = vshll.u32 %v7522_v18, 16 }
  0x52   : > { %859 = vrot.lane.b32.xlu1 %v824_v58, %s7235_s12 }
  0x53   : > { %v715_v27 = vrot.slane %v424_v21, 2  ;;  %v971_v40 = vrot.slane %v424_v21, 3  ;;  %v426_v53 = vrot.slane %v424_v21, 1  ;;  %v7615_v21 = vshrl.u32 %v7602_v15, 16 }
  0x55   : > { %910 = vrot.lane.b32.xlu0 %v824_v58, %s7238_s25  ;;  %v716_v31 = vor.u32 %v715_v27, %v714_v26  ;;  %v972_v46 = vor.u32 %v971_v40, %v970_v37  ;;  %v427_v57 = vsel %vm11888_vm2, %v422_v49, %v426_v53  ;;  %v430_v58 = vor.u32 %v428_v22, %v426_v53 }
  0x56   : > { %912 = vrot.lane.b32.xlu1 %v826_v1, %s7238_s25  ;;  %v982_v2 = vrot.slane %v7615_v21, 2  ;;  %v983_v26 = vrot.slane %v7612_v20, 3  ;;  %v438_v37 = vor.u32 %v7553_v39, %v434_v59  ;;  %v442_v40 = vrot.slane %v440_v0, 1 }
  0x57   : > { %v717_v33 = vsel %vm11882_vm3, %v712_v29, %v716_v31  ;;  %v973_v50 = vsel %vm11887_vm4, %v968_v3, %v972_v46  ;;  %v435_v61 = vsel %vm11888_vm2, %v430_v58, %v434_v59  ;;  %v718_v3 = vrot.slane %v7553_v39, 1 }
  0x58   : > { %v575_v53 = vrot.slane %v7602_v15, 1  ;;  %v726_v59 = vrot.slane %v7615_v21, 1 }
  0x59   : > { %1040 = vrot.lane.b32.xlu0 %v965_v5, %s7239_s26  ;;  %v719_v5 = vrot.slane %v7550_v38, 2 }
  0x5a   : > { %1042 = vrot.lane.b32.xlu1 %v969_v7, %s7239_s26  ;;  %v573_v7 = vrot.slane %v7577_v60, 1 }
  0x5c   : > { %v7597_v12 = vsel %vm11891_vm0, %v571_v62, %v573_v7  ;;  %v576_v0 = vsel %vm11891_vm0, %v573_v7, %v575_v53 }
  0x5d   : > { %1117 = vrot.lane.b32.xlu0 %v1082_v11, %s7240_s30  ;;  %v720_v11 = vor.u32 %v719_v5, %v718_v3 }
  0x5e   : > { %524 = vrot.lane.b32.xlu1 %v411_v13, %s7236_s13 }
  0x5f   : > { %v721_v17 = vsel %vm11882_vm3, %v716_v31, %v720_v11  ;;  %v7630_v31 = vor.u32 %v983_v26, %v982_v2 }
  0x61   : > { %1119 = vrot.lane.b32.xlu0 %v1084_v63, %s7240_s30 }
  0x62   : > { %526 = vrot.lane.b32.xlu1 %v419_v19, %s7236_s13  ;;  %v831_v19 = vrot.slane %v7577_v60, 2 }
  0x64   : > { %v832_v24 = vsel %vm11890_vm1, %v829_v42, %v831_v19 }
  0x65   : > { %601 = vrot.lane.b32.xlu0 %v566_v48, %s7234_s11  ;;  %v976_v48 = vor.u32 %v975_v44, %v974_v43  ;;  %v1091_v43 = vrot.slane %v7602_v15, 3 }
  0x66   : > { %603 = vrot.lane.b32.xlu1 %v568_v25, %s7234_s11 }
  0x67   : > { %v977_v52 = vsel %vm11887_vm4, %v972_v46, %v976_v48  ;;  %v443_v46 = vsel %vm11888_vm2, %v438_v37, %v442_v40 }
  0x69   : > { %654 = vrot.lane.b32.xlu0 %v568_v25, %s7233_s10  ;;  %v833_v25 = vrot.slane %v7602_v15, 2 }
  0x6a   : > { %656 = vrot.lane.b32.xlu1 %v570_v30, %s7233_s10 }
  0x6d   : > { %784 = vrot.lane.b32.xlu0 %v713_v34, %s7237_s23 }
  0x6e   : > { %786 = vrot.lane.b32.xlu1 %v717_v33, %s7237_s23  ;;  %v1089_v33 = vrot.slane %v7577_v60, 3 }
  0x70   : > { %v1090_v42 = vsel %vm11889_vm5, %v1087_v56, %v1089_v33  ;;  %v1092_v39 = vsel %vm11889_vm5, %v1089_v33, %v1091_v43 }
  0x71   : > { %861 = vrot.lane.b32.xlu0 %v826_v1, %s7235_s12  ;;  %v444_v1 = vshrl.u32 %v7577_v60, 16 }
  0x72   : > { %863 = vrot.lane.b32.xlu1 %v828_v41, %s7235_s12 }
  0x73   : > { %v722_v8 = vrot.slane %v444_v1, 1  ;;  %v978_v22 = vrot.slane %v444_v1, 2 }
  0x75   : > { %914 = vrot.lane.b32.xlu0 %v828_v41, %s7238_s25  ;;  %v7599_v13 = vor.u32 %v723_v10, %v722_v8  ;;  %v980_v27 = vor.u32 %v979_v23, %v978_v22 }
  0x76   : > { %916 = vrot.lane.b32.xlu1 %v830_v47, %s7238_s25 }
  0x77   : > { %v725_v63 = vsel %vm11882_vm3, %v720_v11, %v7599_v13  ;;  %v981_v34 = vsel %vm11887_vm4, %v976_v48, %v980_v27  ;;  %v985_v38 = vsel %vm11887_vm4, %v980_v27, %v7630_v31  ;;  %v450_v48 = vrot.slane %v7612_v20, 1 }
  0x79   : > { %1044 = vrot.lane.b32.xlu0 %v973_v50, %s7239_s26  ;;  %v7649_v50 = vld [vmem:[%s7332_s9 + $0x58] sm:$0xff]  }
  0x7a   : > { %1046 = vrot.lane.b32.xlu1 %v977_v52, %s7239_s26  ;;  %v7664_v56 = vshrl.u32 %v7649_v50, 16  ;;  %v577_v58 = vrot.slane %v7649_v50, 1 }
  0x7c   : > { %v7687_v7 = vsel %vm11891_vm0, %v575_v53, %v577_v58  ;;  %v986_v37 = vrot.slane %v7664_v56, 2 }
  0x7d   : > { %1121 = vrot.lane.b32.xlu0 %v1086_v55, %s7240_s30  ;;  %v7661_v55 = vshll.u32 %v7649_v50, 16 }
  0x7e   : > { %528 = vrot.lane.b32.xlu1 %v427_v57, %s7236_s13 }
  0x7f   : > { %v731_v3 = vrot.slane %v7661_v55, 2 }
  0x81   : > { %1123 = vrot.lane.b32.xlu0 %v1088_v54, %s7240_s30  ;;  %v727_v54 = vrot.slane %v7612_v20, 2 }
  0x82   : > { %530 = vrot.lane.b32.xlu1 %v435_v61, %s7236_s13 }
  0x85   : > { %605 = vrot.lane.b32.xlu0 %v570_v30, %s7234_s11  ;;  %v7628_v30 = vsel %vm11890_vm1, %v831_v19, %v833_v25  ;;  %v835_v19 = vrot.slane %v7649_v50, 2 }
  0x86   : > { %607 = vrot.lane.b32.xlu1 %v572_v6, %s7234_s11 }
  0x89   : > { %658 = vrot.lane.b32.xlu0 %v572_v6, %s7233_s10 }
  0x8a   : > { %660 = vrot.lane.b32.xlu1 %v7597_v12, %s7233_s10 }
  0x8d   : > { %788 = vrot.lane.b32.xlu0 %v721_v17, %s7237_s23  ;;  %v7692_v17 = vld [vmem:[%s7332_s9 + $0x60] sm:$0xff]  }
  0x8e   : > { %790 = vrot.lane.b32.xlu1 %v725_v63, %s7237_s23  ;;  %v7707_v27 = vshll.u32 %v7692_v17, 16 }
  0x91   : > { %865 = vrot.lane.b32.xlu0 %v830_v47, %s7235_s12  ;;  %v446_v47 = vor.u32 %v444_v1, %v442_v40  ;;  %v730_v1 = vrot.slane %v7664_v56, 1  ;;  %v987_v40 = vrot.slane %v7661_v55, 3 }
  0x92   : > { %867 = vrot.lane.b32.xlu1 %v832_v24, %s7235_s12 }
  0x93   : > { %v647_v29 = vpop.permute.xlu0 %646  ;;  %v451_v49 = vsel %vm11888_vm2, %v446_v47, %v450_v48  ;;  %v7689_v11 = vor.u32 %v731_v3, %v730_v1  ;;  %v454_v3 = vor.u32 %v7615_v21, %v450_v48  ;;  %v466_v21 = vrot.slane %v7707_v27, 1  ;;  %v7766_v48 = vld [vmem:[%s7332_s9 + $0x68] sm:$0xff]  }
  0x94   : > { %v594_v32 = vpop.permute.xlu1 %593 }
  0x95   : > { %918 = vrot.lane.b32.xlu0 %v832_v24, %s7238_s25 }
  0x96   : > { %920 = vrot.lane.b32.xlu1 %v7628_v30, %s7238_s25 }
  0x97   : > { %v7637_v36 = vpop.permute.xlu0 %853 }
  0x98   : > { %v596_v41 = vpop.permute.xlu1 %595 }
  0x99   : > { %1048 = vrot.lane.b32.xlu0 %v981_v34, %s7239_s26 }
  0x9a   : > { %1050 = vrot.lane.b32.xlu1 %v985_v38, %s7239_s26 }
  0x9b   : > { %v517_v44 = vpop.permute.xlu0 %516 }
  0x9c   : > { %v649_v28 = vpop.permute.xlu1 %648  ;;  %v1151_v61 = vsel %vm1149_vm7, %v7351_v14, %v517_v44  ;;  %v728_v14 = vor.u32 %v727_v54, %v726_v59 }
  0x9d   : > { %1125 = vrot.lane.b32.xlu0 %v1090_v42, %s7240_s30  ;;  %v1188_v8 = vsel %vm11883_vm8, %v1151_v61, %v594_v32  ;;  %v837_v42 = vrot.slane %v7692_v17, 2 }
  0x9e   : > { %532 = vrot.lane.b32.xlu1 %v443_v46, %s7236_s13  ;;  %v1225_v63 = vsel %vm1223_vm9, %v1188_v8, %v647_v29  ;;  %v729_v23 = vsel %vm11882_vm3, %v7599_v13, %v728_v14  ;;  %v733_v26 = vsel %vm11882_vm3, %v728_v14, %v7689_v11  ;;  %v7710_v29 = vshrl.u32 %v7692_v17, 16 }
  0x9f   : > { %v519_v52 = vpop.permute.xlu0 %518  ;;  %v836_v13 = vsel %vm11890_vm1, %v833_v25, %v835_v19  ;;  %v991_v25 = vrot.slane %v7707_v27, 3  ;;  %v7738_v59 = vsel %vm11890_vm1, %v835_v19, %v837_v42  ;;  %v1095_v8 = vrot.slane %v7692_v17, 3 }
  0xa0   : > { %v856_v57 = vpop.permute.xlu1 %855  ;;  %v1153_v6 = vsel %vm1149_vm7, %v7346_v9, %v519_v52  ;;  %v990_v44 = vrot.slane %v7710_v29, 2  ;;  %v988_v52 = vor.u32 %v987_v40, %v986_v37 }
  0xa1   : > { %1127 = vrot.lane.b32.xlu0 %v1092_v39, %s7240_s30  ;;  %v1190_v9 = vsel %vm11883_vm8, %v1153_v6, %v596_v41 }
  0xa2   : > { %534 = vrot.lane.b32.xlu1 %v451_v49, %s7236_s13  ;;  %v1227_v24 = vsel %vm1223_vm9, %v1190_v9, %v649_v28  ;;  %v7740_v54 = vor.u32 %v991_v25, %v990_v44  ;;  %v989_v61 = vsel %vm11887_vm4, %v7630_v31, %v988_v52  ;;  %v839_v25 = vrot.slane %v7766_v48, 2 }
  0xa3   : > { %v777_v62 = vpop.permute.xlu0 %776 }
  0xa4   : > { %v779_v5 = vpop.permute.xlu1 %778  ;;  %v1262_v22 = vsel %vm1260_vm10, %v1225_v63, %v777_v62  ;;  %v1093_v62 = vrot.slane %v7649_v50, 3  ;;  %v993_v1 = vsel %vm11887_vm4, %v988_v52, %v7740_v54  ;;  %v7781_v63 = vshrl.u32 %v7766_v48, 16 }
  0xa5   : > { %609 = vrot.lane.b32.xlu0 %v7597_v12, %s7234_s11  ;;  %v1299_v34 = vsel %vm11896_vm11, %v1262_v22, %v7637_v36  ;;  %v1264_v33 = vsel %vm1260_vm10, %v1227_v24, %v779_v5  ;;  %v458_v5 = vrot.slane %v7661_v55, 1  ;;  %v734_v22 = vrot.slane %v7710_v29, 1 }
  0xa6   : > { %611 = vrot.lane.b32.xlu1 %v576_v0, %s7234_s11  ;;  %v1301_v28 = vsel %vm11896_vm11, %v1264_v33, %v856_v57  ;;  %v1094_v31 = vsel %vm11889_vm5, %v1091_v43, %v1093_v62  ;;  %v1096_v15 = vsel %vm11889_vm5, %v1093_v62, %v1095_v8  ;;  %v840_v62 = vsel %vm11890_vm1, %v837_v42, %v839_v25 }
  0xa7   : > { %v907_v10 = vpop.permute.xlu0 %906  ;;  %v462_v20 = vor.u32 %v7664_v56, %v458_v5  ;;  %v579_v56 = vrot.slane %v7692_v17, 1 }
  0xa8   : > { %v909_v12 = vpop.permute.xlu1 %908  ;;  %v1336_v38 = vsel %vm11895_vm12, %v1299_v34, %v907_v10  ;;  %v459_v10 = vsel %vm11888_vm2, %v454_v3, %v458_v5 }
  0xa9   : > { %662 = vrot.lane.b32.xlu0 %v576_v0, %s7233_s10  ;;  %v1338_v39 = vsel %vm11895_vm12, %v1301_v28, %v909_v12  ;;  %v467_v9 = vsel %vm11888_vm2, %v462_v20, %v466_v21  ;;  %v7778_v12 = vshll.u32 %v7766_v48, 16 }
  0xaa   : > { %664 = vrot.lane.b32.xlu1 %v7687_v7, %s7233_s10 }
  0xab   : > { %v1037_v2 = vpop.permute.xlu0 %1036  ;;  %v739_v34 = vrot.slane %v7778_v12, 2 }
  0xac   : > { %v1039_v32 = vpop.permute.xlu1 %1038  ;;  %v1373_v36 = vsel %vm11894_vm13, %v1336_v38, %v1037_v2  ;;  %v580_v2 = vsel %vm11891_vm0, %v577_v58, %v579_v56  ;;  %v7797_v38 = vld [vmem:[%s7332_s9 + $0x70] sm:$0xff]  }
  0xad   : > { %792 = vrot.lane.b32.xlu0 %v729_v23, %s7237_s23  ;;  %v1375_v49 = vsel %vm11894_vm13, %v1338_v39, %v1039_v32  ;;  %v735_v23 = vrot.slane %v7707_v27, 2  ;;  %v738_v32 = vrot.slane %v7781_v63, 1  ;;  %v7824_v52 = vshrl.u32 %v7797_v38, 16 }
  0xae   : > { %794 = vrot.lane.b32.xlu1 %v733_v26, %s7237_s23  ;;  %v581_v26 = vrot.slane %v7766_v48, 1 }
  0xaf   : > { %v1114_v41 = vpop.permute.xlu0 %1113  ;;  %v736_v33 = vor.u32 %v735_v23, %v734_v22  ;;  %v7804_v40 = vor.u32 %v739_v34, %v738_v32  ;;  %v470_v34 = vor.u32 %v7710_v29, %v466_v21 }
  0xb0   : > { %v521_v46 = vpop.permute.xlu1 %520  ;;  %v1410_v47 = vsel %vm11893_vm14, %v1373_v36, %v1114_v41  ;;  %v7802_v58 = vsel %vm11891_vm0, %v579_v56, %v581_v26 }
  0xb1   : > { %869 = vrot.lane.b32.xlu0 %v7628_v30, %s7235_s12  ;;  %6874 = vmatprep.mubr.msk.bf16.mxu0 %vm11886_vm15, %v1410_v47  ;;  %v1155_v41 = vsel %vm1149_vm7, %v7341_v4, %v521_v46  ;;  %v737_v44 = vsel %vm11882_vm3, %v7689_v11, %v736_v33  ;;  %v7816_v47 = vshll.u32 %v7797_v38, 16  ;;  %v741_v39 = vsel %vm11882_vm3, %v736_v33, %v7804_v40 }
  0xb2   : > { %871 = vrot.lane.b32.xlu1 %v836_v13, %s7235_s12 }
  0xb3   : > { %v1116_v53 = vpop.permute.xlu0 %1115  ;;  %v482_v21 = vrot.slane %v7816_v47, 1 }
  0xb4   : > { %v523_v57 = vpop.permute.xlu1 %522  ;;  %v1412_v30 = vsel %vm11893_vm14, %v1375_v49, %v1116_v53 }
  0xb5   : > { %922 = vrot.lane.b32.xlu0 %v836_v13, %s7238_s25  ;;  %6875 = vmatmul.mubr.msk.bf16.vlgmr.msra.gmra.mrb[0].mxu0 %vm11886_vm15, %v1412_v30  ;;  %v1157_v28 = vsel %vm1149_vm7, %v7354_v16, %v523_v57  ;;  %v841_v30 = vrot.slane %v7797_v38, 2  ;;  %v994_v16 = vrot.slane %v7781_v63, 2 }
  0xb6   : > { %924 = vrot.lane.b32.xlu1 %v7738_v59, %s7238_s25 }
  0xb7   : > { %v598_v0 = vpop.permute.xlu0 %597  ;;  %v7854_v56 = vsel %vm11890_vm1, %v839_v25, %v841_v30 }
  0xb8   : > { %v600_v6 = vpop.permute.xlu1 %599 }
  0xb9   : > { %1052 = vrot.lane.b32.xlu0 %v989_v61, %s7239_s26  ;;  %v1194_v57 = vsel %vm11883_vm8, %v1157_v28, %v600_v6  ;;  %v583_v28 = vrot.slane %v7797_v38, 1 }
  0xba   : > { %1054 = vrot.lane.b32.xlu1 %v993_v1, %s7239_s26 }
  0xbb   : > { %v651_v14 = vpop.permute.xlu0 %650 }
  0xbc   : > { %v653_v55 = vpop.permute.xlu1 %652 }
  0xbd   : > { %1129 = vrot.lane.b32.xlu0 %v1094_v31, %s7240_s30  ;;  %v1231_v1 = vsel %vm1223_vm9, %v1194_v57, %v653_v55  ;;  %v998_v31 = vrot.slane %v7824_v52, 2 }
  0xbe   : > { %536 = vrot.lane.b32.xlu1 %v459_v10, %s7236_s13 }
  0xbf   : > { %v781_v43 = vpop.permute.xlu0 %780 }
  0xc0   : > { %v783_v19 = vpop.permute.xlu1 %782 }
  0xc1   : > { %1131 = vrot.lane.b32.xlu0 %v1096_v15, %s7240_s30  ;;  %v1268_v6 = vsel %vm1260_vm10, %v1231_v1, %v783_v19 }
  0xc2   : > { %538 = vrot.lane.b32.xlu1 %v467_v9, %s7236_s13 }
  0xc3   : > { %v858_v24 = vpop.permute.xlu0 %857 }
  0xc4   : > { %v860_v13 = vpop.permute.xlu1 %859 }
  0xc5   : > { %613 = vrot.lane.b32.xlu0 %v7687_v7, %s7234_s11  ;;  %v1192_v7 = vsel %vm11883_vm8, %v1155_v41, %v598_v0  ;;  %v995_v0 = vrot.slane %v7778_v12, 3  ;;  %v1305_v15 = vsel %vm11896_vm11, %v1268_v6, %v860_v13  ;;  %v474_v13 = vrot.slane %v7778_v12, 1 }
  0xc6   : > { %615 = vrot.lane.b32.xlu1 %v580_v2, %s7234_s11  ;;  %v1229_v4 = vsel %vm1223_vm9, %v1192_v7, %v651_v14  ;;  %v999_v14 = vrot.slane %v7816_v47, 3 }
  0xc7   : > { %v911_v37 = vpop.permute.xlu0 %910  ;;  %v1266_v49 = vsel %vm1260_vm10, %v1229_v4, %v781_v43  ;;  %v996_v55 = vor.u32 %v995_v0, %v994_v16  ;;  %v475_v27 = vsel %vm11888_vm2, %v470_v34, %v474_v13  ;;  %v478_v29 = vor.u32 %v7781_v63, %v474_v13 }
  0xc8   : > { %v913_v36 = vpop.permute.xlu1 %912  ;;  %v1303_v53 = vsel %vm11896_vm11, %v1266_v49, %v858_v24  ;;  %v7856_v19 = vor.u32 %v999_v14, %v998_v31  ;;  %v1097_v24 = vrot.slane %v7766_v48, 3  ;;  %v584_v16 = vsel %vm11891_vm0, %v581_v26, %v583_v28 }
  0xc9   : > { %666 = vrot.lane.b32.xlu0 %v580_v2, %s7233_s10  ;;  %v1340_v61 = vsel %vm11895_vm12, %v1303_v53, %v911_v37  ;;  %v1342_v42 = vsel %vm11895_vm12, %v1305_v15, %v913_v36  ;;  %v997_v23 = vsel %vm11887_vm4, %v7740_v54, %v996_v55  ;;  %v1099_v37 = vrot.slane %v7797_v38, 3  ;;  %v7879_v36 = vld [vmem:[%s7332_s9 + $0x78] sm:$0xff]  }
  0xca   : > { %668 = vrot.lane.b32.xlu1 %v7802_v58, %s7233_s10  ;;  %v1001_v32 = vsel %vm11887_vm4, %v996_v55, %v7856_v19  ;;  %v1098_v54 = vsel %vm11889_vm5, %v1095_v8, %v1097_v24  ;;  %v7890_v7 = vshll.u32 %v7879_v36, 16  ;;  %v483_v63 = vsel %vm11888_vm2, %v478_v29, %v482_v21 }
  0xcb   : > { %v1041_v46 = vpop.permute.xlu0 %1040  ;;  %v1100_v8 = vsel %vm11889_vm5, %v1097_v24, %v1099_v37  ;;  %v585_v57 = vrot.slane %v7879_v36, 1 }
  0xcc   : > { %v1043_v11 = vpop.permute.xlu1 %1042  ;;  %v1377_v3 = vsel %vm11894_vm13, %v1340_v61, %v1041_v46  ;;  %v742_v46 = vrot.slane %v7824_v52, 1 }
  0xcd   : > { %796 = vrot.lane.b32.xlu0 %v737_v44, %s7237_s23  ;;  %v1379_v43 = vsel %vm11894_vm13, %v1342_v42, %v1043_v11  ;;  %v7893_v44 = vshrl.u32 %v7879_v36, 16  ;;  %v747_v11 = vrot.slane %v7890_v7, 2 }
  0xce   : > { %798 = vrot.lane.b32.xlu1 %v741_v39, %s7237_s23  ;;  %v743_v39 = vrot.slane %v7816_v47, 2 }
  0xcf   : > { %v1118_v5 = vpop.permute.xlu0 %1117  ;;  %v746_v49 = vrot.slane %v7893_v44, 1  ;;  %v1002_v24 = vrot.slane %v7893_v44, 2 }
  0xd0   : > { %v525_v10 = vpop.permute.xlu1 %524  ;;  %v1414_v20 = vsel %vm11893_vm14, %v1377_v3, %v1118_v5  ;;  %v7917_v3 = vsel %vm11891_vm0, %v583_v28, %v585_v57  ;;  %v7920_v5 = vld [vmem:[%s7332_s9 + $0x80] sm:$0xff]  }
  0xd1   : > { %873 = vrot.lane.b32.xlu0 %v7738_v59, %s7235_s12  ;;  %6878 = vmatprep.mubr.msk.bf16.mxu0 %vm11886_vm15, %v1414_v20  ;;  %v7912_v0 = vor.u32 %v747_v11, %v746_v49  ;;  %v1159_v31 = vsel %vm1149_vm7, %v7385_v45, %v525_v10  ;;  %v7937_v42 = vshll.u32 %v7920_v5, 16  ;;  %v7940_v55 = vshrl.u32 %v7920_v5, 16 }
  0xd2   : > { %875 = vrot.lane.b32.xlu1 %v840_v62, %s7235_s12  ;;  %v1101_v49 = vrot.slane %v7879_v36, 3 }
  0xd3   : > { %v1120_v9 = vpop.permute.xlu0 %1119 }
  0xd4   : > { %v527_v22 = vpop.permute.xlu1 %526  ;;  %v1416_v59 = vsel %vm11893_vm14, %v1379_v43, %v1120_v9 }
  0xd5   : > { %926 = vrot.lane.b32.xlu0 %v840_v62, %s7238_s25  ;;  %6879 = vmatmul.mubr.msk.bf16.gmra.mrb[4].mxu0 %vm11886_vm15, %v1416_v59  ;;  %v744_v62 = vor.u32 %v743_v39, %v742_v46  ;;  %v1161_v15 = vsel %vm1149_vm7, %v7455_v35, %v527_v22 }
  0xd6   : > { %928 = vrot.lane.b32.xlu1 %v7854_v56, %s7238_s25 }
  0xd7   : > { %v602_v2 = vpop.permute.xlu0 %601  ;;  %v749_v6 = vsel %vm11882_vm3, %v744_v62, %v7912_v0  ;;  %v745_v20 = vsel %vm11882_vm3, %v7804_v40, %v744_v62  ;;  %v845_v40 = vrot.slane %v7920_v5, 2 }
  0xd8   : > { %v604_v33 = vpop.permute.xlu1 %603  ;;  %v1196_v14 = vsel %vm11883_vm8, %v1159_v31, %v602_v2  ;;  %v1003_v2 = vrot.slane %v7890_v7, 3 }
  0xd9   : > { %1056 = vrot.lane.b32.xlu0 %v997_v23, %s7239_s26  ;;  %v1198_v22 = vsel %vm11883_vm8, %v1161_v15, %v604_v33  ;;  %v750_v15 = vrot.slane %v7940_v55, 1 }
  0xda   : > { %1058 = vrot.lane.b32.xlu1 %v1001_v32, %s7239_s26 }
  0xdb   : > { %v655_v41 = vpop.permute.xlu0 %654 }
  0xdc   : > { %v657_v12 = vpop.permute.xlu1 %656  ;;  %v1233_v45 = vsel %vm1223_vm9, %v1196_v14, %v655_v41 }
  0xdd   : > { %1133 = vrot.lane.b32.xlu0 %v1098_v54, %s7240_s30  ;;  %v1235_v32 = vsel %vm1223_vm9, %v1198_v22, %v657_v12  ;;  %v1006_v54 = vrot.slane %v7940_v55, 2 }
  0xde   : > { %540 = vrot.lane.b32.xlu1 %v475_v27, %s7236_s13 }
  0xdf   : > { %v785_v25 = vpop.permute.xlu0 %784 }
  0xe0   : > { %v787_v4 = vpop.permute.xlu1 %786  ;;  %v1270_v43 = vsel %vm1260_vm10, %v1233_v45, %v785_v25  ;;  %v751_v45 = vrot.slane %v7937_v42, 2 }
  0xe1   : > { %1135 = vrot.lane.b32.xlu0 %v1100_v8, %s7240_s30  ;;  %v1272_v41 = vsel %vm1260_vm10, %v1235_v32, %v787_v4  ;;  %v1004_v8 = vor.u32 %v1003_v2, %v1002_v24 }
  0xe2   : > { %542 = vrot.lane.b32.xlu1 %v483_v63, %s7236_s13 }
  0xe3   : > { %v862_v53 = vpop.permute.xlu0 %861  ;;  %v1005_v39 = vsel %vm11887_vm4, %v7856_v19, %v1004_v8  ;;  %v1102_v19 = vsel %vm11889_vm5, %v1099_v37, %v1101_v49 }
  0xe4   : > { %v864_v61 = vpop.permute.xlu1 %863  ;;  %v1307_v59 = vsel %vm11896_vm11, %v1270_v43, %v862_v53 }
  0xe5   : > { %617 = vrot.lane.b32.xlu0 %v7802_v58, %s7234_s11  ;;  %v843_v58 = vrot.slane %v7879_v36, 2  ;;  %v1309_v29 = vsel %vm11896_vm11, %v1272_v41, %v864_v61  ;;  %v490_v61 = vrot.slane %v7890_v7, 1 }
  0xe6   : > { %619 = vrot.lane.b32.xlu1 %v584_v16, %s7234_s11 }
  0xe7   : > { %v915_v1 = vpop.permute.xlu0 %914  ;;  %v844_v35 = vsel %vm11890_vm1, %v841_v30, %v843_v58  ;;  %v1007_v30 = vrot.slane %v7937_v42, 3  ;;  %v7972_v28 = vsel %vm11890_vm1, %v843_v58, %v845_v40 }
  0xe8   : > { %v917_v26 = vpop.permute.xlu1 %916  ;;  %v1344_v23 = vsel %vm11895_vm12, %v1307_v59, %v915_v1  ;;  %v1103_v1 = vrot.slane %v7920_v5, 3 }
  0xe9   : > { %670 = vrot.lane.b32.xlu0 %v584_v16, %s7233_s10  ;;  %v1346_v12 = vsel %vm11895_vm12, %v1309_v29, %v917_v26  ;;  %v7974_v4 = vor.u32 %v1007_v30, %v1006_v54  ;;  %v486_v16 = vor.u32 %v7824_v52, %v482_v21  ;;  %v7997_v26 = vld [vmem:[%s7332_s9 + $0x88] sm:$0xff]   ;;  %v494_v52 = vor.u32 %v7893_v44, %v490_v61 }
  0xea   : > { %672 = vrot.lane.b32.xlu1 %v7917_v3, %s7233_s10  ;;  %v498_v21 = vrot.slane %v7937_v42, 1  ;;  %v1104_v38 = vsel %vm11889_vm5, %v1101_v49, %v1103_v1  ;;  %v8008_v37 = vshll.u32 %v7997_v26, 16  ;;  %v8011_v58 = vshrl.u32 %v7997_v26, 16 }
  0xeb   : > { %v1045_v10 = vpop.permute.xlu0 %1044  ;;  %v1009_v53 = vsel %vm11887_vm4, %v1004_v8, %v7974_v4  ;;  %v491_v47 = vsel %vm11888_vm2, %v486_v16, %v490_v61 }
  0xec   : > { %v1047_v9 = vpop.permute.xlu1 %1046  ;;  %v1381_v34 = vsel %vm11894_vm13, %v1344_v23, %v1045_v10  ;;  %v499_v44 = vsel %vm11888_vm2, %v494_v52, %v498_v21  ;;  %v754_v10 = vrot.slane %v8011_v58, 1  ;;  %v755_v43 = vrot.slane %v8008_v37, 2 }
  0xed   : > { %800 = vrot.lane.b32.xlu0 %v745_v20, %s7237_s23  ;;  %v1383_v25 = vsel %vm11894_vm13, %v1346_v12, %v1047_v9  ;;  %v752_v23 = vor.u32 %v751_v45, %v750_v15  ;;  %v1011_v49 = vrot.slane %v8008_v37, 3 }
  0xee   : > { %802 = vrot.lane.b32.xlu1 %v749_v6, %s7237_s23  ;;  %v587_v6 = vrot.slane %v7920_v5, 1  ;;  %v8032_v24 = vor.u32 %v755_v43, %v754_v10  ;;  %v7112_v10 = vld [vmem:[%s7332_s9 + $0x90] ss:$0 sps:$4 sm:$0x11]  }
  0xef   : > { %v1122_v13 = vpop.permute.xlu0 %1121  ;;  %v753_v41 = vsel %vm11882_vm3, %v7912_v0, %v752_v23  ;;  %v1010_v0 = vrot.slane %v8011_v58, 2 }
  0xf0   : > { %v7959_v33 = vpop.permute.xlu1 %528  ;;  %v1418_v27 = vsel %vm11893_vm14, %v1381_v34, %v1122_v13  ;;  %v588_v59 = vsel %vm11891_vm0, %v585_v57, %v587_v6  ;;  %v8039_v34 = vld [vmem:[%s7332_s9 + $0x90] sm:$0xff]   ;;  %v847_v13 = vrot.slane %v7997_v26, 2  ;;  %v757_v30 = vsel %vm11882_vm3, %v752_v23, %v8032_v24 }
  0xf1   : > { %877 = vrot.lane.b32.xlu0 %v7854_v56, %s7235_s12  ;;  %6882 = vmatprep.mubr.msk.bf16.mxu0 %vm11886_vm15, %v1418_v27  ;;  %v1163_v54 = vsel %vm1149_vm7, %v7479_v51, %v7959_v33  ;;  %v759_v51 = vshrl.u32 %v8039_v34, 16  ;;  %v762_v33 = vshll.u32 %v8039_v34, 16  ;;  %vm11885_vm3 = vsmask.f32 1280 }
  0xf2   : > { %879 = vrot.lane.b32.xlu1 %v844_v35, %s7235_s12 }
  0xf3   : > { %v1124_v63 = vpop.permute.xlu0 %1123  ;;  %v1014_v61 = vrot.slane %v759_v51, 2 }
  0xf4   : > { %v531_v46 = vpop.permute.xlu1 %530  ;;  %v1420_v56 = vsel %vm11893_vm14, %v1383_v25, %v1124_v63  ;;  %v848_v63 = vsel %vm11890_vm1, %v845_v40, %v847_v13  ;;  %v2489_v40 = vld [vmem:[#allocation2 + $0x8] sm:$0x3] }
  0xf5   : > { %930 = vrot.lane.b32.xlu0 %v844_v35, %s7238_s25  ;;  %6883 = vmatmul.mubr.msk.bf16.gmra.mrb[8].mxu0 %vm11886_vm15, %v1420_v56  ;;  %v8027_v35 = vrot.slane %v7997_v26, 1  ;;  %v1165_v27 = vsel %vm1149_vm7, %v7522_v18, %v531_v46  ;;  %v8065_v18 = vrot.slane %v8039_v34, 2 }
  0xf6   : > { %932 = vrot.lane.b32.xlu1 %v7972_v28, %s7238_s25 }
  0xf7   : > { %v606_v11 = vpop.permute.xlu0 %605  ;;  %v8036_v32 = vsel %vm11891_vm0, %v587_v6, %v8027_v35  ;;  %v8099_v15 = vsel %vm11890_vm1, %v847_v13, %v8065_v18  ;;  %v506_v13 = vrot.slane %v8008_v37, 1 }
  0xf8   : > { %v608_v62 = vpop.permute.xlu1 %607 }
  0xf9   : > { %1060 = vrot.lane.b32.xlu0 %v1005_v39, %s7239_s26  ;;  %v1202_v46 = vsel %vm11883_vm8, %v1165_v27, %v608_v62  ;;  %v510_v27 = vor.u32 %v8011_v58, %v506_v13 }
  0xfa   : > { %1062 = vrot.lane.b32.xlu1 %v1009_v53, %s7239_s26 }
  0xfb   : > { %v659_v31 = vpop.permute.xlu0 %658 }
  0xfc   : > { %v661_v7 = vpop.permute.xlu1 %660 }
  0xfd   : > { %1137 = vrot.lane.b32.xlu0 %v1102_v19, %s7240_s30  ;;  %v1015_v19 = vrot.slane %v762_v33, 3 }
  0xfe   : > { %544 = vrot.lane.b32.xlu1 %v491_v47, %s7236_s13 }
  0xff   : > { %v789_v14 = vpop.permute.xlu0 %788  ;;  %v8101_v45 = vor.u32 %v1015_v19, %v1014_v61 }
 0x100   : > { %v791_v20 = vpop.permute.xlu1 %790 }
 0x101   : > { %1139 = vrot.lane.b32.xlu0 %v1104_v38, %s7240_s30 }
 0x102   : > { %546 = vrot.lane.b32.xlu1 %v499_v44, %s7236_s13  ;;  %v1012_v44 = vor.u32 %v1011_v49, %v1010_v0  ;;  %v7113_v0 = vld [vmem:[%s7332_s9 + $0x98] ss:$0 sps:$4 sm:$0x11]   ;;  %v764_v49 = vrot.slane %v762_v33, 2 }
 0x103   : > { %v866_v9 = vpop.permute.xlu0 %865  ;;  %v644_v19 = vrot.slane %v7113_v0, 1 }
 0x104   : > { %v868_v22 = vpop.permute.xlu1 %867 }
 0x105   : > { %621 = vrot.lane.b32.xlu0 %v7917_v3, %s7234_s11  ;;  %v1200_v3 = vsel %vm11883_vm8, %v1163_v54, %v606_v11  ;;  %v1239_v11 = vsel %vm1223_vm9, %v1202_v46, %v661_v7  ;;  %vm8080_vm8 = vmand %vm11884_vm6, %vm11885_vm3  ;;  %vm2492_vm6 = vcmask 60417   ;;  %vm2493_vm3 = vsmask.f32 7942 }
 0x106   : > { %623 = vrot.lane.b32.xlu1 %v588_v59, %s7234_s11  ;;  %v1237_v29 = vsel %vm1223_vm9, %v1200_v3, %v659_v31  ;;  %v1276_v31 = vsel %vm1260_vm10, %v1239_v11, %v791_v20  ;;  %v2490_v7 = vsel %vm8080_vm8, 0, %v2489_v40  ;;  %v512_v54 = vshll.u32 %v7112_v10, 16 }
 0x107   : > { %v919_v2 = vpop.permute.xlu0 %918  ;;  %v1274_v8 = vsel %vm1260_vm10, %v1237_v29, %v789_v14  ;;  %v1313_v38 = vsel %vm11896_vm11, %v1276_v31, %v868_v22  ;;  %2491 = vst [vmem:[#allocation2 + $0x8] sm:$0x3] %v2490_v7  ;;  %v2495_v22 = vld [vmem:[#allocation2 + $0x98] sm:$0xe] }
 0x108   : > { %v921_v57 = vpop.permute.xlu1 %920  ;;  %v1311_v56 = vsel %vm11896_vm11, %v1274_v8, %v866_v9  ;;  %v1013_v9 = vsel %vm11887_vm4, %v7974_v4, %v1012_v44  ;;  %v514_v29 = vrot.slane %v512_v54, 1  ;;  %v7241_v8 = vmov 0   ;;  %v8171_v7 = vld [vmem:[%s7332_s9 + $0x98] sm:$0xff]  }
 0x109   : > { %674 = vrot.lane.b32.xlu0 %v588_v59, %s7233_s10  ;;  %v1348_v39 = vsel %vm11895_vm12, %v1311_v56, %v919_v2  ;;  %v1350_v14 = vsel %vm11895_vm12, %v1313_v38, %v921_v57  ;;  %v1105_v59 = vrot.slane %v7997_v26, 3  ;;  %v1017_v2 = vsel %vm11887_vm4, %v1012_v44, %v8101_v45  ;;  %v8175_v44 = vld [vmem:[%s7332_s9 + $0xa0] ss:$0 sps:$4 sm:$0x77]  }
 0x10a   : > { %676 = vrot.lane.b32.xlu1 %v8036_v32, %s7233_s10  ;;  %v502_v57 = vor.u32 %v7940_v55, %v498_v21  ;;  %vm11892_vm4 = vcmask 60416   ;;  %v1107_v55 = vrot.slane %v8039_v34, 3  ;;  %v591_v56 = vrot.slane %v7112_v10, 1 }
 0x10b   : > { %v1049_v12 = vpop.permute.xlu0 %1048  ;;  %v1106_v42 = vsel %vm11889_vm5, %v1103_v1, %v1105_v59  ;;  %2484 = vst.msk [vmem:[#allocation2] sm:$0xf] %vm11892_vm4, %v7241_v8  ;;  %2485 = vst.msk [vmem:[#allocation2 + $0x4] sm:$0xf] %vm11892_vm4, %v7241_v8  ;;  %v1028_v54 = vshrl.u32 %v8175_v44, 16 }
 0x10c   : > { %v1051_v25 = vpop.permute.xlu1 %1050  ;;  %v1385_v53 = vsel %vm11894_vm13, %v1348_v39, %v1049_v12  ;;  %v507_v37 = vsel %vm11888_vm2, %v502_v57, %v506_v13  ;;  %2498 = vst.msk [vmem:[#allocation2 + $0x9c] sm:$0xf] %vm11892_vm4, %v7241_v8  ;;  %2499 = vst.msk [vmem:[#allocation2 + $0xa0] sm:$0xf] %vm11892_vm4, %v7241_v8  ;;  %v1108_v58 = vsel %vm11889_vm5, %v1105_v59, %v1107_v55  ;;  %v761_v39 = vrot.slane %v759_v51, 1 }
 0x10d   : > { %804 = vrot.lane.b32.xlu0 %v753_v41, %s7237_s23  ;;  %v1387_v6 = vsel %vm11894_vm13, %v1350_v14, %v1051_v25  ;;  %v8132_v41 = vld [vmem:[%s7332_s9 + $0x98] ss:$0 sps:$4 sm:$0x33]   ;;  %v592_v61 = vsel %vm11891_vm0, %v8027_v35, %v591_v56 }
 0x10e   : > { %806 = vrot.lane.b32.xlu1 %v757_v30, %s7237_s23  ;;  %v768_v5 = vshrl.u32 %v8132_v41, 16  ;;  %v771_v1 = vshll.u32 %v8132_v41, 16  ;;  %v765_v51 = vor.u32 %v764_v49, %v761_v39 }
 0x10f   : > { %v1126_v16 = vpop.permute.xlu0 %1125 }
 0x110   : > { %v8085_v47 = vpop.permute.xlu1 %532  ;;  %v1422_v52 = vsel %vm11893_vm14, %v1385_v53, %v1126_v16  ;;  %v770_v40 = vrot.slane %v768_v5, 1  ;;  %v773_v11 = vrot.slane %v771_v1, 2  ;;  %v642_v53 = vrot.slane %v8039_v34, 1 }
 0x111   : > { %881 = vrot.lane.b32.xlu0 %v7972_v28, %s7235_s12  ;;  %6886 = vmatprep.mubr.msk.bf16.mxu0 %vm11886_vm15, %v1422_v52 }
 0x112   : > { %883 = vrot.lane.b32.xlu1 %v848_v63, %s7235_s12  ;;  %v774_v33 = vor.u32 %v773_v11, %v770_v40  ;;  %v643_v52 = vsel %vm11891_vm0, %v8027_v35, %v642_v53  ;;  %v645_v14 = vsel %vm11891_vm0, %v642_v53, %v644_v19 }
 0x113   : > { %v1128_v20 = vpop.permute.xlu0 %1127 }
 0x114   : > { %v8104_v43 = vpop.permute.xlu1 %534  ;;  %v1424_v28 = vsel %vm11893_vm14, %v1387_v6, %v1128_v20  ;;  %v7149_v20 = vld [vmem:[%s7332_s9 + $0x40] sm:$0xff]  }
 0x115   : > { %934 = vrot.lane.b32.xlu0 %v848_v63, %s7238_s25  ;;  %6887 = vmatmul.mubr.msk.bf16.gmra.mrb[12].mxu0 %vm11886_vm15, %v1424_v28  ;;  %vm8122_vm15 = vmand %vm2492_vm6, %vm2493_vm3  ;;  %v515_v63 = vsel %vm11888_vm2, %v510_v27, %v514_v29  ;;  %v1167_v10 = vsel %vm1149_vm7, %v7149_v20, %v8085_v47  ;;  %vm11911_vm3 = vsmask.f32 6400  ;;  %v851_v28 = vrot.slane %v8132_v41, 2 }
 0x116   : > { %936 = vrot.lane.b32.xlu1 %v8099_v15, %s7238_s25  ;;  %v2496_v30 = vsel %vm8122_vm15, 0, %v2495_v22  ;;  %vm11912_vm6 = vcmask 64512   ;;  %vm11913_vm2 = vmmov %vm11911_vm3  ;;  %v1019_v22 = vshrl.u32 %v8171_v7, 16  ;;  %v1169_v47 = vsel %vm1149_vm7, %v7577_v60, %v8104_v43 }
 0x117   : > { %v8114_v23 = vpop.permute.xlu0 %609  ;;  %2497 = vst [vmem:[#allocation2 + $0x98] sm:$0xe] %v2496_v30  ;;  %v766_v59 = vsel %vm11913_vm2, %v8032_v24, %v765_v51  ;;  %vm11914_vm2 = vmmov %vm11912_vm6 }
 0x118   : > { %v8126_v4 = vpop.permute.xlu1 %611  ;;  %v1204_v35 = vsel %vm11912_vm6, %v1167_v10, %v8114_v23  ;;  %v1031_v23 = vshll.u32 %v8175_v44, 16  ;;  %v1021_v27 = vrot.slane %v1019_v22, 2 }
 0x119   : > { %1064 = vrot.lane.b32.xlu0 %v1013_v9, %s7239_s26  ;;  %v7116_v9 = vld [vmem:[%s7332_s9 + $0xa0] ss:$0 sps:$4 sm:$0x33]   ;;  %v1206_v43 = vsel %vm11914_vm2, %v1169_v47, %v8126_v4  ;;  %vm11917_vm2 = vsmask.f32 5376 }
 0x11a   : > { %1066 = vrot.lane.b32.xlu1 %v1017_v2, %s7239_s26  ;;  %v1022_v2 = vshll.u32 %v8171_v7, 16  ;;  %v904_v60 = vrot.slane %v7116_v9, 2 }
 0x11b   : > { %v663_v21 = vpop.permute.xlu0 %662 }
 0x11c   : > { %v8141_v12 = vpop.permute.xlu1 %664  ;;  %v1241_v57 = vsel %vm1223_vm9, %v1204_v35, %v663_v21  ;;  %v1024_v29 = vrot.slane %v1022_v2, 3 }
 0x11d   : > { %1141 = vrot.lane.b32.xlu0 %v1106_v42, %s7240_s30  ;;  %v852_v42 = vsel %vm11890_vm1, %v8065_v18, %v851_v28  ;;  %v1243_v8 = vsel %vm1223_vm9, %v1206_v43, %v8141_v12  ;;  %v7150_v28 = vld [vmem:[%s7332_s9 + $0x50] sm:$0xff]  }
 0x11e   : > { %548 = vrot.lane.b32.xlu1 %v507_v37, %s7236_s13  ;;  %v902_v37 = vrot.slane %v8171_v7, 2  ;;  %v1025_v49 = vor.u32 %v1024_v29, %v1021_v27 }
 0x11f   : > { %v793_v25 = vpop.permute.xlu0 %792 }
 0x120   : > { %v795_v46 = vpop.permute.xlu1 %794  ;;  %v1278_v30 = vsel %vm1260_vm10, %v1241_v57, %v793_v25  ;;  %v1033_v25 = vrot.slane %v1031_v23, 3  ;;  %v903_v12 = vsel %vm11890_vm1, %v8065_v18, %v902_v37  ;;  %v905_v11 = vsel %vm11890_vm1, %v902_v37, %v904_v60 }
 0x121   : > { %1143 = vrot.lane.b32.xlu0 %v1108_v58, %s7240_s30  ;;  %v1030_v58 = vrot.slane %v1028_v54, 2  ;;  %v1109_v18 = vrot.slane %v8171_v7, 3 }
 0x122   : > { %550 = vrot.lane.b32.xlu1 %v515_v63, %s7236_s13  ;;  %v1280_v63 = vsel %vm1260_vm10, %v1243_v8, %v795_v46 }
 0x123   : > { %v870_v16 = vpop.permute.xlu0 %869  ;;  %v1034_v53 = vor.u32 %v1033_v25, %v1030_v58 }
 0x124   : > { %v872_v31 = vpop.permute.xlu1 %871  ;;  %v1315_v24 = vsel %vm11896_vm11, %v1278_v30, %v870_v16 }
 0x125   : > { %625 = vrot.lane.b32.xlu0 %v8036_v32, %s7234_s11  ;;  %v775_v32 = vsel %vm11911_vm3, %v765_v51, %v774_v33  ;;  %v1317_v4 = vsel %vm11896_vm11, %v1280_v63, %v872_v31  ;;  %vm11915_vm3 = vcmask 293888   ;;  %v1111_v51 = vrot.slane %v8175_v44, 3 }
 0x126   : > { %627 = vrot.lane.b32.xlu1 %v592_v61, %s7234_s11  ;;  %vm11916_vm6 = vmmov %vm11915_vm3 }
 0x127   : > { %v923_v38 = vpop.permute.xlu0 %922 }
 0x128   : > { %v925_v6 = vpop.permute.xlu1 %924  ;;  %v1352_v21 = vsel %vm11895_vm12, %v1315_v24, %v923_v38 }
 0x129   : > { %678 = vrot.lane.b32.xlu0 %v643_v52, %s7233_s10  ;;  %v1354_v39 = vsel %vm11895_vm12, %v1317_v4, %v925_v6  ;;  %v1110_v52 = vsel %vm11889_vm5, %v1107_v55, %v1109_v18 }
 0x12a   : > { %680 = vrot.lane.b32.xlu1 %v645_v14, %s7233_s10  ;;  %s7245_s10 = smov 56  }
 0x12b   : > { %v1053_v13 = vpop.permute.xlu0 %1052 }
 0x12c   : > { %v1055_v41 = vpop.permute.xlu1 %1054  ;;  %v1389_v5 = vsel %vm11894_vm13, %v1352_v21, %v1053_v13 }
 0x12d   : > { %808 = vrot.lane.b32.xlu0 %v766_v59, %s7237_s23  ;;  %v1391_v46 = vsel %vm11894_vm13, %v1354_v39, %v1055_v41 }
 0x12e   : > { %810 = vrot.lane.b32.xlu1 %v775_v32, %s7237_s23 }
 0x12f   : > { %v1130_v1 = vpop.permute.xlu0 %1129 }
 0x130   : > { %v537_v56 = vpop.permute.xlu1 %536  ;;  %v1426_v0 = vsel %vm11893_vm14, %v1389_v5, %v1130_v1  ;;  %v1726_v5 = vlaneseq }
 0x131   : > { %885 = vrot.lane.b32.xlu0 %v8099_v15, %s7235_s12  ;;  %6890 = vmatprep.mubr.msk.bf16.mxu0 %vm11915_vm3, %v1426_v0  ;;  %v1026_v15 = vsel %vm11917_vm2, %v8101_v45, %v1025_v49  ;;  %vm11918_vm3 = vmmov %vm11917_vm2  ;;  %v1112_v45 = vsel %vm11889_vm5, %v1109_v18, %v1111_v51  ;;  %v1171_v9 = vsel %vm1149_vm7, %v7150_v28, %v537_v56 }
 0x132   : > { %887 = vrot.lane.b32.xlu1 %v852_v42, %s7235_s12  ;;  %v1035_v31 = vsel %vm11918_vm3, %v1025_v49, %v1034_v53  ;;  %vm11921_vm3 = vcmask 293888   ;;  %v8259_v25 = vshrl.u32 %v1726_v5, 7  ;;  %s6823_s12 = sshll.u32 %s7300_s22, 10 }
 0x133   : > { %v1132_v40 = vpop.permute.xlu0 %1131 }
 0x134   : > { %v539_v16 = vpop.permute.xlu1 %538  ;;  %v1428_v61 = vsel %vm11893_vm14, %v1391_v46, %v1132_v40  ;;  %v1729_v0 = vadd.s32 16, %v8259_v25  ;;  %v1730_v4 = vadd.s32 24, %v8259_v25  ;;  %v1728_v40 = vadd.s32 8, %v8259_v25 }
 0x135   : > { %938 = vrot.lane.b32.xlu0 %v903_v12, %s7238_s25  ;;  %6891 = vmatmul.mubr.msk.bf16.gmra.mrb[16].mxu0 %vm11916_vm6, %v1428_v61  ;;  %vm11919_vm6 = vcmask 64512   ;;  %v1173_v55 = vsel %vm1149_vm7, %v7649_v50, %v539_v16 }
 0x136   : > { %940 = vrot.lane.b32.xlu1 %v905_v11, %s7238_s25  ;;  %vm11920_vm2 = vmmov %vm11919_vm6  ;;  %v8263_v49 = vmul.u32.u64.low 3817748708, %v1729_v0  ;;  %v8264_v46 = vmul.u32.u64.high 3817748708, %v1729_v0, %v8263_v49  ;;  %v8268_v11 = vmul.u32.u64.low 3817748708, %v8259_v25  ;;  %v8269_v53 = vmul.u32.u64.high 3817748708, %v8259_v25, %v8268_v11 }
 0x137   : > { %v614_v19 = vpop.permute.xlu0 %613  ;;  %v8271_v16 = vmul.u32.u64.low 3817748708, %v1730_v4  ;;  %v8272_v61 = vmul.u32.u64.high 3817748708, %v1730_v4, %v8271_v16  ;;  %v8340_v11 = vld [vmem:[#allocation2 + $0x4] sm:$0xf] }
 0x138   : > { %v616_v33 = vpop.permute.xlu1 %615  ;;  %v1208_v34 = vsel %vm11919_vm6, %v1171_v9, %v614_v19  ;;  %vm11922_vm6 = vmmov %vm11921_vm3 }
 0x139   : > { %1068 = vrot.lane.b32.xlu0 %v1026_v15, %s7239_s26  ;;  %v1210_v57 = vsel %vm11920_vm2, %v1173_v55, %v616_v33 }
 0x13a   : > { %1070 = vrot.lane.b32.xlu1 %v1035_v31, %s7239_s26  ;;  %v8274_v19 = vmul.u32.u64.low 3817748708, %v1728_v40  ;;  %v8275_v31 = vmul.u32.u64.high 3817748708, %v1728_v40, %v8274_v19  ;;  %s11824_s26 = scalar_lea.hbm %s11881_s5, %s6823_s12 }
 0x13b   : > { %v667_v38 = vpop.permute.xlu0 %666 }
 0x13c   : > { %v669_v14 = vpop.permute.xlu1 %668  ;;  %v1245_v35 = vsel %vm1223_vm9, %v1208_v34, %v667_v38 }
 0x13d   : > { %1145 = vrot.lane.b32.xlu0 %v1110_v52, %s7240_s30  ;;  %v1247_v54 = vsel %vm1223_vm9, %v1210_v57, %v669_v14 }
 0x13e   : > { %1147 = vrot.lane.b32.xlu1 %v1112_v45, %s7240_s30 }
 0x13f   : > { %v797_v7 = vpop.permute.xlu0 %796 }
 0x140   : > { %v799_v44 = vpop.permute.xlu1 %798  ;;  %v1282_v22 = vsel %vm1260_vm10, %v1245_v35, %v797_v7 }
 0x141   : > { %v1284_v41 = vsel %vm1260_vm10, %v1247_v54, %v799_v44  ;;  %v1791_v44 = vshrl.u32 %v8264_v46, 4  ;;  %v3050_v46 = vld [vmem:[#allocation2] sm:$0xf] }
 0x143   : > { %v874_v6 = vpop.permute.xlu0 %873 }
 0x144   : > { %v876_v20 = vpop.permute.xlu1 %875  ;;  %v1319_v47 = vsel %vm11896_vm11, %v1282_v22, %v874_v6  ;;  %v1792_v22 = vmul.u32 18, %v1791_v44 }
 0x145   : > { %v1321_v42 = vsel %vm11896_vm11, %v1284_v41, %v876_v20  ;;  %v1769_v20 = vshrl.u32 %v8269_v53, 4  ;;  %v8308_v41 = vadd.s32 32, %v8259_v25 }
 0x147   : > { %v927_v10 = vpop.permute.xlu0 %926  ;;  %v1770_v57 = vmul.u32 18, %v1769_v20 }
 0x148   : > { %v929_v32 = vpop.permute.xlu1 %928  ;;  %v1356_v13 = vsel %vm11895_vm12, %v1319_v47, %v927_v10  ;;  %v1802_v10 = vshrl.u32 %v8272_v61, 4 }
 0x149   : > { %v1358_v37 = vsel %vm11895_vm12, %v1321_v42, %v929_v32  ;;  %v8312_v42 = vadd.s32 56, %v8259_v25 }
 0x14b   : > { %v1057_v59 = vpop.permute.xlu0 %1056 }
 0x14c   : > { %v1059_v2 = vpop.permute.xlu1 %1058  ;;  %v1393_v23 = vsel %vm11894_vm13, %v1356_v13, %v1057_v59  ;;  %v1803_v13 = vmul.u32 18, %v1802_v10 }
 0x14d   : > { %v1395_v60 = vsel %vm11894_vm13, %v1358_v37, %v1059_v2  ;;  %v1780_v2 = vshrl.u32 %v8275_v31, 4  ;;  %v8315_v37 = vadd.s32 40, %v8259_v25 }
 0x14f   : > { %v1134_v30 = vpop.permute.xlu0 %1133 }
 0x150   : > { %v541_v50 = vpop.permute.xlu1 %540  ;;  %v1430_v24 = vsel %vm11893_vm14, %v1393_v23, %v1134_v30 }
 0x151   : > { %6894 = vmatprep.mubr.msk.bf16.mxu0 %vm11921_vm3, %v1430_v24  ;;  %v1175_v51 = vsel %vm1149_vm7, %v7692_v17, %v541_v50  ;;  %vm11923_vm3 = vmmov %vm11920_vm2 }
 0x153   : > { %v1136_v43 = vpop.permute.xlu0 %1135 }
 0x154   : > { %v543_v21 = vpop.permute.xlu1 %542  ;;  %v1432_v27 = vsel %vm11893_vm14, %v1395_v60, %v1136_v43 }
 0x155   : > { %6895 = vmatmul.mubr.msk.bf16.gmra.mrb[20].mxu0 %vm11922_vm6, %v1432_v27  ;;  %v1177_v52 = vsel %vm1149_vm7, %v7766_v48, %v543_v21  ;;  %v8291_v48 = vadd.s32 48, %v8259_v25  ;;  %v1781_v21 = vmul.u32 18, %v1780_v2  ;;  %v1793_v27 = vsub.s32 %v1729_v0, %v1792_v22  ;;  %v8386_v2 = vld [vmem:[#allocation2] sm:$0xe] }
 0x157   : > { %v618_v29 = vpop.permute.xlu0 %617  ;;  %v8304_v23 = vmul.u32.u64.low 3817748708, %v8291_v48  ;;  %v8305_v30 = vmul.u32.u64.high 3817748708, %v8291_v48, %v8304_v23  ;;  %v1782_v0 = vsub.s32 %v1728_v40, %v1781_v21  ;;  %v8350_v40 = vadd.s32 80, %v8259_v25  ;;  %v8416_v21 = vld [vmem:[%s11878_s2] ss:$0 sm:$0xff] }
 0x158   : > { %v620_v8 = vpop.permute.xlu1 %619  ;;  %v1212_v33 = vsel %vm11920_vm2, %v1175_v51, %v618_v29  ;;  %vm11924_vm2 = vmmov %vm11922_vm6  ;;  %v1771_v29 = vsub.s32 %v8259_v25, %v1770_v57 }
 0x159   : > { %v1214_v17 = vsel %vm11923_vm3, %v1177_v52, %v620_v8  ;;  %v1804_v8 = vsub.s32 %v1730_v4, %v1803_v13  ;;  %vm2161_vm3 = vcmp.ne.s32.totalorder %v1793_v27, 0  ;;  %v1835_v53 = vshrl.u32 %v8305_v30, 4 }
 0x15a   : > { %vm2195_vm5 = vcmp.lt.s32.totalorder %v1771_v29, 0  ;;  %v2267_v19 = vadd.s32 18, %v1771_v29  ;;  %v8364_v52 = vcombine.low %v3050_v46, %v8340_v11  ;;  %v8396_v30 = vadd.s32 64, %v8259_v25 }
 0x15b   : > { %v671_v1 = vpop.permute.xlu0 %670  ;;  %vm2162_vm1 = vcmp.ne.s32.totalorder %v1804_v8, 0  ;;  %vm2198_vm0 = vcmp.lt.s32.totalorder %v1804_v8, 0  ;;  %v2270_v51 = vadd.s32 18, %v1804_v8 }
 0x15c   : > { %v673_v58 = vpop.permute.xlu1 %672  ;;  %v1249_v38 = vsel %vm1223_vm9, %v1212_v33, %v671_v1  ;;  %v8323_v5 = vmul.u32.u64.low 3817748708, %v8308_v41  ;;  %v8324_v1 = vmul.u32.u64.high 3817748708, %v8308_v41, %v8323_v5  ;;  %v2268_v33 = vadd.s32 18, %v1782_v0 }
 0x15d   : > { %v1251_v28 = vsel %vm1223_vm9, %v1214_v17, %v673_v58  ;;  %v8374_v10 = vmul.u32.u64.low 3817748708, %v8350_v40  ;;  %v8375_v17 = vmul.u32.u64.high 3817748708, %v8350_v40, %v8374_v10  ;;  %v8424_v5 = vadd.s32 72, %v8259_v25 }
 0x15f   : > { %v801_v63 = vpop.permute.xlu0 %800  ;;  %v1879_v61 = vshrl.u32 %v8375_v17, 4 }
 0x160   : > { %v803_v56 = vpop.permute.xlu1 %802  ;;  %v1286_v14 = vsel %vm1260_vm10, %v1249_v38, %v801_v63  ;;  %v1813_v38 = vshrl.u32 %v8324_v1, 4 }
 0x161   : > { %v1288_v55 = vsel %vm1260_vm10, %v1251_v28, %v803_v56  ;;  %v8329_v63 = vmul.u32.u64.low 3817748708, %v8312_v42  ;;  %v8330_v56 = vmul.u32.u64.high 3817748708, %v8312_v42, %v8329_v63 }
 0x163   : > { %v878_v39 = vpop.permute.xlu0 %877  ;;  %v1846_v44 = vshrl.u32 %v8330_v56, 4 }
 0x164   : > { %v880_v12 = vpop.permute.xlu1 %879  ;;  %v1323_v6 = vsel %vm11896_vm11, %v1286_v14, %v878_v39 }
 0x165   : > { %v1325_v47 = vsel %vm11896_vm11, %v1288_v55, %v880_v12  ;;  %v8333_v39 = vmul.u32.u64.low 3817748708, %v8315_v37  ;;  %v8334_v12 = vmul.u32.u64.high 3817748708, %v8315_v37, %v8333_v39  ;;  %vm8359_vm11 = vmand %vm2198_vm0, %vm2162_vm1  ;;  %v1814_v55 = vmul.u32 18, %v1813_v38 }
 0x166   : > { %v1847_v57 = vmul.u32 18, %v1846_v44  ;;  %v8459_v38 = vmul.u32.u64.low 3817748708, %v8424_v5  ;;  %v8460_v14 = vmul.u32.u64.high 3817748708, %v8424_v5, %v8459_v38 }
 0x167   : > { %v931_v15 = vpop.permute.xlu0 %930  ;;  %v8430_v56 = vsub.s32 %v8308_v41, %v1814_v55  ;;  %v7151_v41 = vld [vmem:[%s7332_s9 + $0x70] sm:$0xff]  }
 0x168   : > { %v933_v18 = vpop.permute.xlu1 %932  ;;  %v1360_v32 = vsel %vm11895_vm12, %v1323_v6, %v931_v15  ;;  %v2269_v15 = vadd.s32 18, %v1793_v27  ;;  %v1824_v6 = vshrl.u32 %v8334_v12, 4  ;;  %v8433_v39 = vsub.s32 %v8312_v42, %v1847_v57 }
 0x169   : > { %v1362_v54 = vsel %vm11895_vm12, %v1325_v47, %v933_v18 }
 0x16a   : > { %v1825_v13 = vmul.u32 18, %v1824_v6 }
 0x16b   : > { %v1061_v45 = vpop.permute.xlu0 %1060 }
 0x16c   : > { %v1063_v7 = vpop.permute.xlu1 %1062  ;;  %v1397_v9 = vsel %vm11894_vm13, %v1360_v32, %v1061_v45  ;;  %v8436_v12 = vsub.s32 %v8315_v37, %v1825_v13 }
 0x16d   : > { %v1399_v50 = vsel %vm11894_vm13, %v1362_v54, %v1063_v7  ;;  %vm2196_vm13 = vcmp.lt.s32.totalorder %v1782_v0, 0  ;;  %v1836_v7 = vmul.u32 18, %v1835_v53 }
 0x16f   : > { %v1138_v34 = vpop.permute.xlu0 %1137  ;;  %v8389_v47 = vsub.s32 %v8291_v48, %v1836_v7 }
 0x170   : > { %v8296_v35 = vpop.permute.xlu1 %544  ;;  %v1434_v59 = vsel %vm11893_vm14, %v1397_v9, %v1138_v34  ;;  %v2306_v9 = vsel %vm8359_vm11, %v2270_v51, %v1804_v8  ;;  %vm11941_vm11 = vcmask 64512  }
 0x171   : > { %6898 = vmatprep.mubr.msk.bf16.mxu0 %vm11922_vm6, %v1434_v59  ;;  %vm2197_vm6 = vcmp.lt.s32.totalorder %v1793_v27, 0  ;;  %v3196_v59 = vshll.u32 %v8364_v52, 16  ;;  %v8427_v63 = vadd.s32 18, %v8389_v47  ;;  %v1179_v42 = vsel %vm1149_vm7, %v7151_v41, %v8296_v35 }
 0x172   : > { %vm8345_vm4 = vmand %vm2197_vm6, %vm2161_vm3 }
 0x173   : > { %v1140_v24 = vpop.permute.xlu0 %1139  ;;  %v2305_v32 = vsel %vm8345_vm4, %v2269_v15, %v1793_v27  ;;  %vm8402_vm4 = vcmp.lt.s32.totalorder %v2306_v9, 16  ;;  %v6747_v27 = vcombine.low %v8386_v2, %v8340_v11  ;;  %v8421_v8 = vrot.slane %v3196_v59, 1 }
 0x174   : > { %v8317_v60 = vpop.permute.xlu1 %546  ;;  %v1436_v43 = vsel %vm11893_vm14, %v1399_v50, %v1140_v24  ;;  %vm2160_vm14 = vcmp.ne.s32.totalorder %v1782_v0, 0  ;;  %vm8391_vm0 = vcmp.lt.s32.totalorder %v2305_v32, 16 }
 0x175   : > { %6899 = vmatmul.mubr.msk.bf16.gmra.mrb[24].mxu0 %vm11924_vm2, %v1436_v43  ;;  %vm2159_vm2 = vcmp.ne.s32.totalorder %v1771_v29, 0  ;;  %vm8367_vm3 = vmand %vm2196_vm13, %vm2160_vm14  ;;  %v8411_v43 = vadd.s32 88, %v8259_v25  ;;  %v8443_v15 = vmul.u32.u64.low 3817748708, %v8396_v30  ;;  %v8444_v18 = vmul.u32.u64.high 3817748708, %v8396_v30, %v8443_v15 }
 0x176   : > { %vm8354_vm12 = vmand %vm2195_vm5, %vm2159_vm2  ;;  %v2304_v34 = vsel %vm8367_vm3, %v2268_v33, %v1782_v0  ;;  %v1181_v0 = vsel %vm1149_vm7, %v7879_v36, %v8317_v60  ;;  %vm11943_vm14 = vcmask 162816   ;;  %vm2165_vm2 = vcmp.ne.s32.totalorder %v8389_v47, 0 }
 0x177   : > { %v8326_v58 = vpop.permute.xlu0 %621  ;;  %v2303_v28 = vsel %vm8354_vm12, %v2267_v19, %v1771_v29  ;;  %vm8406_vm5 = vcmp.lt.s32.totalorder %v2304_v34, 16  ;;  %v3194_v29 = vshrl.u32 %v8364_v52, 16  ;;  %vm2611_vm12 = vsmask.f32 5392  ;;  %vm11942_vm13 = vmmov %vm11941_vm11 }
 0x178   : > { %v8336_v49 = vpop.permute.xlu1 %623  ;;  %vm8398_vm1 = vcmp.lt.s32.totalorder %v2303_v28, 16  ;;  %v8451_v31 = vmul.u32.u64.low 3817748708, %v8411_v43  ;;  %v8452_v51 = vmul.u32.u64.high 3817748708, %v8411_v43, %v8451_v31  ;;  %v1216_v36 = vsel %vm11941_vm11, %v1179_v42, %v8326_v58  ;;  %vm11944_vm6 = vmmov %vm11943_vm14 }
 0x179   : > { %v1218_v35 = vsel %vm11942_vm13, %v1181_v0, %v8336_v49  ;;  %vm2201_vm3 = vcmp.lt.s32.totalorder %v8389_v47, 0  ;;  %vm11945_vm11 = vcmask 195584   ;;  %v3380_v17 = vrot.slane %v6747_v27, 1 }
 0x17a   : > { %vm11946_vm13 = vmmov %vm11945_vm11 }
 0x17b   : > { %v8338_v4 = vpop.permute.xlu0 %674 }
 0x17c   : > { %v8343_v16 = vpop.permute.xlu1 %676  ;;  %v1253_v7 = vsel %vm1223_vm9, %v1216_v36, %v8338_v4 }
 0x17d   : > { %v1255_v32 = vsel %vm1223_vm9, %v1218_v35, %v8343_v16 }
 0x17f   : > { %v805_v45 = vpop.permute.xlu0 %804 }
 0x180   : > { %v807_v20 = vpop.permute.xlu1 %806  ;;  %v1290_v28 = vsel %vm1260_vm10, %v1253_v7, %v805_v45 }
 0x181   : > { %v1292_v59 = vsel %vm1260_vm10, %v1255_v32, %v807_v20  ;;  %v3009_v32 = vld [vmem:[#allocation2 + $0x8] sm:$0xe] }
 0x183   : > { %v882_v22 = vpop.permute.xlu0 %881 }
 0x184   : > { %v884_v54 = vpop.permute.xlu1 %883  ;;  %v1327_v49 = vsel %vm11943_vm14, %v1290_v28, %v882_v22  ;;  %vm2199_vm14 = vcmp.lt.s32.totalorder %v8430_v56, 0 }
 0x185   : > { %v1329_v13 = vsel %vm11944_vm6, %v1292_v59, %v884_v54 }
 0x187   : > { %v935_v1 = vpop.permute.xlu0 %934 }
 0x188   : > { %v937_v46 = vpop.permute.xlu1 %936  ;;  %v6876_v53 = vpop.f32.mrb[0].mxu0  ;;  %v1364_v20 = vsel %vm11946_vm13, %v1327_v49, %v935_v1  ;;  %vm11953_vm13 = vcmask 293888  }
 0x189   : > { %v1556_v19 = vadd.f32 %v6876_v53, %v8416_v21  ;;  %v1547_v37 = vpop.f32.mrb[1].mxu0  ;;  %v1366_v45 = vsel %vm11945_vm11, %v1329_v13, %v937_v46 }
 0x18a   : > { %v1548_v60 = vadd.f32 %v8416_v21, %v1547_v37  ;;  %v6877_v33 = vpop.f32.mrb[2].mxu0 }
 0x18b   : > { %v1692_v44 = vmax.f32 %v1556_v19, 0.0  ;;  %v1559_v6 = vadd.f32 %v6877_v33, %v8416_v21  ;;  %v1550_v10 = vpop.f32.mrb[3].mxu0  ;;  %v1065_v58 = vpop.permute.xlu0 %1064 }
 0x18c   : > { %v1690_v9 = vmax.f32 %v1548_v60, 0.0  ;;  %v1067_v34 = vpop.permute.xlu1 %1066  ;;  %v1551_v55 = vadd.f32 %v8416_v21, %v1550_v10 }
 0x18d   : > { %v2449_v4 = vsel %vm8391_vm0, %v1692_v44, 0.0  ;;  %v1693_v57 = vmax.f32 %v1559_v6, 0.0  ;;  %vm2163_vm0 = vcmp.ne.s32.totalorder %v8430_v56, 0 }
 0x18e   : > { %v6789_v0 = vpack.c.bf16 %v2449_v4, %v2449_v4  ;;  %v2447_v16 = vsel %vm8398_vm1, %v1690_v9, 0.0  ;;  %v1691_v53 = vmax.f32 %v1551_v55, 0.0  ;;  %vm11947_vm1 = vcmask 228352  }
 0x18f   : > { %v6787_v22 = vpack.c.bf16 %v2447_v16, %v2447_v16  ;;  %v2450_v23 = vsel %vm8402_vm4, %v1693_v57, 0.0  ;;  %v1142_v15 = vpop.permute.xlu0 %1141  ;;  %v1401_v31 = vsel %vm11947_vm1, %v1364_v20, %v1065_v58  ;;  %vm11948_vm4 = vcmask 261120   ;;  %vm11952_vm11 = vmmov %vm11947_vm1 }
 0x190   : > { %v2633_v54 = vshrl.u32 %v6789_v0, 16  ;;  %v2636_v50 = vshll.u32 %v6789_v0, 16  ;;  %v6790_v41 = vpack.c.bf16 %v2450_v23, %v2450_v23  ;;  %v2448_v42 = vsel %vm8406_vm5, %v1691_v53, 0.0  ;;  %v8489_v19 = vpop.permute.xlu1 %548  ;;  %vm11954_vm1 = vmmov %vm11948_vm4 }
 0x191   : > { %v2614_v46 = vshrl.u32 %v6787_v22, 16  ;;  %v2617_v37 = vshll.u32 %v6787_v22, 16  ;;  %v6788_v1 = vpack.c.bf16 %v2448_v42, %v2448_v42  ;;  %v1438_v9 = vsel %vm11948_vm4, %v1401_v31, %v1142_v15 }
 0x192   : > { %v2635_v24 = vrot.slane %v2633_v54, 6  ;;  %v2638_v36 = vrot.slane %v2636_v50, 7  ;;  %v2643_v60 = vshrl.u32 %v6790_v41, 16  ;;  %v2646_v33 = vshll.u32 %v6790_v41, 16  ;;  %6902 = vmatprep.mubr.msk.bf16.mxu0 %vm11953_vm13, %v1438_v9 }
 0x193   : > { %v2616_v38 = vrot.slane %v2614_v46, 6  ;;  %v2619_v35 = vrot.slane %v2617_v37, 7  ;;  %v2623_v7 = vshrl.u32 %v6788_v1, 16  ;;  %v2626_v44 = vshll.u32 %v6788_v1, 16  ;;  %v1144_v6 = vpop.permute.xlu0 %1143 }
 0x194   : > { %v2639_v10 = vor.u32 %v2638_v36, %v2635_v24  ;;  %v2645_v48 = vrot.slane %v2643_v60, 6  ;;  %v2648_v28 = vrot.slane %v2646_v33, 7  ;;  %v551_v55 = vpop.permute.xlu1 %550  ;;  %vm11949_vm5 = vsmask.f32 1280 }
 0x195   : > { %vm8495_vm6 = vmor %vm11949_vm5, %vm2611_vm12  ;;  %v2620_v59 = vor.u32 %v2619_v35, %v2616_v38  ;;  %v1403_v49 = vsel %vm11952_vm11, %v1366_v45, %v1067_v34  ;;  %v2625_v4 = vrot.slane %v2623_v7, 6  ;;  %v2628_v57 = vrot.slane %v2626_v44, 7 }
 0x196   : > { %v2641_v13 = vrot.slane %v2639_v10, 4  ;;  %v8501_v0 = vor.u32 %v2648_v28, %v2645_v48  ;;  %v1440_v16 = vsel %vm11954_vm1, %v1403_v49, %v1144_v6  ;;  %v8505_v53 = vadd.s32 112, %v8259_v25  ;;  %vm11955_vm12 = vmmov %vm11953_vm13 }
 0x197   : > { %v2621_v20 = vrot.slane %v2620_v59, 4  ;;  %v3010_v22 = vsel %vm8122_vm15, %v2620_v59, %v3009_v32  ;;  %v2629_v23 = vor.u32 %v2628_v57, %v2625_v4  ;;  %6903 = vmatmul.mubr.msk.bf16.gmra.mrb[28].mxu0 %vm11955_vm12, %v1440_v16  ;;  %v626_v34 = vpop.permute.xlu0 %625  ;;  %v1857_v45 = vshrl.u32 %v8444_v18, 4  ;;  %vm8524_vm15 = vmand %vm2201_vm3, %vm2165_vm2 }
 0x198   : > { %3011 = vst [vmem:[#allocation2 + $0x8] sm:$0xe] %v3010_v22  ;;  %v2650_v15 = vsel %vm8495_vm6, %v2641_v13, %v8501_v0  ;;  %v628_v54 = vpop.permute.xlu1 %627  ;;  %v2271_v50 = vadd.s32 18, %v8430_v56  ;;  %vm2166_vm4 = vcmp.ne.s32.totalorder %v8433_v39, 0  ;;  %vm2202_vm5 = vcmp.lt.s32.totalorder %v8433_v39, 0 }
 0x199   : > { %vm11956_vm11 = vcmask 60416   ;;  %v2630_v3 = vsel %vm8495_vm6, %v2621_v20, %v2629_v23  ;;  %v2631_v41 = vrot.slane %v2629_v23, 4  ;;  %vm2164_vm13 = vcmp.ne.s32.totalorder %v8436_v12, 0  ;;  %vm8551_vm2 = vmand %vm2202_vm5, %vm2166_vm4 }
 0x19a   : > { %3014 = vst.msk [vmem:[#allocation2 + $0x14] sm:$0xf] %vm11956_vm11, %v2650_v15  ;;  %vm2200_vm1 = vcmp.lt.s32.totalorder %v8436_v12, 0  ;;  %vm11959_vm12 = vmmov %vm11956_vm11  ;;  %v2274_v46 = vadd.s32 18, %v8433_v39  ;;  %v2272_v37 = vadd.s32 18, %v8436_v12  ;;  %v1880_v33 = vmul.u32 18, %v1879_v61 }
 0x19b   : > { %3012 = vst.msk [vmem:[#allocation2 + $0xc] sm:$0xf] %vm11959_vm12, %v2630_v3  ;;  %vm8535_vm11 = vmand %vm2199_vm14, %vm2163_vm0  ;;  %v8542_v1 = vmul.u32.u64.low 3817748708, %v8505_v53  ;;  %v8543_v31 = vmul.u32.u64.high 3817748708, %v8505_v53, %v8542_v1  ;;  %v2640_v24 = vsel %vm8495_vm6, %v2631_v41, %v2639_v10  ;;  %v679_v36 = vpop.permute.xlu0 %678  ;;  %v1858_v38 = vmul.u32 18, %v1857_v45 }
 0x19c   : > { %v1890_v35 = vshrl.u32 %v8452_v51, 4  ;;  %vm11964_vm3 = vmmov %vm11959_vm12  ;;  %v681_v7 = vpop.permute.xlu1 %680  ;;  %v1868_v6 = vshrl.u32 %v8460_v14, 4  ;;  %v8567_v10 = vadd.s32 96, %v8259_v25  ;;  %v8575_v61 = vor.u32 %v8421_v8, %v3194_v29 }
 0x19d   : > { %3013 = vst.msk [vmem:[#allocation2 + $0x10] sm:$0xf] %vm11964_vm3, %v2640_v24  ;;  %vm8561_vm0 = vmand %vm2200_vm1, %vm2164_vm13  ;;  %v8578_v51 = vadd.s32 120, %v8259_v25  ;;  %v1185_v32 = vsel %vm1149_vm7, %v7997_v26, %v551_v55  ;;  %v2309_v14 = vsel %vm8524_vm15, %v8427_v63, %v8389_v47  ;;  %v2307_v11 = vsel %vm8535_vm11, %v2271_v50, %v8430_v56  ;;  %v7152_v63 = vld [vmem:[%s7332_s9 + $0x80] sm:$0xff]   ;;  %s7242_s9 = smov 40  }
 0x19e   : > { %v2310_v2 = vsel %vm8551_vm2, %v2274_v46, %v8433_v39  ;;  %v2308_v29 = vsel %vm8561_vm0, %v2272_v37, %v8436_v12  ;;  %v8596_v26 = vsub.s32 %v8350_v40, %v1880_v33  ;;  %v8599_v8 = vsub.s32 %v8396_v30, %v1858_v38 }
 0x19f   : > { %v809_v27 = vpop.permute.xlu0 %808  ;;  %v1891_v47 = vmul.u32 18, %v1890_v35  ;;  %v1183_v56 = vsel %vm1149_vm7, %v7152_v63, %v8489_v19  ;;  %v8604_v28 = vmul.u32 18, %v1868_v6  ;;  %vm11967_vm14 = vcmask 64512   ;;  %v3052_v55 = vld [vmem:[#allocation2 + $0x8] sm:$0xf] }
 0x1a0   : > { %v811_v48 = vpop.permute.xlu1 %810  ;;  %v8607_v39 = vmul.u32.u64.low 3817748708, %v8567_v10  ;;  %v8608_v9 = vmul.u32.u64.high 3817748708, %v8567_v10, %v8607_v39  ;;  %v1222_v12 = vsel %vm11967_vm14, %v1185_v32, %v628_v54  ;;  %vm11968_vm4 = vmmov %vm11967_vm14  ;;  %vm8622_vm7 = vcmp.lt.s32.totalorder %v2309_v14, 16  ;;  %v3088_v16 = vld [vmem:[#allocation2 + $0x8] sm:$0xe] }
 0x1a1   : > { %v1220_v40 = vsel %vm11968_vm4, %v1183_v56, %v626_v34  ;;  %v8614_v59 = vmul.u32.u64.low 3817748708, %v8578_v51  ;;  %v8615_v49 = vmul.u32.u64.high 3817748708, %v8578_v51, %v8614_v59  ;;  %v1259_v19 = vsel %vm1223_vm9, %v1222_v12, %v681_v7  ;;  %v8629_v15 = vld [vmem:[#allocation2 + $0x14] sm:$0xf]  ;;  %v3093_v3 = vld [vmem:[#allocation2 + $0x8] sm:$0xc] }
 0x1a2   : > { %v3053_v30 = vld [vmem:[#allocation2 + $0xc] sm:$0xf]  ;;  %v1257_v4 = vsel %vm1223_vm9, %v1220_v40, %v679_v36  ;;  %v1923_v20 = vshrl.u32 %v8543_v31, 4  ;;  %v1296_v22 = vsel %vm1260_vm10, %v1259_v19, %v811_v48  ;;  %vm8631_vm5 = vcmp.lt.s32.totalorder %v2307_v11, 16 }
 0x1a3   : > { %v8620_v57 = vcombine.low %v3052_v55, %v3053_v30  ;;  %v1294_v23 = vsel %vm1260_vm10, %v1257_v4, %v809_v27  ;;  %v886_v34 = vpop.permute.xlu0 %885  ;;  %v6748_v50 = vcombine.low %v3088_v16, %v3053_v30  ;;  %v8636_v41 = vsub.s32 %v8411_v43, %v1891_v47 }
 0x1a4   : > { %v3054_v45 = vld [vmem:[#allocation2 + $0x10] sm:$0xf]  ;;  %v888_v18 = vpop.permute.xlu1 %887  ;;  %vm8642_vm9 = vcmp.lt.s32.totalorder %v2310_v2, 16  ;;  %v6752_v24 = vcombine.low %v3093_v3, %v3053_v30  ;;  %vm11975_vm15 = vcmask 162816   ;;  %vm8649_vm1 = vcmp.lt.s32.totalorder %v2308_v29, 16 }
 0x1a5   : > { %v3381_v42 = vrot.slane %v8620_v57, 1  ;;  %v8640_v46 = vcombine.low %v3054_v45, %v8629_v15  ;;  %v3201_v1 = vshll.u32 %v8620_v57, 16  ;;  %v1333_v36 = vsel %vm11975_vm15, %v1296_v22, %v888_v18  ;;  %vm11976_vm13 = vmmov %vm11975_vm15 }
 0x1a6   : > { %v1331_v60 = vsel %vm11976_vm13, %v1294_v23, %v886_v34  ;;  %v3205_v33 = vshrl.u32 %v8620_v57, 16  ;;  %v8655_v38 = vadd.s32 104, %v8259_v25  ;;  %vm11979_vm12 = vcmask 1046528  }
 0x1a7   : > { %v3382_v35 = vsel %vm11979_vm12, %v3380_v17, %v3381_v42  ;;  %v8659_v7 = vrot.slane %v8640_v46, 1  ;;  %v3203_v44 = vrot.slane %v3201_v1, 1  ;;  %v3209_v6 = vshll.u32 %v8640_v46, 16  ;;  %v939_v32 = vpop.permute.xlu0 %938  ;;  %vm11980_vm11 = vmmov %vm11979_vm12 }
 0x1a8   : > { %3417 = vrot.lane.b32.xlu0 %v3382_v35, %s7237_s23  ;;  %v3464_v14 = vrot.slane %v6748_v50, 1  ;;  %v3213_v11 = vshrl.u32 %v8640_v46, 16  ;;  %v3510_v2 = vshrl.u32 %v6748_v50, 16  ;;  %v3513_v27 = vshll.u32 %v6748_v50, 16  ;;  %v941_v29 = vpop.permute.xlu1 %940  ;;  %v6880_v47 = vpop.f32.mrb[4].mxu0  ;;  %vm11984_vm14 = vmmov %vm11980_vm11 }
 0x1a9   : > { %v3384_v63 = vsel %vm11980_vm11, %v3381_v42, %v8659_v7  ;;  %v3207_v17 = vor.u32 %v3205_v33, %v3203_v44  ;;  %v3638_v56 = vrot.slane %v6752_v24, 2  ;;  %v3639_v48 = vrot.slane %v8640_v46, 2  ;;  %v1563_v40 = vpop.f32.mrb[5].mxu0 }
 0x1aa   : > { %vm11981_vm2 = vcmask 195584   ;;  %v1572_v12 = vadd.f32 %v6880_v47, %v8416_v21  ;;  %3419 = vrot.lane.b32.xlu1 %v3384_v63, %s7237_s23  ;;  %vm11982_vm3 = vsmask.f32 7424  ;;  %v8672_v30 = vrot.slane %v3209_v6, 1  ;;  %v6881_v4 = vpop.f32.mrb[6].mxu0 }
 0x1ab   : > { %v1368_v39 = vsel %vm11981_vm2, %v1331_v60, %v939_v32  ;;  %v3204_v55 = vsel %vm11982_vm3, %v8575_v61, %v3203_v44  ;;  %vm11983_vm0 = vmmov %vm11981_vm2  ;;  %v1564_v19 = vadd.f32 %v8416_v21, %v1563_v40  ;;  %v8676_v16 = vrot.slane %v3510_v2, 1  ;;  %v1566_v45 = vpop.f32.mrb[7].mxu0  ;;  %v1069_v50 = vpop.permute.xlu0 %1068 }
 0x1ac   : > { %v1370_v59 = vsel %vm11983_vm0, %v1333_v36, %v941_v29  ;;  %v8678_v22 = vrot.slane %v3513_v27, 2  ;;  %v1696_v23 = vmax.f32 %v1572_v12, 0.0  ;;  %v1575_v34 = vadd.f32 %v6881_v4, %v8416_v21  ;;  %3341 = vrot.lane.b32.xlu0 %v3204_v55, %s7234_s11  ;;  %v1071_v42 = vpop.permute.xlu1 %1070  ;;  %vm11985_vm4 = vmmov %vm11982_vm3 }
 0x1ad   : > { %v3465_v61 = vsel %vm11984_vm14, %v3464_v14, %v8659_v7  ;;  %v3517_v3 = vrot.slane %v3213_v11, 1  ;;  %v1694_v18 = vmax.f32 %v1564_v19, 0.0  ;;  %v1567_v1 = vadd.f32 %v8416_v21, %v1566_v45 }
 0x1ae   : > { %v3212_v24 = vsel %vm11985_vm4, %v3207_v17, %v8672_v30  ;;  %vm11986_vm15 = vcmask 1045504   ;;  %v2453_v60 = vsel %vm8622_vm7, %v1696_v23, 0.0  ;;  %v1697_v33 = vmax.f32 %v1575_v34, 0.0 }
 0x1af   : > { %v3640_v36 = vsel %vm11986_vm15, %v3638_v56, %v3639_v48  ;;  %vm11987_vm13 = vcmask 228352   ;;  %3343 = vrot.lane.b32.xlu1 %v3212_v24, %s7234_s11  ;;  %v3518_v44 = vrot.slane %v3209_v6, 2  ;;  %v6793_v32 = vpack.c.bf16 %v2453_v60, %v2453_v60 }
 0x1b0   : > { %v1405_v35 = vsel %vm11987_vm13, %v1368_v39, %v1069_v50  ;;  %v2451_v14 = vsel %vm8631_vm5, %v1694_v18, 0.0  ;;  %v1695_v2 = vmax.f32 %v1567_v1, 0.0  ;;  %v3516_v27 = vor.u32 %v8678_v22, %v8676_v16  ;;  %vm11988_vm12 = vmmov %vm11987_vm13  ;;  %3470 = vrot.lane.b32.xlu0 %v3465_v61, %s7238_s25  ;;  %v1148_v39 = vpop.permute.xlu1 %1147 }
 0x1b1   : > { %v6791_v29 = vpack.c.bf16 %v2451_v14, %v2451_v14  ;;  %v2454_v47 = vsel %vm8642_vm9, %v1697_v33, 0.0  ;;  %v1407_v13 = vsel %vm11988_vm12, %v1370_v59, %v1071_v42  ;;  %v8704_v63 = vor.u32 %v3518_v44, %v3517_v3  ;;  %v1146_v59 = vpop.permute.xlu0 %1145 }
 0x1b2   : > { %v2673_v17 = vshrl.u32 %v6793_v32, 16  ;;  %v2676_v6 = vshll.u32 %v6793_v32, 16  ;;  %v6794_v56 = vpack.c.bf16 %v2454_v47, %v2454_v47  ;;  %v2452_v54 = vsel %vm8649_vm1, %v1695_v2, 0.0 }
 0x1b3   : > { %vm2169_vm7 = vcmp.ne.s32.totalorder %v8596_v26, 0  ;;  %vm2205_vm5 = vcmp.lt.s32.totalorder %v8596_v26, 0  ;;  %v2653_v12 = vshrl.u32 %v6791_v29, 16  ;;  %v2656_v37 = vshll.u32 %v6791_v29, 16 }
 0x1b4   : > { %v6792_v40 = vpack.c.bf16 %v2452_v54, %v2452_v54  ;;  %vm11989_vm9 = vcmask 261120   ;;  %v2675_v19 = vrot.slane %v2673_v17, 6  ;;  %v2678_v4 = vrot.slane %v2676_v6, 7  ;;  %3675 = vrot.lane.b32.xlu0 %v3640_v36, %s7242_s9 }
 0x1b5   : > { %v1444_v55 = vsel %vm11989_vm9, %v1407_v13, %v1148_v39  ;;  %v2683_v16 = vshrl.u32 %v6794_v56, 16  ;;  %v2686_v22 = vshll.u32 %v6794_v56, 16  ;;  %v2655_v23 = vrot.slane %v2653_v12, 6  ;;  %vm11990_vm1 = vmmov %vm11989_vm9 }
 0x1b6   : > { %v2658_v34 = vrot.slane %v2656_v37, 7  ;;  %v2663_v45 = vshrl.u32 %v6792_v40, 16  ;;  %v2666_v43 = vshll.u32 %v6792_v40, 16  ;;  %v2679_v50 = vor.u32 %v2678_v4, %v2675_v19 }
 0x1b7   : > { %v2685_v61 = vrot.slane %v2683_v16, 6  ;;  %v2688_v3 = vrot.slane %v2686_v22, 7  ;;  %v1442_v18 = vsel %vm11990_vm1, %v1405_v35, %v1146_v59  ;;  %v2651_v42 = vrot.slane %v8501_v0, 4  ;;  %vm8750_vm1 = vmand %vm2205_vm5, %vm2169_vm7  ;;  %v3099_v22 = vld [vmem:[#allocation2 + $0x10] sm:$0x8] }
 0x1b8   : > { %v2659_v1 = vor.u32 %v2658_v34, %v2655_v23  ;;  %v2665_v24 = vrot.slane %v2663_v45, 6  ;;  %v2668_v60 = vrot.slane %v2666_v43, 7  ;;  %vm11991_vm11 = vcmask 293888  }
 0x1b9   : > { %6906 = vmatprep.mubr.msk.bf16.mxu0 %vm11991_vm11, %v1442_v18  ;;  %v2681_v33 = vrot.slane %v2679_v50, 4  ;;  %v8715_v44 = vor.u32 %v2688_v3, %v2685_v61  ;;  %vm11992_vm2 = vmmov %vm11991_vm11  ;;  %vm11993_vm3 = vsmask.f32 6400  ;;  %vm2167_vm0 = vcmp.ne.s32.totalorder %v8599_v8, 0 }
 0x1ba   : > { %6907 = vmatmul.mubr.msk.bf16.gmra.mrb[32].mxu0 %vm11992_vm2, %v1444_v55  ;;  %v3520_v36 = vsel %vm11993_vm3, %v3516_v27, %v8704_v63  ;;  %v2660_v35 = vsel %vm8495_vm6, %v2651_v42, %v2659_v1  ;;  %v2661_v32 = vrot.slane %v2659_v1, 4  ;;  %v2669_v0 = vor.u32 %v2668_v60, %v2665_v24 }
 0x1bb   : > { %3599 = vrot.lane.b32.xlu0 %v3520_v36, %s7240_s30  ;;  %v1870_v14 = vsub.s32 %v8424_v5, %v8604_v28  ;;  %vm11994_vm14 = vcmask 60416   ;;  %v2690_v2 = vsel %vm8495_vm6, %v2681_v33, %v8715_v44  ;;  %vm2203_vm4 = vcmp.lt.s32.totalorder %v8599_v8, 0 }
 0x1bc   : > { %3015 = vst.msk [vmem:[#allocation2 + $0x18] sm:$0xf] %vm11994_vm14, %v2660_v35  ;;  %v8732_v27 = vmul.u32.u64.low 3817748708, %v8655_v38  ;;  %v8733_v29 = vmul.u32.u64.high 3817748708, %v8655_v38, %v8732_v27  ;;  %vm11995_vm15 = vmmov %vm11994_vm14  ;;  %v2670_v47 = vsel %vm8495_vm6, %v2661_v32, %v2669_v0  ;;  %v2671_v13 = vrot.slane %v2669_v0, 4 }
 0x1bd   : > { %3018 = vst.msk [vmem:[#allocation2 + $0x24] sm:$0xf] %vm11995_vm15, %v2690_v2  ;;  %v1924_v5 = vmul.u32 18, %v1923_v20  ;;  %v1901_v28 = vshrl.u32 %v8608_v9, 4  ;;  %vm11996_vm13 = vmmov %vm11994_vm14  ;;  %vm2170_vm12 = vcmp.ne.s32.totalorder %v8636_v41, 0  ;;  %vm2206_vm9 = vcmp.lt.s32.totalorder %v8636_v41, 0 }
 0x1be   : > { %3016 = vst.msk [vmem:[#allocation2 + $0x1c] sm:$0xf] %vm11996_vm13, %v2670_v47  ;;  %v2680_v17 = vsel %vm8495_vm6, %v2671_v13, %v2679_v50  ;;  %v2277_v31 = vadd.s32 18, %v8596_v26  ;;  %vm2168_vm11 = vcmp.ne.s32.totalorder %v1870_v14, 0  ;;  %vm2204_vm2 = vcmp.lt.s32.totalorder %v1870_v14, 0  ;;  %vm11999_vm3 = vmmov %vm11996_vm13 }
 0x1bf   : > { %3017 = vst.msk [vmem:[#allocation2 + $0x20] sm:$0xf] %vm11999_vm3, %v2680_v17  ;;  %v3094_v9 = vld [vmem:[#allocation2 + $0x10] sm:$0xc]  ;;  %vm8760_vm14 = vmand %vm2203_vm4, %vm2167_vm0  ;;  %v2275_v56 = vadd.s32 18, %v8599_v8  ;;  %v2278_v54 = vadd.s32 18, %v8636_v41  ;;  %v8771_v37 = vsub.s32 %v8505_v53, %v1924_v5  ;;  %v6757_v36 = vcombine.low %v3099_v22, %v8629_v15 }
 0x1c0   : > { %vm8766_vm7 = vmand %vm2206_vm9, %vm2170_vm12  ;;  %v2276_v12 = vadd.s32 18, %v1870_v14  ;;  %v1902_v40 = vmul.u32 18, %v1901_v28  ;;  %v1934_v55 = vshrl.u32 %v8615_v49, 4  ;;  %v8779_v19 = vadd.s32 144, %v8259_v25 }
 0x1c1   : > { %vm8774_vm5 = vmand %vm2204_vm2, %vm2168_vm11  ;;  %v6753_v4 = vcombine.low %v3094_v9, %v8629_v15  ;;  %v2313_v16 = vsel %vm8750_vm1, %v2277_v31, %v8596_v26  ;;  %v2311_v53 = vsel %vm8760_vm14, %v2275_v56, %v8599_v8  ;;  %v2314_v49 = vsel %vm8766_vm7, %v2278_v54, %v8636_v41 }
 0x1c2   : > { %v1912_v23 = vshrl.u32 %v8733_v29, 4  ;;  %v8793_v34 = vadd.s32 128, %v8259_v25  ;;  %v2312_v43 = vsel %vm8774_vm5, %v2276_v12, %v1870_v14  ;;  %v8800_v26 = vadd.s32 18, %v8771_v37 }
 0x1c3   : > { %v8803_v8 = vsub.s32 %v8567_v10, %v1902_v40  ;;  %v1935_v50 = vmul.u32 18, %v1934_v55  ;;  %vm8805_vm0 = vcmp.lt.s32.totalorder %v2313_v16, 16  ;;  %v8815_v18 = vadd.s32 152, %v8259_v25  ;;  %v7130_v10 = vld [vmem:[%s11879_s3] sm:$0xff]  }
 0x1c4   : > { %v8810_v61 = vmul.u32.u64.low 3817748708, %v8779_v19  ;;  %v8811_v3 = vmul.u32.u64.high 3817748708, %v8779_v19, %v8810_v61  ;;  %v8818_v42 = vadd.s32 136, %v8259_v25  ;;  %v3722_v60 = vrot.slane %v6753_v4, 2  ;;  %6910 = vmatprep.subr.bf16.mxu1 %v7130_v10 }
 0x1c5   : > { %v8795_v45 = vld [vmem:[#allocation2 + $0x18] sm:$0xff]   ;;  %vm8825_vm4 = vcmp.lt.s32.totalorder %v2311_v53, 16  ;;  %vm8830_vm15 = vcmp.lt.s32.totalorder %v2314_v49, 16  ;;  %v3768_v32 = vshrl.u32 %v6753_v4, 16  ;;  %v1913_v0 = vmul.u32 18, %v1912_v23  ;;  %6911 = vmatpush3.bf16.msra.mxu1 %v7130_v10 }
 0x1c6   : > { %v3385_v1 = vrot.slane %v8795_v45, 1  ;;  %v3641_v24 = vrot.slane %v8795_v45, 2  ;;  %v8835_v14 = vmul.u32.u64.low 3817748708, %v8793_v34  ;;  %v8836_v2 = vmul.u32.u64.high 3817748708, %v8793_v34, %v8835_v14  ;;  %v8849_v13 = vld [vmem:[#allocation2 + $0x20] sm:$0xff]  }
 0x1c7   : > { %vm12012_vm13 = vcmask 1046528   ;;  %vm12013_vm12 = vcmask 1045504   ;;  %vm8844_vm9 = vcmp.lt.s32.totalorder %v2312_v43, 16  ;;  %v3897_v47 = vrot.slane %v8795_v45, 3 }
 0x1c8   : > { %v3386_v27 = vsel %vm12012_vm13, %v8659_v7, %v3385_v1  ;;  %v3723_v29 = vsel %vm12013_vm12, %v3722_v60, %v3641_v24  ;;  %v8852_v5 = vsub.s32 %v8578_v51, %v1935_v50  ;;  %v8857_v7 = vshll.u32 %v8795_v45, 16  ;;  %v6884_v54 = vpop.f32.mrb[8].mxu0  ;;  %vm12016_vm1 = vmmov %vm12013_vm12 }
 0x1c9   : > { %3472 = vrot.lane.b32.xlu1 %v3386_v27, %s7238_s25  ;;  %3728 = vrot.lane.b32.xlu0 %v3723_v29, %s7243_s14  ;;  %v3771_v28 = vshll.u32 %v6753_v4, 16  ;;  %v8860_v17 = vmul.u32.u64.low 3817748708, %v8815_v18  ;;  %v8861_v6 = vmul.u32.u64.high 3817748708, %v8815_v18, %v8860_v17  ;;  %v3896_v31 = vrot.slane %v6757_v36, 3  ;;  %v1579_v59 = vpop.f32.mrb[9].mxu0  ;;  %vm12018_vm2 = vmmov %vm12016_vm1 }
 0x1ca   : > { %v8865_v9 = vshrl.u32 %v8795_v45, 16  ;;  %v8868_v51 = vmul.u32.u64.low 3817748708, %v8818_v42  ;;  %v8869_v20 = vmul.u32.u64.high 3817748708, %v8818_v42, %v8868_v51  ;;  %v2691_v56 = vrot.slane %v8715_v44, 4  ;;  %v6885_v22 = vpop.f32.mrb[10].mxu0 }
 0x1cb   : > { %v3215_v39 = vor.u32 %v3213_v11, %v8672_v30  ;;  %v8876_v12 = vrot.slane %v3768_v32, 2  ;;  %v8879_v40 = vsub.s32 %v8655_v38, %v1913_v0  ;;  %v1588_v55 = vadd.f32 %v6884_v54, %v8416_v21  ;;  %v1582_v43 = vpop.f32.mrb[11].mxu0 }
 0x1cc   : > { %v3642_v4 = vsel %vm12016_vm1, %v3639_v48, %v3641_v24  ;;  %vm12017_vm11 = vcmask 1044480   ;;  %v3643_v53 = vrot.slane %v8849_v13, 2  ;;  %v1580_v49 = vadd.f32 %v8416_v21, %v1579_v59 }
 0x1cd   : > { %v3898_v16 = vsel %vm12017_vm11, %v3896_v31, %v3897_v47  ;;  %3677 = vrot.lane.b32.xlu1 %v3642_v4, %s7242_s9  ;;  %v3219_v38 = vrot.slane %v8857_v7, 1  ;;  %v3899_v11 = vrot.slane %v8849_v13, 3  ;;  %v8892_v30 = vrot.slane %v3771_v28, 3  ;;  %vm12020_vm14 = vmmov %vm12017_vm11 }
 0x1ce   : > { %3933 = vrot.lane.b32.xlu0 %v3898_v16, %s7244_s15  ;;  %v1700_v23 = vmax.f32 %v1588_v55, 0.0  ;;  %v1591_v48 = vadd.f32 %v6885_v22, %v8416_v21  ;;  %v3521_v50 = vrot.slane %v8865_v9, 1  ;;  %v3522_v61 = vrot.slane %v8857_v7, 2 }
 0x1cf   : > { %v1698_v10 = vmax.f32 %v1580_v49, 0.0  ;;  %v1583_v60 = vadd.f32 %v8416_v21, %v1582_v43  ;;  %v3387_v36 = vrot.slane %v8849_v13, 1  ;;  %v8900_v32 = vshll.u32 %v8849_v13, 16 }
 0x1d0   : > { %v2457_v0 = vsel %vm8805_vm0, %v1700_v23, 0.0  ;;  %v1701_v14 = vmax.f32 %v1591_v48, 0.0  ;;  %v8907_v29 = vsel %vm12018_vm2, %v3641_v24, %v3643_v53  ;;  %v3775_v28 = vrot.slane %v8865_v9, 2  ;;  %vm12021_vm0 = vmmov %vm12012_vm13 }
 0x1d1   : > { %v6797_v17 = vpack.c.bf16 %v2457_v0, %v2457_v0  ;;  %v2455_v21 = vsel %vm8825_vm4, %v1698_v10, 0.0  ;;  %v1699_v31 = vmax.f32 %v1583_v60, 0.0  ;;  %3730 = vrot.lane.b32.xlu1 %v8907_v29, %s7243_s14  ;;  %vm12019_vm3 = vsmask.f32 7424 }
 0x1d2   : > { %3421 = vrot.lane.b32.xlu0 %v3386_v27, %s7237_s23  ;;  %v3220_v41 = vsel %vm12019_vm3, %v3215_v39, %v3219_v38  ;;  %v6795_v51 = vpack.c.bf16 %v2455_v21, %v2455_v21  ;;  %v2458_v54 = vsel %vm8830_vm15, %v1701_v14, 0.0  ;;  %v3900_v24 = vsel %vm12020_vm14, %v3897_v47, %v3899_v11 }
 0x1d3   : > { %v8921_v55 = vor.u32 %v3522_v61, %v3521_v50  ;;  %v2713_v33 = vshrl.u32 %v6797_v17, 16  ;;  %v2716_v59 = vshll.u32 %v6797_v17, 16  ;;  %v6798_v4 = vpack.c.bf16 %v2458_v54, %v2458_v54 }
 0x1d4   : > { %v2456_v16 = vsel %vm8844_vm9, %v1699_v31, 0.0  ;;  %v2693_v49 = vshrl.u32 %v6795_v51, 16  ;;  %v2696_v27 = vshll.u32 %v6795_v51, 16  ;;  %v3776_v39 = vrot.slane %v8857_v7, 3 }
 0x1d5   : > { %v6796_v22 = vpack.c.bf16 %v2456_v16, %v2456_v16  ;;  %vm2173_vm7 = vcmp.ne.s32.totalorder %v8771_v37, 0  ;;  %vm2209_vm5 = vcmp.lt.s32.totalorder %v8771_v37, 0  ;;  %v2715_v35 = vrot.slane %v2713_v33, 6  ;;  %3345 = vrot.lane.b32.xlu1 %v3220_v41, %s7234_s11  ;;  %v7132_v33 = vld [vmem:[%s11879_s3 + $0x8] sm:$0xff]  }
 0x1d6   : > { %v2718_v23 = vrot.slane %v2716_v59, 7  ;;  %v2723_v47 = vshrl.u32 %v6798_v4, 16  ;;  %v2726_v48 = vshll.u32 %v6798_v4, 16  ;;  %3935 = vrot.lane.b32.xlu0 %v3900_v24, %s7244_s15  ;;  %v2695_v43 = vrot.slane %v2693_v49, 6  ;;  %6912 = vmatprep.subr.bf16.mxu1 %v7132_v33  ;;  %vm8987_vm14 = vmand %vm2209_vm5, %vm2173_vm7 }
 0x1d7   : > { %v2698_v15 = vrot.slane %v2696_v27, 7  ;;  %v2703_v50 = vshrl.u32 %v6796_v22, 16  ;;  %v2706_v61 = vshll.u32 %v6796_v22, 16  ;;  %v8931_v7 = vshrl.u32 %v8849_v13, 16  ;;  %6913 = vmatpush3.bf16.msra.mxu1 %v7132_v33 }
 0x1d8   : > { %v2719_v10 = vor.u32 %v2718_v23, %v2715_v35  ;;  %v2725_v60 = vrot.slane %v2723_v47, 6  ;;  %v2728_v0 = vrot.slane %v2726_v48, 7  ;;  %v3388_v31 = vsel %vm12021_vm0, %v3385_v1, %v3387_v36  ;;  %v7134_v47 = vld [vmem:[%s11879_s3 + $0x18] sm:$0xff]  }
 0x1d9   : > { %v2699_v14 = vor.u32 %v2698_v15, %v2695_v43  ;;  %v2705_v17 = vrot.slane %v2703_v50, 6  ;;  %v2708_v21 = vrot.slane %v2706_v61, 7  ;;  %3423 = vrot.lane.b32.xlu1 %v3388_v31, %s7237_s23  ;;  %v3223_v54 = vor.u32 %v8865_v9, %v3219_v38 }
 0x1da   : > { %v2721_v41 = vrot.slane %v2719_v10, 4  ;;  %v8938_v51 = vor.u32 %v2728_v0, %v2725_v60  ;;  %3474 = vrot.lane.b32.xlu0 %v3388_v31, %s7238_s25  ;;  %v3227_v24 = vrot.slane %v8900_v32, 1  ;;  %v3780_v4 = vrot.slane %v8900_v32, 3 }
 0x1db   : > { %v2700_v45 = vsel %vm8495_vm6, %v2691_v56, %v2699_v14  ;;  %v2701_v1 = vrot.slane %v2699_v14, 4  ;;  %v2709_v59 = vor.u32 %v2708_v21, %v2705_v17  ;;  %vm12022_vm4 = vcmask 60416  }
 0x1dc   : > { %3019 = vst.msk [vmem:[#allocation2 + $0x28] sm:$0xf] %vm12022_vm4, %v2700_v45  ;;  %v2730_v9 = vsel %vm8495_vm6, %v2721_v41, %v8938_v51  ;;  %vm12023_vm15 = vsmask.f32 6400  ;;  %v3777_v16 = vor.u32 %v3776_v39, %v3775_v28  ;;  %v3779_v44 = vrot.slane %v8931_v7, 2  ;;  %vm12024_vm13 = vmmov %vm12022_vm4 }
 0x1dd   : > { %v3524_v38 = vsel %vm12023_vm15, %v8704_v63, %v8921_v55  ;;  %3022 = vst.msk [vmem:[#allocation2 + $0x34] sm:$0xf] %vm12024_vm13, %v2730_v9  ;;  %v2710_v56 = vsel %vm8495_vm6, %v2701_v1, %v2709_v59  ;;  %v2711_v49 = vrot.slane %v2709_v59, 4  ;;  %v3525_v27 = vrot.slane %v8931_v7, 1  ;;  %vm12025_vm12 = vmmov %vm12022_vm4 }
 0x1de   : > { %v3526_v22 = vrot.slane %v8900_v32, 2  ;;  %3020 = vst.msk [vmem:[#allocation2 + $0x2c] sm:$0xf] %vm12025_vm12, %v2710_v56  ;;  %3601 = vrot.lane.b32.xlu1 %v3524_v38, %s7240_s30  ;;  %3679 = vrot.lane.b32.xlu0 %v8907_v29, %s7242_s9  ;;  %vm2171_vm9 = vcmp.ne.s32.totalorder %v8803_v8, 0  ;;  %vm2207_vm1 = vcmp.lt.s32.totalorder %v8803_v8, 0  ;;  %v2279_v63 = vadd.s32 18, %v8803_v8  ;;  %vm12026_vm3 = vmmov %vm12022_vm4 }
 0x1df   : > { %vm2174_vm11 = vcmp.ne.s32.totalorder %v8852_v5, 0  ;;  %v2720_v28 = vsel %vm8495_vm6, %v2711_v49, %v2719_v10  ;;  %v3774_v39 = vor.u32 %v8892_v30, %v8876_v12  ;;  %vm2210_vm2 = vcmp.lt.s32.totalorder %v8852_v5, 0  ;;  %v7133_v29 = vld [vmem:[%s11879_s3 + $0x10] sm:$0xff]   ;;  %vm9010_vm5 = vmand %vm2207_vm1, %vm2171_vm9 }
 0x1e0   : > { %v2282_v35 = vadd.s32 18, %v8852_v5  ;;  %3021 = vst.msk [vmem:[#allocation2 + $0x30] sm:$0xf] %vm12026_vm3, %v2720_v28  ;;  %vm2172_vm0 = vcmp.ne.s32.totalorder %v8879_v40, 0  ;;  %vm2208_vm4 = vcmp.lt.s32.totalorder %v8879_v40, 0  ;;  %v1967_v12 = vshrl.u32 %v8811_v3, 4  ;;  %6914 = vmatprep.subr.bf16.mxu1 %v7133_v29  ;;  %vm9020_vm13 = vmand %vm2210_vm2, %vm2174_vm11 }
 0x1e1   : > { %v1945_v30 = vshrl.u32 %v8836_v2, 4  ;;  %vm12029_vm15 = vsmask.f32 7424  ;;  %vm12030_vm7 = vsmask.f32 5376  ;;  %v9002_v15 = vor.u32 %v3780_v4, %v3779_v44  ;;  %vm9034_vm12 = vmand %vm2208_vm4, %vm2172_vm0  ;;  %6915 = vmatpush3.bf16.msra.mxu1 %v7133_v29 }
 0x1e2   : > { %v3228_v48 = vsel %vm12029_vm15, %v3223_v54, %v3227_v24  ;;  %v3778_v43 = vsel %vm12030_vm7, %v3774_v39, %v3777_v16  ;;  %v9004_v50 = vor.u32 %v3526_v22, %v3525_v27  ;;  %v2280_v61 = vadd.s32 18, %v8879_v40  ;;  %6916 = vmatprep.subr.bf16.mxu1 %v7134_v47  ;;  %vm12037_vm9 = vmmov %vm12030_vm7 }
 0x1e3   : > { %3347 = vrot.lane.b32.xlu1 %v3228_v48, %s7234_s11  ;;  %3857 = vrot.lane.b32.xlu0 %v3778_v43, %s7245_s10  ;;  %v1978_v10 = vshrl.u32 %v8861_v6, 4  ;;  %v2317_v60 = vsel %vm8987_vm14, %v8800_v26, %v8771_v37  ;;  %v1956_v14 = vshrl.u32 %v8869_v20, 4  ;;  %v2315_v6 = vsel %vm9010_vm5, %v2279_v63, %v8803_v8  ;;  %v9045_v37 = vld [vmem:[%s11879_s3 + $0x20] ss:$0 sps:$4 sm:$0xff]  }
 0x1e4   : > { %v1968_v17 = vmul.u32 18, %v1967_v12  ;;  %v1946_v21 = vmul.u32 18, %v1945_v30  ;;  %v3782_v26 = vsel %vm12037_vm9, %v3777_v16, %v9002_v15  ;;  %vm12038_vm1 = vsmask.f32 6400 }
 0x1e5   : > { %v3528_v20 = vsel %vm12038_vm1, %v8921_v55, %v9004_v50  ;;  %v9052_v31 = vld [vmem:[#allocation2 + $0x28] sm:$0xff]   ;;  %v2318_v8 = vsel %vm9020_vm13, %v2282_v35, %v8852_v5  ;;  %vm9059_vm11 = vcmp.lt.s32.totalorder %v2317_v60, 16  ;;  %v2316_v54 = vsel %vm9034_vm12, %v2280_v61, %v8879_v40  ;;  %6917 = vmatpush3.bf16.msra.mxu1 %v7134_v47 }
 0x1e6   : > { %v1979_v33 = vmul.u32 18, %v1978_v10  ;;  %v9067_v55 = vadd.s32 176, %v8259_v25  ;;  %vm4341_vm2 = vcmask 1043456   ;;  %v3389_v45 = vrot.slane %v9052_v31, 1 }
 0x1e7   : > { %3859 = vrot.lane.b32.xlu1 %v3782_v26, %s7245_s10  ;;  %3603 = vrot.lane.b32.xlu0 %v3528_v20, %s7240_s30  ;;  %v3645_v5 = vrot.slane %v9052_v31, 2  ;;  %vm9071_vm3 = vcmp.lt.s32.totalorder %v2315_v6, 16  ;;  %v1957_v59 = vmul.u32 18, %v1956_v14  ;;  %v9076_v4 = vadd.s32 160, %v8259_v25  ;;  %v9082_v9 = vld [vmem:[#allocation2 + $0x30] sm:$0xff]  }
 0x1e8   : > { %vm9078_vm14 = vcmp.lt.s32.totalorder %v2318_v8, 16  ;;  %v9085_v38 = vsub.s32 %v8779_v19, %v1968_v17  ;;  %v9088_v16 = vsub.s32 %v8793_v34, %v1946_v21  ;;  %v9091_v44 = vadd.s32 184, %v8259_v25  ;;  %6957 = vmatprep.subr.msk.bf16.mxu1 %vm4341_vm2, %v9045_v37  ;;  %v6888_v23 = vpop.f32.mrb[12].mxu0 }
 0x1e9   : > { %vm12045_vm0 = vcmask 1046528   ;;  %vm12046_vm4 = vcmask 1045504   ;;  %vm9103_vm15 = vcmp.lt.s32.totalorder %v2316_v54, 16  ;;  %v3901_v34 = vrot.slane %v9052_v31, 3  ;;  %v1595_v43 = vpop.f32.mrb[13].mxu0 }
 0x1ea   : > { %v3390_v56 = vsel %vm12045_vm0, %v3387_v36, %v3389_v45  ;;  %v3646_v19 = vsel %vm12046_vm4, %v3643_v53, %v3645_v5  ;;  %v9109_v27 = vadd.s32 168, %v8259_v25  ;;  %v9114_v22 = vshll.u32 %v9052_v31, 16  ;;  %v6889_v61 = vpop.f32.mrb[14].mxu0  ;;  %vm12050_vm5 = vmmov %vm12046_vm4 }
 0x1eb   : > { %3476 = vrot.lane.b32.xlu1 %v3390_v56, %s7238_s25  ;;  %3732 = vrot.lane.b32.xlu0 %v3646_v19, %s7243_s14  ;;  %v9117_v36 = vsub.s32 %v8815_v18, %v1979_v33  ;;  %v9120_v53 = vmul.u32.u64.low 3817748708, %v9067_v55  ;;  %v9121_v63 = vmul.u32.u64.high 3817748708, %v9067_v55, %v9120_v53  ;;  %v9125_v28 = vshrl.u32 %v9052_v31, 16  ;;  %v1598_v0 = vpop.f32.mrb[15].mxu0  ;;  %vm12053_vm9 = vmmov %vm12045_vm0 }
 0x1ec   : > { %v9128_v39 = vsub.s32 %v8818_v42, %v1957_v59  ;;  %v9131_v35 = vmul.u32.u64.low 3817748708, %v9076_v4  ;;  %v9132_v29 = vmul.u32.u64.high 3817748708, %v9076_v4, %v9131_v35  ;;  %v3647_v18 = vrot.slane %v9082_v9, 2  ;;  %v9147_v42 = vld [vmem:[%s11878_s2] ss:$0 sm:$0xff] }
 0x1ed   : > { %v3231_v12 = vor.u32 %v8931_v7, %v3227_v24  ;;  %v9140_v30 = vmul.u32.u64.low 3817748708, %v9091_v44  ;;  %v9141_v47 = vmul.u32.u64.high 3817748708, %v9091_v44, %v9140_v30  ;;  %v1604_v48 = vadd.f32 %v9147_v42, %v6888_v23 }
 0x1ee   : > { %vm12049_vm7 = vcmask 1044480   ;;  %v9154_v32 = vmul.u32.u64.low 3817748708, %v9109_v27  ;;  %v9155_v7 = vmul.u32.u64.high 3817748708, %v9109_v27, %v9154_v32  ;;  %v2731_v24 = vrot.slane %v8938_v51, 4 }
 0x1ef   : > { %v3902_v3 = vsel %vm12049_vm7, %v3899_v11, %v3901_v34  ;;  %v1596_v2 = vadd.f32 %v9147_v42, %v1595_v43  ;;  %3681 = vrot.lane.b32.xlu1 %v3646_v19, %s7242_s9  ;;  %v3235_v10 = vrot.slane %v9114_v22, 1  ;;  %v3903_v13 = vrot.slane %v9082_v9, 3  ;;  %vm12052_vm12 = vmmov %vm12049_vm7 }
 0x1f0   : > { %3937 = vrot.lane.b32.xlu0 %v3902_v3, %s7244_s15  ;;  %v1704_v60 = vmax.f32 %v1604_v48, 0.0  ;;  %v1607_v11 = vadd.f32 %v9147_v42, %v6889_v61  ;;  %v3391_v14 = vrot.slane %v9082_v9, 1  ;;  %v3529_v6 = vrot.slane %v9125_v28, 1 }
 0x1f1   : > { %v1702_v17 = vmax.f32 %v1596_v2, 0.0  ;;  %v1599_v21 = vadd.f32 %v9147_v42, %v1598_v0  ;;  %v9171_v26 = vsel %vm12050_vm5, %v3645_v5, %v3647_v18  ;;  %v3530_v20 = vrot.slane %v9114_v22, 2 }
 0x1f2   : > { %v2461_v8 = vsel %vm9059_vm11, %v1704_v60, 0.0  ;;  %v1705_v54 = vmax.f32 %v1607_v11, 0.0  ;;  %v9177_v33 = vshll.u32 %v9082_v9, 16  ;;  %v3783_v59 = vrot.slane %v9125_v28, 2 }
 0x1f3   : > { %v6801_v19 = vpack.c.bf16 %v2461_v8, %v2461_v8  ;;  %v2459_v53 = vsel %vm9071_vm3, %v1702_v17, 0.0  ;;  %v1703_v35 = vmax.f32 %v1599_v21, 0.0  ;;  %3734 = vrot.lane.b32.xlu1 %v9171_v26, %s7243_s14  ;;  %vm12051_vm13 = vsmask.f32 7424 }
 0x1f4   : > { %3425 = vrot.lane.b32.xlu0 %v3390_v56, %s7237_s23  ;;  %v3236_v5 = vsel %vm12051_vm13, %v3231_v12, %v3235_v10  ;;  %v6799_v41 = vpack.c.bf16 %v2459_v53, %v2459_v53  ;;  %v2462_v23 = vsel %vm9078_vm14, %v1705_v54, 0.0  ;;  %v3904_v30 = vsel %vm12052_vm12, %v3901_v34, %v3903_v13 }
 0x1f5   : > { %v3392_v1 = vsel %vm12053_vm9, %v3389_v45, %v3391_v14  ;;  %v2753_v48 = vshrl.u32 %v6801_v19, 16  ;;  %v2756_v43 = vshll.u32 %v6801_v19, 16  ;;  %v6802_v3 = vpack.c.bf16 %v2462_v23, %v2462_v23 }
 0x1f6   : > { %v2460_v56 = vsel %vm9103_vm15, %v1703_v35, 0.0  ;;  %v2733_v12 = vshrl.u32 %v6799_v41, 16  ;;  %v2736_v32 = vshll.u32 %v6799_v41, 16  ;;  %v9198_v2 = vor.u32 %v3530_v20, %v3529_v6 }
 0x1f7   : > { %v6800_v40 = vpack.c.bf16 %v2460_v56, %v2460_v56  ;;  %vm2177_vm1 = vcmp.ne.s32.totalorder %v9085_v38, 0  ;;  %vm2213_vm11 = vcmp.lt.s32.totalorder %v9085_v38, 0  ;;  %v2755_v34 = vrot.slane %v2753_v48, 6  ;;  %3349 = vrot.lane.b32.xlu1 %v3236_v5, %s7234_s11 }
 0x1f8   : > { %v2758_v61 = vrot.slane %v2756_v43, 7  ;;  %v2763_v31 = vshrl.u32 %v6802_v3, 16  ;;  %v2766_v60 = vshll.u32 %v6802_v3, 16  ;;  %3939 = vrot.lane.b32.xlu0 %v3904_v30, %s7244_s15  ;;  %v2735_v45 = vrot.slane %v2733_v12, 6  ;;  %vm9250_vm9 = vmand %vm2213_vm11, %vm2177_vm1 }
 0x1f9   : > { %v2738_v49 = vrot.slane %v2736_v32, 7  ;;  %v2743_v11 = vshrl.u32 %v6800_v40, 16  ;;  %v2746_v0 = vshll.u32 %v6800_v40, 16  ;;  %v3784_v20 = vrot.slane %v9114_v22, 3 }
 0x1fa   : > { %v2759_v17 = vor.u32 %v2758_v61, %v2755_v34  ;;  %v2765_v21 = vrot.slane %v2763_v31, 6  ;;  %v2768_v6 = vrot.slane %v2766_v60, 7  ;;  %v9206_v53 = vshrl.u32 %v9082_v9, 16 }
 0x1fb   : > { %v2739_v8 = vor.u32 %v2738_v49, %v2735_v45  ;;  %v2745_v54 = vrot.slane %v2743_v11, 6  ;;  %v2748_v19 = vrot.slane %v2746_v0, 7  ;;  %3427 = vrot.lane.b32.xlu1 %v3392_v1, %s7237_s23  ;;  %v3239_v5 = vor.u32 %v9125_v28, %v3235_v10 }
 0x1fc   : > { %v2761_v35 = vrot.slane %v2759_v17, 4  ;;  %v9208_v41 = vor.u32 %v2768_v6, %v2765_v21  ;;  %3478 = vrot.lane.b32.xlu0 %v3392_v1, %s7238_s25  ;;  %v3243_v23 = vrot.slane %v9177_v33, 1  ;;  %v3788_v43 = vrot.slane %v9177_v33, 3 }
 0x1fd   : > { %v2740_v22 = vsel %vm8495_vm6, %v2731_v24, %v2739_v8  ;;  %v2741_v30 = vrot.slane %v2739_v8, 4  ;;  %v2749_v48 = vor.u32 %v2748_v19, %v2745_v54  ;;  %vm12054_vm3 = vcmask 60416  }
 0x1fe   : > { %3023 = vst.msk [vmem:[#allocation2 + $0x38] sm:$0xf] %vm12054_vm3, %v2740_v22  ;;  %v2770_v3 = vsel %vm8495_vm6, %v2761_v35, %v9208_v41  ;;  %vm12055_vm14 = vsmask.f32 6400  ;;  %v3785_v10 = vor.u32 %v3784_v20, %v3783_v59  ;;  %v3534_v51 = vrot.slane %v9177_v33, 2  ;;  %vm12056_vm0 = vmmov %vm12054_vm3 }
 0x1ff   : > { %v3532_v28 = vsel %vm12055_vm14, %v9004_v50, %v9198_v2  ;;  %3026 = vst.msk [vmem:[#allocation2 + $0x44] sm:$0xf] %vm12056_vm0, %v2770_v3  ;;  %v2750_v24 = vsel %vm8495_vm6, %v2741_v30, %v2749_v48  ;;  %v2751_v1 = vrot.slane %v2749_v48, 4  ;;  %v3787_v56 = vrot.slane %v9206_v53, 2  ;;  %vm12057_vm4 = vmmov %vm12056_vm0 }
 0x200   : > { %v3533_v12 = vrot.slane %v9206_v53, 1  ;;  %3024 = vst.msk [vmem:[#allocation2 + $0x3c] sm:$0xf] %vm12057_vm4, %v2750_v24  ;;  %3605 = vrot.lane.b32.xlu1 %v3532_v28, %s7240_s30  ;;  %3683 = vrot.lane.b32.xlu0 %v9171_v26, %s7242_s9  ;;  %v2285_v50 = vadd.s32 18, %v9085_v38  ;;  %vm2175_vm15 = vcmp.ne.s32.totalorder %v9088_v16, 0  ;;  %vm2211_vm7 = vcmp.lt.s32.totalorder %v9088_v16, 0  ;;  %vm12058_vm12 = vmmov %vm12056_vm0 }
 0x201   : > { %v2760_v59 = vsel %vm8495_vm6, %v2751_v1, %v2759_v17  ;;  %vm2178_vm5 = vcmp.ne.s32.totalorder %v9117_v36, 0  ;;  %vm2214_vm13 = vcmp.lt.s32.totalorder %v9117_v36, 0  ;;  %v4343_v32 = vsel %vm4341_vm2, %v9045_v37, 0  ;;  %vm9271_vm1 = vmand %vm2211_vm7, %vm2175_vm15 }
 0x202   : > { %3025 = vst.msk [vmem:[#allocation2 + $0x40] sm:$0xf] %vm12058_vm12, %v2760_v59  ;;  %v2283_v40 = vadd.s32 18, %v9088_v16  ;;  %v2286_v34 = vadd.s32 18, %v9117_v36  ;;  %vm2176_vm3 = vcmp.ne.s32.totalorder %v9128_v39, 0  ;;  %vm2212_vm14 = vcmp.lt.s32.totalorder %v9128_v39, 0  ;;  %6919 = vmatpush3.bf16.msra.mxu1 %v4343_v32  ;;  %vm9281_vm11 = vmand %vm2214_vm13, %vm2178_vm5 }
 0x203   : > { %vm12061_vm2 = vsmask.f32 7424  ;;  %vm12062_vm0 = vsmask.f32 5376  ;;  %v9263_v31 = vor.u32 %v3788_v43, %v3787_v56  ;;  %v9265_v60 = vor.u32 %v3534_v51, %v3533_v12  ;;  %vm9294_vm4 = vmand %vm2212_vm14, %vm2176_vm3 }
 0x204   : > { %v3244_v37 = vsel %vm12061_vm2, %v3239_v5, %v3243_v23  ;;  %v3786_v61 = vsel %vm12062_vm0, %v9002_v15, %v3785_v10  ;;  %v2284_v49 = vadd.s32 18, %v9128_v39  ;;  %v2011_v11 = vshrl.u32 %v9121_v63, 4  ;;  %vm12069_vm15 = vmmov %vm12062_vm0 }
 0x205   : > { %3351 = vrot.lane.b32.xlu1 %v3244_v37, %s7234_s11  ;;  %3861 = vrot.lane.b32.xlu0 %v3786_v61, %s7245_s10  ;;  %v2321_v0 = vsel %vm9250_vm9, %v2285_v50, %v9085_v38  ;;  %v1989_v21 = vshrl.u32 %v9132_v29, 4  ;;  %v2319_v6 = vsel %vm9271_vm1, %v2283_v40, %v9088_v16  ;;  %v2022_v63 = vshrl.u32 %v9141_v47, 4 }
 0x206   : > { %v9304_v20 = vadd.s32 208, %v8259_v25  ;;  %v3790_v38 = vsel %vm12069_vm15, %v3785_v10, %v9263_v31  ;;  %vm12070_vm7 = vsmask.f32 6400  ;;  %v2322_v29 = vsel %vm9281_vm11, %v2286_v34, %v9117_v36 }
 0x207   : > { %v3536_v8 = vsel %vm12070_vm7, %v9198_v2, %v9265_v60  ;;  %v9311_v54 = vld [vmem:[#allocation2 + $0x38] sm:$0xff]   ;;  %v2000_v16 = vshrl.u32 %v9155_v7, 4  ;;  %vm9319_vm5 = vcmp.lt.s32.totalorder %v2321_v0, 16  ;;  %v2320_v2 = vsel %vm9294_vm4, %v2284_v49, %v9128_v39 }
 0x208   : > { %v2012_v19 = vmul.u32 18, %v2011_v11  ;;  %v9327_v35 = vadd.s32 192, %v8259_v25  ;;  %v3393_v36 = vrot.slane %v9311_v54, 1  ;;  %v3649_v7 = vrot.slane %v9311_v54, 2  ;;  %v6892_v37 = vpop.f32.mrb[16].mxu0 }
 0x209   : > { %3863 = vrot.lane.b32.xlu1 %v3790_v38, %s7245_s10  ;;  %3607 = vrot.lane.b32.xlu0 %v3536_v8, %s7240_s30  ;;  %vm9331_vm13 = vcmp.lt.s32.totalorder %v2319_v6, 16  ;;  %v1990_v22 = vmul.u32 18, %v1989_v21  ;;  %v9336_v30 = vadd.s32 216, %v8259_v25  ;;  %vm9338_vm12 = vcmp.lt.s32.totalorder %v2322_v29, 16  ;;  %v9342_v39 = vld [vmem:[#allocation2 + $0x40] sm:$0xff]  }
 0x20a   : > { %v2023_v43 = vmul.u32 18, %v2022_v63  ;;  %v9345_v3 = vmul.u32.u64.low 3817748708, %v9304_v20  ;;  %v9346_v28 = vmul.u32.u64.high 3817748708, %v9304_v20, %v9345_v3  ;;  %v9350_v10 = vadd.s32 200, %v8259_v25 }
 0x20b   : > { %vm12077_vm9 = vcmask 1046528   ;;  %vm12078_vm3 = vcmask 1045504   ;;  %vm9358_vm14 = vcmp.lt.s32.totalorder %v2320_v2, 16  ;;  %v3905_v56 = vrot.slane %v9311_v54, 3 }
 0x20c   : > { %v3394_v51 = vsel %vm12077_vm9, %v3391_v14, %v3393_v36  ;;  %v3650_v24 = vsel %vm12078_vm3, %v3647_v18, %v3649_v7  ;;  %v2001_v12 = vmul.u32 18, %v2000_v16  ;;  %v9366_v50 = vshll.u32 %v9311_v54, 16  ;;  %vm12082_vm0 = vmmov %vm12078_vm3 }
 0x20d   : > { %3480 = vrot.lane.b32.xlu1 %v3394_v51, %s7238_s25  ;;  %3736 = vrot.lane.b32.xlu0 %v3650_v24, %s7243_s14  ;;  %v9369_v14 = vsub.s32 %v9067_v55, %v2012_v19  ;;  %v9372_v59 = vmul.u32.u64.low 3817748708, %v9327_v35  ;;  %v9373_v18 = vmul.u32.u64.high 3817748708, %v9327_v35, %v9372_v59  ;;  %v9377_v32 = vshrl.u32 %v9311_v54, 16  ;;  %vm12085_vm4 = vmmov %vm12077_vm9 }
 0x20e   : > { %v9380_v26 = vsub.s32 %v9076_v4, %v1990_v22  ;;  %v9383_v40 = vmul.u32.u64.low 3817748708, %v9336_v30  ;;  %v9384_v34 = vmul.u32.u64.high 3817748708, %v9336_v30, %v9383_v40  ;;  %v3651_v55 = vrot.slane %v9342_v39, 2  ;;  %v1611_v4 = vpop.f32.mrb[17].mxu0 }
 0x20f   : > { %v9389_v61 = vsub.s32 %v9091_v44, %v2023_v43  ;;  %v9392_v45 = vmul.u32.u64.low 3817748708, %v9350_v10  ;;  %v9393_v15 = vmul.u32.u64.high 3817748708, %v9350_v10, %v9392_v45  ;;  %v1620_v49 = vadd.f32 %v9147_v42, %v6892_v37  ;;  %v6893_v6 = vpop.f32.mrb[18].mxu0 }
 0x210   : > { %vm12081_vm2 = vcmask 1044480   ;;  %v3247_v0 = vor.u32 %v9206_v53, %v3243_v23  ;;  %v9404_v17 = vsub.s32 %v9109_v27, %v2001_v12  ;;  %v2771_v44 = vrot.slane %v9208_v41, 4  ;;  %v1614_v53 = vpop.f32.mrb[19].mxu0 }
 0x211   : > { %v3906_v11 = vsel %vm12081_vm2, %v3903_v13, %v3905_v56  ;;  %v1612_v21 = vadd.f32 %v9147_v42, %v1611_v4  ;;  %3685 = vrot.lane.b32.xlu1 %v3650_v24, %s7242_s9  ;;  %v3251_v9 = vrot.slane %v9366_v50, 1  ;;  %v3907_v13 = vrot.slane %v9342_v39, 3  ;;  %vm12084_vm11 = vmmov %vm12081_vm2 }
 0x212   : > { %3941 = vrot.lane.b32.xlu0 %v3906_v11, %s7244_s15  ;;  %v1708_v63 = vmax.f32 %v1620_v49, 0.0  ;;  %v1623_v33 = vadd.f32 %v9147_v42, %v6893_v6  ;;  %v3395_v27 = vrot.slane %v9342_v39, 1  ;;  %v3537_v23 = vrot.slane %v9377_v32, 1 }
 0x213   : > { %v1706_v38 = vmax.f32 %v1612_v21, 0.0  ;;  %v1615_v8 = vadd.f32 %v9147_v42, %v1614_v53  ;;  %v9419_v54 = vsel %vm12082_vm0, %v3649_v7, %v3651_v55  ;;  %v3538_v29 = vrot.slane %v9366_v50, 2 }
 0x214   : > { %v2465_v16 = vsel %vm9319_vm5, %v1708_v63, 0.0  ;;  %v1709_v2 = vmax.f32 %v1623_v33, 0.0  ;;  %v9425_v19 = vshll.u32 %v9342_v39, 16  ;;  %v3791_v22 = vrot.slane %v9377_v32, 2 }
 0x215   : > { %v6805_v43 = vpack.c.bf16 %v2465_v16, %v2465_v16  ;;  %v2463_v3 = vsel %vm9331_vm13, %v1706_v38, 0.0  ;;  %v1707_v24 = vmax.f32 %v1615_v8, 0.0  ;;  %3738 = vrot.lane.b32.xlu1 %v9419_v54, %s7243_s14  ;;  %vm12083_vm1 = vsmask.f32 7424 }
 0x216   : > { %3429 = vrot.lane.b32.xlu0 %v3394_v51, %s7237_s23  ;;  %v3252_v7 = vsel %vm12083_vm1, %v3247_v0, %v3251_v9  ;;  %v6803_v47 = vpack.c.bf16 %v2463_v3, %v2463_v3  ;;  %v2466_v12 = vsel %vm9338_vm12, %v1709_v2, 0.0  ;;  %v3908_v59 = vsel %vm12084_vm11, %v3905_v56, %v3907_v13 }
 0x217   : > { %v3396_v5 = vsel %vm12085_vm4, %v3393_v36, %v3395_v27  ;;  %v2793_v40 = vshrl.u32 %v6805_v43, 16  ;;  %v2796_v37 = vshll.u32 %v6805_v43, 16  ;;  %v6806_v45 = vpack.c.bf16 %v2466_v12, %v2466_v12 }
 0x218   : > { %v2464_v51 = vsel %vm9358_vm14, %v1707_v24, 0.0  ;;  %vm2181_vm15 = vcmp.ne.s32.totalorder %v9369_v14, 0  ;;  %vm2217_vm7 = vcmp.lt.s32.totalorder %v9369_v14, 0  ;;  %v2773_v48 = vshrl.u32 %v6803_v47, 16 }
 0x219   : > { %v2776_v49 = vshll.u32 %v6803_v47, 16  ;;  %v6804_v4 = vpack.c.bf16 %v2464_v51, %v2464_v51  ;;  %v9446_v11 = vor.u32 %v3538_v29, %v3537_v23  ;;  %vm2179_vm5 = vcmp.ne.s32.totalorder %v9380_v26, 0  ;;  %3353 = vrot.lane.b32.xlu1 %v3252_v7, %s7234_s11  ;;  %vm9494_vm1 = vmand %vm2217_vm7, %vm2181_vm15 }
 0x21a   : > { %vm2215_vm13 = vcmp.lt.s32.totalorder %v9380_v26, 0  ;;  %v2795_v36 = vrot.slane %v2793_v40, 6  ;;  %v2798_v56 = vrot.slane %v2796_v37, 7  ;;  %v2803_v0 = vshrl.u32 %v6806_v45, 16  ;;  %3943 = vrot.lane.b32.xlu0 %v3908_v59, %s7244_s15 }
 0x21b   : > { %v2806_v21 = vshll.u32 %v6806_v45, 16  ;;  %v2775_v1 = vrot.slane %v2773_v48, 6  ;;  %v2778_v6 = vrot.slane %v2776_v49, 7  ;;  %v2783_v63 = vshrl.u32 %v6804_v4, 16  ;;  %vm9508_vm4 = vmand %vm2215_vm13, %vm2179_vm5 }
 0x21c   : > { %v2786_v33 = vshll.u32 %v6804_v4, 16  ;;  %v2799_v53 = vor.u32 %v2798_v56, %v2795_v36  ;;  %v2805_v38 = vrot.slane %v2803_v0, 6  ;;  %v3792_v8 = vrot.slane %v9366_v50, 3  ;;  %v9502_v56 = vpop.permute.xlu0 %3417 }
 0x21d   : > { %v2808_v23 = vrot.slane %v2806_v21, 7  ;;  %v2779_v29 = vor.u32 %v2778_v6, %v2775_v1  ;;  %v2785_v16 = vrot.slane %v2783_v63, 6  ;;  %v9454_v43 = vshrl.u32 %v9342_v39, 16  ;;  %3431 = vrot.lane.b32.xlu1 %v3396_v5, %s7237_s23 }
 0x21e   : > { %v2788_v2 = vrot.slane %v2786_v33, 7  ;;  %v2801_v3 = vrot.slane %v2799_v53, 4  ;;  %3482 = vrot.lane.b32.xlu0 %v3396_v5, %s7238_s25  ;;  %v3255_v7 = vor.u32 %v9377_v32, %v3251_v9  ;;  %v3259_v47 = vrot.slane %v9425_v19, 1 }
 0x21f   : > { %v9456_v24 = vor.u32 %v2808_v23, %v2805_v38  ;;  %v2780_v50 = vsel %vm8495_vm6, %v2771_v44, %v2779_v29  ;;  %v2781_v12 = vrot.slane %v2779_v29, 4  ;;  %v3796_v40 = vrot.slane %v9425_v19, 3 }
 0x220   : > { %v2789_v59 = vor.u32 %v2788_v2, %v2785_v16  ;;  %vm12086_vm12 = vcmask 60416   ;;  %vm12087_vm9 = vsmask.f32 6400  ;;  %v3793_v9 = vor.u32 %v3792_v8, %v3791_v22 }
 0x221   : > { %3027 = vst.msk [vmem:[#allocation2 + $0x48] sm:$0xf] %vm12086_vm12, %v2780_v50  ;;  %v2810_v37 = vsel %vm8495_vm6, %v2801_v3, %v9456_v24  ;;  %v3540_v32 = vsel %vm12087_vm9, %v9265_v60, %v9446_v11  ;;  %v3542_v41 = vrot.slane %v9425_v19, 2  ;;  %vm12088_vm3 = vmmov %vm12086_vm12  ;;  %v3795_v45 = vrot.slane %v9454_v43, 2 }
 0x222   : > { %3030 = vst.msk [vmem:[#allocation2 + $0x54] sm:$0xf] %vm12088_vm3, %v2810_v37  ;;  %v2790_v44 = vsel %vm8495_vm6, %v2781_v12, %v2789_v59  ;;  %v2791_v5 = vrot.slane %v2789_v59, 4  ;;  %v3541_v51 = vrot.slane %v9454_v43, 1  ;;  %vm12089_vm14 = vmmov %vm12088_vm3  ;;  %3609 = vrot.lane.b32.xlu1 %v3540_v32, %s7240_s30  ;;  %3687 = vrot.lane.b32.xlu0 %v9419_v54, %s7242_s9  ;;  %v2289_v60 = vadd.s32 18, %v9369_v14  ;;  %v9574_v59 = vpop.permute.xlu0 %3341 }
 0x223   : > { %3028 = vst.msk [vmem:[#allocation2 + $0x4c] sm:$0xf] %vm12089_vm14, %v2790_v44  ;;  %v2287_v22 = vadd.s32 18, %v9380_v26  ;;  %vm2182_vm2 = vcmp.ne.s32.totalorder %v9389_v61, 0  ;;  %vm2218_vm0 = vcmp.lt.s32.totalorder %v9389_v61, 0  ;;  %v2290_v54 = vadd.s32 18, %v9389_v61  ;;  %vm12092_vm11 = vmmov %vm12088_vm3 }
 0x224   : > { %v2800_v48 = vsel %vm8495_vm6, %v2791_v5, %v2799_v53  ;;  %v2055_v4 = vshrl.u32 %v9346_v28, 4  ;;  %v2033_v36 = vshrl.u32 %v9373_v18, 4  ;;  %vm2180_vm15 = vcmp.ne.s32.totalorder %v9404_v17, 0  ;;  %vm9535_vm5 = vmand %vm2218_vm0, %vm2182_vm2 }
 0x225   : > { %3029 = vst.msk [vmem:[#allocation2 + $0x50] sm:$0xf] %vm12092_vm11, %v2800_v48  ;;  %vm2216_vm7 = vcmp.lt.s32.totalorder %v9404_v17, 0  ;;  %v9515_v28 = vadd.s32 240, %v8259_v25  ;;  %v9518_v18 = vadd.s32 224, %v8259_v25  ;;  %v9525_v6 = vor.u32 %v3796_v40, %v3795_v45 }
 0x226   : > { %vm12095_vm12 = vsmask.f32 7424  ;;  %vm12096_vm9 = vsmask.f32 5376  ;;  %v9527_v63 = vor.u32 %v3542_v41, %v3541_v51  ;;  %v2288_v53 = vadd.s32 18, %v9404_v17  ;;  %vm9552_vm13 = vmand %vm2216_vm7, %vm2180_vm15 }
 0x227   : > { %v3260_v21 = vsel %vm12095_vm12, %v3255_v7, %v3259_v47  ;;  %v3794_v1 = vsel %vm12096_vm9, %v9263_v31, %v3793_v9  ;;  %v2066_v31 = vshrl.u32 %v9384_v34, 4  ;;  %v2044_v38 = vshrl.u32 %v9393_v15, 4  ;;  %vm12101_vm3 = vmmov %vm12096_vm9 }
 0x228   : > { %3355 = vrot.lane.b32.xlu1 %v3260_v21, %s7234_s11  ;;  %3865 = vrot.lane.b32.xlu0 %v3794_v1, %s7245_s10  ;;  %v2325_v23 = vsel %vm9494_vm1, %v2289_v60, %v9369_v14  ;;  %v2323_v8 = vsel %vm9508_vm4, %v2287_v22, %v9380_v26  ;;  %v2056_v16 = vmul.u32 18, %v2055_v4  ;;  %v3798_v26 = vsel %vm12101_vm3, %v3793_v9, %v9525_v6  ;;  %v9645_v21 = vpop.permute.xlu0 %3470 }
 0x229   : > { %v9557_v34 = vmul.u32.u64.low 3817748708, %v9515_v28  ;;  %v9558_v15 = vmul.u32.u64.high 3817748708, %v9515_v28, %v9557_v34  ;;  %v9561_v2 = vmul.u32.u64.low 3817748708, %v9518_v18  ;;  %v9562_v14 = vmul.u32.u64.high 3817748708, %v9518_v18, %v9561_v2 }
 0x22a   : > { %vm12102_vm14 = vsmask.f32 6400  ;;  %v9569_v7 = vld [vmem:[#allocation2 + $0x48] sm:$0xff]   ;;  %v2326_v50 = vsel %vm9535_vm5, %v2290_v54, %v9389_v61  ;;  %v2034_v12 = vmul.u32 18, %v2033_v36  ;;  %vm9578_vm2 = vcmp.lt.s32.totalorder %v2325_v23, 16 }
 0x22b   : > { %v3544_v3 = vsel %vm12102_vm14, %v9446_v11, %v9527_v63  ;;  %v2324_v11 = vsel %vm9552_vm13, %v2288_v53, %v9404_v17  ;;  %v2067_v37 = vmul.u32 18, %v2066_v31  ;;  %v2045_v32 = vmul.u32 18, %v2044_v38 }
 0x22c   : > { %3867 = vrot.lane.b32.xlu1 %v3798_v26, %s7245_s10  ;;  %3611 = vrot.lane.b32.xlu0 %v3544_v3, %s7240_s30  ;;  %v3397_v9 = vrot.slane %v9569_v7, 1  ;;  %v3653_v61 = vrot.slane %v9569_v7, 2  ;;  %vm9587_vm0 = vcmp.lt.s32.totalorder %v2323_v8, 16  ;;  %v9591_v44 = vld [vmem:[#allocation2 + $0x50] sm:$0xff]   ;;  %vm9593_vm1 = vcmp.lt.s32.totalorder %v2326_v50, 16 }
 0x22d   : > { %v3909_v45 = vrot.slane %v9569_v7, 3  ;;  %v9599_v17 = vshll.u32 %v9569_v7, 16  ;;  %v9602_v51 = vshrl.u32 %v9569_v7, 16  ;;  %v9605_v60 = vsub.s32 %v9304_v20, %v2056_v16 }
 0x22e   : > { %vm12109_vm11 = vcmask 1046528   ;;  %vm12110_vm4 = vcmask 1045504   ;;  %vm9617_vm15 = vcmp.lt.s32.totalorder %v2324_v11, 16  ;;  %v9622_v54 = vsub.s32 %v9327_v35, %v2034_v12 }
 0x22f   : > { %v9612_v22 = vsel %vm12109_vm11, %v3395_v27, %v3397_v9  ;;  %v3654_v48 = vsel %vm12110_vm4, %v3651_v55, %v3653_v61  ;;  %v9628_v20 = vsub.s32 %v9336_v30, %v2067_v37  ;;  %v9631_v27 = vsub.s32 %v9350_v10, %v2045_v32  ;;  %v6896_v10 = vpop.f32.mrb[20].mxu0  ;;  %vm12114_vm12 = vmmov %vm12110_vm4 }
 0x230   : > { %3484 = vrot.lane.b32.xlu1 %v9612_v22, %s7238_s25  ;;  %3740 = vrot.lane.b32.xlu0 %v3654_v48, %s7243_s14  ;;  %v9634_v55 = vadd.s32 248, %v8259_v25  ;;  %v9637_v4 = vadd.s32 232, %v8259_v25  ;;  %v3655_v35 = vrot.slane %v9591_v44, 2  ;;  %v3263_v36 = vor.u32 %v9454_v43, %v3259_v47  ;;  %v1627_v43 = vpop.f32.mrb[21].mxu0 }
 0x231   : > { %v3799_v0 = vrot.slane %v9602_v51, 2  ;;  %v3800_v30 = vrot.slane %v9599_v17, 3  ;;  %vm12113_vm7 = vcmask 1044480   ;;  %v11897_v33 = vrot.slane %v9591_v44, 3 }
 0x232   : > { %v3910_v1 = vsel %vm12113_vm7, %v3907_v13, %v3909_v45  ;;  %v2099_v53 = vshrl.u32 %v9558_v15, 4  ;;  %v2077_v31 = vshrl.u32 %v9562_v14, 4  ;;  %v1636_v19 = vadd.f32 %v9147_v42, %v6896_v10  ;;  %v6897_v13 = vpop.f32.mrb[22].mxu0  ;;  %vm12115_vm9 = vmmov %vm12113_vm7 }
 0x233   : > { %v3267_v47 = vrot.slane %v9599_v17, 1  ;;  %v3545_v38 = vrot.slane %v9602_v51, 1  ;;  %v3546_v23 = vrot.slane %v9599_v17, 2  ;;  %v2811_v8 = vrot.slane %v9456_v24, 4  ;;  %v1630_v26 = vpop.f32.mrb[23].mxu0 }
 0x234   : > { %v1628_v39 = vadd.f32 %v9147_v42, %v1627_v43  ;;  %3689 = vrot.lane.b32.xlu1 %v3654_v48, %s7242_s9  ;;  %3945 = vrot.lane.b32.xlu0 %v3910_v1, %s7244_s15  ;;  %v9662_v29 = vmul.u32.u64.low 3817748708, %v9634_v55  ;;  %v9663_v16 = vmul.u32.u64.high 3817748708, %v9634_v55, %v9662_v29  ;;  %v1712_v34 = vmax.f32 %v1636_v19, 0.0 }
 0x235   : > { %v1639_v2 = vadd.f32 %v9147_v42, %v6897_v13  ;;  %v9670_v3 = vsel %vm12114_vm12, %v3653_v61, %v3655_v35  ;;  %v9672_v50 = vor.u32 %v3800_v30, %v3799_v0  ;;  %v1631_v11 = vadd.f32 %v9147_v42, %v1630_v26  ;;  %v9686_v0 = vpop.permute.xlu1 %3419  ;;  %v9688_v30 = vpop.permute.xlu0 %3675 }
 0x236   : > { %v1710_v12 = vmax.f32 %v1628_v39, 0.0  ;;  %v3912_v37 = vsel %vm12115_vm9, %v3909_v45, %v11897_v33  ;;  %v3399_v32 = vrot.slane %v9591_v44, 1  ;;  %v2469_v48 = vsel %vm9578_vm2, %v1712_v34, 0.0 }
 0x237   : > { %v1713_v10 = vmax.f32 %v1639_v2, 0.0  ;;  %vm12116_vm5 = vsmask.f32 7424  ;;  %v9684_v1 = vor.u32 %v3546_v23, %v3545_v38  ;;  %v6809_v42 = vpack.c.bf16 %v2469_v48, %v2469_v48 }
 0x238   : > { %v3268_v61 = vsel %vm12116_vm5, %v3263_v36, %v3267_v47  ;;  %v2467_v45 = vsel %vm9587_vm0, %v1710_v12, 0.0  ;;  %v1711_v19 = vmax.f32 %v1631_v11, 0.0  ;;  %3742 = vrot.lane.b32.xlu1 %v9670_v3, %s7243_s14  ;;  %3947 = vrot.lane.b32.xlu0 %v3912_v37, %s7244_s15  ;;  %v9696_v40 = vshll.u32 %v9591_v44, 16 }
 0x239   : > { %vm2185_vm13 = vcmp.ne.s32.totalorder %v9605_v60, 0  ;;  %vm2221_vm3 = vcmp.lt.s32.totalorder %v9605_v60, 0  ;;  %v6807_v36 = vpack.c.bf16 %v2467_v45, %v2467_v45  ;;  %v2470_v43 = vsel %vm9593_vm1, %v1713_v10, 0.0  ;;  %v9721_v45 = vpop.permute.xlu1 %3343 }
 0x23a   : > { %vm12117_vm14 = vsmask.f32 5376  ;;  %v9706_v38 = vshrl.u32 %v9591_v44, 16  ;;  %vm2183_vm2 = vcmp.ne.s32.totalorder %v9622_v54, 0  ;;  %vm2219_vm0 = vcmp.lt.s32.totalorder %v9622_v54, 0 }
 0x23b   : > { %v3802_v41 = vsel %vm12117_vm14, %v9525_v6, %v9672_v50  ;;  %v2833_v23 = vshrl.u32 %v6809_v42, 16  ;;  %v2836_v39 = vshll.u32 %v6809_v42, 16  ;;  %v6810_v13 = vpack.c.bf16 %v2470_v43, %v2470_v43  ;;  %vm9768_vm14 = vmand %vm2221_vm3, %vm2185_vm13 }
 0x23c   : > { %v2468_v29 = vsel %vm9617_vm15, %v1711_v19, 0.0  ;;  %vm2186_vm11 = vcmp.ne.s32.totalorder %v9628_v20, 0  ;;  %vm2222_vm1 = vcmp.lt.s32.totalorder %v9628_v20, 0  ;;  %v2813_v5 = vshrl.u32 %v6807_v36, 16  ;;  %3357 = vrot.lane.b32.xlu1 %v3268_v61, %s7234_s11  ;;  %3869 = vrot.lane.b32.xlu0 %v3802_v41, %s7245_s10 }
 0x23d   : > { %v2816_v34 = vshll.u32 %v6807_v36, 16  ;;  %v6808_v6 = vpack.c.bf16 %v2468_v29, %v2468_v29  ;;  %vm12118_vm4 = vsmask.f32 6400  ;;  %vm2184_vm7 = vcmp.ne.s32.totalorder %v9631_v27, 0  ;;  %vm9793_vm3 = vmand %vm2222_vm1, %vm2186_vm11 }
 0x23e   : > { %v3548_v2 = vsel %vm12118_vm4, %v9527_v63, %v9684_v1  ;;  %vm2220_vm12 = vcmp.lt.s32.totalorder %v9631_v27, 0  ;;  %v2835_v26 = vrot.slane %v2833_v23, 6  ;;  %v2838_v12 = vrot.slane %v2836_v39, 7  ;;  %v9723_v63 = vpop.permute.xlu0 %3599 }
 0x23f   : > { %v2843_v11 = vshrl.u32 %v6810_v13, 16  ;;  %v2846_v49 = vshll.u32 %v6810_v13, 16  ;;  %v2815_v37 = vrot.slane %v2813_v5, 6  ;;  %v2818_v48 = vrot.slane %v2816_v34, 7  ;;  %vm9811_vm11 = vmand %vm2220_vm12, %vm2184_vm7 }
 0x240   : > { %v2823_v10 = vshrl.u32 %v6808_v6, 16  ;;  %v2826_v42 = vshll.u32 %v6808_v6, 16  ;;  %v2839_v19 = vor.u32 %v2838_v12, %v2835_v26  ;;  %v3549_v23 = vrot.slane %v9706_v38, 1  ;;  %3613 = vrot.lane.b32.xlu1 %v3548_v2, %s7240_s30  ;;  %3433 = vrot.lane.b32.xlu0 %v9612_v22, %s7237_s23  ;;  %v9747_v2 = vpop.permute.xlu1 %3472 }
 0x241   : > { %v2845_v36 = vrot.slane %v2843_v11, 6  ;;  %v2848_v43 = vrot.slane %v2846_v49, 7  ;;  %v2819_v39 = vor.u32 %v2818_v48, %v2815_v37  ;;  %v3550_v61 = vrot.slane %v9696_v40, 2 }
 0x242   : > { %v2825_v29 = vrot.slane %v2823_v10, 6  ;;  %v2828_v13 = vrot.slane %v2826_v42, 7  ;;  %v2841_v33 = vrot.slane %v2839_v19, 4  ;;  %v3271_v11 = vor.u32 %v9602_v51, %v3267_v47  ;;  %v9749_v49 = vpop.permute.xlu0 %3728 }
 0x243   : > { %v9727_v41 = vor.u32 %v2848_v43, %v2845_v36  ;;  %v9733_v5 = vmul.u32.u64.low 3817748708, %v9637_v4  ;;  %v9734_v34 = vmul.u32.u64.high 3817748708, %v9637_v4, %v9733_v5  ;;  %v2820_v6 = vsel %vm8495_vm6, %v2811_v8, %v2819_v39 }
 0x244   : > { %v2821_v26 = vrot.slane %v2819_v39, 4  ;;  %v2829_v12 = vor.u32 %v2828_v13, %v2825_v29  ;;  %vm12119_vm15 = vcmask 60416   ;;  %vm12120_vm9 = vcmask 1046528  }
 0x245   : > { %3031 = vst.msk [vmem:[#allocation2 + $0x58] sm:$0xf] %vm12119_vm15, %v2820_v6  ;;  %v2850_v22 = vsel %vm8495_vm6, %v2841_v33, %v9727_v41  ;;  %v3400_v24 = vsel %vm12120_vm9, %v3397_v9, %v3399_v32  ;;  %v3275_v17 = vrot.slane %v9696_v40, 1  ;;  %v3803_v51 = vrot.slane %v9706_v38, 2  ;;  %vm12121_vm5 = vmmov %vm12119_vm15 }
 0x246   : > { %3034 = vst.msk [vmem:[#allocation2 + $0x64] sm:$0xf] %vm12121_vm5, %v2850_v22  ;;  %v2830_v47 = vsel %vm8495_vm6, %v2821_v26, %v2829_v12  ;;  %v2831_v33 = vrot.slane %v2829_v12, 4  ;;  %v9761_v8 = vor.u32 %v3550_v61, %v3549_v23  ;;  %v3804_v37 = vrot.slane %v9696_v40, 3  ;;  %vm12124_vm4 = vmmov %vm12121_vm5  ;;  %3435 = vrot.lane.b32.xlu1 %v3400_v24, %s7237_s23  ;;  %3486 = vrot.lane.b32.xlu0 %v3400_v24, %s7238_s25 }
 0x247   : > { %3032 = vst.msk [vmem:[#allocation2 + $0x5c] sm:$0xf] %vm12124_vm4, %v2830_v47  ;;  %v2293_v9 = vadd.s32 18, %v9605_v60  ;;  %vm9780_vm15 = vmand %vm2219_vm0, %vm2183_vm2  ;;  %v2291_v10 = vadd.s32 18, %v9622_v54  ;;  %v2100_v42 = vmul.u32 18, %v2099_v53  ;;  %vm4113_vm13 = vcmask 326656   ;;  %v9803_v53 = vpop.permute.xlu1 %3677 }
 0x248   : > { %v2840_v36 = vsel %vm8495_vm6, %v2831_v33, %v2839_v19  ;;  %v2294_v23 = vadd.s32 18, %v9628_v20  ;;  %v2292_v39 = vadd.s32 18, %v9631_v27  ;;  %vm12129_vm2 = vcmask 64512   ;;  %vm12130_vm0 = vmmov %vm12124_vm4  ;;  %v9805_v19 = vpop.permute.xlu0 %3933 }
 0x249   : > { %v3970_v15 = vsel %vm12129_vm2, %v8364_v52, %v9574_v59  ;;  %3033 = vst.msk [vmem:[#allocation2 + $0x60] sm:$0xf] %vm12130_vm0, %v2840_v36  ;;  %vm11904_vm9 = vcmask 392192   ;;  %v2078_v13 = vmul.u32 18, %v2077_v31  ;;  %v2110_v52 = vshrl.u32 %v9663_v16, 4  ;;  %vm12135_vm7 = vmmov %vm12129_vm2 }
 0x24a   : > { %vm12133_vm1 = vsmask.f32 7424  ;;  %vm12134_vm5 = vsmask.f32 6400  ;;  %v9824_v5 = vor.u32 %v3804_v37, %v3803_v51  ;;  %v9827_v6 = vadd.s32 272, %v8259_v25 }
 0x24b   : > { %v3276_v59 = vsel %vm12133_vm1, %v3271_v11, %v3275_v17  ;;  %v3552_v61 = vsel %vm12134_vm5, %v9684_v1, %v9761_v8  ;;  %v2329_v14 = vsel %vm9768_vm14, %v2293_v9, %v9605_v60  ;;  %v2327_v31 = vsel %vm9780_vm15, %v2291_v10, %v9622_v54  ;;  %v9854_v11 = vpop.permute.xlu1 %3730 }
 0x24c   : > { %3359 = vrot.lane.b32.xlu1 %v3276_v59, %s7234_s11  ;;  %3615 = vrot.lane.b32.xlu0 %v3552_v61, %s7240_s30  ;;  %v9838_v16 = vsub.s32 %v9515_v28, %v2100_v42  ;;  %v2088_v1 = vshrl.u32 %v9734_v34, 4  ;;  %v3972_v26 = vsel %vm12135_vm7, %v8620_v57, %v9721_v45  ;;  %v4006_v12 = vsel %vm1260_vm10, %v3970_v15, %v9502_v56  ;;  %v9856_v34 = vpop.permute.xlu0 %3421 }
 0x24d   : > { %v2330_v60 = vsel %vm9793_vm3, %v2294_v23, %v9628_v20  ;;  %v2328_v54 = vsel %vm9811_vm11, %v2292_v39, %v9631_v27  ;;  %vm12136_vm12 = vcmask 195584   ;;  %v9859_v57 = vsub.s32 %v9518_v18, %v2078_v13 }
 0x24e   : > { %v4042_v28 = vsel %vm12136_vm12, %v4006_v12, %v9645_v21  ;;  %v2111_v45 = vmul.u32 18, %v2110_v52  ;;  %v9862_v56 = vadd.s32 256, %v8259_v25  ;;  %vm12137_vm14 = vcmask 261120   ;;  %v9869_v22 = vld [vmem:[#allocation2 + $0x58] sm:$0xff]   ;;  %vm12149_vm5 = vmmov %vm12136_vm12 }
 0x24f   : > { %v4078_v20 = vsel %vm12137_vm14, %v4042_v28, %v9723_v63  ;;  %vm12138_vm4 = vsmask.f32 5376  ;;  %v9872_v21 = vmul.u32.u64.low 3817748708, %v9827_v6  ;;  %v9873_v24 = vmul.u32.u64.high 3817748708, %v9827_v6, %v9872_v21  ;;  %v9907_v48 = vpop.permute.xlu1 %3345 }
 0x250   : > { %v3806_v27 = vsel %vm12138_vm4, %v9672_v50, %v9824_v5  ;;  %v4008_v18 = vsel %vm1260_vm10, %v3972_v26, %v9686_v0  ;;  %3691 = vrot.lane.b32.xlu0 %v9670_v3, %s7242_s9  ;;  %vm9881_vm15 = vcmp.lt.s32.totalorder %v2329_v14, 16  ;;  %v9886_v50 = vadd.s32 18, %v9838_v16  ;;  %v9909_v10 = vpop.permute.xlu0 %3935  ;;  %v9915_v36 = vld [vmem:[#allocation2 + $0x60] sm:$0xff]   ;;  %v6900_v14 = vpop.f32.mrb[24].mxu0  ;;  %vm12151_vm14 = vmmov %vm12138_vm4 }
 0x251   : > { %3871 = vrot.lane.b32.xlu1 %v3806_v27, %s7245_s10  ;;  %v9888_v51 = vmul.u32 18, %v2088_v1  ;;  %v9891_v47 = vadd.s32 280, %v8259_v25  ;;  %v11898_v33 = vrot.slane %v9869_v22, 1  ;;  %v3657_v0 = vrot.slane %v9869_v22, 2 }
 0x252   : > { %vm9895_vm3 = vcmp.lt.s32.totalorder %v2327_v31, 16  ;;  %v9900_v3 = vshll.u32 %v9869_v22, 16  ;;  %v9903_v7 = vshrl.u32 %v9869_v22, 16  ;;  %v4115_v9 = vsel %vm4113_vm13, %v4078_v20, %v9688_v30 }
 0x253   : > { %vm9911_vm2 = vcmp.lt.s32.totalorder %v2330_v60, 16  ;;  %v9918_v43 = vsub.s32 %v9634_v55, %v2111_v45  ;;  %v9921_v23 = vmul.u32.u64.low 3817748708, %v9862_v56  ;;  %v9922_v39 = vmul.u32.u64.high 3817748708, %v9862_v56, %v9921_v23  ;;  %v9962_v31 = vpop.permute.xlu1 %3423 }
 0x254   : > { %vm12145_vm0 = vcmask 1046528   ;;  %vm12146_vm11 = vcmask 1045504   ;;  %v3553_v29 = vrot.slane %v9903_v7, 1  ;;  %vm9936_vm1 = vcmp.lt.s32.totalorder %v2328_v54, 16  ;;  %v1643_v54 = vpop.f32.mrb[25].mxu0  ;;  %v9978_v28 = vpop.permute.xlu0 %3474 }
 0x255   : > { %v9930_v30 = vsel %vm12145_vm0, %v3399_v32, %v11898_v33  ;;  %v3658_v15 = vsel %vm12146_vm11, %v3655_v35, %v3657_v0  ;;  %v9943_v13 = vor.u32 %v9706_v38, %v3275_v17  ;;  %v3554_v32 = vrot.slane %v9900_v3, 2 }
 0x256   : > { %3488 = vrot.lane.b32.xlu1 %v9930_v30, %s7238_s25  ;;  %3744 = vrot.lane.b32.xlu0 %v3658_v15, %s7243_s14  ;;  %v3807_v35 = vrot.slane %v9903_v7, 2  ;;  %v3808_v52 = vrot.slane %v9900_v3, 3  ;;  %v3913_v59 = vrot.slane %v9869_v22, 3  ;;  %v4044_v40 = vsel %vm12149_vm5, %v4008_v18, %v9747_v2  ;;  %v9975_v2 = vld [vmem:[%s11878_s2] ss:$0 sm:$0xff]  ;;  %v6901_v18 = vpop.f32.mrb[26].mxu0 }
 0x257   : > { %v9957_v38 = vsel %vm11904_vm9, %v4115_v9, %v9749_v49  ;;  %v9960_v17 = vshll.u32 %v9915_v36, 16  ;;  %v9964_v1 = vor.u32 %v3554_v32, %v3553_v29  ;;  %v11899_v12 = vrot.slane %v9915_v36, 2 }
 0x258   : > { %v9966_v26 = vor.u32 %v3808_v52, %v3807_v35  ;;  %v9970_v60 = vshrl.u32 %v9915_v36, 16  ;;  %v1652_v49 = vadd.f32 %v9975_v2, %v6900_v14  ;;  %vm11902_vm7 = vcmask 457728   ;;  %v1646_v14 = vpop.f32.mrb[27].mxu0  ;;  %v10011_v33 = vpop.permute.xlu0 %3679 }
 0x259   : > { %v3915_v45 = vrot.slane %v9915_v36, 3  ;;  %v9982_v20 = vmul.u32.u64.low 3817748708, %v9891_v47  ;;  %v9983_v27 = vmul.u32.u64.high 3817748708, %v9891_v47, %v9982_v20  ;;  %v1644_v21 = vadd.f32 %v9975_v2, %v1643_v54 }
 0x25a   : > { %vm12150_vm12 = vsmask.f32 6400  ;;  %v3810_v23 = vsel %vm12151_vm14, %v9824_v5, %v9966_v26  ;;  %v12152_v29 = vrot.slane %v9591_v44, 3  ;;  %vm12153_vm4 = vcmask 1044480   ;;  %v3602_v44 = vpop.permute.xlu1 %3601 }
 0x25b   : > { %v3556_v9 = vsel %vm12150_vm12, %v9761_v8, %v9964_v1  ;;  %vm11901_vm0 = vcmask 523264   ;;  %v1716_v35 = vmax.f32 %v1652_v49, 0.0  ;;  %v1655_v52 = vadd.f32 %v9975_v2, %v6901_v18  ;;  %3873 = vrot.lane.b32.xlu0 %v3810_v23, %s7245_s10  ;;  %vm12156_vm14 = vmmov %vm12153_vm4 }
 0x25c   : > { %v3914_v32 = vsel %vm12153_vm4, %v12152_v29, %v3913_v59  ;;  %3617 = vrot.lane.b32.xlu1 %v3556_v9, %s7240_s30  ;;  %vm11900_vm11 = vcmask 588800   ;;  %v3811_v8 = vrot.slane %v9970_v60, 2  ;;  %v3812_v54 = vrot.slane %v9960_v17, 3 }
 0x25d   : > { %v1714_v20 = vmax.f32 %v1644_v21, 0.0  ;;  %v1647_v5 = vadd.f32 %v9975_v2, %v1646_v14  ;;  %vm12154_vm5 = vcmask 1045504   ;;  %v2473_v9 = vsel %vm9881_vm15, %v1716_v35, 0.0 }
 0x25e   : > { %v10005_v49 = vsel %vm12154_vm5, %v3657_v0, %v11899_v12  ;;  %v1717_v23 = vmax.f32 %v1655_v52, 0.0  ;;  %vm12155_vm12 = vcmask 261120   ;;  %v3916_v21 = vsel %vm12156_vm14, %v3913_v59, %v3915_v45 }
 0x25f   : > { %v4080_v29 = vsel %vm12155_vm12, %v4044_v40, %v3602_v44  ;;  %v6813_v14 = vpack.c.bf16 %v2473_v9, %v2473_v9  ;;  %v2471_v61 = vsel %vm9895_vm3, %v1714_v20, 0.0  ;;  %v1715_v0 = vmax.f32 %v1647_v5, 0.0  ;;  %3949 = vrot.lane.b32.xlu0 %v3914_v32, %s7244_s15  ;;  %v10029_v5 = vpop.permute.xlu1 %3347  ;;  %v3858_v44 = vpop.permute.xlu0 %3857 }
 0x260   : > { %v4117_v12 = vsel %vm4113_vm13, %v4080_v29, %v9803_v53  ;;  %v6811_v18 = vpack.c.bf16 %v2471_v61, %v2471_v61  ;;  %v2474_v63 = vsel %vm9911_vm2, %v1717_v23, 0.0  ;;  %3693 = vrot.lane.b32.xlu1 %v3658_v15, %s7242_s9  ;;  %v10024_v40 = vor.u32 %v3812_v54, %v3811_v8 }
 0x261   : > { %v3403_v59 = vrot.slane %v9915_v36, 1  ;;  %v2873_v35 = vshrl.u32 %v6813_v14, 16  ;;  %v2876_v52 = vshll.u32 %v6813_v14, 16  ;;  %v6814_v37 = vpack.c.bf16 %v2474_v63, %v2474_v63 }
 0x262   : > { %v2472_v20 = vsel %vm9936_vm1, %v1715_v0, 0.0  ;;  %v2853_v53 = vshrl.u32 %v6811_v18, 16  ;;  %v2856_v61 = vshll.u32 %v6811_v18, 16  ;;  %v4154_v15 = vsel %vm11904_vm9, %v4117_v12, %v9854_v11 }
 0x263   : > { %v6812_v42 = vpack.c.bf16 %v2472_v20, %v2472_v20  ;;  %v2875_v32 = vrot.slane %v2873_v35, 6  ;;  %v2878_v8 = vrot.slane %v2876_v52, 7  ;;  %v2883_v54 = vshrl.u32 %v6814_v37, 16  ;;  %3951 = vrot.lane.b32.xlu0 %v3916_v21, %s7244_s15  ;;  %v3860_v63 = vpop.permute.xlu1 %3859 }
 0x264   : > { %v2886_v9 = vshll.u32 %v6814_v37, 16  ;;  %vm2189_vm15 = vcmp.ne.s32.totalorder %v9838_v16, 0  ;;  %vm2225_vm3 = vcmp.lt.s32.totalorder %v9838_v16, 0  ;;  %v2855_v23 = vrot.slane %v2853_v53, 6  ;;  %3746 = vrot.lane.b32.xlu1 %v10005_v49, %s7243_s14  ;;  %v10042_v53 = vpop.permute.xlu0 %3603 }
 0x265   : > { %v2858_v55 = vrot.slane %v2856_v61, 7  ;;  %v2863_v29 = vshrl.u32 %v6812_v42, 16  ;;  %v2866_v14 = vshll.u32 %v6812_v42, 16  ;;  %v2879_v18 = vor.u32 %v2878_v8, %v2875_v32 }
 0x266   : > { %v2885_v0 = vrot.slane %v2883_v54, 6  ;;  %v2888_v11 = vrot.slane %v2886_v9, 7  ;;  %v4189_v12 = vsel %vm11902_vm7, %v9957_v38, %v3858_v44  ;;  %v4191_v21 = vsel %vm11902_vm7, %v4154_v15, %v3860_v63 }
 0x267   : > { %v2859_v35 = vor.u32 %v2858_v55, %v2855_v23  ;;  %v2865_v52 = vrot.slane %v2863_v29, 6  ;;  %v2868_v37 = vrot.slane %v2866_v14, 7  ;;  %v4226_v20 = vsel %vm11901_vm0, %v4189_v12, %v9805_v19  ;;  %3437 = vrot.lane.b32.xlu0 %v9930_v30, %s7237_s23 }
 0x268   : > { %v2881_v61 = vrot.slane %v2879_v18, 4  ;;  %v10044_v42 = vor.u32 %v2888_v11, %v2885_v0  ;;  %6920 = vmatprep.mubr.msk.bf16.mxu1 %vm11900_vm11, %v4226_v20  ;;  %vm12157_vm2 = vsmask.f32 5376  ;;  %v12158_v44 = vrot.slane %v9727_v41, 4  ;;  %v10065_v41 = vpop.permute.xlu1 %3476  ;;  %v10078_v23 = vpop.permute.xlu0 %3732 }
 0x269   : > { %v3814_v38 = vsel %vm12157_vm2, %v9966_v26, %v10024_v40  ;;  %v2861_v8 = vrot.slane %v2859_v35, 4  ;;  %v2869_v19 = vor.u32 %v2868_v37, %v2865_v52  ;;  %v4228_v54 = vsel %vm11901_vm0, %v4191_v21, %v9909_v10 }
 0x26a   : > { %v2860_v32 = vsel %vm8495_vm6, %v12158_v44, %v2859_v35  ;;  %3875 = vrot.lane.b32.xlu1 %v3814_v38, %s7245_s10  ;;  %vm12159_vm1 = vcmask 60416   ;;  %v2890_v26 = vsel %vm8495_vm6, %v2881_v61, %v10044_v42  ;;  %6921 = vmatmul.mubr.msk.bf16.vlgmr.msra.gmra.mrb[0].mxu1 %vm11900_vm11, %v4228_v54  ;;  %vm2187_vm4 = vcmp.ne.s32.totalorder %v9859_v57, 0 }
 0x26b   : > { %3035 = vst.msk [vmem:[#allocation2 + $0x68] sm:$0xf] %vm12159_vm1, %v2860_v32  ;;  %v10070_v15 = vsub.s32 %v9637_v4, %v9888_v51  ;;  %v10073_v30 = vadd.s32 264, %v8259_v25  ;;  %vm12160_vm5 = vmmov %vm12159_vm1  ;;  %v2870_v10 = vsel %vm8495_vm6, %v2861_v8, %v2869_v19  ;;  %v2871_v9 = vrot.slane %v2869_v19, 4 }
 0x26c   : > { %3038 = vst.msk [vmem:[#allocation2 + $0x74] sm:$0xf] %vm12160_vm5, %v2890_v26  ;;  %v12161_v55 = vrot.slane %v9900_v3, 1  ;;  %vm12162_vm12 = vsmask.f32 7424  ;;  %vm12164_vm14 = vmmov %vm12159_vm1  ;;  %v12165_v51 = vrot.slane %v9869_v22, 1  ;;  %v10104_v3 = vpop.permute.xlu1 %3681  ;;  %v10113_v52 = vpop.permute.xlu0 %3937 }
 0x26d   : > { %3036 = vst.msk [vmem:[#allocation2 + $0x6c] sm:$0xf] %vm12164_vm14, %v2870_v10  ;;  %vm12166_vm2 = vcmask 1046528   ;;  %v3291_v11 = vrot.slane %v9960_v17, 1  ;;  %v3557_v12 = vrot.slane %v9970_v60, 1  ;;  %v3558_v63 = vrot.slane %v9960_v17, 2 }
 0x26e   : > { %v3284_v29 = vsel %vm12162_vm12, %v9943_v13, %v12161_v55  ;;  %v12163_v14 = vmov %v12161_v55  ;;  %v3404_v0 = vsel %vm12166_vm2, %v12165_v51, %v3403_v59  ;;  %v2880_v13 = vsel %vm8495_vm6, %v2871_v9, %v2879_v18  ;;  %vm12167_vm12 = vmmov %vm12164_vm14 }
 0x26f   : > { %v3287_v4 = vor.u32 %v9903_v7, %v12163_v14  ;;  %3361 = vrot.lane.b32.xlu1 %v3284_v29, %s7234_s11  ;;  %3490 = vrot.lane.b32.xlu0 %v3404_v0, %s7238_s25  ;;  %vm2223_vm1 = vcmp.lt.s32.totalorder %v9859_v57, 0  ;;  %vm2190_vm5 = vcmp.ne.s32.totalorder %v9918_v43, 0  ;;  %v2143_v22 = vshrl.u32 %v9873_v24, 4  ;;  %3037 = vst.msk [vmem:[#allocation2 + $0x70] sm:$0xf] %vm12167_vm12, %v2880_v13  ;;  %vm10119_vm2 = vmand %vm2225_vm3, %vm2189_vm15  ;;  %v7155_v13 = vld [vmem:[#allocation2 + $0x18] sm:$0xff]  }
 0x270   : > { %v10106_v7 = vor.u32 %v3558_v63, %v3557_v12  ;;  %vm2226_vm14 = vcmp.lt.s32.totalorder %v9918_v43, 0  ;;  %v10110_v18 = vmul.u32.u64.low 3817748708, %v10073_v30  ;;  %v10111_v35 = vmul.u32.u64.high 3817748708, %v10073_v30, %v10110_v18  ;;  %vm10137_vm15 = vmand %vm2223_vm1, %vm2187_vm4  ;;  %v10156_v19 = vpop.permute.xlu1 %3734  ;;  %v10159_v54 = vpop.permute.xlu0 %3425 }
 0x271   : > { %v2295_v37 = vadd.s32 18, %v9859_v57  ;;  %v2298_v20 = vadd.s32 18, %v9918_v43  ;;  %vm2188_vm12 = vcmp.ne.s32.totalorder %v10070_v15, 0  ;;  %vm2224_vm11 = vcmp.lt.s32.totalorder %v10070_v15, 0 }
 0x272   : > { %vm12170_vm0 = vsmask.f32 7424  ;;  %vm12171_vm7 = vsmask.f32 6400  ;;  %v2121_v44 = vshrl.u32 %v9922_v39, 4  ;;  %v2154_v32 = vshrl.u32 %v9983_v27, 4 }
 0x273   : > { %v3292_v61 = vsel %vm12170_vm0, %v3287_v4, %v3291_v11  ;;  %v3560_v21 = vsel %vm12171_vm7, %v9964_v1, %v10106_v7  ;;  %vm12174_vm3 = vcmask 64512   ;;  %vm10152_vm7 = vmand %vm2226_vm14, %vm2190_vm5  ;;  %v2296_v39 = vadd.s32 18, %v10070_v15 }
 0x274   : > { %v3974_v8 = vsel %vm12174_vm3, %v8640_v46, %v9907_v48  ;;  %3363 = vrot.lane.b32.xlu1 %v3292_v61, %s7234_s11  ;;  %3619 = vrot.lane.b32.xlu0 %v3560_v21, %s7240_s30  ;;  %v2144_v27 = vmul.u32 18, %v2143_v22  ;;  %v10161_v46 = vld [vmem:[#allocation2 + $0x68] sm:$0xff]   ;;  %v2333_v48 = vsel %vm10119_vm2, %v9886_v50, %v9838_v16  ;;  %v2331_v26 = vsel %vm10137_vm15, %v2295_v37, %v9859_v57  ;;  %vm10174_vm0 = vmand %vm2224_vm11, %vm2188_vm12  ;;  %v10196_v4 = vpop.permute.xlu1 %3349  ;;  %v10213_v22 = vpop.permute.xlu0 %3939 }
 0x275   : > { %v4010_v9 = vsel %vm1260_vm10, %v3974_v8, %v9856_v34  ;;  %v2334_v55 = vsel %vm10152_vm7, %v2298_v20, %v9918_v43  ;;  %v2122_v16 = vmul.u32 18, %v2121_v44  ;;  %v2155_v50 = vmul.u32 18, %v2154_v32  ;;  %vm12182_vm1 = vmmov %vm12174_vm3 }
 0x276   : > { %v3405_v57 = vrot.slane %v10161_v46, 1  ;;  %v3661_v29 = vrot.slane %v10161_v46, 2  ;;  %v10189_v14 = vshll.u32 %v10161_v46, 16  ;;  %v10192_v34 = vshrl.u32 %v10161_v46, 16 }
 0x277   : > { %vm12179_vm11 = vcmask 195584   ;;  %vm10198_vm4 = vcmp.lt.s32.totalorder %v2333_v48, 16  ;;  %v10208_v12 = vsub.s32 %v9827_v6, %v2144_v27  ;;  %v2132_v63 = vshrl.u32 %v10111_v35, 4 }
 0x278   : > { %3439 = vrot.lane.b32.xlu1 %v3404_v0, %s7237_s23  ;;  %3695 = vrot.lane.b32.xlu0 %v10005_v49, %s7242_s9  ;;  %v4046_v43 = vsel %vm12179_vm11, %v4010_v9, %v9978_v28  ;;  %v2332_v49 = vsel %vm10174_vm0, %v2296_v39, %v10070_v15  ;;  %v10205_v0 = vld [vmem:[#allocation2 + $0x70] sm:$0xff]   ;;  %v3976_v28 = vsel %vm12182_vm1, %v7155_v13, %v10029_v5  ;;  %vm12183_vm5 = vcmask 1046528   ;;  %v10256_v8 = vpop.permute.xlu1 %3427  ;;  %v10268_v10 = vpop.permute.xlu0 %3478 }
 0x279   : > { %v10220_v18 = vsel %vm12183_vm5, %v3403_v59, %v3405_v57  ;;  %v12184_v15 = vrot.slane %v9915_v36, 2  ;;  %vm12185_vm14 = vcmask 1045504   ;;  %vm10225_vm2 = vcmp.lt.s32.totalorder %v2331_v26, 16 }
 0x27a   : > { %v3561_v35 = vrot.slane %v10192_v34, 1  ;;  %vm12188_vm12 = vcmask 261120   ;;  %vm10232_vm15 = vcmp.lt.s32.totalorder %v2334_v55, 16  ;;  %v3562_v59 = vrot.slane %v10189_v14, 2  ;;  %v6904_v55 = vpop.f32.mrb[28].mxu0  ;;  %vm12196_vm5 = vmmov %vm12185_vm14 }
 0x27b   : > { %v3662_v6 = vsel %vm12185_vm14, %v12184_v15, %v3661_v29  ;;  %v4082_v5 = vsel %vm12188_vm12, %v4046_v43, %v10042_v53  ;;  %v3815_v20 = vrot.slane %v10192_v34, 2  ;;  %v3816_v61 = vrot.slane %v10189_v14, 3  ;;  %vm12197_vm14 = vmmov %vm12188_vm12 }
 0x27c   : > { %3492 = vrot.lane.b32.xlu1 %v10220_v18, %s7238_s25  ;;  %3748 = vrot.lane.b32.xlu0 %v3662_v6, %s7243_s14  ;;  %vm10242_vm3 = vcmp.lt.s32.totalorder %v2332_v49, 16  ;;  %v3917_v53 = vrot.slane %v10161_v46, 3  ;;  %v10248_v38 = vshll.u32 %v10205_v0, 16  ;;  %v10251_v44 = vsub.s32 %v9862_v56, %v2122_v16  ;;  %v3606_v15 = vpop.permute.xlu1 %3605 }
 0x27d   : > { %v10254_v32 = vsub.s32 %v9891_v47, %v2155_v50  ;;  %v10258_v1 = vor.u32 %v3562_v59, %v3561_v35  ;;  %v3817_v39 = vor.u32 %v3816_v61, %v3815_v20  ;;  %v3663_v27 = vrot.slane %v10205_v0, 2 }
 0x27e   : > { %v10262_v48 = vshrl.u32 %v10205_v0, 16  ;;  %v4012_v26 = vsel %vm1260_vm10, %v3976_v28, %v9962_v31  ;;  %v4119_v56 = vsel %vm4113_vm13, %v4082_v5, %v10011_v33  ;;  %v3820_v47 = vrot.slane %v10248_v38, 3  ;;  %v1659_v28 = vpop.f32.mrb[29].mxu0 }
 0x27f   : > { %v10271_v9 = vmul.u32 18, %v2132_v63  ;;  %vm12193_vm7 = vsmask.f32 6400  ;;  %vm12194_vm0 = vsmask.f32 5376  ;;  %v11903_v43 = vrot.slane %v10205_v0, 3 }
 0x280   : > { %v3564_v16 = vsel %vm12193_vm7, %v10106_v7, %v10258_v1  ;;  %v3818_v50 = vsel %vm12194_vm0, %v10024_v40, %v3817_v39  ;;  %v3819_v31 = vrot.slane %v10262_v48, 2  ;;  %v2891_v33 = vrot.slane %v10044_v42, 4  ;;  %v6905_v7 = vpop.f32.mrb[30].mxu0 }
 0x281   : > { %v4048_v49 = vsel %vm12179_vm11, %v4012_v26, %v10065_v41  ;;  %v4156_v63 = vsel %vm11904_vm9, %v4119_v56, %v10078_v23  ;;  %v1668_v13 = vadd.f32 %v9975_v2, %v6904_v55  ;;  %3621 = vrot.lane.b32.xlu1 %v3564_v16, %s7240_s30  ;;  %3877 = vrot.lane.b32.xlu0 %v3818_v50, %s7245_s10  ;;  %vm12195_vm1 = vcmask 1044480   ;;  %v1662_v20 = vpop.f32.mrb[31].mxu0  ;;  %v10300_v26 = vpop.permute.xlu0 %3683 }
 0x282   : > { %v1660_v40 = vadd.f32 %v9975_v2, %v1659_v28  ;;  %v3918_v35 = vsel %vm12195_vm1, %v3915_v45, %v3917_v53  ;;  %v10295_v41 = vsel %vm12196_vm5, %v3661_v29, %v3663_v27  ;;  %v3299_v23 = vrot.slane %v10189_v14, 1  ;;  %vm12198_vm12 = vmmov %vm12195_vm1  ;;  %v10318_v28 = vpop.permute.xlu1 %3351 }
 0x283   : > { %v1720_v5 = vmax.f32 %v1668_v13, 0.0  ;;  %v1671_v59 = vadd.f32 %v9975_v2, %v6905_v7  ;;  %v4084_v61 = vsel %vm12197_vm14, %v4048_v49, %v3606_v15  ;;  %v10302_v56 = vor.u32 %v3820_v47, %v3819_v31 }
 0x284   : > { %v1718_v36 = vmax.f32 %v1660_v40, 0.0  ;;  %v1663_v45 = vadd.f32 %v9975_v2, %v1662_v20  ;;  %v4121_v55 = vsel %vm4113_vm13, %v4084_v61, %v10104_v3  ;;  %v3920_v29 = vsel %vm12198_vm12, %v3917_v53, %v11903_v43 }
 0x285   : > { %v2477_v16 = vsel %vm10198_vm4, %v1720_v5, 0.0  ;;  %v1721_v50 = vmax.f32 %v1671_v59, 0.0  ;;  %3697 = vrot.lane.b32.xlu1 %v3662_v6, %s7242_s9  ;;  %3953 = vrot.lane.b32.xlu0 %v3918_v35, %s7244_s15  ;;  %v3407_v47 = vrot.slane %v10205_v0, 1  ;;  %v3565_v31 = vrot.slane %v10262_v48, 1  ;;  %v3862_v6 = vpop.permute.xlu0 %3861  ;;  %vm12199_vm4 = vmmov %vm12194_vm0 }
 0x286   : > { %v6817_v49 = vpack.c.bf16 %v2477_v16, %v2477_v16  ;;  %v2475_v3 = vsel %vm10225_vm2, %v1718_v36, 0.0  ;;  %v1719_v13 = vmax.f32 %v1663_v45, 0.0  ;;  %v3566_v53 = vrot.slane %v10248_v38, 2 }
 0x287   : > { %v6815_v51 = vpack.c.bf16 %v2475_v3, %v2475_v3  ;;  %v2478_v40 = vsel %vm10232_vm15, %v1721_v50, 0.0  ;;  %v4158_v7 = vsel %vm11904_vm9, %v4121_v55, %v10156_v19  ;;  %v3822_v15 = vsel %vm12199_vm4, %v3817_v39, %v10302_v56  ;;  %v3864_v55 = vpop.permute.xlu1 %3863 }
 0x288   : > { %v2913_v35 = vshrl.u32 %v6817_v49, 16  ;;  %v2916_v5 = vshll.u32 %v6817_v49, 16  ;;  %v6818_v24 = vpack.c.bf16 %v2478_v40, %v2478_v40  ;;  %v2476_v59 = vsel %vm10242_vm3, %v1719_v13, 0.0 }
 0x289   : > { %vm2193_vm2 = vcmp.ne.s32.totalorder %v10208_v12, 0  ;;  %vm2229_vm7 = vcmp.lt.s32.totalorder %v10208_v12, 0  ;;  %v2893_v20 = vshrl.u32 %v6815_v51, 16  ;;  %v2896_v37 = vshll.u32 %v6815_v51, 16  ;;  %3750 = vrot.lane.b32.xlu1 %v10295_v41, %s7243_s14  ;;  %3955 = vrot.lane.b32.xlu0 %v3920_v29, %s7244_s15  ;;  %v10337_v13 = vpop.permute.xlu0 %3607 }
 0x28a   : > { %v6816_v61 = vpack.c.bf16 %v2476_v59, %v2476_v59  ;;  %vm12200_vm15 = vcmask 457728   ;;  %vm2191_vm0 = vcmp.ne.s32.totalorder %v10251_v44, 0  ;;  %vm2227_vm11 = vcmp.lt.s32.totalorder %v10251_v44, 0 }
 0x28b   : > { %v4193_v36 = vsel %vm12200_vm15, %v4156_v63, %v3862_v6  ;;  %v2915_v19 = vrot.slane %v2913_v35, 6  ;;  %v2918_v21 = vrot.slane %v2916_v5, 7  ;;  %v2923_v39 = vshrl.u32 %v6818_v24, 16  ;;  %vm12203_vm5 = vmmov %vm12200_vm15 }
 0x28c   : > { %v2926_v45 = vshll.u32 %v6818_v24, 16  ;;  %v2895_v16 = vrot.slane %v2893_v20, 6  ;;  %v2898_v50 = vrot.slane %v2896_v37, 7  ;;  %v2903_v49 = vshrl.u32 %v6816_v61, 16  ;;  %v10350_v37 = vpop.permute.xlu1 %3480  ;;  %vm10418_vm9 = vmand %vm2227_vm11, %vm2191_vm0 }
 0x28d   : > { %v2906_v3 = vshll.u32 %v6816_v61, 16  ;;  %v2919_v63 = vor.u32 %v2918_v21, %v2915_v19  ;;  %v2925_v51 = vrot.slane %v2923_v39, 6  ;;  %vm12201_vm3 = vcmask 523264   ;;  %3879 = vrot.lane.b32.xlu1 %v3822_v15, %s7245_s10  ;;  %3441 = vrot.lane.b32.xlu0 %v10220_v18, %s7237_s23 }
 0x28e   : > { %v2928_v40 = vrot.slane %v2926_v45, 7  ;;  %v4230_v29 = vsel %vm12201_vm3, %v4193_v36, %v10113_v52  ;;  %v2899_v6 = vor.u32 %v2898_v50, %v2895_v16  ;;  %v2905_v59 = vrot.slane %v2903_v49, 6  ;;  %vm12204_vm14 = vmmov %vm12201_vm3  ;;  %v10360_v36 = vpop.permute.xlu0 %3736 }
 0x28f   : > { %v2908_v43 = vrot.slane %v2906_v3, 7  ;;  %vm12202_vm1 = vcmask 588800   ;;  %v4195_v35 = vsel %vm12203_vm5, %v4158_v7, %v3864_v55  ;;  %v2921_v5 = vrot.slane %v2919_v63, 4  ;;  %v7156_v55 = vld [vmem:[#allocation2 + $0x20] sm:$0xff]  }
 0x290   : > { %6924 = vmatprep.mubr.msk.bf16.mxu1 %vm12202_vm1, %v4230_v29  ;;  %v10344_v24 = vor.u32 %v2928_v40, %v2925_v51  ;;  %v4232_v20 = vsel %vm12204_vm14, %v4195_v35, %v10213_v22  ;;  %v3295_v52 = vor.u32 %v9970_v60, %v3291_v11  ;;  %v2900_v7 = vsel %vm8495_vm6, %v2891_v33, %v2899_v6  ;;  %vm12205_vm12 = vmmov %vm12202_vm1  ;;  %v7157_v40 = vld [vmem:[#allocation2 + $0x28] sm:$0xff]  }
 0x291   : > { %v2901_v15 = vrot.slane %v2899_v6, 4  ;;  %v2909_v61 = vor.u32 %v2908_v43, %v2905_v59  ;;  %6925 = vmatmul.mubr.msk.bf16.gmra.mrb[4].mxu1 %vm12205_vm12, %v4232_v20  ;;  %v2134_v22 = vsub.s32 %v10073_v30, %v10271_v9  ;;  %vm12206_vm4 = vcmask 60416  }
 0x292   : > { %3039 = vst.msk [vmem:[#allocation2 + $0x78] sm:$0xf] %vm12206_vm4, %v2900_v7  ;;  %v2930_v17 = vsel %vm8495_vm6, %v2921_v5, %v10344_v24  ;;  %vm12207_vm15 = vsmask.f32 7424  ;;  %v3303_v42 = vor.u32 %v10192_v34, %v3299_v23  ;;  %v3307_v11 = vrot.slane %v10248_v38, 1  ;;  %vm12208_vm3 = vmmov %vm12206_vm4  ;;  %v10392_v34 = vpop.permute.xlu1 %3685 }
 0x293   : > { %v3300_v60 = vsel %vm12207_vm15, %v3295_v52, %v3299_v23  ;;  %3042 = vst.msk [vmem:[#allocation2 + $0x84] sm:$0xf] %vm12208_vm3, %v2930_v17  ;;  %v2910_v30 = vsel %vm8495_vm6, %v2901_v15, %v2909_v61  ;;  %v2911_v18 = vrot.slane %v2909_v61, 4  ;;  %vm12209_vm1 = vcmask 1046528   ;;  %vm12210_vm5 = vmmov %vm12208_vm3 }
 0x294   : > { %3365 = vrot.lane.b32.xlu1 %v3300_v60, %s7234_s11  ;;  %v3408_v9 = vsel %vm12209_vm1, %v3405_v57, %v3407_v47  ;;  %v10388_v14 = vor.u32 %v3566_v53, %v3565_v31  ;;  %3040 = vst.msk [vmem:[#allocation2 + $0x7c] sm:$0xf] %vm12210_vm5, %v2910_v30  ;;  %v2301_v43 = vadd.s32 18, %v10208_v12  ;;  %vm2194_vm14 = vcmp.ne.s32.totalorder %v10254_v32, 0  ;;  %v10399_v57 = vpop.permute.xlu0 %3941  ;;  %vm10405_vm4 = vmand %vm2229_vm7, %vm2193_vm2 }
 0x295   : > { %3494 = vrot.lane.b32.xlu0 %v3408_v9, %s7238_s25  ;;  %vm2230_vm12 = vcmp.lt.s32.totalorder %v10254_v32, 0  ;;  %v2920_v46 = vsel %vm8495_vm6, %v2911_v18, %v2919_v63  ;;  %v2299_v23 = vadd.s32 18, %v10251_v44  ;;  %vm2192_vm15 = vcmp.ne.s32.totalorder %v2134_v22, 0  ;;  %vm12213_vm1 = vmmov %vm12210_vm5 }
 0x296   : > { %vm2228_vm3 = vcmp.lt.s32.totalorder %v2134_v22, 0  ;;  %3041 = vst.msk [vmem:[#allocation2 + $0x80] sm:$0xf] %vm12213_vm1, %v2920_v46  ;;  %vm12214_vm5 = vsmask.f32 7424  ;;  %v2302_v19 = vadd.s32 18, %v10254_v32  ;;  %vm10427_vm7 = vmand %vm2230_vm12, %vm2194_vm14  ;;  %v10434_v50 = vpop.permute.xlu1 %3738 }
 0x297   : > { %v3308_v31 = vsel %vm12214_vm5, %v3303_v42, %v3307_v11  ;;  %vm12217_vm2 = vsmask.f32 6400  ;;  %v2300_v45 = vadd.s32 18, %v2134_v22  ;;  %vm12220_vm1 = vcmask 64512   ;;  %vm10436_vm0 = vmand %vm2228_vm3, %vm2192_vm15  ;;  %v6908_v46 = vpop.f32.mrb[32].mxu0 }
 0x298   : > { %3367 = vrot.lane.b32.xlu1 %v3308_v31, %s7234_s11  ;;  %v3568_v21 = vsel %vm12217_vm2, %v10258_v1, %v10388_v14  ;;  %v3978_v16 = vsel %vm12220_vm1, %v7156_v55, %v10196_v4  ;;  %v10440_v3 = vpop.permute.xlu0 %3429  ;;  %v2337_v1 = vsel %vm10405_vm4, %v2301_v43, %v10208_v12  ;;  %v2335_v63 = vsel %vm10418_vm9, %v2299_v23, %v10251_v44  ;;  %vm12223_vm11 = vmmov %vm12220_vm1 }
 0x299   : > { %3623 = vrot.lane.b32.xlu0 %v3568_v21, %s7240_s30  ;;  %v2338_v4 = vsel %vm10427_vm7, %v2302_v19, %v10254_v32  ;;  %v4014_v51 = vsel %vm1260_vm10, %v3978_v16, %v10159_v54  ;;  %v3980_v29 = vsel %vm12223_vm11, %v7157_v40, %v10318_v28  ;;  %v2336_v12 = vsel %vm10436_vm0, %v2300_v45, %v2134_v22  ;;  %v1675_v19 = vpop.f32.mrb[33].mxu0 }
 0x29a   : > { %vm12224_vm9 = vcmask 195584   ;;  %v10464_v32 = vpop.permute.xlu1 %3353  ;;  %vm10466_vm14 = vcmp.lt.s32.totalorder %v2337_v1, 16  ;;  %vm10470_vm12 = vcmp.lt.s32.totalorder %v2335_v63, 16  ;;  %vm12229_vm4 = vcmask 261120   ;;  %v6909_v45 = vpop.f32.mrb[34].mxu0 }
 0x29b   : > { %v10456_v6 = vld [vmem:[#allocation2 + $0x78] sm:$0xff]   ;;  %v4050_v44 = vsel %vm12224_vm9, %v4014_v51, %v10268_v10  ;;  %vm10479_vm15 = vcmp.lt.s32.totalorder %v2338_v4, 16  ;;  %v4016_v7 = vsel %vm1260_vm10, %v3980_v29, %v10256_v8  ;;  %vm10491_vm3 = vcmp.lt.s32.totalorder %v2336_v12, 16  ;;  %vm12236_vm7 = vmmov %vm12224_vm9  ;;  %v1678_v63 = vpop.f32.mrb[35].mxu0 }
 0x29c   : > { %3443 = vrot.lane.b32.xlu1 %v3408_v9, %s7237_s23  ;;  %v4086_v59 = vsel %vm12229_vm4, %v4050_v44, %v10337_v13  ;;  %v10476_v35 = vpop.permute.xlu0 %3943  ;;  %v3409_v10 = vrot.slane %v10456_v6, 1  ;;  %v10485_v20 = vshll.u32 %v10456_v6, 16  ;;  %v10496_v15 = vshrl.u32 %v10456_v6, 16 }
 0x29d   : > { %3699 = vrot.lane.b32.xlu0 %v10295_v41, %s7242_s9  ;;  %v3665_v41 = vrot.slane %v10456_v6, 2  ;;  %v10487_v52 = vld [vmem:[#allocation2 + $0x80] sm:$0xff]   ;;  %v3921_v61 = vrot.slane %v10456_v6, 3  ;;  %vm12234_vm5 = vcmask 1046528   ;;  %vm12235_vm2 = vcmask 1045504  }
 0x29e   : > { %v10504_v22 = vsel %vm12234_vm5, %v3407_v47, %v3409_v10  ;;  %v3570_v17 = vrot.slane %v10485_v20, 2  ;;  %v3824_v60 = vrot.slane %v10485_v20, 3  ;;  %v2931_v42 = vrot.slane %v10344_v24, 4  ;;  %v10517_v47 = vpop.permute.xlu1 %3431  ;;  %vm12242_vm5 = vmmov %vm12235_vm2 }
 0x29f   : > { %v3666_v8 = vsel %vm12235_vm2, %v3663_v27, %v3665_v41  ;;  %v4123_v30 = vsel %vm4113_vm13, %v4086_v59, %v10300_v26  ;;  %v3569_v18 = vrot.slane %v10496_v15, 1  ;;  %v3823_v27 = vrot.slane %v10496_v15, 2 }
 0x2a0   : > { %3496 = vrot.lane.b32.xlu1 %v10504_v22, %s7238_s25  ;;  %v4052_v9 = vsel %vm12236_vm7, %v4016_v7, %v10350_v37  ;;  %vm12237_vm1 = vcmask 392192   ;;  %v10527_v26 = vpop.permute.xlu0 %3482  ;;  %v12238_v33 = vrot.slane %v10205_v0, 3  ;;  %vm12239_vm0 = vcmask 1044480  }
 0x2a1   : > { %3752 = vrot.lane.b32.xlu0 %v3666_v8, %s7243_s14  ;;  %v10525_v43 = vsel %vm12237_vm1, %v4123_v30, %v10360_v36  ;;  %v10533_v31 = vshrl.u32 %v10487_v52, 16  ;;  %v1684_v53 = vadd.f32 %v9975_v2, %v6908_v46  ;;  %v10536_v21 = vor.u32 %v3570_v17, %v3569_v18  ;;  %vm12244_vm2 = vmmov %vm12237_vm1 }
 0x2a2   : > { %v3922_v23 = vsel %vm12239_vm0, %v12238_v33, %v3921_v61  ;;  %v10538_v37 = vor.u32 %v3824_v60, %v3823_v27  ;;  %v10541_v36 = vshll.u32 %v10487_v52, 16  ;;  %v1676_v39 = vadd.f32 %v9975_v2, %v1675_v19  ;;  %v3610_v40 = vpop.permute.xlu1 %3609 }
 0x2a3   : > { %v3667_v0 = vrot.slane %v10487_v52, 2  ;;  %v3923_v55 = vrot.slane %v10487_v52, 3  ;;  %v3315_v16 = vrot.slane %v10485_v20, 1  ;;  %v1724_v49 = vmax.f32 %v1684_v53, 0.0 }
 0x2a4   : > { %v1687_v1 = vadd.f32 %v9975_v2, %v6909_v45  ;;  %vm12240_vm11 = vsmask.f32 6400  ;;  %vm12241_vm9 = vsmask.f32 5376  ;;  %v1722_v29 = vmax.f32 %v1676_v39, 0.0  ;;  %v10558_v59 = vpop.permute.xlu0 %3687 }
 0x2a5   : > { %v3572_v4 = vsel %vm12240_vm11, %v10388_v14, %v10536_v21  ;;  %v3826_v51 = vsel %vm12241_vm9, %v10302_v56, %v10538_v37  ;;  %v1679_v12 = vadd.f32 %v9975_v2, %v1678_v63  ;;  %v4088_v44 = vsel %vm12229_vm4, %v4052_v9, %v3610_v40  ;;  %vm12249_vm1 = vmmov %vm12241_vm9 }
 0x2a6   : > { %3625 = vrot.lane.b32.xlu1 %v3572_v4, %s7240_s30  ;;  %3881 = vrot.lane.b32.xlu0 %v3826_v51, %s7245_s10  ;;  %v3827_v7 = vrot.slane %v10533_v31, 2  ;;  %v2481_v14 = vsel %vm10466_vm14, %v1724_v49, 0.0  ;;  %v1725_v17 = vmax.f32 %v1687_v1, 0.0  ;;  %v4125_v56 = vsel %vm4113_vm13, %v4088_v44, %v10392_v34  ;;  %v10575_v46 = vpop.permute.xlu1 %3355  ;;  %vm12243_vm14 = vmmov %vm12239_vm0 }
 0x2a7   : > { %v3828_v60 = vrot.slane %v10541_v36, 3  ;;  %v6821_v2 = vpack.c.bf16 %v2481_v14, %v2481_v14  ;;  %v2479_v30 = vsel %vm10470_vm12, %v1722_v29, 0.0  ;;  %v1723_v18 = vmax.f32 %v1679_v12, 0.0 }
 0x2a8   : > { %v10571_v27 = vsel %vm12242_vm5, %v3665_v41, %v3667_v0  ;;  %v6819_v9 = vpack.c.bf16 %v2479_v30, %v2479_v30  ;;  %v2482_v54 = vsel %vm10479_vm15, %v1725_v17, 0.0  ;;  %v3924_v34 = vsel %vm12243_vm14, %v3921_v61, %v3923_v55  ;;  %v3866_v5 = vpop.permute.xlu0 %3865 }
 0x2a9   : > { %v4162_v28 = vsel %vm12244_vm2, %v4125_v56, %v10434_v50  ;;  %v2953_v33 = vshrl.u32 %v6821_v2, 16  ;;  %v2956_v53 = vshll.u32 %v6821_v2, 16  ;;  %v6822_v19 = vpack.c.bf16 %v2482_v54, %v2482_v54 }
 0x2aa   : > { %v2480_v41 = vsel %vm10491_vm3, %v1723_v18, 0.0  ;;  %3701 = vrot.lane.b32.xlu1 %v3666_v8, %s7242_s9  ;;  %3957 = vrot.lane.b32.xlu0 %v3922_v23, %s7244_s15  ;;  %v2933_v39 = vshrl.u32 %v6819_v9, 16  ;;  %v2936_v45 = vshll.u32 %v6819_v9, 16  ;;  %v10586_v1 = vor.u32 %v3828_v60, %v3827_v7  ;;  %v3868_v13 = vpop.permute.xlu1 %3867 }
 0x2ab   : > { %v6820_v49 = vpack.c.bf16 %v2480_v41, %v2480_v41  ;;  %v2955_v61 = vrot.slane %v2953_v33, 6  ;;  %v2958_v63 = vrot.slane %v2956_v53, 7  ;;  %v2963_v4 = vshrl.u32 %v6822_v19, 16  ;;  %v3047_v33 = vld [vmem:[#allocation2 + $0x98] sm:$0x3] }
 0x2ac   : > { %v2966_v50 = vshll.u32 %v6822_v19, 16  ;;  %v2935_v51 = vrot.slane %v2933_v39, 6  ;;  %v2938_v40 = vrot.slane %v2936_v45, 7  ;;  %vm12245_vm12 = vcmask 457728   ;;  %v3612_v7 = vpop.permute.xlu0 %3611 }
 0x2ad   : > { %v2943_v29 = vshrl.u32 %v6820_v49, 16  ;;  %v2946_v12 = vshll.u32 %v6820_v49, 16  ;;  %v2959_v44 = vor.u32 %v2958_v63, %v2955_v61  ;;  %v2965_v14 = vrot.slane %v2963_v4, 6  ;;  %vm12248_vm7 = vmmov %vm12245_vm12 }
 0x2ae   : > { %v2968_v8 = vrot.slane %v2966_v50, 7  ;;  %v4197_v23 = vsel %vm12245_vm12, %v10525_v43, %v3866_v5  ;;  %3754 = vrot.lane.b32.xlu1 %v10571_v27, %s7243_s14  ;;  %3959 = vrot.lane.b32.xlu0 %v3924_v34, %s7244_s15  ;;  %v2939_v17 = vor.u32 %v2938_v40, %v2935_v51  ;;  %vm12246_vm15 = vcmask 523264   ;;  %v10605_v19 = vpop.permute.xlu1 %3484  ;;  %v7158_v5 = vld [vmem:[#allocation2 + $0x30] sm:$0xff]  }
 0x2af   : > { %v2945_v56 = vrot.slane %v2943_v29, 6  ;;  %v2948_v60 = vrot.slane %v2946_v12, 7  ;;  %v4234_v2 = vsel %vm12246_vm15, %v4197_v23, %v10399_v57  ;;  %v2961_v30 = vrot.slane %v2959_v44, 4  ;;  %vm12251_vm11 = vmmov %vm12246_vm15 }
 0x2b0   : > { %v2969_v18 = vor.u32 %v2968_v8, %v2965_v14  ;;  %vm12247_vm3 = vcmask 588800   ;;  %v4199_v9 = vsel %vm12248_vm7, %v4162_v28, %v3868_v13  ;;  %v3411_v43 = vrot.slane %v10487_v52, 1 }
 0x2b1   : > { %6928 = vmatprep.mubr.msk.bf16.mxu1 %vm12247_vm3, %v4234_v2  ;;  %v2940_v54 = vsel %vm8495_vm6, %v2931_v42, %v2939_v17  ;;  %v2941_v34 = vrot.slane %v2939_v17, 4  ;;  %v2949_v53 = vor.u32 %v2948_v60, %v2945_v56  ;;  %v3830_v57 = vsel %vm12249_vm1, %v10538_v37, %v10586_v1  ;;  %v3741_v42 = vpop.permute.xlu0 %3740  ;;  %vm12254_vm5 = vmmov %vm12247_vm3  ;;  %v7159_v2 = vld [vmem:[#allocation2 + $0x38] sm:$0xff]  }
 0x2b2   : > { %vm12250_vm0 = vcmask 60416   ;;  %v2970_v28 = vsel %vm8495_vm6, %v2961_v30, %v2969_v18  ;;  %v2971_v41 = vrot.slane %v2969_v18, 4  ;;  %3883 = vrot.lane.b32.xlu1 %v3830_v57, %s7245_s10  ;;  %3445 = vrot.lane.b32.xlu0 %v10504_v22, %s7237_s23  ;;  %v4236_v24 = vsel %vm12251_vm11, %v4199_v9, %v10476_v35 }
 0x2b3   : > { %3043 = vst.msk [vmem:[#allocation2 + $0x88] sm:$0xf] %vm12250_vm0, %v2940_v54  ;;  %v3311_v37 = vor.u32 %v10262_v48, %v3307_v11  ;;  %vm12252_vm9 = vcmask 64512   ;;  %vm12253_vm4 = vmmov %vm12250_vm0  ;;  %v2950_v45 = vsel %vm8495_vm6, %v2941_v34, %v2949_v53  ;;  %v2951_v49 = vrot.slane %v2949_v53, 4  ;;  %6929 = vmatmul.mubr.msk.bf16.gmra.mrb[8].mxu1 %vm12254_vm5, %v4236_v24 }
 0x2b4   : > { %v3982_v39 = vsel %vm12252_vm9, %v7158_v5, %v10464_v32  ;;  %3046 = vst.msk [vmem:[#allocation2 + $0x94] sm:$0xf] %vm12253_vm4, %v2970_v28  ;;  %v3048_v35 = vsel %vm8080_vm8, %v2971_v41, %v3047_v33  ;;  %vm12255_vm14 = vmmov %vm12250_vm0  ;;  %vm12256_vm2 = vsmask.f32 7424  ;;  %vm12257_vm12 = vcmask 1046528   ;;  %v10640_v32 = vpop.permute.xlu1 %3689 }
 0x2b5   : > { %3044 = vst.msk [vmem:[#allocation2 + $0x8c] sm:$0xf] %vm12255_vm14, %v2950_v45  ;;  %v3316_v38 = vsel %vm12256_vm2, %v3311_v37, %v3315_v16  ;;  %v3412_v48 = vsel %vm12257_vm12, %v3409_v10, %v3411_v43  ;;  %v3319_v11 = vor.u32 %v10496_v15, %v3315_v16  ;;  %3049 = vst [vmem:[#allocation2 + $0x98] sm:$0x3] %v3048_v35  ;;  %v3323_v22 = vrot.slane %v10541_v36, 1  ;;  %v3946_v10 = vpop.permute.xlu0 %3945 }
 0x2b6   : > { %v2960_v62 = vsel %vm8495_vm6, %v2951_v49, %v2959_v44  ;;  %v3573_v61 = vrot.slane %v10533_v31, 1  ;;  %v3574_v63 = vrot.slane %v10541_v36, 2  ;;  %vm12258_vm8 = vmmov %vm12250_vm0  ;;  %3369 = vrot.lane.b32.xlu1 %v3316_v38, %s7234_s11  ;;  %3498 = vrot.lane.b32.xlu0 %v3412_v48, %s7238_s25  ;;  %v4018_v20 = vsel %vm1260_vm10, %v3982_v39, %v10440_v3 }
 0x2b7   : > { %3045 = vst.msk [vmem:[#allocation2 + $0x90] sm:$0xf] %vm12258_vm8, %v2960_v62  ;;  %vm12259_vm6 = vcmask 195584   ;;  %vm12260_vm15 = vcmask 261120   ;;  %vm12261_vm3 = vmmov %vm12256_vm2  ;;  %vm12262_vm7 = vsmask.f32 6400  ;;  %v3984_v30 = vsel %vm12252_vm9, %v7159_v2, %v10575_v46 }
 0x2b8   : > { %v3575_v58 = vor.u32 %v3574_v63, %v3573_v61  ;;  %v4054_v15 = vsel %vm12259_vm6, %v4018_v20, %v10527_v26  ;;  %v3324_v4 = vsel %vm12261_vm3, %v3319_v11, %v3323_v22  ;;  %v3743_v51 = vpop.permute.xlu1 %3742  ;;  %vm12263_vm1 = vcmask 392192   ;;  %vm12265_vm4 = vmmov %vm12257_vm12 }
 0x2b9   : > { %v4090_v16 = vsel %vm12260_vm15, %v4054_v15, %v3612_v7  ;;  %v10660_v40 = vpop.permute.xlu0 %3947  ;;  %vm12264_vm0 = vcmask 457728   ;;  %vm12266_vm5 = vcmask 1045504   ;;  %vm12267_vm14 = vcmask 588800   ;;  %vm12268_vm2 = vmmov %vm12262_vm7 }
 0x2ba   : > { %v3576_v50 = vsel %vm12262_vm7, %v10536_v21, %v3575_v58  ;;  %3371 = vrot.lane.b32.xlu1 %v3324_v4, %s7234_s11  ;;  %v4127_v26 = vsel %vm4113_vm13, %v4090_v16, %v10558_v59  ;;  %vm12269_vm12 = vsmask.f32 5376  ;;  %vm12270_vm8 = vmmov %vm12259_vm6 }
 0x2bb   : > { %3627 = vrot.lane.b32.xlu0 %v3576_v50, %s7240_s30  ;;  %v4164_v14 = vsel %vm12263_vm1, %v4127_v26, %v3741_v42  ;;  %vm12271_vm6 = vmmov %vm12260_vm15  ;;  %vm12272_vm15 = vcmask 1044480  }
 0x2bc   : > { %v10662_v3 = vld [vmem:[#allocation2 + $0x88] sm:$0xff]   ;;  %v10666_v29 = vpop.permute.xlu1 %3357  ;;  %vm12273_vm3 = vmmov %vm12266_vm5  ;;  %v10768_v36 = vld [vmem:[#allocation2 + $0x98] sm:$0xff]  }
 0x2bd   : > { %v10669_v12 = vrot.slane %v10662_v3, 1  ;;  %v3669_v13 = vrot.slane %v10662_v3, 2  ;;  %v10673_v21 = vshll.u32 %v10662_v3, 16  ;;  %v10676_v44 = vshrl.u32 %v10662_v3, 16  ;;  %v3870_v59 = vpop.permute.xlu0 %3869  ;;  %vm12274_vm7 = vmmov %vm12272_vm15 }
 0x2be   : > { %3447 = vrot.lane.b32.xlu1 %v3412_v48, %s7237_s23  ;;  %v4201_v8 = vsel %vm12264_vm0, %v4164_v14, %v3870_v59  ;;  %v10698_v54 = vld [vmem:[#allocation2 + $0x90] sm:$0xff]   ;;  %v3925_v53 = vrot.slane %v10662_v3, 3  ;;  %vm12275_vm9 = vmmov %vm12267_vm14  ;;  %v7160_v14 = vld [vmem:[#allocation2 + $0x40] sm:$0xff]  }
 0x2bf   : > { %3703 = vrot.lane.b32.xlu0 %v10571_v27, %s7242_s9  ;;  %v3577_v23 = vrot.slane %v10676_v44, 1  ;;  %v4238_v7 = vsel %vm12251_vm11, %v4201_v8, %v3946_v10  ;;  %v3578_v17 = vrot.slane %v10673_v21, 2  ;;  %v3831_v56 = vrot.slane %v10676_v44, 2  ;;  %v7143_v48 = vld [vmem:[#allocation2 + $0x90] ss:$0 sps:$4 sm:$0x11]  }
 0x2c0   : > { %v3832_v60 = vrot.slane %v10673_v21, 3  ;;  %v3414_v27 = vsel %vm12265_vm4, %v3411_v43, %v10669_v12  ;;  %v3670_v18 = vsel %vm12266_vm5, %v3667_v0, %v3669_v13  ;;  %6932 = vmatprep.mubr.msk.bf16.mxu1 %vm12267_vm14, %v4238_v7  ;;  %v3614_v9 = vpop.permute.xlu1 %3613  ;;  %v4020_v43 = vsel %vm1260_vm10, %v3984_v30, %v10517_v47  ;;  %vm12276_vm4 = vmmov %vm12269_vm12 }
 0x2c1   : > { %v3434_v34 = vpop.permute.xlu0 %3433  ;;  %v10702_v46 = vor.u32 %v3578_v17, %v3577_v23  ;;  %v3582_v41 = vshrl.u32 %v10698_v54, 16  ;;  %v3585_v24 = vshll.u32 %v10698_v54, 16  ;;  %v4056_v42 = vsel %vm12270_vm8, %v4020_v43, %v10605_v19  ;;  %v10762_v23 = vld [vmem:[#allocation2 + $0x98] ss:$0 sps:$4 sm:$0x33]  }
 0x2c2   : > { %3500 = vrot.lane.b32.xlu1 %v3414_v27, %s7238_s25  ;;  %v3833_v33 = vor.u32 %v3832_v60, %v3831_v56  ;;  %v4092_v37 = vsel %vm12271_vm6, %v4056_v42, %v3614_v9  ;;  %v10726_v39 = vrot.slane %v10698_v54, 2  ;;  %v3927_v45 = vrot.slane %v10698_v54, 3  ;;  %v7161_v42 = vld [vmem:[#allocation2 + $0x48] sm:$0xff]  }
 0x2c3   : > { %3756 = vrot.lane.b32.xlu0 %v3670_v18, %s7243_s14  ;;  %v3580_v0 = vsel %vm12268_vm2, %v3575_v58, %v10702_v46  ;;  %v3835_v49 = vrot.slane %v3582_v41, 2  ;;  %v3836_v19 = vrot.slane %v3585_v24, 3  ;;  %v4129_v35 = vsel %vm4113_vm13, %v4092_v37, %v10640_v32 }
 0x2c4   : > { %v3834_v57 = vsel %vm12269_vm12, %v10586_v1, %v3833_v33  ;;  %v10711_v28 = vpop.permute.xlu1 %3435  ;;  %v3926_v1 = vsel %vm12272_vm15, %v3923_v55, %v3925_v53  ;;  %v10735_v55 = vsel %vm12273_vm3, %v3669_v13, %v10726_v39  ;;  %v3928_v11 = vsel %vm12274_vm7, %v3925_v53, %v3927_v45  ;;  %vm12280_vm12 = vmmov %vm12270_vm8 }
 0x2c5   : > { %v3487_v47 = vpop.permute.xlu0 %3486  ;;  %v4166_v62 = vsel %vm12263_vm1, %v4129_v35, %v3743_v51  ;;  %v10741_v63 = vor.u32 %v3836_v19, %v3835_v49  ;;  %v3331_v58 = vrot.slane %v10673_v21, 1  ;;  %v3337_v15 = vshll.u32 %v7143_v48, 16  ;;  %vm12281_vm8 = vmmov %vm12271_vm6 }
 0x2c6   : > { %3629 = vrot.lane.b32.xlu1 %v3580_v0, %s7240_s30  ;;  %v3466_v50 = vrot.slane %v10698_v54, 1  ;;  %v3584_v51 = vrot.slane %v3582_v41, 1  ;;  %v3587_v26 = vrot.slane %v3585_v24, 2  ;;  %vm12277_vm5 = vcmask 64512   ;;  %vm12283_vm15 = vmmov %vm12263_vm1 }
 0x2c7   : > { %3885 = vrot.lane.b32.xlu0 %v3834_v57, %s7245_s10  ;;  %v3838_v16 = vsel %vm12276_vm4, %v3833_v33, %v10741_v63  ;;  %v3986_v21 = vsel %vm12277_vm5, %v7160_v14, %v10666_v29  ;;  %v3335_v59 = vor.u32 %v10676_v44, %v3331_v58  ;;  %v3339_v8 = vrot.slane %v3337_v15, 1  ;;  %vm12285_vm7 = vmmov %vm12264_vm0 }
 0x2c8   : > { %v10723_v5 = vpop.permute.xlu1 %3359  ;;  %v4022_v7 = vsel %vm1260_vm10, %v3986_v21, %v3434_v34  ;;  %vm12278_vm14 = vsmask.f32 7424  ;;  %vm12279_vm2 = vcmask 1046528   ;;  %v3588_v60 = vor.u32 %v3587_v26, %v3584_v51  ;;  %vm12286_vm1 = vmmov %vm12277_vm5 }
 0x2c9   : > { %v3616_v38 = vpop.permute.xlu0 %3615  ;;  %v3467_v56 = vsel %vm12279_vm2, %v10669_v12, %v3466_v50  ;;  %v3415_v2 = vrot.slane %v7143_v48, 1  ;;  %vm12282_vm6 = vmmov %vm12278_vm14  ;;  %v3591_v9 = vshrl.u32 %v10762_v23, 16  ;;  %v3594_v34 = vshll.u32 %v10762_v23, 16 }
 0x2ca   : > { %3705 = vrot.lane.b32.xlu1 %v3670_v18, %s7242_s9  ;;  %v7144_v18 = vld [vmem:[#allocation2 + $0x98] ss:$0 sps:$4 sm:$0x11]   ;;  %vm12284_vm3 = vsmask.f32 6400  ;;  %v3840_v53 = vshrl.u32 %v10768_v36, 16  ;;  %vm12289_vm4 = vmmov %vm12280_vm12 }
 0x2cb   : > { %3961 = vrot.lane.b32.xlu0 %v3926_v1, %s7244_s15  ;;  %v3589_v43 = vsel %vm12284_vm3, %v10702_v46, %v3588_v60  ;;  %v3843_v0 = vshll.u32 %v10768_v36, 16  ;;  %v3468_v1 = vrot.slane %v7144_v18, 1  ;;  %v3724_v49 = vrot.slane %v10768_v36, 2  ;;  %vm12290_vm5 = vmmov %vm12281_vm8 }
 0x2cc   : > { %v3872_v61 = vpop.permute.xlu1 %3871  ;;  %v3593_v19 = vrot.slane %v3591_v9, 1  ;;  %v3596_v35 = vrot.slane %v3594_v34, 2 }
 0x2cd   : > { %v4203_v32 = vsel %vm12264_vm0, %v4166_v62, %v3872_v61  ;;  %v3692_v10 = vpop.permute.xlu0 %3691  ;;  %vm12287_vm0 = vmmov %vm12251_vm11  ;;  %v3845_v48 = vrot.slane %v3843_v0, 3 }
 0x2ce   : > { %3758 = vrot.lane.b32.xlu1 %v10735_v55, %s7243_s14  ;;  %v4240_v20 = vsel %vm12251_vm11, %v4203_v32, %v10660_v40  ;;  %v3327_v40 = vor.u32 %v10533_v31, %v3323_v22  ;;  %v4058_v31 = vsel %vm12280_vm12, %v4022_v7, %v3487_v47  ;;  %v3988_v47 = vsel %vm12286_vm1, %v7161_v42, %v10723_v5  ;;  %vm12288_vm11 = vmmov %vm12279_vm2 }
 0x2cf   : > { %3963 = vrot.lane.b32.xlu0 %v3928_v11, %s7244_s15  ;;  %6933 = vmatmul.mubr.msk.bf16.gmra.mrb[12].mxu1 %vm12275_vm9, %v4240_v20  ;;  %v4094_v44 = vsel %vm12281_vm8, %v4058_v31, %v3616_v38  ;;  %v3416_v46 = vsel %vm12288_vm11, %v10669_v12, %v3415_v2  ;;  %v3842_v38 = vrot.slane %v3840_v53, 2  ;;  %v4024_v11 = vsel %vm1260_vm10, %v3988_v47, %v10711_v28  ;;  %vm12292_vm12 = vmmov %vm12283_vm15  ;;  %v7162_v2 = vld [vmem:[#allocation2 + $0x50] sm:$0xff]  }
 0x2d0   : > { %v3489_v4 = vpop.permute.xlu1 %3488  ;;  %v3332_v17 = vsel %vm12278_vm14, %v3327_v40, %v3331_v58  ;;  %v4131_v30 = vsel %vm4113_vm13, %v4094_v44, %v3692_v10  ;;  %vm12291_vm14 = vcmask 1045504   ;;  %v7148_v10 = vld [vmem:[#allocation2 + $0xa0] ss:$0 sps:$4 sm:$0x77]   ;;  %v3469_v58 = vsel %vm12279_vm2, %v3466_v50, %v3468_v1  ;;  %vm12293_vm8 = vmmov %vm12285_vm7  ;;  %v7163_v1 = vld [vmem:[#allocation2 + $0x58] sm:$0xff]  }
 0x2d1   : > { %v3745_v13 = vpop.permute.xlu0 %3744  ;;  %v4060_v12 = vsel %vm12289_vm4, %v4024_v11, %v3489_v4  ;;  %v3725_v32 = vsel %vm12291_vm14, %v10726_v39, %v3724_v49  ;;  %v3597_v28 = vor.u32 %v3596_v35, %v3593_v19  ;;  %v3846_v15 = vor.u32 %v3845_v48, %v3842_v38  ;;  %vm12298_vm1 = vmmov %vm12291_vm14 }
 0x2d2   : > { %3887 = vrot.lane.b32.xlu1 %v3838_v16, %s7245_s10  ;;  %v4168_v33 = vsel %vm12283_vm15, %v4131_v30, %v3745_v13  ;;  %v7147_v13 = vld [vmem:[#allocation2 + $0xa0] ss:$0 sps:$4 sm:$0x33]   ;;  %v3849_v40 = vshrl.u32 %v7148_v10, 16  ;;  %v3852_v14 = vshll.u32 %v7148_v10, 16  ;;  %vm12295_vm15 = vmmov %vm12284_vm3  ;;  %v3931_v18 = vrot.slane %v7148_v10, 3 }
 0x2d3   : > { %3449 = vrot.lane.b32.xlu0 %v3414_v27, %s7237_s23  ;;  %v3340_v27 = vsel %vm12282_vm6, %v3335_v59, %v3339_v8  ;;  %vm12294_vm6 = vmmov %vm12287_vm0  ;;  %v3598_v21 = vsel %vm12295_vm15, %v3588_v60, %v3597_v28  ;;  %vm12296_vm3 = vsmask.f32 5376  ;;  %v3673_v59 = vrot.slane %v10762_v23, 2 }
 0x2d4   : > { %v3618_v22 = vpop.permute.xlu1 %3617  ;;  %v3847_v50 = vsel %vm12296_vm3, %v10741_v63, %v3846_v15  ;;  %v3929_v8 = vrot.slane %v10768_v36, 3  ;;  %v3851_v60 = vrot.slane %v3849_v40, 2  ;;  %vm12300_vm11 = vmmov %vm12298_vm1  ;;  %vm12305_vm2 = vcmask 261120  }
 0x2d5   : > { %v3874_v29 = vpop.permute.xlu0 %3873  ;;  %v4096_v61 = vsel %vm12290_vm5, %v4060_v12, %v3618_v22  ;;  %v3674_v31 = vsel %vm12298_vm1, %v10726_v39, %v3673_v59  ;;  %v3854_v22 = vrot.slane %v3852_v14, 3  ;;  %vm12302_vm4 = vmmov %vm12296_vm3  ;;  %vm12303_vm5 = vcmask 195584  }
 0x2d6   : > { %3373 = vrot.lane.b32.xlu1 %v3332_v17, %s7234_s11  ;;  %v4205_v57 = vsel %vm12285_vm7, %v4168_v33, %v3874_v29  ;;  %vm12297_vm7 = vmmov %vm12275_vm9 }
 0x2d7   : > { %3502 = vrot.lane.b32.xlu0 %v3467_v56, %s7238_s25  ;;  %v3726_v56 = vrot.slane %v7147_v13, 2  ;;  %v3855_v44 = vor.u32 %v3854_v22, %v3851_v60  ;;  %vm12306_vm15 = vmmov %vm12297_vm7  ;;  %v7165_v60 = vld [vmem:[#allocation2 + $0x68] sm:$0xff]  }
 0x2d8   : > { %v3694_v41 = vpop.permute.xlu1 %3693  ;;  %vm12309_vm1 = vmmov %vm12305_vm2 }
 0x2d9   : > { %v3950_v24 = vpop.permute.xlu0 %3949  ;;  %v4133_v20 = vsel %vm4113_vm13, %v4096_v61, %v3694_v41  ;;  %v3727_v29 = vsel %vm12300_vm11, %v3724_v49, %v3726_v56  ;;  %vm12311_vm11 = vmmov %vm12293_vm8 }
 0x2da   : > { %3375 = vrot.lane.b32.xlu1 %v3340_v27, %s7234_s11  ;;  %v4242_v37 = vsel %vm12287_vm0, %v4205_v57, %v3950_v24  ;;  %vm12299_vm0 = vcmask 1044480   ;;  %v3856_v27 = vsel %vm12302_vm4, %v3846_v15, %v3855_v44  ;;  %vm12313_vm4 = vmmov %vm12306_vm15 }
 0x2db   : > { %3631 = vrot.lane.b32.xlu0 %v3589_v43, %s7240_s30  ;;  %6936 = vmatprep.mubr.msk.bf16.mxu1 %vm12275_vm9, %v4242_v37  ;;  %v3930_v63 = vsel %vm12299_vm0, %v3927_v45, %v3929_v8  ;;  %vm12301_vm9 = vcmask 64512   ;;  %vm12304_vm14 = vmmov %vm12299_vm0 }
 0x2dc   : > { %v3747_v5 = vpop.permute.xlu1 %3746  ;;  %v3932_v43 = vsel %vm12304_vm14, %v3929_v8, %v3931_v18  ;;  %vm12307_vm3 = vmmov %vm12301_vm9 }
 0x2dd   : > { %v3952_v62 = vpop.permute.xlu0 %3951  ;;  %v4170_v16 = vsel %vm12292_vm12, %v4133_v20, %v3747_v5  ;;  %vm12310_vm0 = vmmov %vm12292_vm12 }
 0x2de   : > { %3451 = vrot.lane.b32.xlu1 %v3416_v46, %s7237_s23  ;;  %s7247_s23 = smov [#allocation3]  }
 0x2df   : > { %3707 = vrot.lane.b32.xlu0 %v10735_v55, %s7242_s9 }
 0x2e0   : > { %v3876_v55 = vpop.permute.xlu1 %3875 }
 0x2e1   : > { %v3438_v4 = vpop.permute.xlu0 %3437  ;;  %v4207_v51 = vsel %vm12293_vm8, %v4170_v16, %v3876_v55 }
 0x2e2   : > { %3504 = vrot.lane.b32.xlu1 %v3469_v58, %s7238_s25  ;;  %v4244_v26 = vsel %vm12294_vm6, %v4207_v51, %v3952_v62  ;;  %s7173_s25 = sshll.u32 %s7247_s23, 4  ;;  %s7174_s25 = int_to_ptr.vmem [resolvable:$false] %s7173_s25 }
 0x2e3   : > { %3760 = vrot.lane.b32.xlu0 %v3725_v32, %s7243_s14  ;;  %6937 = vmatmul.mubr.msk.bf16.gmra.mrb[16].mxu1 %vm12297_vm7, %v4244_v26  ;;  %vm12308_vm7 = vmmov %vm12303_vm5 }
 0x2e4   : > { %v3362_v7 = vpop.permute.xlu1 %3361  ;;  %vm12315_vm14 = vmmov %vm12308_vm7 }
 0x2e5   : > { %v3491_v17 = vpop.permute.xlu0 %3490  ;;  %v3990_v30 = vsel %vm12301_vm9, %v7162_v2, %v3362_v7  ;;  %vm12312_vm9 = vmmov %vm12294_vm6 }
 0x2e6   : > { %3633 = vrot.lane.b32.xlu1 %v3598_v21, %s7240_s30  ;;  %v4026_v45 = vsel %vm1260_vm10, %v3990_v30, %v3438_v4  ;;  %v7164_v4 = vld [vmem:[#allocation2 + $0x60] sm:$0xff]   ;;  %s215_s30 = sand.u32 1, %s7223_s19  }
 0x2e7   : > { %3889 = vrot.lane.b32.xlu0 %v3847_v50, %s7245_s10  ;;  %v4062_v33 = vsel %vm12303_vm5, %v4026_v45, %v3491_v17  ;;  %vm12314_vm5 = vmmov %vm12307_vm3  ;;  %s11834_s22 = scalar_lea.sflag [#allocation4], %s215_s30 }
 0x2e8   : > { %v3364_v23 = vpop.permute.xlu1 %3363 }
 0x2e9   : > { %v3620_v36 = vpop.permute.xlu0 %3619  ;;  %v3992_v49 = vsel %vm12307_vm3, %v7163_v1, %v3364_v23 }
 0x2ea   : > { %3709 = vrot.lane.b32.xlu1 %v3674_v31, %s7242_s9  ;;  %v4098_v57 = vsel %vm12305_vm2, %v4062_v33, %v3620_v36  ;;  %vm12316_vm2 = vmmov %vm12309_vm1  ;;  %s6638_s9 = sshll.u32 %s215_s30, 6 }
 0x2eb   : > { %3965 = vrot.lane.b32.xlu0 %v3930_v63, %s7244_s15 }
 0x2ec   : > { %v3440_v39 = vpop.permute.xlu1 %3439 }
 0x2ed   : > { %v3696_v54 = vpop.permute.xlu0 %3695  ;;  %v4028_v19 = vsel %vm1260_vm10, %v3992_v49, %v3440_v39 }
 0x2ee   : > { %3762 = vrot.lane.b32.xlu1 %v3727_v29, %s7243_s14  ;;  %v4135_v41 = vsel %vm4113_vm13, %v4098_v57, %v3696_v54  ;;  %s11045_s14 = scalar_lea.vmem [#allocation3], %s6638_s9  ;;  %s7175_s9 = scalar_lea.vmem %s7174_s25, 2048 }
 0x2ef   : > { %s6572_s13 = sshll.u32 %s11045_s14, 4  ;;  %s11827_s13 = int_to_ptr.vmem [resolvable:$true] %s6572_s13 }
 0x2f0   : > { %v3493_v9 = vpop.permute.xlu1 %3492  ;;  %s7169_s6 = scalar_lea.vmem %s11827_s13, 1024  ;;  %p7176_p0 = scmp.lt.s32.totalorder %s11827_s13, %s7174_s25 }
 0x2f1   : > { %v3749_v34 = vpop.permute.xlu0 %3748  ;;  %v4064_v48 = vsel %vm12308_vm7, %v4028_v19, %v3493_v9  ;;  %p7170_p11 = scmp.ne.s32.totalorder %s11827_s13, %s7169_s6  ;;  %p7177_p1 = scmp.lt.s32.totalorder %s7175_s9, %s7169_s6 }
 0x2f2   : > { %3891 = vrot.lane.b32.xlu1 %v3856_v27, %s7245_s10  ;;  %v4172_v24 = vsel %vm12292_vm12, %v4135_v41, %v3749_v34  ;;  %vm12317_vm12 = vmmov %vm12310_vm0 }
 0x2f3   : > { %p7171_p12 = pnand %p7170_p11, %p7317_p5  ;;  %p7178_p2 = por %p7177_p1, %p7176_p0 }
 0x2f4   : > { %v3622_v53 = vpop.permute.xlu1 %3621 }
 0x2f5   : > { %v3878_v0 = vpop.permute.xlu0 %3877  ;;  %v4100_v11 = vsel %vm12309_vm1, %v4064_v48, %v3622_v53  ;;  %v7166_v53 = vld [vmem:[#allocation2 + $0x70] sm:$0xff]   ;;  %p7172_p13 = pneg %p7171_p12 }
 0x2f6   : > { %3967 = vrot.lane.b32.xlu1 %v3932_v43, %s7244_s15  ;;  %v4209_v42 = vsel %vm12293_vm8, %v4172_v24, %v3878_v0 }
 0x2f7   : > { %p7179_p3 = pnand %p7178_p2, %p7172_p13 }
 0x2f8   : > { %v3698_v47 = vpop.permute.xlu1 %3697 }
 0x2f9   : > { %v3954_v37 = vpop.permute.xlu0 %3953  ;;  %v4137_v5 = vsel %vm4113_vm13, %v4100_v11, %v3698_v47 }
 0x2fa   : > { %v4246_v46 = vsel %vm12294_vm6, %v4209_v42, %v3954_v37 }
 0x2fb   : > { %6940 = vmatprep.mubr.msk.bf16.mxu1 %vm12306_vm15, %v4246_v46  ;;  %vm12318_vm15 = vmmov %vm12313_vm4 }
 0x2fc   : > { %v3751_v35 = vpop.permute.xlu1 %3750 }
 0x2fd   : > { %v3956_v38 = vpop.permute.xlu0 %3955  ;;  %v4174_v62 = vsel %vm12310_vm0, %v4137_v5, %v3751_v35 }
 0x300   : > { %v3880_v12 = vpop.permute.xlu1 %3879 }
 0x301   : > { %v4211_v61 = vsel %vm12311_vm11, %v4174_v62, %v3880_v12  ;;  %v3442_v32 = vpop.permute.xlu0 %3441  ;;  %vm12319_vm11 = vmmov %vm12293_vm8  ;;  %v7246_v62 = vmov 1983009808  }
 0x302   : > { %v4248_v10 = vsel %vm12312_vm9, %v4211_v61, %v3956_v38  ;;  %vm12320_vm9 = vmmov %vm12294_vm6  ;;  %v4596_v12 = vunpack.c.l.s4 %v7246_v62 }
 0x303   : > { %6941 = vmatmul.mubr.msk.bf16.gmra.mrb[20].mxu1 %vm12313_vm4, %v4248_v10 }
 0x306   : > { %v3366_v20 = vpop.permute.xlu1 %3365 }
 0x307   : > { %v3495_v58 = vpop.permute.xlu0 %3494  ;;  %v3994_v51 = vsel %vm12314_vm5, %v7164_v4, %v3366_v20  ;;  %vm12321_vm5 = vmmov %vm12307_vm3 }
 0x308   : > { %v4030_v26 = vsel %vm1260_vm10, %v3994_v51, %v3442_v32 }
 0x309   : > { %v4066_v14 = vsel %vm12315_vm14, %v4030_v26, %v3495_v58  ;;  %vm12322_vm14 = vmmov %vm12308_vm7 }
 0x30a   : > { %v3368_v28 = vpop.permute.xlu1 %3367 }
 0x30b   : > { %v3624_v15 = vpop.permute.xlu0 %3623  ;;  %v3996_v22 = vsel %vm12307_vm3, %v7165_v60, %v3368_v28  ;;  %v4597_v28 = vunpack.c.0.s8 %v4596_v12 }
 0x30c   : > { %v4102_v59 = vsel %vm12316_vm2, %v4066_v14, %v3624_v15  ;;  %vm12323_vm2 = vmmov %vm12309_vm1 }
 0x30e   : > { %v3444_v16 = vpop.permute.xlu1 %3443 }
 0x30f   : > { %v3700_v55 = vpop.permute.xlu0 %3699  ;;  %v4032_v23 = vsel %vm1260_vm10, %v3996_v22, %v3444_v16 }
 0x310   : > { %v4139_v8 = vsel %vm4113_vm13, %v4102_v59, %v3700_v55  ;;  %v10884_v55 = vld [vmem:[%s11880_s4] ss:$0 sm:$0xff] }
 0x312   : > { %v3497_v13 = vpop.permute.xlu1 %3496 }
 0x313   : > { %v3753_v40 = vpop.permute.xlu0 %3752  ;;  %v4068_v44 = vsel %vm12308_vm7, %v4032_v23, %v3497_v13 }
 0x314   : > { %v4176_v7 = vsel %vm12317_vm12, %v4139_v8, %v3753_v40  ;;  %vm12324_vm12 = vmmov %vm12310_vm0  ;;  %v10890_v40 = vsub.s32 %v4597_v28, %v8259_v25 }
 0x318   : > { %v3626_v21 = vpop.permute.xlu1 %3625  ;;  %v3882_v50 = vpop.permute.xlu0 %3881 }
 0x319   : > { %v4213_v17 = vsel %vm12293_vm8, %v4176_v7, %v3882_v50  ;;  %v4104_v2 = vsel %vm12309_vm1, %v4068_v44, %v3626_v21 }
 0x31c   : > { %v3702_v56 = vpop.permute.xlu1 %3701  ;;  %v3958_v31 = vpop.permute.xlu0 %3957 }
 0x31d   : > { %v4250_v63 = vsel %vm12294_vm6, %v4213_v17, %v3958_v31  ;;  %v4141_v30 = vsel %vm4113_vm13, %v4104_v2, %v3702_v56 }
 0x31e   : > { %6944 = vmatprep.mubr.msk.bf16.mxu1 %vm12318_vm15, %v4250_v63  ;;  %vm12325_vm15 = vmmov %vm12313_vm4 }
 0x320   : > { %v3755_v36 = vpop.permute.xlu1 %3754  ;;  %v3960_v29 = vpop.permute.xlu0 %3959 }
 0x321   : > { %v4178_v39 = vsel %vm12310_vm0, %v4141_v30, %v3755_v36 }
 0x324   : > { %v3884_v54 = vpop.permute.xlu1 %3883  ;;  %v3446_v45 = vpop.permute.xlu0 %3445 }
 0x325   : > { %v4215_v27 = vsel %vm12319_vm11, %v4178_v39, %v3884_v54  ;;  %vm12326_vm11 = vmmov %vm12293_vm8 }
 0x326   : > { %v4252_v18 = vsel %vm12320_vm9, %v4215_v27, %v3960_v29  ;;  %vm12327_vm9 = vmmov %vm12294_vm6 }
 0x327   : > { %6945 = vmatmul.mubr.msk.bf16.gmra.mrb[24].mxu1 %vm12313_vm4, %v4252_v18 }
 0x328   : > { %v3370_v9 = vpop.permute.xlu1 %3369  ;;  %v3499_v34 = vpop.permute.xlu0 %3498 }
 0x329   : > { %v3998_v0 = vsel %vm12321_vm5, %v7166_v53, %v3370_v9  ;;  %vm12328_vm5 = vmmov %vm12307_vm3 }
 0x32a   : > { %v4034_v24 = vsel %vm1260_vm10, %v3998_v0, %v3446_v45 }
 0x32b   : > { %v4070_v37 = vsel %vm12322_vm14, %v4034_v24, %v3499_v34  ;;  %vm12329_vm14 = vcmask 58368  }
 0x32c   : > { %v3372_v33 = vpop.permute.xlu1 %3371 }
 0x32d   : > { %v3628_v43 = vpop.permute.xlu0 %3627  ;;  %v4000_v61 = vsel %vm12307_vm3, %v10456_v6, %v3372_v33 }
 0x32e   : > { %v4106_v49 = vsel %vm12323_vm2, %v4070_v37, %v3628_v43  ;;  %vm12330_vm2 = vmmov %vm12329_vm14 }
 0x32f   : > { %vm12335_vm3 = vmmov %vm12330_vm2 }
 0x330   : > { %v3448_v57 = vpop.permute.xlu1 %3447 }
 0x331   : > { %v3704_v41 = vpop.permute.xlu0 %3703  ;;  %v4036_v32 = vsel %vm1260_vm10, %v4000_v61, %v3448_v57 }
 0x332   : > { %v4143_v19 = vsel %vm4113_vm13, %v4106_v49, %v3704_v41 }
 0x334   : > { %v3501_v42 = vpop.permute.xlu1 %3500 }
 0x335   : > { %v3757_v47 = vpop.permute.xlu0 %3756  ;;  %v4072_v20 = vsel %vm12308_vm7, %v4036_v32, %v3501_v42  ;;  %vm6479_vm7 = vcmask 1041409  }
 0x336   : > { %v4180_v35 = vsel %vm12324_vm12, %v4143_v19, %v3757_v47  ;;  %vm12331_vm12 = vmmov %vm12330_vm2 }
 0x338   : > { %v3630_v46 = vpop.permute.xlu1 %3629 }
 0x339   : > { %v3886_v1 = vpop.permute.xlu0 %3885  ;;  %v4108_v58 = vsel %vm12309_vm1, %v4072_v20, %v3630_v46  ;;  %vm6481_vm1 = vcmask 1042434  }
 0x33a   : > { %v4217_v38 = vsel %vm12293_vm8, %v4180_v35, %v3886_v1  ;;  %vm12332_vm8 = vmmov %vm12330_vm2 }
 0x33c   : > { %v3706_v48 = vpop.permute.xlu1 %3705 }
 0x33d   : > { %v3962_v11 = vpop.permute.xlu0 %3961  ;;  %v4145_v15 = vsel %vm4113_vm13, %v4108_v58, %v3706_v48  ;;  %v6922_v26 = vpop.f32.mrb[0].mxu1 }
 0x33e   : > { %v4254_v5 = vsel %vm12294_vm6, %v4217_v38, %v3962_v11  ;;  %v4388_v13 = vadd.f32 %v6922_v26, %v10884_v55  ;;  %v4379_v14 = vpop.f32.mrb[1].mxu1  ;;  %vm12333_vm6 = vmmov %vm12330_vm2 }
 0x33f   : > { %6948 = vmatprep.mubr.msk.bf16.mxu1 %vm12325_vm15, %v4254_v5  ;;  %v4380_v50 = vadd.f32 %v10884_v55, %v4379_v14  ;;  %v6923_v59 = vpop.f32.mrb[2].mxu1  ;;  %vm12334_vm15 = vmmov %vm12330_vm2 }
 0x340   : > { %v3759_v10 = vpop.permute.xlu1 %3758  ;;  %v4524_v8 = vmax.f32 %v4388_v13, 0.0  ;;  %v4391_v17 = vadd.f32 %v6923_v59, %v10884_v55  ;;  %v4382_v60 = vpop.f32.mrb[3].mxu1 }
 0x341   : > { %v3964_v16 = vpop.permute.xlu0 %3963  ;;  %v4182_v4 = vsel %vm12310_vm0, %v4145_v15, %v3759_v10  ;;  %v4522_v31 = vmax.f32 %v4380_v50, 0.0  ;;  %v4383_v2 = vadd.f32 %v10884_v55, %v4382_v60  ;;  %vm12336_vm0 = vmmov %vm12330_vm2 }
 0x342   : > { %v4628_v25 = vcombine.high %v4524_v8, %v4524_v8  ;;  %v4635_v22 = vrot.slane %v4524_v8, %v10890_v40  ;;  %v4525_v23 = vmax.f32 %v4391_v17, 0.0 }
 0x343   : > { %v4594_v36 = vcombine.high %v4522_v31, %v4522_v31  ;;  %v4601_v29 = vrot.slane %v4522_v31, %v10890_v40  ;;  %v10912_v34 = vmax.f32 %v4383_v2, 0.0 }
 0x344   : > { %v3888_v51 = vpop.permute.xlu1 %3887  ;;  %v4642_v30 = vrot.slane %v4628_v25, %v10890_v40  ;;  %v4643_v39 = vcombine.high %v4635_v22, %v4635_v22  ;;  %v4645_v54 = vcombine.high %v4525_v23, %v4525_v23  ;;  %v10906_v45 = vrot.slane %v4525_v23, %v10890_v40 }
 0x345   : > { %v4219_v6 = vsel %vm12326_vm11, %v4182_v4, %v3888_v51  ;;  %v3450_v56 = vpop.permute.xlu0 %3449  ;;  %v4608_v27 = vrot.slane %v4594_v36, %v10890_v40  ;;  %v4609_v18 = vcombine.high %v4601_v29, %v4601_v29  ;;  %v5327_v9 = vsel %vm12329_vm14, %v4601_v29, -inf  ;;  %vm12337_vm11 = vmmov %vm12328_vm5 }
 0x346   : > { %v4256_v21 = vsel %vm12327_vm9, %v4219_v6, %v3964_v16  ;;  %v4644_v33 = vcombine.high %v4642_v30, %v4642_v30  ;;  %v5383_v43 = vsel %vm12330_vm2, %v4643_v39, -inf  ;;  %v5390_v53 = vsel %vm12331_vm12, %v4642_v30, -inf  ;;  %vm12338_vm9 = vmmov %vm12328_vm5 }
 0x347   : > { %6949 = vmatmul.mubr.msk.bf16.gmra.mrb[28].mxu1 %vm12313_vm4, %v4256_v21  ;;  %v5328_v0 = vrot.slane %v5327_v9, 4  ;;  %v5384_v57 = vrot.slane %v5383_v43, 4  ;;  %v5391_v41 = vrot.slane %v5390_v53, 4  ;;  %v4610_v24 = vcombine.high %v4608_v27, %v4608_v27  ;;  %vm12339_vm4 = vmmov %vm12328_vm5 }
 0x348   : > { %v3374_v7 = vpop.permute.xlu1 %3373  ;;  %v5334_v42 = vsel %vm12332_vm8, %v4609_v18, -inf  ;;  %v5397_v37 = vsel %vm12333_vm6, %v4644_v33, -inf  ;;  %v5341_v49 = vsel %vm12334_vm15, %v4608_v27, -inf  ;;  %v4659_v61 = vrot.slane %v4645_v54, %v10890_v40  ;;  %vm12341_vm14 = vmmov %vm12339_vm4 }
 0x349   : > { %v4002_v63 = vsel %vm12328_vm5, %v10487_v52, %v3374_v7  ;;  %v10917_v47 = vpop.permute.xlu0 %3502  ;;  %v5329_v46 = vmax.f32 %v5327_v9, %v5328_v0  ;;  %v5335_v1 = vrot.slane %v5334_v42, 4  ;;  %v5385_v35 = vmax.f32 %v5383_v43, %v5384_v57  ;;  %vm12340_vm5 = vmmov %vm12339_vm4 }
 0x34a   : > { %v10901_v44 = vsel %vm1260_vm10, %v4002_v63, %v3450_v56  ;;  %v5392_v38 = vmax.f32 %v5390_v53, %v5391_v41  ;;  %v5398_v48 = vrot.slane %v5397_v37, 4  ;;  %v5342_v11 = vrot.slane %v5341_v49, 4  ;;  %vm12342_vm2 = vmmov %vm12339_vm4 }
 0x34b   : > { %v5330_v5 = vrot.slane %v5329_v46, 2  ;;  %v5336_v62 = vmax.f32 %v5334_v42, %v5335_v1  ;;  %v5348_v12 = vsel %vm12335_vm3, %v4610_v24, -inf  ;;  %v5386_v32 = vrot.slane %v5385_v35, 2  ;;  %vm12343_vm12 = vmmov %vm12336_vm0 }
 0x34c   : > { %v10908_v52 = vpop.permute.xlu1 %3375  ;;  %v5393_v10 = vrot.slane %v5392_v38, 2  ;;  %v5399_v20 = vmax.f32 %v5397_v37, %v5398_v48  ;;  %v5343_v58 = vmax.f32 %v5341_v49, %v5342_v11  ;;  %v5349_v16 = vrot.slane %v5348_v12, 4  ;;  %vm12344_vm6 = vmmov %vm12336_vm0 }
 0x34d   : > { %v5331_v28 = vmax.f32 %v5329_v46, %v5330_v5  ;;  %v5337_v15 = vrot.slane %v5336_v62, 2  ;;  %v4660_v4 = vcombine.high %v10906_v45, %v10906_v45  ;;  %v5387_v6 = vmax.f32 %v5385_v35, %v5386_v32  ;;  %v10929_v21 = vpop.permute.xlu0 %3631  ;;  %vm12345_vm15 = vmmov %vm12336_vm0 }
 0x34e   : > { %v5394_v26 = vmax.f32 %v5392_v38, %v5393_v10  ;;  %v5400_v13 = vrot.slane %v5399_v20, 2  ;;  %v5344_v14 = vrot.slane %v5343_v58, 2  ;;  %v5350_v8 = vmax.f32 %v5348_v12, %v5349_v16 }
 0x34f   : > { %v5332_v50 = vrot.slane %v5331_v28, 1  ;;  %v5338_v59 = vmax.f32 %v5336_v62, %v5337_v15  ;;  %v4661_v7 = vcombine.high %v4659_v61, %v4659_v61  ;;  %v5388_v17 = vrot.slane %v5387_v6, 1 }
 0x350   : > { %v10921_v19 = vpop.permute.xlu1 %3451  ;;  %v5395_v56 = vrot.slane %v5394_v26, 1  ;;  %v5401_v31 = vmax.f32 %v5399_v20, %v5400_v13  ;;  %v5345_v63 = vmax.f32 %v5343_v58, %v5344_v14  ;;  %v5351_v22 = vrot.slane %v5350_v8, 2 }
 0x351   : > { %v5333_v60 = vmax.f32 %v5331_v28, %v5332_v50  ;;  %v5339_v25 = vrot.slane %v5338_v59, 1  ;;  %v5404_v23 = vsel %vm12336_vm0, %v10906_v45, -inf  ;;  %v5389_v29 = vmax.f32 %v5387_v6, %v5388_v17  ;;  %v10938_v57 = vpop.permute.xlu0 %3707  ;;  %vm12347_vm0 = vmmov %vm12342_vm2 }
 0x352   : > { %v5396_v2 = vmax.f32 %v5394_v26, %v5395_v56  ;;  %v5402_v30 = vrot.slane %v5401_v31, 1  ;;  %v5346_v39 = vrot.slane %v5345_v63, 1  ;;  %v5352_v27 = vmax.f32 %v5350_v8, %v5351_v22 }
 0x353   : > { %v5340_v54 = vmax.f32 %v5338_v59, %v5339_v25  ;;  %v6223_v18 = vsel %vm12337_vm11, %v5333_v60, -inf  ;;  %v5405_v9 = vrot.slane %v5404_v23, 4  ;;  %v6224_v43 = vsel %vm12338_vm9, %v5389_v29, -inf  ;;  %vm12348_vm11 = vmmov %vm12344_vm6 }
 0x354   : > { %v10927_v51 = vpop.permute.xlu1 %3504  ;;  %v5403_v33 = vmax.f32 %v5401_v31, %v5402_v30  ;;  %v6227_v53 = vsel %vm12339_vm4, %v5396_v2, -inf  ;;  %v5347_v0 = vmax.f32 %v5345_v63, %v5346_v39  ;;  %v5353_v45 = vrot.slane %v5352_v27, 1  ;;  %vm12349_vm9 = vmmov %vm12344_vm6 }
 0x355   : > { %v6225_v41 = vmax.f32 %v6223_v18, %v6224_v43  ;;  %v6226_v24 = vsel %vm12340_vm5, %v5340_v54, -inf  ;;  %v5406_v42 = vmax.f32 %v5404_v23, %v5405_v9  ;;  %v5411_v49 = vsel %vm12343_vm12, %v4660_v4, -inf  ;;  %v10958_v26 = vpop.permute.xlu0 %3760  ;;  %vm12350_vm4 = vmmov %vm12344_vm6 }
 0x356   : > { %v6228_v37 = vmax.f32 %v6226_v24, %v6227_v53  ;;  %v6229_v46 = vsel %vm12341_vm14, %v5347_v0, -inf  ;;  %v6230_v1 = vsel %vm12342_vm2, %v5403_v33, -inf  ;;  %v5354_v35 = vmax.f32 %v5352_v27, %v5353_v45  ;;  %vm12351_vm5 = vmmov %vm12350_vm4 }
 0x357   : > { %v6231_v38 = vmax.f32 %v6229_v46, %v6230_v1  ;;  %v5407_v48 = vrot.slane %v5406_v42, 2  ;;  %v5412_v11 = vrot.slane %v5411_v49, 4  ;;  %vm6483_vm8 = vcmask 1043459   ;;  %vm12352_vm14 = vmmov %vm12347_vm0 }
 0x358   : > { %v10933_v36 = vpop.permute.xlu1 %3633  ;;  %v6480_v62 = vsel %vm6479_vm7, %v6228_v37, %v6225_v41  ;;  %v5418_v12 = vsel %vm12344_vm6, %v4659_v61, -inf  ;;  %v5425_v32 = vsel %vm12345_vm15, %v4661_v7, -inf  ;;  %v4611_v10 = vcombine.high %v10912_v34, %v10912_v34  ;;  %vm12353_vm12 = vmmov %vm12347_vm0 }
 0x359   : > { %v6482_v20 = vsel %vm6481_vm1, %v6231_v38, %v6480_v62  ;;  %v5408_v58 = vmax.f32 %v5406_v42, %v5407_v48  ;;  %v5413_v28 = vmax.f32 %v5411_v49, %v5412_v11  ;;  %v5419_v15 = vrot.slane %v5418_v12, 4  ;;  %v3890_v53 = vpop.permute.xlu0 %3889  ;;  %vm12354_vm6 = vmmov %vm12347_vm0 }
 0x35a   : > { %v5426_v16 = vrot.slane %v5425_v32, 4  ;;  %vm12346_vm3 = vcmask 195584   ;;  %v4618_v6 = vrot.slane %v10912_v34, %v10890_v40  ;;  %v4625_v61 = vrot.slane %v4611_v10, %v10890_v40 }
 0x35b   : > { %v4074_v4 = vsel %vm12346_vm3, %v10901_v44, %v10917_v47  ;;  %v5409_v13 = vrot.slane %v5408_v58, 1  ;;  %v5414_v14 = vrot.slane %v5413_v28, 2  ;;  %v5420_v50 = vmax.f32 %v5418_v12, %v5419_v15  ;;  %vm12355_vm3 = vmmov %vm12347_vm0 }
 0x35c   : > { %v10944_v5 = vpop.permute.xlu1 %3709  ;;  %v6232_v59 = vsel %vm12347_vm0, %v5354_v35, -inf  ;;  %v5427_v8 = vmax.f32 %v5425_v32, %v5426_v16  ;;  %v4626_v7 = vcombine.high %v4618_v6, %v4618_v6  ;;  %v4627_v17 = vcombine.high %v4625_v61, %v4625_v61 }
 0x35d   : > { %v5355_v56 = vsel %vm12348_vm11, %v4618_v6, -inf  ;;  %v5410_v31 = vmax.f32 %v5408_v58, %v5409_v13  ;;  %v5415_v63 = vmax.f32 %v5413_v28, %v5414_v14  ;;  %v5421_v44 = vrot.slane %v5420_v50, 2  ;;  %vm12357_vm11 = vmmov %vm12355_vm3 }
 0x35e   : > { %v5356_v47 = vrot.slane %v5355_v56, 4  ;;  %v5428_v34 = vrot.slane %v5427_v8, 2  ;;  %v5362_v25 = vsel %vm12349_vm9, %v4626_v7, -inf  ;;  %v5369_v22 = vsel %vm12350_vm4, %v4625_v61, -inf }
 0x35f   : > { %v5376_v23 = vsel %vm12351_vm5, %v4627_v17, -inf  ;;  %v5416_v2 = vrot.slane %v5415_v63, 1  ;;  %v5422_v30 = vmax.f32 %v5420_v50, %v5421_v44  ;;  %v6233_v39 = vsel %vm12352_vm14, %v5410_v31, -inf }
 0x360   : > { %v10962_v60 = vpop.permute.xlu1 %3762  ;;  %v5357_v54 = vmax.f32 %v5355_v56, %v5356_v47  ;;  %v5429_v18 = vmax.f32 %v5427_v8, %v5428_v34  ;;  %v6234_v9 = vmax.f32 %v6232_v59, %v6233_v39  ;;  %v5363_v33 = vrot.slane %v5362_v25, 4 }
 0x361   : > { %v5370_v43 = vrot.slane %v5369_v22, 4  ;;  %v5417_v45 = vmax.f32 %v5415_v63, %v5416_v2  ;;  %v5423_v41 = vrot.slane %v5422_v30, 1  ;;  %v5377_v42 = vrot.slane %v5376_v23, 4 }
 0x362   : > { %v5358_v24 = vrot.slane %v5357_v54, 2  ;;  %vm6485_vm2 = vcmask 1044484   ;;  %v5430_v46 = vrot.slane %v5429_v18, 1  ;;  %v6484_v1 = vsel %vm6483_vm8, %v6234_v9, %v6482_v20 }
 0x363   : > { %v5364_v49 = vmax.f32 %v5362_v25, %v5363_v33  ;;  %v5371_v35 = vmax.f32 %v5369_v22, %v5370_v43  ;;  %v5424_v38 = vmax.f32 %v5422_v30, %v5423_v41  ;;  %v5378_v11 = vmax.f32 %v5376_v23, %v5377_v42 }
 0x364   : > { %v6926_v29 = vpop.f32.mrb[4].mxu1  ;;  %v5359_v48 = vmax.f32 %v5357_v54, %v5358_v24  ;;  %v4004_v62 = vsel %vm12353_vm12, %v10662_v3, %v10908_v52  ;;  %v3892_v12 = vpop.permute.xlu1 %3891  ;;  %v5431_v32 = vmax.f32 %v5429_v18, %v5430_v46  ;;  %v6236_v28 = vsel %vm12354_vm6, %v5417_v45, -inf }
 0x365   : > { %v4395_v27 = vpop.f32.mrb[5].mxu1  ;;  %v5365_v10 = vrot.slane %v5364_v49, 2  ;;  %v5372_v58 = vrot.slane %v5371_v35, 2  ;;  %vm6487_vm15 = vcmask 1045509   ;;  %v6239_v15 = vsel %vm12355_vm3, %v5424_v38, -inf  ;;  %v3966_v52 = vpop.permute.xlu0 %3965 }
 0x366   : > { %v6927_v0 = vpop.f32.mrb[6].mxu1  ;;  %v5360_v16 = vrot.slane %v5359_v48, 1  ;;  %v5379_v20 = vrot.slane %v5378_v11, 2  ;;  %vm12356_vm0 = vcmask 261120   ;;  %v4040_v14 = vsel %vm1260_vm10, %v4004_v62, %v10921_v19  ;;  %vm12362_vm10 = vmmov %vm12355_vm3 }
 0x367   : > { %v10968_v37 = vpop.f32.mrb[7].mxu1  ;;  %v4110_v6 = vsel %vm12356_vm0, %v4074_v4, %v10929_v21  ;;  %v5366_v61 = vmax.f32 %v5364_v49, %v5365_v10  ;;  %v5373_v13 = vmax.f32 %v5371_v35, %v5372_v58  ;;  %v6242_v59 = vsel %vm12357_vm11, %v5431_v32, -inf  ;;  %vm12360_vm5 = vmmov %vm12356_vm0 }
 0x368   : > { %v4147_v3 = vsel %vm4113_vm13, %v4110_v6, %v10938_v57  ;;  %v5361_v50 = vmax.f32 %v5359_v48, %v5360_v16  ;;  %vm12358_vm9 = vcmask 195584   ;;  %vm12359_vm4 = vcmask 392192   ;;  %v3968_v44 = vpop.permute.xlu1 %3967 }
 0x369   : > { %v4076_v8 = vsel %vm12358_vm9, %v4040_v14, %v10927_v51  ;;  %v4184_v7 = vsel %vm12359_vm4, %v4147_v3, %v10958_v26  ;;  %v5367_v17 = vrot.slane %v5366_v61, 1  ;;  %v5374_v21 = vrot.slane %v5373_v13, 1  ;;  %vm12365_vm3 = vmmov %vm12359_vm4 }
 0x36a   : > { %v4112_v4 = vsel %vm12360_vm5, %v4076_v8, %v10933_v36  ;;  %vm12361_vm14 = vcmask 457728   ;;  %v5380_v56 = vmax.f32 %v5378_v11, %v5379_v20  ;;  %v6235_v57 = vsel %vm12362_vm10, %v5361_v50, -inf  ;;  %vm12367_vm9 = vmmov %vm12362_vm10 }
 0x36b   : > { %v4221_v19 = vsel %vm12361_vm14, %v4184_v7, %v3890_v53  ;;  %v4149_v31 = vsel %vm4113_vm13, %v4112_v4, %v10944_v5  ;;  %vm12363_vm12 = vcmask 523264   ;;  %v5368_v51 = vmax.f32 %v5366_v61, %v5367_v17  ;;  %vm12366_vm11 = vmmov %vm12361_vm14 }
 0x36c   : > { %v4258_v63 = vsel %vm12363_vm12, %v4221_v19, %v3966_v52  ;;  %v5375_v47 = vmax.f32 %v5373_v13, %v5374_v21  ;;  %v6237_v34 = vmax.f32 %v6235_v57, %v6236_v28  ;;  %vm12364_vm6 = vcmask 588800   ;;  %vm12368_vm13 = vmmov %vm12367_vm9 }
 0x36d   : > { %6952 = vmatprep.mubr.msk.bf16.mxu1 %vm12364_vm6, %v4258_v63  ;;  %v4186_v26 = vsel %vm12365_vm3, %v4149_v31, %v10962_v60  ;;  %vm6489_vm0 = vcmask 1046534   ;;  %v4404_v25 = vadd.f32 %v6926_v29, %v10884_v55  ;;  %v4396_v22 = vadd.f32 %v10884_v55, %v4395_v27  ;;  %vm12369_vm4 = vmmov %vm12363_vm12 }
 0x36e   : > { %v4223_v36 = vsel %vm12366_vm11, %v4186_v26, %v3892_v12  ;;  %v6238_v5 = vsel %vm12367_vm9, %v5368_v51, -inf  ;;  %v6241_v23 = vsel %vm12368_vm13, %v5375_v47, -inf  ;;  %v6486_v2 = vsel %vm6485_vm2, %v6237_v34, %v6484_v1  ;;  %vm12370_vm5 = vmmov %vm12364_vm6 }
 0x36f   : > { %v4260_v30 = vsel %vm12369_vm4, %v4223_v36, %v3968_v44  ;;  %v6240_v39 = vmax.f32 %v6238_v5, %v6239_v15  ;;  %v6243_v54 = vmax.f32 %v6241_v23, %v6242_v59  ;;  %v4528_v18 = vmax.f32 %v4404_v25, 0.0 }
 0x370   : > { %v4526_v9 = vmax.f32 %v4396_v22, 0.0  ;;  %6953 = vmatmul.mubr.msk.bf16.gmra.mrb[32].mxu1 %vm12370_vm5, %v4260_v30  ;;  %v5381_v60 = vrot.slane %v5380_v56, 1  ;;  %v4407_v33 = vadd.f32 %v6927_v0, %v10884_v55  ;;  %vm12371_vm14 = vcmask 58368  }
 0x371   : > { %v6488_v29 = vsel %vm6487_vm15, %v6240_v39, %v6486_v2  ;;  %v4695_v27 = vcombine.high %v4528_v18, %v4528_v18  ;;  %v4702_v43 = vrot.slane %v4528_v18, %v10890_v40  ;;  %vm12372_vm10 = vmmov %vm12371_vm14  ;;  %vm6491_vm13 = vcmask 1047559  }
 0x372   : > { %v4662_v53 = vcombine.high %v4526_v9, %v4526_v9  ;;  %v11009_v45 = vsel %vm6489_vm0, %v6243_v54, %v6488_v29  ;;  %v4669_v41 = vrot.slane %v4526_v9, %v10890_v40  ;;  %v4529_v24 = vmax.f32 %v4407_v33, 0.0  ;;  %vm12373_vm12 = vmmov %vm12372_vm10 }
 0x373   : > { %v4709_v42 = vrot.slane %v4695_v27, %v10890_v40  ;;  %v4710_v46 = vcombine.high %v4702_v43, %v4702_v43  ;;  %v5481_v1 = vsel %vm12371_vm14, %v4702_v43, -inf  ;;  %v5382_v0 = vmax.f32 %v5380_v56, %v5381_v60  ;;  %vm12374_vm6 = vmmov %vm12372_vm10 }
 0x374   : > { %v4676_v49 = vrot.slane %v4662_v53, %v10890_v40  ;;  %v5482_v35 = vrot.slane %v5481_v1, 4  ;;  %v5432_v38 = vsel %vm12372_vm10, %v4669_v41, -inf  ;;  %v4719_v48 = vrot.slane %v4529_v24, %v10890_v40  ;;  %vm12375_vm3 = vmmov %vm12374_vm6 }
 0x375   : > { %v4711_v11 = vcombine.high %v4709_v42, %v4709_v42  ;;  %v5488_v62 = vsel %vm12373_vm12, %v4710_v46, -inf  ;;  %v5433_v32 = vrot.slane %v5432_v38, 4  ;;  %v4712_v15 = vcombine.high %v4529_v24, %v4529_v24  ;;  %vm12376_vm11 = vmmov %vm12375_vm3 }
 0x376   : > { %v4677_v12 = vcombine.high %v4676_v49, %v4676_v49  ;;  %v5483_v10 = vmax.f32 %v5481_v1, %v5482_v35  ;;  %v5489_v58 = vrot.slane %v5488_v62, 4  ;;  %v5439_v28 = vsel %vm12374_vm6, %v4676_v49, -inf  ;;  %vm12377_vm4 = vmmov %vm12375_vm3 }
 0x377   : > { %v5495_v16 = vsel %vm12375_vm3, %v4711_v11, -inf  ;;  %v5434_v20 = vmax.f32 %v5432_v38, %v5433_v32  ;;  %v5440_v6 = vrot.slane %v5439_v28, 4  ;;  %v6244_v8 = vsel %vm12367_vm9, %v5382_v0, -inf  ;;  %vm12378_vm5 = vmmov %vm12375_vm3 }
 0x378   : > { %v5446_v61 = vsel %vm12376_vm11, %v4677_v12, -inf  ;;  %v5484_v13 = vrot.slane %v5483_v10, 2  ;;  %v5490_v14 = vmax.f32 %v5488_v62, %v5489_v58  ;;  %v5496_v3 = vrot.slane %v5495_v16, 4  ;;  %vm12379_vm14 = vmmov %vm12367_vm9 }
 0x379   : > { %v5447_v52 = vrot.slane %v5446_v61, 4  ;;  %v5435_v50 = vrot.slane %v5434_v20, 2  ;;  %v5441_v59 = vmax.f32 %v5439_v28, %v5440_v6  ;;  %v4727_v7 = vcombine.high %v4719_v48, %v4719_v48  ;;  %vm12380_vm10 = vmmov %vm12367_vm9 }
 0x37a   : > { %v5485_v17 = vmax.f32 %v5483_v10, %v5484_v13  ;;  %v5497_v21 = vmax.f32 %v5495_v16, %v5496_v3  ;;  %v4399_v19 = vadd.f32 %v10884_v55, %v10968_v37  ;;  %v5502_v31 = vsel %vm12377_vm4, %v4719_v48, -inf  ;;  %vm12381_vm12 = vmmov %vm12375_vm3 }
 0x37b   : > { %v5448_v4 = vmax.f32 %v5446_v61, %v5447_v52  ;;  %v5436_v56 = vmax.f32 %v5434_v20, %v5435_v50  ;;  %v5442_v57 = vrot.slane %v5441_v59, 2  ;;  %v5509_v63 = vsel %vm12378_vm5, %v4727_v7, -inf  ;;  %vm12382_vm6 = vmmov %vm12367_vm9 }
 0x37c   : > { %v5491_v44 = vrot.slane %v5490_v14, 2  ;;  %v5498_v51 = vrot.slane %v5497_v21, 2  ;;  %v4726_v34 = vrot.slane %v4712_v15, %v10890_v40  ;;  %v5503_v25 = vrot.slane %v5502_v31, 4  ;;  %vm12383_vm11 = vmmov %vm12382_vm6 }
 0x37d   : > { %v5449_v47 = vrot.slane %v5448_v4, 2  ;;  %v5437_v26 = vrot.slane %v5436_v56, 1  ;;  %v5443_v36 = vmax.f32 %v5441_v59, %v5442_v57  ;;  %v5510_v22 = vrot.slane %v5509_v63, 4  ;;  %vm12384_vm9 = vmmov %vm12382_vm6 }
 0x37e   : > { %v5486_v5 = vrot.slane %v5485_v17, 1  ;;  %v5499_v23 = vmax.f32 %v5497_v21, %v5498_v51  ;;  %v4527_v2 = vmax.f32 %v4399_v19, 0.0  ;;  %v5504_v54 = vmax.f32 %v5502_v31, %v5503_v25  ;;  %vm12385_vm4 = vmmov %vm12375_vm3 }
 0x37f   : > { %v5450_v37 = vmax.f32 %v5448_v4, %v5449_v47  ;;  %v5438_v30 = vmax.f32 %v5436_v56, %v5437_v26  ;;  %v5444_v39 = vrot.slane %v5443_v36, 1  ;;  %v5511_v18 = vmax.f32 %v5509_v63, %v5510_v22  ;;  %vm12386_vm5 = vmmov %vm12382_vm6 }
 0x380   : > { %v11030_v9 = vmax.f32 %v5490_v14, %v5491_v44  ;;  %v5500_v60 = vrot.slane %v5499_v23, 1  ;;  %v4728_v29 = vcombine.high %v4726_v34, %v4726_v34  ;;  %v5505_v53 = vrot.slane %v5504_v54, 2 }
 0x381   : > { %v5451_v33 = vrot.slane %v5450_v37, 1  ;;  %v5445_v27 = vmax.f32 %v5443_v36, %v5444_v39  ;;  %v6245_v43 = vsel %vm12379_vm14, %v5438_v30, -inf  ;;  %v5512_v41 = vrot.slane %v5511_v18, 2  ;;  %vm12387_vm14 = vmmov %vm12375_vm3 }
 0x382   : > { %v11033_v42 = vmax.f32 %v5485_v17, %v5486_v5  ;;  %v5501_v46 = vmax.f32 %v5499_v23, %v5500_v60  ;;  %v6246_v49 = vmax.f32 %v6244_v8, %v6245_v43  ;;  %v5506_v38 = vmax.f32 %v5504_v54, %v5505_v53 }
 0x383   : > { %v5452_v1 = vmax.f32 %v5450_v37, %v5451_v33  ;;  %v6247_v35 = vsel %vm12380_vm10, %v5445_v27, -inf  ;;  %v5513_v48 = vmax.f32 %v5511_v18, %v5512_v41  ;;  %v5516_v11 = vsel %vm12381_vm12, %v4726_v34, -inf  ;;  %vm12388_vm10 = vmmov %vm12375_vm3 }
 0x384   : > { %v6248_v12 = vsel %vm12382_vm6, %v5501_v46, -inf  ;;  %v6492_v32 = vsel %vm6491_vm13, %v6246_v49, %v11009_v45  ;;  %v5517_v10 = vrot.slane %v5516_v11, 4  ;;  %v5523_v58 = vsel %vm12375_vm3, %v4728_v29, -inf  ;;  %vm12389_vm12 = vmmov %vm12375_vm3 }
 0x385   : > { %v6249_v15 = vmax.f32 %v6247_v35, %v6248_v12  ;;  %6550 = vst.msk [vmem:[%s11045_s14] sm:$0xff] %vm12383_vm11, %v6492_v32  ;;  %v5507_v16 = vrot.slane %v5506_v38, 1  ;;  %v5514_v20 = vrot.slane %v5513_v48, 1  ;;  %v5524_v6 = vrot.slane %v5523_v58, 4  ;;  %vm12390_vm6 = vmmov %vm12386_vm5 }
 0x386   : > { %v6930_v24 = vpop.f32.mrb[8].mxu1  ;;  %v5493_v61 = vrot.slane %v11030_v9, 1  ;;  %v5518_v13 = vmax.f32 %v5516_v11, %v5517_v10  ;;  %v4678_v14 = vcombine.high %v4527_v2, %v4527_v2  ;;  %v4685_v45 = vrot.slane %v4527_v2, %v10890_v40  ;;  %vm12391_vm3 = vmmov %vm12386_vm5 }
 0x387   : > { %v4411_v0 = vpop.f32.mrb[9].mxu1  ;;  %v5508_v3 = vmax.f32 %v5506_v38, %v5507_v16  ;;  %v5515_v52 = vmax.f32 %v5513_v48, %v5514_v20  ;;  %v5525_v50 = vmax.f32 %v5523_v58, %v5524_v6  ;;  %v6250_v59 = vsel %vm12384_vm9, %v5452_v1, -inf  ;;  %vm12392_vm11 = vmmov %vm12385_vm4 }
 0x388   : > { %v11037_v62 = vpop.f32.mrb[10].mxu1  ;;  %v5519_v8 = vrot.slane %v5518_v13, 2  ;;  %v4692_v7 = vrot.slane %v4678_v14, %v10890_v40  ;;  %v4693_v17 = vcombine.high %v4685_v45, %v4685_v45  ;;  %v5453_v21 = vsel %vm12385_vm4, %v4685_v45, -inf  ;;  %vm12393_vm9 = vmmov %vm12385_vm4 }
 0x389   : > { %v11043_v28 = vpop.f32.mrb[11].mxu1  ;;  %v5526_v4 = vrot.slane %v5525_v50, 2  ;;  %v6251_v19 = vsel %vm12386_vm5, %v5508_v3, -inf  ;;  %v5454_v56 = vrot.slane %v5453_v21, 4  ;;  %v4420_v57 = vadd.f32 %v6930_v24, %v10884_v55  ;;  %vm12394_vm5 = vmmov %vm12391_vm3 }
 0x38a   : > { %v5520_v31 = vmax.f32 %v5518_v13, %v5519_v8  ;;  %v6252_v63 = vmax.f32 %v6250_v59, %v6251_v19  ;;  %v4694_v44 = vcombine.high %v4692_v7, %v4692_v7  ;;  %v5460_v51 = vsel %vm12387_vm14, %v4693_v17, -inf  ;;  %vm12395_vm14 = vmmov %vm12391_vm3 }
 0x38b   : > { %v5527_v47 = vmax.f32 %v5525_v50, %v5526_v4  ;;  %v5455_v34 = vmax.f32 %v5453_v21, %v5454_v56  ;;  %v5461_v26 = vrot.slane %v5460_v51, 4  ;;  %v5467_v36 = vsel %vm12388_vm10, %v4692_v7, -inf  ;;  %vm12396_vm10 = vmmov %vm12391_vm3 }
 0x38c   : > { %v5521_v25 = vrot.slane %v5520_v31, 1  ;;  %v6493_v22 = vsel %vm6479_vm7, %v6252_v63, %v6249_v15  ;;  %v5468_v5 = vrot.slane %v5467_v36, 4  ;;  %v5474_v23 = vsel %vm12389_vm12, %v4694_v44, -inf  ;;  %vm12397_vm12 = vmmov %vm12385_vm4 }
 0x38d   : > { %v5528_v37 = vrot.slane %v5527_v47, 1  ;;  %v5456_v2 = vrot.slane %v5455_v34, 2  ;;  %v5462_v30 = vmax.f32 %v5460_v51, %v5461_v26  ;;  %v5475_v39 = vrot.slane %v5474_v23, 4 }
 0x38e   : > { %v5522_v54 = vmax.f32 %v5520_v31, %v5521_v25  ;;  %v5469_v18 = vmax.f32 %v5467_v36, %v5468_v5  ;;  %v6254_v60 = vsel %vm12390_vm6, %v5515_v52, -inf  ;;  %v4532_v33 = vmax.f32 %v4420_v57, 0.0  ;;  %vm12398_vm6 = vmmov %vm12391_vm3 }
 0x38f   : > { %v5457_v29 = vmax.f32 %v5455_v34, %v5456_v2  ;;  %v5463_v27 = vrot.slane %v5462_v30, 2  ;;  %v5476_v43 = vmax.f32 %v5474_v23, %v5475_v39  ;;  %v4412_v53 = vadd.f32 %v10884_v55, %v4411_v0 }
 0x390   : > { %v5529_v41 = vmax.f32 %v5527_v47, %v5528_v37  ;;  %v5470_v24 = vrot.slane %v5469_v18, 2  ;;  %v4762_v46 = vcombine.high %v4532_v33, %v4532_v33  ;;  %v4769_v1 = vrot.slane %v4532_v33, %v10890_v40 }
 0x391   : > { %v6257_v49 = vsel %vm12391_vm3, %v5522_v54, -inf  ;;  %v5458_v35 = vrot.slane %v5457_v29, 1  ;;  %v5464_v38 = vmax.f32 %v5462_v30, %v5463_v27  ;;  %v5477_v48 = vrot.slane %v5476_v43, 2 }
 0x392   : > { %v5471_v11 = vmax.f32 %v5469_v18, %v5470_v24  ;;  %v4776_v12 = vrot.slane %v4762_v46, %v10890_v40  ;;  %v4777_v32 = vcombine.high %v4769_v1, %v4769_v1  ;;  %v5579_v10 = vsel %vm12392_vm11, %v4769_v1, -inf  ;;  %vm12399_vm11 = vmmov %vm12385_vm4 }
 0x393   : > { %v5459_v58 = vmax.f32 %v5457_v29, %v5458_v35  ;;  %v5465_v15 = vrot.slane %v5464_v38, 1  ;;  %v5478_v16 = vmax.f32 %v5476_v43, %v5477_v48  ;;  %v5580_v0 = vrot.slane %v5579_v10, 4 }
 0x394   : > { %v5472_v20 = vrot.slane %v5471_v11, 1  ;;  %v4778_v6 = vcombine.high %v4776_v12, %v4776_v12  ;;  %v5586_v13 = vsel %vm12393_vm9, %v4777_v32, -inf  ;;  %v5593_v14 = vsel %vm12385_vm4, %v4776_v12, -inf  ;;  %vm12400_vm9 = vmmov %vm12391_vm3 }
 0x395   : > { %v5466_v45 = vmax.f32 %v5464_v38, %v5465_v15  ;;  %v6253_v3 = vsel %vm12394_vm5, %v5459_v58, -inf  ;;  %v6260_v52 = vsel %vm12395_vm14, %v5529_v41, -inf  ;;  %v5581_v50 = vmax.f32 %v5579_v10, %v5580_v0  ;;  %vm12401_vm5 = vmmov %vm12385_vm4 }
 0x396   : > { %v5473_v59 = vmax.f32 %v5471_v11, %v5472_v20  ;;  %v6255_v8 = vmax.f32 %v6253_v3, %v6254_v60  ;;  %v5587_v7 = vrot.slane %v5586_v13, 4  ;;  %v5594_v17 = vrot.slane %v5593_v14, 4  ;;  %vm12402_vm14 = vmmov %vm12391_vm3 }
 0x397   : > { %v5479_v21 = vrot.slane %v5478_v16, 1  ;;  %v6256_v4 = vsel %vm12396_vm10, %v5466_v45, -inf  ;;  %v5582_v19 = vrot.slane %v5581_v50, 2  ;;  %v5600_v56 = vsel %vm12397_vm12, %v4778_v6, -inf  ;;  %vm12403_vm10 = vmmov %vm12391_vm3 }
 0x398   : > { %v6258_v57 = vmax.f32 %v6256_v4, %v6257_v49  ;;  %v6259_v31 = vsel %vm12398_vm6, %v5473_v59, -inf  ;;  %v6494_v63 = vsel %vm6481_vm1, %v6255_v8, %v6493_v22  ;;  %v5588_v44 = vmax.f32 %v5586_v13, %v5587_v7  ;;  %vm12404_vm12 = vmmov %vm12385_vm4 }
 0x399   : > { %v6261_v51 = vmax.f32 %v6259_v31, %v6260_v52  ;;  %v5583_v47 = vmax.f32 %v5581_v50, %v5582_v19  ;;  %v5595_v34 = vmax.f32 %v5593_v14, %v5594_v17  ;;  %v5601_v26 = vrot.slane %v5600_v56, 4  ;;  %vm12405_vm6 = vmmov %vm12385_vm4 }
 0x39a   : > { %v5494_v36 = vmax.f32 %v11030_v9, %v5493_v61  ;;  %v6495_v25 = vsel %vm6483_vm8, %v6258_v57, %v6494_v63  ;;  %v5589_v5 = vrot.slane %v5588_v44, 2  ;;  %v4530_v23 = vmax.f32 %v4412_v53, 0.0 }
 0x39b   : > { %v11079_v37 = vsel %vm6485_vm2, %v6261_v51, %v6495_v25  ;;  %v5584_v2 = vrot.slane %v5583_v47, 1  ;;  %v5596_v30 = vrot.slane %v5595_v34, 2  ;;  %v5602_v39 = vmax.f32 %v5600_v56, %v5601_v26 }
 0x39c   : > { %v4729_v22 = vcombine.high %v4530_v23, %v4530_v23  ;;  %v4736_v54 = vrot.slane %v4530_v23, %v10890_v40  ;;  %v4423_v18 = vadd.f32 %v11037_v62, %v10884_v55  ;;  %v11086_v60 = vsel %vm12391_vm3, %v11033_v42, -inf  ;;  %vm12406_vm3 = vmmov %vm12385_vm4 }
 0x39d   : > { %v5480_v9 = vmax.f32 %v5478_v16, %v5479_v21  ;;  %v5590_v61 = vmax.f32 %v5588_v44, %v5589_v5  ;;  %v11088_v33 = vmax.f32 %v5595_v34, %v5596_v30  ;;  %v11093_v41 = vsel %vm12400_vm9, %v5494_v36, -inf }
 0x39e   : > { %v4743_v29 = vrot.slane %v4729_v22, %v10890_v40  ;;  %v4744_v27 = vcombine.high %v4736_v54, %v4736_v54  ;;  %v5530_v43 = vsel %vm12399_vm11, %v4736_v54, -inf  ;;  %v5585_v24 = vmax.f32 %v5583_v47, %v5584_v2  ;;  %vm12407_vm11 = vmmov %vm12400_vm9 }
 0x39f   : > { %v5603_v46 = vrot.slane %v5602_v39, 2  ;;  %v5531_v62 = vrot.slane %v5530_v43, 4  ;;  %v4533_v35 = vmax.f32 %v4423_v18, 0.0  ;;  %v4415_v38 = vadd.f32 %v10884_v55, %v11043_v28 }
 0x3a0   : > { %v5537_v42 = vsel %vm12385_vm4, %v4744_v27, -inf  ;;  %v5544_v49 = vsel %vm12401_vm5, %v4743_v29, -inf  ;;  %v5591_v11 = vrot.slane %v5590_v61, 1  ;;  %v6262_v10 = vsel %vm12402_vm14, %v5480_v9, -inf  ;;  %vm12408_vm4 = vmmov %vm12406_vm3 }
 0x3a1   : > { %v5532_v12 = vmax.f32 %v5530_v43, %v5531_v62  ;;  %v5538_v32 = vrot.slane %v5537_v42, 4  ;;  %v5598_v15 = vrot.slane %v11088_v33, 1  ;;  %v5545_v16 = vrot.slane %v5544_v49, 4  ;;  %vm12409_vm5 = vmmov %vm12400_vm9 }
 0x3a2   : > { %v6934_v53 = vpop.f32.mrb[12].mxu1  ;;  %v4779_v0 = vcombine.high %v4533_v35, %v4533_v35  ;;  %v4786_v20 = vrot.slane %v4533_v35, %v10890_v40  ;;  %v11108_v6 = vmax.f32 %v5602_v39, %v5603_v46  ;;  %v11111_v13 = vsel %vm12403_vm10, %v5585_v24, -inf  ;;  %vm12410_vm14 = vmmov %vm12406_vm3 }
 0x3a3   : > { %v11095_v1 = vpop.f32.mrb[13].mxu1  ;;  %v5533_v28 = vrot.slane %v5532_v12, 2  ;;  %v5539_v14 = vmax.f32 %v5537_v42, %v5538_v32  ;;  %v5546_v45 = vmax.f32 %v5544_v49, %v5545_v16  ;;  %v4531_v50 = vmax.f32 %v4415_v38, 0.0  ;;  %vm12411_vm10 = vmmov %vm12406_vm3 }
 0x3a4   : > { %v11101_v48 = vpop.f32.mrb[14].mxu1  ;;  %v4793_v3 = vrot.slane %v4779_v0, %v10890_v40  ;;  %v4794_v52 = vcombine.high %v4786_v20, %v4786_v20  ;;  %v11114_v59 = vmax.f32 %v5590_v61, %v5591_v11  ;;  %v4436_v17 = vadd.f32 %v6934_v53, %v10884_v55 }
 0x3a5   : > { %v11104_v58 = vpop.f32.mrb[15].mxu1  ;;  %v5534_v8 = vmax.f32 %v5532_v12, %v5533_v28  ;;  %v5540_v7 = vrot.slane %v5539_v14, 2  ;;  %v5547_v21 = vrot.slane %v5546_v45, 2  ;;  %v4745_v34 = vcombine.high %v4531_v50, %v4531_v50 }
 0x3a6   : > { %v4795_v4 = vcombine.high %v4793_v3, %v4793_v3  ;;  %v5607_v19 = vsel %vm12404_vm12, %v4794_v52, -inf  ;;  %v5614_v56 = vsel %vm12405_vm6, %v4793_v3, -inf  ;;  %v4752_v26 = vrot.slane %v4531_v50, %v10890_v40  ;;  %vm12412_vm12 = vmmov %vm12409_vm5 }
 0x3a7   : > { %v5535_v57 = vrot.slane %v5534_v8, 1  ;;  %v5541_v31 = vmax.f32 %v5539_v14, %v5540_v7  ;;  %v5608_v63 = vrot.slane %v5607_v19, 4  ;;  %v5615_v44 = vrot.slane %v5614_v56, 4  ;;  %vm12413_vm6 = vmmov %vm12406_vm3 }
 0x3a8   : > { %v5548_v51 = vmax.f32 %v5546_v45, %v5547_v21  ;;  %v5621_v47 = vsel %vm12406_vm3, %v4795_v4, -inf  ;;  %v4759_v39 = vrot.slane %v4745_v34, %v10890_v40  ;;  %v4760_v22 = vcombine.high %v4752_v26, %v4752_v26  ;;  %vm12414_vm3 = vmmov %vm12409_vm5 }
 0x3a9   : > { %v5536_v36 = vmax.f32 %v5534_v8, %v5535_v57  ;;  %v5542_v25 = vrot.slane %v5541_v31, 1  ;;  %v5609_v5 = vmax.f32 %v5607_v19, %v5608_v63  ;;  %v5616_v23 = vmax.f32 %v5614_v56, %v5615_v44 }
 0x3aa   : > { %v5549_v2 = vrot.slane %v5548_v51, 1  ;;  %v5622_v30 = vrot.slane %v5621_v47, 4  ;;  %v4761_v53 = vcombine.high %v4759_v39, %v4759_v39  ;;  %v5551_v42 = vsel %vm12408_vm4, %v4752_v26, -inf }
 0x3ab   : > { %v5543_v54 = vmax.f32 %v5541_v31, %v5542_v25  ;;  %v6263_v18 = vsel %vm12407_vm11, %v5536_v36, -inf  ;;  %v5610_v9 = vrot.slane %v5609_v5, 2  ;;  %v5617_v61 = vrot.slane %v5616_v23, 2  ;;  %vm12415_vm11 = vmmov %vm12414_vm3 }
 0x3ac   : > { %v5550_v29 = vmax.f32 %v5548_v51, %v5549_v2  ;;  %v6264_v27 = vmax.f32 %v6262_v10, %v6263_v18  ;;  %v5623_v43 = vmax.f32 %v5621_v47, %v5622_v30  ;;  %v5552_v16 = vrot.slane %v5551_v42, 4 }
 0x3ad   : > { %v6266_v24 = vsel %vm12400_vm9, %v5543_v54, -inf  ;;  %v5611_v46 = vmax.f32 %v5609_v5, %v5610_v9  ;;  %v5618_v62 = vmax.f32 %v5616_v23, %v5617_v61  ;;  %v5558_v28 = vsel %vm12410_vm14, %v4760_v22, -inf  ;;  %vm12416_vm9 = vmmov %vm12414_vm3 }
 0x3ae   : > { %v6267_v49 = vmax.f32 %v11086_v60, %v6266_v24  ;;  %v6269_v35 = vsel %vm12409_vm5, %v5550_v29, -inf  ;;  %v6497_v38 = vsel %vm6487_vm15, %v6264_v27, %v11079_v37  ;;  %v5624_v11 = vrot.slane %v5623_v43, 2  ;;  %vm12417_vm5 = vmmov %vm12414_vm3 }
 0x3af   : > { %v6270_v12 = vmax.f32 %v11093_v41, %v6269_v35  ;;  %v5612_v32 = vrot.slane %v5611_v46, 1  ;;  %v5619_v10 = vrot.slane %v5618_v62, 1  ;;  %v5565_v14 = vsel %vm12411_vm10, %v4759_v39, -inf  ;;  %vm12418_vm14 = vmmov %vm12408_vm4 }
 0x3b0   : > { %v6498_v0 = vsel %vm6489_vm0, %v6267_v49, %v6497_v38  ;;  %v5625_v20 = vmax.f32 %v5623_v43, %v5624_v11  ;;  %v5553_v3 = vmax.f32 %v5551_v42, %v5552_v16  ;;  %v4428_v37 = vadd.f32 %v10884_v55, %v11095_v1  ;;  %vm12419_vm10 = vmmov %vm12408_vm4 }
 0x3b1   : > { %v6499_v60 = vsel %vm6491_vm13, %v6270_v12, %v6498_v0  ;;  %v5613_v45 = vmax.f32 %v5611_v46, %v5612_v32  ;;  %v5559_v52 = vrot.slane %v5558_v28, 4  ;;  %v5566_v50 = vrot.slane %v5565_v14, 4 }
 0x3b2   : > { %6551 = vst.msk [vmem:[%s11045_s14 + $0x8] sm:$0xff] %vm12412_vm12, %v6499_v60  ;;  %v5626_v41 = vrot.slane %v5625_v20, 1  ;;  %v5572_v8 = vsel %vm12413_vm6, %v4761_v53, -inf  ;;  %v11142_v7 = vmax.f32 %v11088_v33, %v5598_v15  ;;  %v5620_v21 = vmax.f32 %v5618_v62, %v5619_v10  ;;  %vm12420_vm12 = vmmov %vm12408_vm4 }
 0x3b3   : > { %v5554_v4 = vrot.slane %v5553_v3, 2  ;;  %v5573_v19 = vrot.slane %v5572_v8, 4  ;;  %v5560_v31 = vmax.f32 %v5558_v28, %v5559_v52  ;;  %v5567_v55 = vmax.f32 %v5565_v14, %v5566_v50  ;;  %vm12421_vm6 = vmmov %vm12414_vm3 }
 0x3b4   : > { %v5627_v57 = vmax.f32 %v5625_v20, %v5626_v41  ;;  %v4536_v1 = vmax.f32 %v4436_v17, 0.0  ;;  %v5605_v44 = vrot.slane %v11108_v6, 1  ;;  %v4534_v34 = vmax.f32 %v4428_v37, 0.0 }
 0x3b5   : > { %v5555_v51 = vmax.f32 %v5553_v3, %v5554_v4  ;;  %v5574_v47 = vmax.f32 %v5572_v8, %v5573_v19  ;;  %v6272_v33 = vsel %vm12414_vm3, %v5613_v45, -inf  ;;  %v5561_v15 = vrot.slane %v5560_v31, 2 }
 0x3b6   : > { %v11144_v56 = vpop.f32.mrb[16].mxu1  ;;  %v5568_v36 = vrot.slane %v5567_v55, 2  ;;  %v4829_v25 = vcombine.high %v4536_v1, %v4536_v1  ;;  %v6275_v23 = vsel %vm12415_vm11, %v5620_v21, -inf  ;;  %v6278_v17 = vsel %vm12416_vm9, %v5627_v57, -inf  ;;  %vm12422_vm11 = vmmov %vm12408_vm4 }
 0x3b7   : > { %v11146_v63 = vpop.f32.mrb[17].mxu1  ;;  %v5556_v2 = vrot.slane %v5555_v51, 1  ;;  %v4836_v30 = vrot.slane %v4536_v1, %v10890_v40  ;;  %v5562_v39 = vmax.f32 %v5560_v31, %v5561_v15  ;;  %v5575_v54 = vrot.slane %v5574_v47, 2  ;;  %vm12423_vm9 = vmmov %vm12414_vm3 }
 0x3b8   : > { %v11149_v26 = vpop.f32.mrb[18].mxu1  ;;  %v5569_v22 = vmax.f32 %v5567_v55, %v5568_v36  ;;  %v4843_v18 = vrot.slane %v4829_v25, %v10890_v40  ;;  %v4796_v27 = vcombine.high %v4534_v34, %v4534_v34  ;;  %v4803_v35 = vrot.slane %v4534_v34, %v10890_v40 }
 0x3b9   : > { %v11152_v5 = vpop.f32.mrb[19].mxu1  ;;  %v5557_v9 = vmax.f32 %v5555_v51, %v5556_v2  ;;  %v4844_v61 = vcombine.high %v4836_v30, %v4836_v30  ;;  %v5677_v29 = vsel %vm12408_vm4, %v4836_v30, -inf  ;;  %v5563_v43 = vrot.slane %v5562_v39, 1 }
 0x3ba   : > { %v5570_v53 = vrot.slane %v5569_v22, 1  ;;  %v4845_v24 = vcombine.high %v4843_v18, %v4843_v18  ;;  %v5678_v46 = vrot.slane %v5677_v29, 4  ;;  %v5691_v49 = vsel %vm12419_vm10, %v4843_v18, -inf  ;;  %vm12426_vm10 = vmmov %vm12414_vm3 }
 0x3bb   : > { %v6271_v62 = vsel %vm12417_vm5, %v5557_v9, -inf  ;;  %v5684_v42 = vsel %vm12418_vm14, %v4844_v61, -inf  ;;  %v5564_v38 = vmax.f32 %v5562_v39, %v5563_v43  ;;  %v5576_v10 = vmax.f32 %v5574_v47, %v5575_v54  ;;  %vm12424_vm5 = vmmov %vm12408_vm4 }
 0x3bc   : > { %v5571_v11 = vmax.f32 %v5569_v22, %v5570_v53  ;;  %v6273_v12 = vmax.f32 %v6271_v62, %v6272_v33  ;;  %v5679_v32 = vmax.f32 %v5677_v29, %v5678_v46  ;;  %v5685_v16 = vrot.slane %v5684_v42, 4  ;;  %vm12425_vm14 = vmmov %vm12408_vm4  ;;  %v11193_v29 = vld [vmem:[%s11880_s4] ss:$0 sm:$0xff] }
 0x3bd   : > { %v5692_v0 = vrot.slane %v5691_v49, 4  ;;  %v5698_v20 = vsel %vm12420_vm12, %v4845_v24, -inf  ;;  %v6274_v28 = vsel %vm12421_vm6, %v5564_v38, -inf  ;;  %v4810_v21 = vrot.slane %v4796_v27, %v10890_v40  ;;  %vm12427_vm12 = vmmov %vm12414_vm3 }
 0x3be   : > { %v6277_v14 = vsel %vm12414_vm3, %v5571_v11, -inf  ;;  %v5680_v60 = vrot.slane %v5679_v32, 2  ;;  %v5699_v45 = vrot.slane %v5698_v20, 4  ;;  %v6276_v3 = vmax.f32 %v6274_v28, %v6275_v23  ;;  %vm12428_vm6 = vmmov %vm12414_vm3 }
 0x3bf   : > { %v6279_v37 = vmax.f32 %v6277_v14, %v6278_v17  ;;  %v5686_v41 = vmax.f32 %v5684_v42, %v5685_v16  ;;  %v5693_v52 = vmax.f32 %v5691_v49, %v5692_v0  ;;  %v4811_v4 = vcombine.high %v4803_v35, %v4803_v35 }
 0x3c0   : > { %v5681_v50 = vmax.f32 %v5679_v32, %v5680_v60  ;;  %v5700_v8 = vmax.f32 %v5698_v20, %v5699_v45  ;;  %v6500_v19 = vsel %vm6479_vm7, %v6276_v3, %v6273_v12  ;;  %v5628_v55 = vsel %vm12422_vm11, %v4803_v35, -inf  ;;  %vm12429_vm11 = vmmov %vm12408_vm4 }
 0x3c1   : > { %v5687_v57 = vrot.slane %v5686_v41, 2  ;;  %v5694_v31 = vrot.slane %v5693_v52, 2  ;;  %v11170_v1 = vsel %vm6481_vm1, %v6279_v37, %v6500_v19  ;;  %v4812_v34 = vcombine.high %v4810_v21, %v4810_v21 }
 0x3c2   : > { %v5682_v51 = vrot.slane %v5681_v50, 1  ;;  %v5701_v47 = vrot.slane %v5700_v8, 2  ;;  %v11174_v33 = vsel %vm12423_vm9, %v11114_v59, -inf  ;;  %v5577_v15 = vrot.slane %v5576_v10, 1  ;;  %vm12430_vm9 = vmmov %vm12414_vm3 }
 0x3c3   : > { %v5629_v36 = vrot.slane %v5628_v55, 4  ;;  %v5635_v25 = vsel %vm12408_vm4, %v4811_v4, -inf  ;;  %v11177_v23 = vmax.f32 %v5686_v41, %v5687_v57  ;;  %v11179_v2 = vmax.f32 %v5693_v52, %v5694_v31  ;;  %vm12431_vm4 = vmmov %vm12414_vm3 }
 0x3c4   : > { %v5636_v17 = vrot.slane %v5635_v25, 4  ;;  %v5642_v30 = vsel %vm12424_vm5, %v4810_v21, -inf  ;;  %v5683_v39 = vmax.f32 %v5681_v50, %v5682_v51  ;;  %v11182_v22 = vmax.f32 %v5700_v8, %v5701_v47 }
 0x3c5   : > { %v5630_v54 = vmax.f32 %v5628_v55, %v5629_v36  ;;  %v5643_v18 = vrot.slane %v5642_v30, 4  ;;  %v11187_v59 = vmax.f32 %v11108_v6, %v5605_v44  ;;  %v5649_v61 = vsel %vm12425_vm14, %v4812_v34, -inf  ;;  %vm12432_vm14 = vmmov %vm12424_vm5 }
 0x3c6   : > { %v5637_v9 = vmax.f32 %v5635_v25, %v5636_v17  ;;  %v4439_v27 = vadd.f32 %v11193_v29, %v11101_v48  ;;  %v11199_v43 = vsel %vm12426_vm10, %v11142_v7, -inf  ;;  %v5578_v53 = vmax.f32 %v5576_v10, %v5577_v15  ;;  %vm12433_vm10 = vmmov %vm12414_vm3 }
 0x3c7   : > { %v5631_v24 = vrot.slane %v5630_v54, 2  ;;  %v5644_v46 = vmax.f32 %v5642_v30, %v5643_v18  ;;  %v5689_v6 = vrot.slane %v11177_v23, 1  ;;  %v5696_v44 = vrot.slane %v11179_v2, 1 }
 0x3c8   : > { %v5638_v62 = vrot.slane %v5637_v9, 2  ;;  %v5650_v42 = vrot.slane %v5649_v61, 4  ;;  %v5703_v49 = vrot.slane %v11182_v22, 1  ;;  %v11205_v35 = vsel %vm12427_vm12, %v5683_v39, -inf  ;;  %vm12434_vm12 = vmmov %vm12424_vm5 }
 0x3c9   : > { %v5632_v38 = vmax.f32 %v5630_v54, %v5631_v24  ;;  %v5645_v48 = vrot.slane %v5644_v46, 2  ;;  %v4537_v7 = vmax.f32 %v4439_v27, 0.0  ;;  %v4431_v32 = vadd.f32 %v11193_v29, %v11104_v58 }
 0x3ca   : > { %v5639_v11 = vmax.f32 %v5637_v9, %v5638_v62  ;;  %v5651_v12 = vmax.f32 %v5649_v61, %v5650_v42  ;;  %v6280_v0 = vsel %vm12428_vm6, %v5578_v53, -inf  ;;  %v4452_v20 = vadd.f32 %v11193_v29, %v11144_v56  ;;  %vm12435_vm6 = vmmov %vm12424_vm5 }
 0x3cb   : > { %v5633_v10 = vrot.slane %v5632_v38, 1  ;;  %v5646_v16 = vmax.f32 %v5644_v46, %v5645_v48  ;;  %v4846_v60 = vcombine.high %v4537_v7, %v4537_v7  ;;  %v4853_v45 = vrot.slane %v4537_v7, %v10890_v40 }
 0x3cc   : > { %v5640_v28 = vrot.slane %v5639_v11, 1  ;;  %v5652_v14 = vrot.slane %v5651_v12, 2  ;;  %v4535_v41 = vmax.f32 %v4431_v32, 0.0  ;;  %v4540_v52 = vmax.f32 %v4452_v20, 0.0 }
 0x3cd   : > { %v5634_v3 = vmax.f32 %v5632_v38, %v5633_v10  ;;  %v5647_v37 = vrot.slane %v5646_v16, 1  ;;  %v4860_v58 = vrot.slane %v4846_v60, %v10890_v40  ;;  %v4861_v21 = vcombine.high %v4853_v45, %v4853_v45 }
 0x3ce   : > { %v5641_v50 = vmax.f32 %v5639_v11, %v5640_v28  ;;  %v5653_v8 = vmax.f32 %v5651_v12, %v5652_v14  ;;  %v5705_v57 = vsel %vm12429_vm11, %v4853_v45, -inf  ;;  %v4813_v56 = vcombine.high %v4535_v41, %v4535_v41  ;;  %vm12437_vm11 = vmmov %vm12431_vm4 }
 0x3cf   : > { %v5648_v4 = vmax.f32 %v5646_v16, %v5647_v37  ;;  %v6281_v19 = vsel %vm12414_vm3, %v5634_v3, -inf  ;;  %v4862_v47 = vcombine.high %v4860_v58, %v4860_v58  ;;  %v5706_v36 = vrot.slane %v5705_v57, 4  ;;  %vm12436_vm3 = vmmov %vm12424_vm5 }
 0x3d0   : > { %v5654_v31 = vrot.slane %v5653_v8, 1  ;;  %v6282_v55 = vmax.f32 %v6280_v0, %v6281_v19  ;;  %v6284_v51 = vsel %vm12430_vm9, %v5641_v50, -inf  ;;  %v5712_v25 = vsel %vm12424_vm5, %v4861_v21, -inf  ;;  %vm12438_vm9 = vmmov %vm12436_vm3 }
 0x3d1   : > { %v6285_v34 = vmax.f32 %v11111_v13, %v6284_v51  ;;  %v6287_v15 = vsel %vm12431_vm4, %v5648_v4, -inf  ;;  %v5713_v54 = vrot.slane %v5712_v25, 4  ;;  %v5707_v9 = vmax.f32 %v5705_v57, %v5706_v36  ;;  %vm12439_vm4 = vmmov %vm12436_vm3 }
 0x3d2   : > { %v5655_v17 = vmax.f32 %v5653_v8, %v5654_v31  ;;  %v6288_v30 = vmax.f32 %v11174_v33, %v6287_v15  ;;  %v6502_v39 = vsel %vm6483_vm8, %v6282_v55, %v11170_v1  ;;  %v5719_v61 = vsel %vm12432_vm14, %v4862_v47, -inf  ;;  %vm12440_vm5 = vmmov %vm12436_vm3 }
 0x3d3   : > { %v6503_v18 = vsel %vm6485_vm2, %v6285_v34, %v6502_v39  ;;  %v4820_v27 = vrot.slane %v4535_v41, %v10890_v40  ;;  %v5714_v46 = vmax.f32 %v5712_v25, %v5713_v54  ;;  %v5720_v62 = vrot.slane %v5719_v61, 4  ;;  %vm12441_vm14 = vmmov %vm12433_vm10 }
 0x3d4   : > { %v6290_v53 = vsel %vm12433_vm10, %v5655_v17, -inf  ;;  %v6504_v24 = vsel %vm6487_vm15, %v6288_v30, %v6503_v18  ;;  %v5708_v42 = vrot.slane %v5707_v9, 2  ;;  %v4827_v38 = vrot.slane %v4813_v56, %v10890_v40  ;;  %vm12442_vm10 = vmmov %vm12436_vm3 }
 0x3d5   : > { %v6291_v1 = vmax.f32 %v11199_v43, %v6290_v53  ;;  %v5656_v48 = vsel %vm12434_vm12, %v4820_v27, -inf  ;;  %v5715_v12 = vrot.slane %v5714_v46, 2  ;;  %v5721_v7 = vmax.f32 %v5719_v61, %v5720_v62  ;;  %vm12443_vm12 = vmmov %vm12437_vm11 }
 0x3d6   : > { %v11226_v13 = vpop.f32.mrb[20].mxu1  ;;  %v5657_v32 = vrot.slane %v5656_v48, 4  ;;  %v4896_v10 = vcombine.high %v4540_v52, %v4540_v52  ;;  %v5709_v0 = vmax.f32 %v5707_v9, %v5708_v42  ;;  %v4828_v20 = vcombine.high %v4827_v38, %v4827_v38 }
 0x3d7   : > { %v11230_v33 = vpop.f32.mrb[21].mxu1  ;;  %v5663_v28 = vsel %vm12435_vm6, %v4827_v38, -inf  ;;  %v6505_v14 = vsel %vm6489_vm0, %v6291_v1, %v6504_v24  ;;  %v5716_v43 = vmax.f32 %v5714_v46, %v5715_v12  ;;  %v5722_v60 = vrot.slane %v5721_v7, 2  ;;  %vm12444_vm6 = vmmov %vm12437_vm11 }
 0x3d8   : > { %v11235_v11 = vpop.f32.mrb[22].mxu1  ;;  %v5658_v45 = vmax.f32 %v5656_v48, %v5657_v32  ;;  %v5664_v3 = vrot.slane %v5663_v28, 4  ;;  %v5690_v37 = vmax.f32 %v11177_v23, %v5689_v6  ;;  %v5670_v41 = vsel %vm12436_vm3, %v4828_v20, -inf  ;;  %vm12445_vm3 = vmmov %vm12444_vm6 }
 0x3d9   : > { %v11237_v16 = vpop.f32.mrb[23].mxu1  ;;  %v4903_v50 = vrot.slane %v4540_v52, %v10890_v40  ;;  %v4910_v8 = vrot.slane %v4896_v10, %v10890_v40  ;;  %v5710_v58 = vrot.slane %v5709_v0, 1  ;;  %v5723_v21 = vmax.f32 %v5721_v7, %v5722_v60 }
 0x3da   : > { %v5659_v4 = vrot.slane %v5658_v45, 2  ;;  %v5665_v19 = vmax.f32 %v5663_v28, %v5664_v3  ;;  %v5697_v57 = vmax.f32 %v11179_v2, %v5696_v44  ;;  %v5671_v56 = vrot.slane %v5670_v41, 4 }
 0x3db   : > { %v6292_v31 = vsel %vm12437_vm11, %v11187_v59, -inf  ;;  %v4911_v55 = vcombine.high %v4903_v50, %v4903_v50  ;;  %v5717_v23 = vrot.slane %v5716_v43, 1  ;;  %v5724_v6 = vrot.slane %v5723_v21, 1  ;;  %vm12446_vm11 = vmmov %vm12445_vm3 }
 0x3dc   : > { %v5660_v51 = vmax.f32 %v5658_v45, %v5659_v4  ;;  %v5666_v47 = vrot.slane %v5665_v19, 2  ;;  %v5672_v52 = vmax.f32 %v5670_v41, %v5671_v56  ;;  %v4912_v34 = vcombine.high %v4910_v8, %v4910_v8 }
 0x3dd   : > { %v5775_v15 = vsel %vm12438_vm9, %v4903_v50, -inf  ;;  %v5782_v36 = vsel %vm12439_vm4, %v4911_v55, -inf  ;;  %v5711_v25 = vmax.f32 %v5709_v0, %v5710_v58  ;;  %v5725_v17 = vmax.f32 %v5723_v21, %v5724_v6  ;;  %vm12447_vm9 = vmmov %vm12445_vm3 }
 0x3de   : > { %v5661_v30 = vrot.slane %v5660_v51, 1  ;;  %v5667_v39 = vmax.f32 %v5665_v19, %v5666_v47  ;;  %v5673_v2 = vrot.slane %v5672_v52, 2  ;;  %v5776_v44 = vrot.slane %v5775_v15, 4  ;;  %vm12448_vm4 = vmmov %vm12445_vm3 }
 0x3df   : > { %v5783_v54 = vrot.slane %v5782_v36, 4  ;;  %v5789_v59 = vsel %vm12440_vm5, %v4910_v8, -inf  ;;  %v11256_v18 = vsel %vm12441_vm14, %v5725_v17, -inf  ;;  %v5796_v62 = vsel %vm12442_vm10, %v4912_v34, -inf  ;;  %vm12449_vm5 = vmmov %vm12445_vm3 }
 0x3e0   : > { %v5662_v9 = vmax.f32 %v5660_v51, %v5661_v30  ;;  %v5668_v61 = vrot.slane %v5667_v39, 1  ;;  %v5790_v27 = vrot.slane %v5789_v59, 4  ;;  %v5674_v53 = vmax.f32 %v5672_v52, %v5673_v2  ;;  %vm12450_vm14 = vmmov %vm12445_vm3 }
 0x3e1   : > { %v5777_v24 = vmax.f32 %v5775_v15, %v5776_v44  ;;  %v5784_v46 = vmax.f32 %v5782_v36, %v5783_v54  ;;  %v5797_v48 = vrot.slane %v5796_v62, 4  ;;  %v4444_v60 = vadd.f32 %v11193_v29, %v11146_v63 }
 0x3e2   : > { %v5669_v1 = vmax.f32 %v5667_v39, %v5668_v61  ;;  %v6293_v42 = vsel %vm12443_vm12, %v5662_v9, -inf  ;;  %v5791_v38 = vmax.f32 %v5789_v59, %v5790_v27  ;;  %v5675_v12 = vrot.slane %v5674_v53, 1  ;;  %vm12451_vm12 = vmmov %vm12442_vm10 }
 0x3e3   : > { %v6294_v7 = vmax.f32 %v6292_v31, %v6293_v42  ;;  %v5778_v32 = vrot.slane %v5777_v24, 2  ;;  %v5785_v10 = vrot.slane %v5784_v46, 2  ;;  %v5798_v28 = vmax.f32 %v5796_v62, %v5797_v48 }
 0x3e4   : > { %v11261_v0 = vsel %vm12444_vm6, %v5669_v1, -inf  ;;  %v5792_v20 = vrot.slane %v5791_v38, 2  ;;  %v5718_v45 = vmax.f32 %v5716_v43, %v5717_v23  ;;  %v5676_v8 = vmax.f32 %v5674_v53, %v5675_v12  ;;  %vm12452_vm6 = vmmov %vm12442_vm10 }
 0x3e5   : > { %v6297_v3 = vmax.f32 %v11261_v0, %v11256_v18  ;;  %v6506_v41 = vsel %vm6491_vm13, %v6294_v7, %v6505_v14  ;;  %v5779_v50 = vmax.f32 %v5777_v24, %v5778_v32  ;;  %v5786_v58 = vmax.f32 %v5784_v46, %v5785_v10 }
 0x3e6   : > { %6552 = vst.msk [vmem:[%s11045_s14 + $0x10] sm:$0xff] %vm12445_vm3, %v6506_v41  ;;  %v11270_v21 = vmax.f32 %v5791_v38, %v5792_v20  ;;  %v4538_v4 = vmax.f32 %v4444_v60, 0.0  ;;  %v11275_v19 = vmax.f32 %v11182_v22, %v5703_v49  ;;  %v11278_v63 = vsel %vm12446_vm11, %v5690_v37, -inf  ;;  %vm12453_vm3 = vmmov %vm12452_vm6 }
 0x3e7   : > { %v5799_v43 = vrot.slane %v5798_v28, 2  ;;  %v4455_v14 = vadd.f32 %v11193_v29, %v11149_v26  ;;  %v5780_v56 = vrot.slane %v5779_v50, 1  ;;  %v5787_v31 = vrot.slane %v5786_v58, 1  ;;  %vm12454_vm11 = vmmov %vm12453_vm3 }
 0x3e8   : > { %v4863_v55 = vcombine.high %v4538_v4, %v4538_v4  ;;  %v4447_v23 = vadd.f32 %v11193_v29, %v11152_v5  ;;  %v11285_v6 = vsel %vm12447_vm9, %v5697_v57, -inf  ;;  %v11288_v51 = vsel %vm12448_vm4, %v5711_v25, -inf  ;;  %vm12455_vm9 = vmmov %vm12453_vm3 }
 0x3e9   : > { %v4870_v22 = vrot.slane %v4538_v4, %v10890_v40  ;;  %v4541_v49 = vmax.f32 %v4455_v14, 0.0  ;;  %v11292_v37 = vsel %vm12449_vm5, %v5718_v45, -inf  ;;  %v5794_v26 = vrot.slane %v11270_v21, 1  ;;  %vm12456_vm4 = vmmov %vm12453_vm3 }
 0x3ea   : > { %v4877_v47 = vrot.slane %v4863_v55, %v10890_v40  ;;  %v11297_v52 = vsel %vm12450_vm14, %v5676_v8, -inf  ;;  %v11299_v5 = vmax.f32 %v5798_v28, %v5799_v43  ;;  %v11302_v36 = vmax.f32 %v5779_v50, %v5780_v56  ;;  %vm12457_vm5 = vmmov %vm12453_vm3 }
 0x3eb   : > { %v4878_v57 = vcombine.high %v4870_v22, %v4870_v22  ;;  %v5726_v34 = vsel %vm12442_vm10, %v4870_v22, -inf  ;;  %v4913_v15 = vcombine.high %v4541_v49, %v4541_v49  ;;  %v11304_v25 = vmax.f32 %v5786_v58, %v5787_v31  ;;  %vm12458_vm10 = vmmov %vm12450_vm14 }
 0x3ec   : > { %v4879_v17 = vcombine.high %v4877_v47, %v4877_v47  ;;  %v11306_v30 = vmax.f32 %v4447_v23, 0.0  ;;  %v5727_v39 = vrot.slane %v5726_v34, 4  ;;  %v5740_v44 = vsel %vm12452_vm6, %v4877_v47, -inf  ;;  %vm12460_vm6 = vmmov %vm12458_vm10 }
 0x3ed   : > { %v5733_v2 = vsel %vm12451_vm12, %v4878_v57, -inf  ;;  %v4920_v54 = vrot.slane %v4541_v49, %v10890_v40  ;;  %v5741_v9 = vrot.slane %v5740_v44, 4  ;;  %v4927_v27 = vrot.slane %v4913_v15, %v10890_v40  ;;  %vm12459_vm12 = vmmov %vm12458_vm10 }
 0x3ee   : > { %v5734_v59 = vrot.slane %v5733_v2, 4  ;;  %v5747_v61 = vsel %vm12453_vm3, %v4879_v17, -inf  ;;  %v5728_v53 = vmax.f32 %v5726_v34, %v5727_v39  ;;  %vm12461_vm3 = vmmov %vm12460_vm6  ;;  %v4887_v0 = vrot.slane %v11306_v30, %v10890_v40 }
 0x3ef   : > { %v5748_v24 = vrot.slane %v5747_v61, 4  ;;  %v4928_v46 = vcombine.high %v4920_v54, %v4920_v54  ;;  %v5803_v62 = vsel %vm12454_vm11, %v4920_v54, -inf  ;;  %v5742_v42 = vmax.f32 %v5740_v44, %v5741_v9  ;;  %vm12462_vm11 = vmmov %vm12461_vm3 }
 0x3f0   : > { %v5735_v1 = vmax.f32 %v5733_v2, %v5734_v59  ;;  %v4929_v38 = vcombine.high %v4927_v27, %v4927_v27  ;;  %v5804_v48 = vrot.slane %v5803_v62, 4  ;;  %v5729_v12 = vrot.slane %v5728_v53, 2 }
 0x3f1   : > { %v5749_v7 = vmax.f32 %v5747_v61, %v5748_v24  ;;  %v5810_v32 = vsel %vm12455_vm9, %v4928_v46, -inf  ;;  %v5817_v10 = vsel %vm12456_vm4, %v4927_v27, -inf  ;;  %v5743_v28 = vrot.slane %v5742_v42, 2  ;;  %vm12463_vm9 = vmmov %vm12461_vm3 }
 0x3f2   : > { %v5736_v20 = vrot.slane %v5735_v1, 2  ;;  %v5805_v60 = vmax.f32 %v5803_v62, %v5804_v48  ;;  %v5811_v45 = vrot.slane %v5810_v32, 4  ;;  %v5730_v41 = vmax.f32 %v5728_v53, %v5729_v12 }
 0x3f3   : > { %v5750_v50 = vrot.slane %v5749_v7, 2  ;;  %v5818_v8 = vrot.slane %v5817_v10, 4  ;;  %v5824_v58 = vsel %vm12457_vm5, %v4929_v38, -inf  ;;  %v5744_v43 = vmax.f32 %v5742_v42, %v5743_v28  ;;  %vm12464_vm5 = vmmov %vm12456_vm4 }
 0x3f4   : > { %v5737_v4 = vmax.f32 %v5735_v1, %v5736_v20  ;;  %v5806_v14 = vrot.slane %v5805_v60, 2  ;;  %v5812_v56 = vmax.f32 %v5810_v32, %v5811_v45  ;;  %v5731_v31 = vrot.slane %v5730_v41, 1 }
 0x3f5   : > { %v5751_v55 = vmax.f32 %v5749_v7, %v5750_v50  ;;  %v5819_v23 = vmax.f32 %v5817_v10, %v5818_v8  ;;  %v5825_v22 = vrot.slane %v5824_v58, 4  ;;  %v5745_v57 = vrot.slane %v5744_v43, 1 }
 0x3f6   : > { %v5738_v47 = vrot.slane %v5737_v4, 1  ;;  %v5807_v34 = vmax.f32 %v5805_v60, %v5806_v14  ;;  %v5813_v15 = vrot.slane %v5812_v56, 2  ;;  %v5732_v39 = vmax.f32 %v5730_v41, %v5731_v31 }
 0x3f7   : > { %v5752_v2 = vrot.slane %v5751_v55, 1  ;;  %v5820_v44 = vrot.slane %v5819_v23, 2  ;;  %v5826_v54 = vmax.f32 %v5824_v58, %v5825_v22  ;;  %v5801_v9 = vrot.slane %v11299_v5, 1 }
 0x3f8   : > { %v5739_v61 = vmax.f32 %v5737_v4, %v5738_v47  ;;  %v5746_v27 = vmax.f32 %v5744_v43, %v5745_v57  ;;  %v5814_v53 = vmax.f32 %v5812_v56, %v5813_v15  ;;  %v6299_v62 = vsel %vm12450_vm14, %v5732_v39, -inf  ;;  %vm12465_vm14 = vmmov %vm12461_vm3 }
 0x3f9   : > { %v5753_v46 = vmax.f32 %v5751_v55, %v5752_v2  ;;  %v5808_v1 = vrot.slane %v5807_v34, 1  ;;  %v5827_v42 = vrot.slane %v5826_v54, 2  ;;  %v6300_v38 = vmax.f32 %v11297_v52, %v6299_v62 }
 0x3fa   : > { %v11317_v49 = vpop.f32.mrb[24].mxu1  ;;  %v6302_v48 = vsel %vm12458_vm10, %v5739_v61, -inf  ;;  %v6305_v12 = vsel %vm12459_vm12, %v5746_v27, -inf  ;;  %v5821_v7 = vmax.f32 %v5819_v23, %v5820_v44  ;;  %v5795_v32 = vmax.f32 %v11270_v21, %v5794_v26  ;;  %vm12466_vm10 = vmmov %vm12456_vm4 }
 0x3fb   : > { %v11319_v17 = vpop.f32.mrb[25].mxu1  ;;  %v6303_v10 = vmax.f32 %v11205_v35, %v6302_v48  ;;  %v6306_v20 = vmax.f32 %v11278_v63, %v6305_v12  ;;  %v6308_v28 = vsel %vm12460_vm6, %v5753_v46, -inf  ;;  %v6507_v52 = vsel %vm6479_vm7, %v6300_v38, %v6297_v3  ;;  %vm12467_vm12 = vmmov %vm12461_vm3 }
 0x3fc   : > { %v11321_v59 = vpop.f32.mrb[26].mxu1  ;;  %v6309_v60 = vmax.f32 %v11285_v6, %v6308_v28  ;;  %v5815_v45 = vrot.slane %v5814_v53, 1  ;;  %v5828_v41 = vmax.f32 %v5826_v54, %v5827_v42  ;;  %v11342_v50 = vmax.f32 %v11299_v5, %v5801_v9  ;;  %vm12468_vm6 = vmmov %vm12461_vm3 }
 0x3fd   : > { %v11324_v24 = vpop.f32.mrb[27].mxu1  ;;  %v11346_v21 = vsel %vm12461_vm3, %v11302_v36, -inf  ;;  %v6508_v35 = vsel %vm6481_vm1, %v6303_v10, %v6507_v52  ;;  %v4880_v63 = vcombine.high %v11306_v30, %v11306_v30  ;;  %v5809_v26 = vmax.f32 %v5807_v34, %v5808_v1  ;;  %vm12469_vm3 = vmmov %vm12456_vm4 }
 0x3fe   : > { %v6509_v6 = vsel %vm6483_vm8, %v6306_v20, %v6508_v35  ;;  %v5822_v18 = vrot.slane %v5821_v7, 1  ;;  %v11356_v3 = vsel %vm12462_vm11, %v11304_v25, -inf  ;;  %v11359_v5 = vsel %vm12463_vm9, %v5795_v32, -inf  ;;  %vm12470_vm11 = vmmov %vm12469_vm3 }
 0x3ff   : > { %v4894_v36 = vrot.slane %v4880_v63, %v10890_v40  ;;  %v11363_v8 = vsel %vm6485_vm2, %v6309_v60, %v6509_v6  ;;  %v5816_v58 = vmax.f32 %v5814_v53, %v5815_v45  ;;  %v5829_v4 = vrot.slane %v5828_v41, 1  ;;  %vm12471_vm9 = vmmov %vm12469_vm3 }
 0x400   : > { %v4895_v43 = vcombine.high %v4887_v0, %v4887_v0  ;;  %v5754_v14 = vsel %vm12456_vm4, %v4887_v0, -inf  ;;  %v4468_v25 = vadd.f32 %v11193_v29, %v11226_v13  ;;  %v4460_v31 = vadd.f32 %v11193_v29, %v11230_v33  ;;  %vm12472_vm4 = vmmov %vm12469_vm3 }
 0x401   : > { %v5755_v56 = vrot.slane %v5754_v14, 4  ;;  %v5768_v30 = vsel %vm12464_vm5, %v4894_v36, -inf  ;;  %v5823_v55 = vmax.f32 %v5821_v7, %v5822_v18  ;;  %v11372_v23 = vsel %vm12465_vm14, %v5809_v26, -inf  ;;  %vm12473_vm5 = vmmov %vm12468_vm6 }
 0x402   : > { %v5761_v22 = vsel %vm12466_vm10, %v4895_v43, -inf  ;;  %v5769_v47 = vrot.slane %v5768_v30, 4  ;;  %v4544_v15 = vmax.f32 %v4468_v25, 0.0  ;;  %v4542_v39 = vmax.f32 %v4460_v31, 0.0  ;;  %vm12474_vm14 = vmmov %vm12473_vm5 }
 0x403   : > { %v5756_v57 = vmax.f32 %v5754_v14, %v5755_v56  ;;  %v5762_v34 = vrot.slane %v5761_v22, 4  ;;  %v11375_v2 = vmax.f32 %v5828_v41, %v5829_v4  ;;  %v11378_v44 = vsel %vm12467_vm12, %v5816_v58, -inf  ;;  %vm12475_vm10 = vmmov %vm12469_vm3 }
 0x404   : > { %v5770_v13 = vmax.f32 %v5768_v30, %v5769_v47  ;;  %v6310_v33 = vsel %vm12468_vm6, %v11275_v19, -inf  ;;  %v4964_v61 = vcombine.high %v4544_v15, %v4544_v15  ;;  %v4971_v27 = vrot.slane %v4544_v15, %v10890_v40  ;;  %vm12476_vm12 = vmmov %vm12473_vm5 }
 0x405   : > { %v5757_v54 = vrot.slane %v5756_v57, 2  ;;  %v5763_v9 = vmax.f32 %v5761_v22, %v5762_v34  ;;  %v4930_v46 = vcombine.high %v4542_v39, %v4542_v39  ;;  %v4937_v62 = vrot.slane %v4542_v39, %v10890_v40  ;;  %vm12477_vm6 = vmmov %vm12473_vm5 }
 0x406   : > { %v5771_v53 = vrot.slane %v5770_v13, 2  ;;  %v4471_v1 = vadd.f32 %v11193_v29, %v11235_v11  ;;  %v4978_v48 = vrot.slane %v4964_v61, %v10890_v40  ;;  %v5880_v12 = vsel %vm12469_vm3, %v4971_v27, -inf }
 0x407   : > { %v5758_v42 = vmax.f32 %v5756_v57, %v5757_v54  ;;  %v5764_v38 = vrot.slane %v5763_v9, 2  ;;  %v5881_v19 = vrot.slane %v5880_v12, 4  ;;  %v4944_v32 = vrot.slane %v4930_v46, %v10890_v40 }
 0x408   : > { %v5772_v7 = vmax.f32 %v5770_v13, %v5771_v53  ;;  %v4945_v10 = vcombine.high %v4937_v62, %v4937_v62  ;;  %v4979_v60 = vcombine.high %v4978_v48, %v4978_v48  ;;  %v5887_v52 = vsel %vm12470_vm11, %v4978_v48, -inf  ;;  %vm12478_vm11 = vmmov %vm12473_vm5 }
 0x409   : > { %v5759_v20 = vrot.slane %v5758_v42, 1  ;;  %v5765_v28 = vmax.f32 %v5763_v9, %v5764_v38  ;;  %v5882_v41 = vmax.f32 %v5880_v12, %v5881_v19  ;;  %v5888_v35 = vrot.slane %v5887_v52, 4 }
 0x40a   : > { %v5773_v45 = vrot.slane %v5772_v7, 1  ;;  %v4545_v11 = vmax.f32 %v4471_v1, 0.0  ;;  %v5894_v26 = vsel %vm12471_vm9, %v4979_v60, -inf  ;;  %v5831_v18 = vsel %vm12472_vm4, %v4945_v10, -inf  ;;  %vm12479_vm9 = vmmov %vm12473_vm5 }
 0x40b   : > { %v5760_v63 = vmax.f32 %v5758_v42, %v5759_v20  ;;  %v5766_v6 = vrot.slane %v5765_v28, 1  ;;  %v5883_v36 = vrot.slane %v5882_v41, 2  ;;  %v5889_v58 = vmax.f32 %v5887_v52, %v5888_v35  ;;  %vm12480_vm4 = vmmov %vm12473_vm5 }
 0x40c   : > { %v5774_v0 = vmax.f32 %v5772_v7, %v5773_v45  ;;  %v4946_v4 = vcombine.high %v4944_v32, %v4944_v32  ;;  %v5895_v56 = vrot.slane %v5894_v26, 4  ;;  %v5832_v30 = vrot.slane %v5831_v18, 4 }
 0x40d   : > { %v5767_v43 = vmax.f32 %v5765_v28, %v5766_v6  ;;  %v6311_v14 = vsel %vm12473_vm5, %v5760_v63, -inf  ;;  %v5884_v22 = vmax.f32 %v5882_v41, %v5883_v36  ;;  %v5838_v47 = vsel %vm12475_vm10, %v4944_v32, -inf  ;;  %vm12481_vm5 = vmmov %vm12469_vm3 }
 0x40e   : > { %v6312_v25 = vmax.f32 %v6310_v33, %v6311_v14  ;;  %v6317_v31 = vsel %vm12474_vm14, %v5774_v0, -inf  ;;  %v5890_v15 = vrot.slane %v5889_v58, 2  ;;  %v5833_v39 = vmax.f32 %v5831_v18, %v5832_v30  ;;  %vm12482_vm14 = vmmov %vm12469_vm3 }
 0x40f   : > { %v6314_v57 = vsel %vm12476_vm12, %v5767_v43, -inf  ;;  %v6318_v34 = vmax.f32 %v11292_v37, %v6317_v31  ;;  %v11398_v13 = vsel %vm12477_vm6, %v5823_v55, -inf  ;;  %v5885_v9 = vrot.slane %v5884_v22, 1  ;;  %vm12483_vm10 = vmmov %vm12480_vm4 }
 0x410   : > { %v6315_v54 = vmax.f32 %v11288_v51, %v6314_v57  ;;  %v6511_v33 = vsel %vm6487_vm15, %v6312_v25, %v11363_v8  ;;  %v5834_v61 = vrot.slane %v5833_v39, 2  ;;  %v5839_v27 = vrot.slane %v5838_v47, 4  ;;  %vm12484_vm12 = vmmov %vm12469_vm3 }
 0x411   : > { %v5845_v53 = vsel %vm12469_vm3, %v4946_v4, -inf  ;;  %v4980_v46 = vcombine.high %v4545_v11, %v4545_v11  ;;  %v5886_v37 = vmax.f32 %v5884_v22, %v5885_v9  ;;  %v5896_v1 = vmax.f32 %v5894_v26, %v5895_v56  ;;  %vm12485_vm6 = vmmov %vm12469_vm3 }
 0x412   : > { %v6512_v62 = vsel %vm6489_vm0, %v6315_v54, %v6511_v33  ;;  %v5846_v42 = vrot.slane %v5845_v53, 4  ;;  %v5891_v38 = vmax.f32 %v5889_v58, %v5890_v15  ;;  %v5835_v48 = vmax.f32 %v5833_v39, %v5834_v61  ;;  %vm12486_vm3 = vmmov %vm12480_vm4 }
 0x413   : > { %v6513_v55 = vsel %vm6491_vm13, %v6318_v34, %v6512_v62  ;;  %v5840_v12 = vmax.f32 %v5838_v47, %v5839_v27  ;;  %v11410_v51 = vsel %vm12479_vm9, %v11375_v2, -inf  ;;  %v11413_v8 = vsel %vm12480_vm4, %v5886_v37, -inf  ;;  %vm12488_vm9 = vmmov %vm12481_vm5 }
 0x414   : > { %6553 = vst.msk [vmem:[%s11045_s14 + $0x18] sm:$0xff] %vm12478_vm11, %v6513_v55  ;;  %v5847_v7 = vmax.f32 %v5845_v53, %v5846_v42  ;;  %v4987_v19 = vrot.slane %v4545_v11, %v10890_v40  ;;  %v6342_v32 = vmax.f32 %v11410_v51, %v11413_v8  ;;  %v5836_v10 = vrot.slane %v5835_v48, 1  ;;  %vm12487_vm11 = vmmov %vm12486_vm3 }
 0x415   : > { %v5841_v20 = vrot.slane %v5840_v12, 2  ;;  %v4463_v28 = vadd.f32 %v11193_v29, %v11237_v16  ;;  %v5897_v52 = vrot.slane %v5896_v1, 2  ;;  %v4994_v2 = vrot.slane %v4980_v46, %v10890_v40  ;;  %vm12489_vm4 = vmmov %vm12481_vm5 }
 0x416   : > { %v5848_v45 = vrot.slane %v5847_v7, 2  ;;  %v4995_v41 = vcombine.high %v4987_v19, %v4987_v19  ;;  %v5892_v63 = vrot.slane %v5891_v38, 1  ;;  %v5837_v6 = vmax.f32 %v5835_v48, %v5836_v10 }
 0x417   : > { %v5842_v11 = vmax.f32 %v5840_v12, %v5841_v20  ;;  %v5901_v26 = vsel %vm12481_vm5, %v4987_v19, -inf  ;;  %v4996_v36 = vcombine.high %v4994_v2, %v4994_v2  ;;  %v5915_v30 = vsel %vm12484_vm12, %v4994_v2, -inf  ;;  %vm12490_vm5 = vmmov %vm12486_vm3 }
 0x418   : > { %v5849_v0 = vmax.f32 %v5847_v7, %v5848_v45  ;;  %v5902_v58 = vrot.slane %v5901_v26, 4  ;;  %v5908_v16 = vsel %vm12482_vm14, %v4995_v41, -inf  ;;  %v6320_v14 = vsel %vm12483_vm10, %v5837_v6, -inf  ;;  %vm12491_vm14 = vmmov %vm12489_vm4 }
 0x419   : > { %v5843_v43 = vrot.slane %v5842_v11, 1  ;;  %v5909_v56 = vrot.slane %v5908_v16, 4  ;;  %v6321_v31 = vmax.f32 %v11346_v21, %v6320_v14  ;;  %v5916_v47 = vrot.slane %v5915_v30, 4  ;;  %vm12492_vm10 = vmmov %vm12486_vm3 }
 0x41a   : > { %v11420_v60 = vpop.f32.mrb[28].mxu1  ;;  %v5850_v25 = vrot.slane %v5849_v0, 1  ;;  %v5903_v22 = vmax.f32 %v5901_v26, %v5902_v58  ;;  %v5922_v15 = vsel %vm12485_vm6, %v4996_v36, -inf  ;;  %v4543_v39 = vmax.f32 %v4463_v28, 0.0  ;;  %vm12493_vm12 = vmmov %vm12489_vm4 }
 0x41b   : > { %v11423_v35 = vpop.f32.mrb[29].mxu1  ;;  %v5844_v57 = vmax.f32 %v5842_v11, %v5843_v43  ;;  %v5910_v34 = vmax.f32 %v5908_v16, %v5909_v56  ;;  %v5917_v9 = vmax.f32 %v5915_v30, %v5916_v47  ;;  %v5923_v61 = vrot.slane %v5922_v15, 4  ;;  %vm12494_vm6 = vmmov %vm12486_vm3 }
 0x41c   : > { %v11426_v18 = vpop.f32.mrb[30].mxu1  ;;  %v5851_v54 = vmax.f32 %v5849_v0, %v5850_v25  ;;  %v5904_v33 = vrot.slane %v5903_v22, 2  ;;  %v4947_v46 = vcombine.high %v4543_v39, %v4543_v39  ;;  %v4954_v62 = vrot.slane %v4543_v39, %v10890_v40 }
 0x41d   : > { %v11429_v4 = vpop.f32.mrb[31].mxu1  ;;  %v6323_v27 = vsel %vm12486_vm3, %v5844_v57, -inf  ;;  %v5911_v53 = vrot.slane %v5910_v34, 2  ;;  %v5918_v55 = vrot.slane %v5917_v9, 2  ;;  %v11439_v48 = vmax.f32 %v5896_v1, %v5897_v52  ;;  %vm12495_vm3 = vmmov %vm12489_vm4 }
 0x41e   : > { %v6324_v37 = vmax.f32 %v11356_v3, %v6323_v27  ;;  %v6326_v21 = vsel %vm12487_vm11, %v5851_v54, -inf  ;;  %v5905_v42 = vmax.f32 %v5903_v22, %v5904_v33  ;;  %v5924_v7 = vmax.f32 %v5922_v15, %v5923_v61  ;;  %vm12496_vm11 = vmmov %vm12490_vm5 }
 0x41f   : > { %v6327_v12 = vmax.f32 %v11359_v5, %v6326_v21  ;;  %v4961_v19 = vrot.slane %v4947_v46, %v10890_v40  ;;  %v5893_v10 = vmax.f32 %v5891_v38, %v5892_v63  ;;  %v11444_v28 = vmax.f32 %v5910_v34, %v5911_v53 }
 0x420   : > { %v6514_v20 = vsel %vm6479_vm7, %v6324_v37, %v6321_v31  ;;  %v4962_v45 = vcombine.high %v4954_v62, %v4954_v62  ;;  %v5906_v2 = vrot.slane %v5905_v42, 1  ;;  %v5925_v41 = vrot.slane %v5924_v7, 2 }
 0x421   : > { %v4963_v3 = vcombine.high %v4961_v19, %v4961_v19  ;;  %v5852_v6 = vsel %vm12488_vm9, %v4954_v62, -inf  ;;  %v11447_v11 = vmax.f32 %v5917_v9, %v5918_v55  ;;  %v6328_v5 = vsel %vm12490_vm5, %v11342_v50, -inf  ;;  %vm12497_vm9 = vmmov %vm12490_vm5 }
 0x422   : > { %v5853_v1 = vrot.slane %v5852_v6, 4  ;;  %v5859_v52 = vsel %vm12489_vm4, %v4962_v45, -inf  ;;  %v5899_v38 = vrot.slane %v11439_v48, 1  ;;  %v5926_v63 = vmax.f32 %v5924_v7, %v5925_v41  ;;  %vm12498_vm4 = vmmov %vm12495_vm3 }
 0x423   : > { %v5860_v26 = vrot.slane %v5859_v52, 4  ;;  %v5866_v0 = vsel %vm12491_vm14, %v4961_v19, -inf  ;;  %v11455_v36 = vsel %vm12492_vm10, %v5893_v10, -inf  ;;  %v5913_v58 = vrot.slane %v11444_v28, 1  ;;  %vm12499_vm5 = vmmov %vm12495_vm3 }
 0x424   : > { %v5854_v16 = vmax.f32 %v5852_v6, %v5853_v1  ;;  %v5867_v43 = vrot.slane %v5866_v0, 4  ;;  %v11458_v14 = vmax.f32 %v5905_v42, %v5906_v2  ;;  %v5927_v56 = vrot.slane %v5926_v63, 1  ;;  %vm12500_vm14 = vmmov %vm12494_vm6 }
 0x425   : > { %v5861_v30 = vmax.f32 %v5859_v52, %v5860_v26  ;;  %v5873_v25 = vsel %vm12493_vm12, %v4963_v3, -inf  ;;  %v5920_v50 = vrot.slane %v11447_v11, 1  ;;  %v6515_v15 = vsel %vm6481_vm1, %v6327_v12, %v6514_v20  ;;  %vm12501_vm10 = vmmov %vm12494_vm6 }
 0x426   : > { %v5855_v31 = vrot.slane %v5854_v16, 2  ;;  %v5868_v22 = vmax.f32 %v5866_v0, %v5867_v43  ;;  %v5874_v47 = vrot.slane %v5873_v25, 4  ;;  %v5928_v57 = vmax.f32 %v5926_v63, %v5927_v56  ;;  %vm12502_vm12 = vmmov %vm12495_vm3 }
 0x427   : > { %v5862_v34 = vrot.slane %v5861_v30, 2  ;;  %v4484_v39 = vadd.f32 %v11193_v29, %v11317_v49  ;;  %v4476_v61 = vadd.f32 %v11193_v29, %v11319_v17  ;;  %v4487_v62 = vadd.f32 %v11193_v29, %v11321_v59 }
 0x428   : > { %v5856_v54 = vmax.f32 %v5854_v16, %v5855_v31  ;;  %v5869_v33 = vrot.slane %v5868_v22, 2  ;;  %v5875_v9 = vmax.f32 %v5873_v25, %v5874_v47  ;;  %v11468_v46 = vsel %vm12494_vm6, %v5928_v57, -inf  ;;  %vm12503_vm6 = vmmov %vm12495_vm3 }
 0x429   : > { %v5863_v27 = vmax.f32 %v5861_v30, %v5862_v34  ;;  %v4548_v53 = vmax.f32 %v4484_v39, 0.0  ;;  %v4546_v55 = vmax.f32 %v4476_v61, 0.0  ;;  %v4549_v19 = vmax.f32 %v4487_v62, 0.0 }
 0x42a   : > { %v5857_v37 = vrot.slane %v5856_v54, 1  ;;  %v5870_v21 = vmax.f32 %v5868_v22, %v5869_v33  ;;  %v5876_v42 = vrot.slane %v5875_v9, 2 }
 0x42b   : > { %v5864_v12 = vrot.slane %v5863_v27, 1  ;;  %v5031_v49 = vcombine.high %v4548_v53, %v4548_v53  ;;  %v5038_v7 = vrot.slane %v4548_v53, %v10890_v40  ;;  %v4997_v45 = vcombine.high %v4546_v55, %v4546_v55 }
 0x42c   : > { %v5858_v10 = vmax.f32 %v5856_v54, %v5857_v37  ;;  %v5871_v20 = vrot.slane %v5870_v21, 1  ;;  %v5877_v17 = vmax.f32 %v5875_v9, %v5876_v42  ;;  %v5004_v33 = vrot.slane %v4546_v55, %v10890_v40 }
 0x42d   : > { %v5865_v2 = vmax.f32 %v5863_v27, %v5864_v12  ;;  %v5045_v41 = vrot.slane %v5031_v49, %v10890_v40  ;;  %v5046_v3 = vcombine.high %v5038_v7, %v5038_v7  ;;  %v5978_v6 = vsel %vm12495_vm3, %v5038_v7, -inf  ;;  %vm12504_vm3 = vmmov %vm12497_vm9 }
 0x42e   : > { %v5872_v59 = vmax.f32 %v5870_v21, %v5871_v20  ;;  %v5878_v1 = vrot.slane %v5877_v17, 1  ;;  %v6329_v52 = vsel %vm12496_vm11, %v5858_v10, -inf  ;;  %v5979_v63 = vrot.slane %v5978_v6, 4  ;;  %vm12505_vm11 = vmmov %vm12498_vm4 }
 0x42f   : > { %v6330_v26 = vmax.f32 %v6328_v5, %v6329_v52  ;;  %v6332_v0 = vsel %vm12497_vm9, %v5865_v2, -inf  ;;  %v5985_v16 = vsel %vm12498_vm4, %v5046_v3, -inf  ;;  %v5992_v43 = vsel %vm12499_vm5, %v5045_v41, -inf  ;;  %vm12506_vm9 = vmmov %vm12504_vm3 }
 0x430   : > { %v5879_v56 = vmax.f32 %v5877_v17, %v5878_v1  ;;  %v6333_v30 = vmax.f32 %v11372_v23, %v6332_v0  ;;  %v6335_v25 = vsel %vm12500_vm14, %v5872_v59, -inf  ;;  %v5980_v31 = vmax.f32 %v5978_v6, %v5979_v63  ;;  %vm12507_vm5 = vmmov %vm12504_vm3 }
 0x431   : > { %v6336_v22 = vmax.f32 %v11378_v44, %v6335_v25  ;;  %v6516_v47 = vsel %vm6483_vm8, %v6330_v26, %v6515_v15  ;;  %v5986_v57 = vrot.slane %v5985_v16, 4  ;;  %v5993_v34 = vrot.slane %v5992_v43, 4  ;;  %vm12508_vm14 = vmmov %vm12504_vm3 }
 0x432   : > { %v6338_v5 = vsel %vm12501_vm10, %v5879_v56, -inf  ;;  %v6517_v39 = vsel %vm6485_vm2, %v6333_v30, %v6516_v47  ;;  %v5981_v54 = vrot.slane %v5980_v31, 2  ;;  %v5011_v44 = vrot.slane %v4997_v45, %v10890_v40  ;;  %vm12509_vm10 = vmmov %vm12498_vm4 }
 0x433   : > { %v6339_v9 = vmax.f32 %v11398_v13, %v6338_v5  ;;  %v6518_v23 = vsel %vm6487_vm15, %v6336_v22, %v6517_v39  ;;  %v5987_v61 = vmax.f32 %v5985_v16, %v5986_v57  ;;  %v5994_v27 = vmax.f32 %v5992_v43, %v5993_v34 }
 0x434   : > { %v5982_v53 = vmax.f32 %v5980_v31, %v5981_v54  ;;  %v5012_v15 = vcombine.high %v5004_v33, %v5004_v33  ;;  %v5929_v62 = vsel %vm12502_vm12, %v5004_v33, -inf  ;;  %v5013_v49 = vcombine.high %v5011_v44, %v5011_v44  ;;  %vm12510_vm12 = vmmov %vm12498_vm4 }
 0x435   : > { %v6519_v37 = vsel %vm6489_vm0, %v6339_v9, %v6518_v23  ;;  %v5988_v21 = vrot.slane %v5987_v61, 2  ;;  %v5995_v42 = vrot.slane %v5994_v27, 2  ;;  %v5930_v12 = vrot.slane %v5929_v62, 4 }
 0x436   : > { %v6520_v13 = vsel %vm6491_vm13, %v6342_v32, %v6519_v37  ;;  %v5983_v55 = vrot.slane %v5982_v53, 1  ;;  %v5936_v7 = vsel %vm12503_vm6, %v5012_v15, -inf  ;;  %v5943_v41 = vsel %vm12505_vm11, %v5013_v49, -inf  ;;  %vm12511_vm6 = vmmov %vm12498_vm4 }
 0x437   : > { %6554 = vst.msk [vmem:[%s11045_s14 + $0x20] sm:$0xff] %vm12504_vm3, %v6520_v13  ;;  %v5989_v10 = vmax.f32 %v5987_v61, %v5988_v21  ;;  %v5996_v20 = vmax.f32 %v5994_v27, %v5995_v42  ;;  %v5931_v17 = vmax.f32 %v5929_v62, %v5930_v12  ;;  %v5937_v45 = vrot.slane %v5936_v7, 4  ;;  %vm12512_vm11 = vmmov %vm12504_vm3 }
 0x438   : > { %v5984_v2 = vmax.f32 %v5982_v53, %v5983_v55  ;;  %v5047_v3 = vcombine.high %v4549_v19, %v4549_v19  ;;  %v5054_v6 = vrot.slane %v4549_v19, %v10890_v40  ;;  %v5944_v52 = vrot.slane %v5943_v41, 4 }
 0x439   : > { %v5990_v59 = vrot.slane %v5989_v10, 1  ;;  %v5997_v51 = vrot.slane %v5996_v20, 1  ;;  %v5932_v8 = vrot.slane %v5931_v17, 2  ;;  %v5938_v32 = vmax.f32 %v5936_v7, %v5937_v45 }
 0x43a   : > { %v11501_v1 = vsel %vm12506_vm9, %v5984_v2, -inf  ;;  %v5061_v63 = vrot.slane %v5047_v3, %v10890_v40  ;;  %v5062_v26 = vcombine.high %v5054_v6, %v5054_v6  ;;  %v5945_v25 = vmax.f32 %v5943_v41, %v5944_v52  ;;  %vm12513_vm9 = vmmov %vm12504_vm3 }
 0x43b   : > { %v5991_v0 = vmax.f32 %v5989_v10, %v5990_v59  ;;  %v5998_v16 = vmax.f32 %v5996_v20, %v5997_v51  ;;  %v6360_v43 = vmax.f32 %v11468_v46, %v11501_v1  ;;  %v5933_v56 = vmax.f32 %v5931_v17, %v5932_v8 }
 0x43c   : > { %v5939_v30 = vrot.slane %v5938_v32, 2  ;;  %v5063_v19 = vcombine.high %v5061_v63, %v5061_v63  ;;  %v5999_v31 = vsel %vm12498_vm4, %v5054_v6, -inf  ;;  %v5946_v39 = vrot.slane %v5945_v25, 2  ;;  %vm12514_vm4 = vmmov %vm12504_vm3 }
 0x43d   : > { %v11508_v22 = vsel %vm12507_vm5, %v5998_v16, -inf  ;;  %v5934_v47 = vrot.slane %v5933_v56, 1  ;;  %v11511_v57 = vsel %vm12508_vm14, %v5991_v0, -inf  ;;  %v6000_v34 = vrot.slane %v5999_v31, 4  ;;  %vm12515_vm5 = vmmov %vm12504_vm3 }
 0x43e   : > { %v5940_v5 = vmax.f32 %v5938_v32, %v5939_v30  ;;  %v6006_v54 = vsel %vm12509_vm10, %v5062_v26, -inf  ;;  %v6013_v33 = vsel %vm12510_vm12, %v5061_v63, -inf  ;;  %v5947_v44 = vmax.f32 %v5945_v25, %v5946_v39  ;;  %vm12516_vm14 = vmmov %vm12511_vm6 }
 0x43f   : > { %v5935_v9 = vmax.f32 %v5933_v56, %v5934_v47  ;;  %v6001_v23 = vmax.f32 %v5999_v31, %v6000_v34  ;;  %v6007_v61 = vrot.slane %v6006_v54, 4  ;;  %v6014_v27 = vrot.slane %v6013_v33, 4  ;;  %vm12517_vm10 = vmmov %vm12504_vm3 }
 0x440   : > { %v5941_v53 = vrot.slane %v5940_v5, 1  ;;  %v6020_v15 = vsel %vm12511_vm6, %v5063_v19, -inf  ;;  %v4479_v62 = vadd.f32 %v11193_v29, %v11324_v24  ;;  %v5948_v55 = vrot.slane %v5947_v44, 1  ;;  %vm12518_vm12 = vmmov %vm12504_vm3 }
 0x441   : > { %v11519_v37 = vsel %vm12504_vm3, %v5935_v9, -inf  ;;  %v6002_v21 = vrot.slane %v6001_v23, 2  ;;  %v6008_v42 = vmax.f32 %v6006_v54, %v6007_v61  ;;  %v6015_v12 = vmax.f32 %v6013_v33, %v6014_v27  ;;  %vm12519_vm3 = vmmov %vm12511_vm6 }
 0x442   : > { %v5942_v13 = vmax.f32 %v5940_v5, %v5941_v53  ;;  %v6363_v49 = vmax.f32 %v11519_v37, %v11511_v57  ;;  %v6021_v7 = vrot.slane %v6020_v15, 4  ;;  %v5914_v20 = vmax.f32 %v11444_v28, %v5913_v58 }
 0x443   : > { %v11523_v10 = vpop.f32.mrb[32].mxu1  ;;  %v6003_v17 = vmax.f32 %v6001_v23, %v6002_v21  ;;  %v6009_v29 = vrot.slane %v6008_v42, 2  ;;  %v4547_v24 = vmax.f32 %v4479_v62, 0.0  ;;  %v5900_v2 = vmax.f32 %v11439_v48, %v5899_v38 }
 0x444   : > { %v11528_v45 = vpop.f32.mrb[33].mxu1  ;;  %v5949_v41 = vmax.f32 %v5947_v44, %v5948_v55  ;;  %v11534_v3 = vsel %vm12512_vm11, %v5942_v13, -inf  ;;  %v6022_v6 = vmax.f32 %v6020_v15, %v6021_v7  ;;  %v5921_v28 = vmax.f32 %v11447_v11, %v5920_v50  ;;  %vm12520_vm11 = vmmov %vm12519_vm3  ;;  %v11577_v15 = vld [vmem:[%s11880_s4] ss:$0 sm:$0xff] }
 0x445   : > { %v11536_v59 = vpop.f32.mrb[34].mxu1  ;;  %v11543_v58 = vsel %vm12513_vm9, %v11458_v14, -inf  ;;  %v6366_v51 = vmax.f32 %v11534_v3, %v11508_v22  ;;  %v6016_v8 = vrot.slane %v6015_v12, 2  ;;  %v5014_v52 = vcombine.high %v4547_v24, %v4547_v24  ;;  %vm12521_vm9 = vmmov %vm12514_vm4 }
 0x446   : > { %v11547_v48 = vpop.f32.mrb[35].mxu1  ;;  %v11550_v38 = vsel %vm12514_vm4, %v5949_v41, -inf  ;;  %v6023_v32 = vrot.slane %v6022_v6, 2  ;;  %v5021_v63 = vrot.slane %v4547_v24, %v10890_v40  ;;  %v11554_v26 = vsel %vm12515_vm5, %v5914_v20, -inf  ;;  %vm12522_vm4 = vmmov %vm12519_vm3 }
 0x447   : > { %v6345_v11 = vmax.f32 %v11455_v36, %v11550_v38  ;;  %v6004_v14 = vrot.slane %v6003_v17, 1  ;;  %v11558_v50 = vmax.f32 %v6008_v42, %v6009_v29  ;;  %v5028_v16 = vrot.slane %v5014_v52, %v10890_v40  ;;  %vm12523_vm5 = vmmov %vm12519_vm3 }
 0x448   : > { %v6024_v0 = vmax.f32 %v6022_v6, %v6023_v32  ;;  %v5029_v56 = vcombine.high %v5021_v63, %v5021_v63  ;;  %v5950_v30 = vsel %vm12516_vm14, %v5021_v63, -inf  ;;  %v11563_v25 = vsel %vm12517_vm10, %v5921_v28, -inf  ;;  %vm12524_vm14 = vmmov %vm12519_vm3 }
 0x449   : > { %v11565_v19 = vmax.f32 %v6015_v12, %v6016_v8  ;;  %v5951_v31 = vrot.slane %v5950_v30, 4  ;;  %v6346_v47 = vsel %vm12518_vm12, %v5900_v2, -inf  ;;  %v5030_v5 = vcombine.high %v5028_v16, %v5028_v16  ;;  %vm12525_vm10 = vmmov %vm12521_vm9 }
 0x44a   : > { %v6025_v34 = vrot.slane %v6024_v0, 1  ;;  %v5957_v39 = vsel %vm12511_vm6, %v5029_v56, -inf  ;;  %v5964_v54 = vsel %vm12519_vm3, %v5028_v16, -inf  ;;  %v11570_v33 = vmax.f32 %v6003_v17, %v6004_v14  ;;  %vm12526_vm12 = vmmov %vm12521_vm9 }
 0x44b   : > { %v6011_v9 = vrot.slane %v11558_v50, 1  ;;  %v5952_v23 = vmax.f32 %v5950_v30, %v5951_v31  ;;  %v5958_v61 = vrot.slane %v5957_v39, 4  ;;  %v5965_v53 = vrot.slane %v5964_v54, 4  ;;  %vm12527_vm6 = vmmov %vm12519_vm3 }
 0x44c   : > { %v6026_v27 = vmax.f32 %v6024_v0, %v6025_v34  ;;  %v5971_v44 = vsel %vm12520_vm11, %v5030_v5, -inf  ;;  %v4500_v62 = vadd.f32 %v11577_v15, %v11420_v60  ;;  %v4492_v13 = vadd.f32 %v11577_v15, %v11423_v35  ;;  %vm12528_vm3 = vmmov %vm12521_vm9 }
 0x44d   : > { %v5953_v21 = vrot.slane %v5952_v23, 2  ;;  %v5959_v42 = vmax.f32 %v5957_v39, %v5958_v61  ;;  %v5972_v12 = vrot.slane %v5971_v44, 4  ;;  %v6018_v55 = vrot.slane %v11565_v19, 1  ;;  %vm12529_vm11 = vmmov %vm12528_vm3 }
 0x44e   : > { %v5966_v7 = vmax.f32 %v5964_v54, %v5965_v53  ;;  %v4552_v20 = vmax.f32 %v4500_v62, 0.0  ;;  %v11585_v17 = vsel %vm12521_vm9, %v6026_v27, -inf  ;;  %v4550_v41 = vmax.f32 %v4492_v13, 0.0  ;;  %vm12530_vm9 = vmmov %vm12528_vm3 }
 0x44f   : > { %v5954_v29 = vmax.f32 %v5952_v23, %v5953_v21  ;;  %v5960_v24 = vrot.slane %v5959_v42, 2  ;;  %v5973_v2 = vmax.f32 %v5971_v44, %v5972_v12  ;;  %v4503_v8 = vadd.f32 %v11577_v15, %v11426_v18 }
 0x450   : > { %v5967_v6 = vrot.slane %v5966_v7, 2  ;;  %v5098_v28 = vcombine.high %v4552_v20, %v4552_v20  ;;  %v5105_v60 = vrot.slane %v4552_v20, %v10890_v40  ;;  %v5064_v63 = vcombine.high %v4550_v41, %v4550_v41 }
 0x451   : > { %v5955_v32 = vrot.slane %v5954_v29, 1  ;;  %v5961_v35 = vmax.f32 %v5959_v42, %v5960_v24  ;;  %v5974_v52 = vrot.slane %v5973_v2, 2  ;;  %v5071_v36 = vrot.slane %v4550_v41, %v10890_v40 }
 0x452   : > { %v5968_v14 = vmax.f32 %v5966_v7, %v5967_v6  ;;  %v5112_v0 = vrot.slane %v5098_v28, %v10890_v40  ;;  %v5113_v16 = vcombine.high %v5105_v60, %v5105_v60  ;;  %v6076_v56 = vsel %vm12522_vm4, %v5105_v60, -inf }
 0x453   : > { %v5956_v30 = vmax.f32 %v5954_v29, %v5955_v32  ;;  %v5962_v31 = vrot.slane %v5961_v35, 1  ;;  %v5975_v34 = vmax.f32 %v5973_v2, %v5974_v52  ;;  %v6077_v5 = vrot.slane %v6076_v56, 4 }
 0x454   : > { %v5969_v39 = vrot.slane %v5968_v14, 1  ;;  %v5114_v54 = vcombine.high %v5112_v0, %v5112_v0  ;;  %v6083_v23 = vsel %vm12523_vm5, %v5113_v16, -inf  ;;  %v6090_v18 = vsel %vm12524_vm14, %v5112_v0, -inf  ;;  %vm12531_vm5 = vmmov %vm12528_vm3 }
 0x455   : > { %v5963_v61 = vmax.f32 %v5961_v35, %v5962_v31  ;;  %v5976_v27 = vrot.slane %v5975_v34, 1  ;;  %v6347_v53 = vsel %vm12525_vm10, %v5956_v30, -inf  ;;  %v6078_v44 = vmax.f32 %v6076_v56, %v6077_v5  ;;  %vm12532_vm14 = vmmov %vm12522_vm4 }
 0x456   : > { %v5970_v62 = vmax.f32 %v5968_v14, %v5969_v39  ;;  %v6348_v21 = vmax.f32 %v6346_v47, %v6347_v53  ;;  %v6084_v42 = vrot.slane %v6083_v23, 4  ;;  %v6091_v12 = vrot.slane %v6090_v18, 4  ;;  %vm12533_vm10 = vmmov %vm12522_vm4 }
 0x457   : > { %v5977_v13 = vmax.f32 %v5975_v34, %v5976_v27  ;;  %v6350_v7 = vsel %vm12526_vm12, %v5963_v61, -inf  ;;  %v6079_v20 = vrot.slane %v6078_v44, 2  ;;  %v6097_v29 = vsel %vm12527_vm6, %v5114_v54, -inf  ;;  %vm12534_vm12 = vmmov %vm12522_vm4 }
 0x458   : > { %v6351_v24 = vmax.f32 %v11543_v58, %v6350_v7  ;;  %v6353_v2 = vsel %vm12528_vm3, %v5970_v62, -inf  ;;  %v6521_v6 = vsel %vm6479_vm7, %v6348_v21, %v6345_v11  ;;  %v6085_v28 = vmax.f32 %v6083_v23, %v6084_v42  ;;  %vm12535_vm6 = vmmov %vm12528_vm3 }
 0x459   : > { %v6354_v47 = vmax.f32 %v11554_v26, %v6353_v2  ;;  %v6356_v60 = vsel %vm12529_vm11, %v5977_v13, -inf  ;;  %v6080_v32 = vmax.f32 %v6078_v44, %v6079_v20  ;;  %v6092_v35 = vmax.f32 %v6090_v18, %v6091_v12  ;;  %vm12536_vm3 = vmmov %vm12522_vm4 }
 0x45a   : > { %v6357_v52 = vmax.f32 %v11563_v25, %v6356_v60  ;;  %v6522_v14 = vsel %vm6481_vm1, %v6351_v24, %v6521_v6  ;;  %v6086_v0 = vrot.slane %v6085_v28, 2  ;;  %v6098_v58 = vrot.slane %v6097_v29, 4  ;;  %vm12537_vm11 = vmmov %vm12531_vm5 }
 0x45b   : > { %v6523_v16 = vsel %vm6483_vm8, %v6354_v47, %v6522_v14  ;;  %v6081_v56 = vrot.slane %v6080_v32, 1  ;;  %v6093_v30 = vrot.slane %v6092_v35, 2  ;;  %v5078_v31 = vrot.slane %v5064_v63, %v10890_v40 }
 0x45c   : > { %v6524_v38 = vsel %vm6485_vm2, %v6357_v52, %v6523_v16  ;;  %v6087_v26 = vmax.f32 %v6085_v28, %v6086_v0  ;;  %v6099_v11 = vmax.f32 %v6097_v29, %v6098_v58  ;;  %v5079_v39 = vcombine.high %v5071_v36, %v5071_v36 }
 0x45d   : > { %v6525_v25 = vsel %vm6487_vm15, %v6360_v43, %v6524_v38  ;;  %v6082_v34 = vmax.f32 %v6080_v32, %v6081_v56  ;;  %v6094_v5 = vmax.f32 %v6092_v35, %v6093_v30  ;;  %v5080_v23 = vcombine.high %v5078_v31, %v5078_v31 }
 0x45e   : > { %v6526_v41 = vsel %vm6489_vm0, %v6363_v49, %v6525_v25  ;;  %v6100_v54 = vrot.slane %v6099_v11, 2  ;;  %v4553_v18 = vmax.f32 %v4503_v8, 0.0  ;;  %v6027_v1 = vsel %vm12522_vm4, %v5071_v36, -inf  ;;  %vm12539_vm4 = vmmov %vm12531_vm5 }
 0x45f   : > { %v6527_v63 = vsel %vm6491_vm13, %v6366_v51, %v6526_v41  ;;  %v6095_v61 = vrot.slane %v6094_v5, 1  ;;  %v11624_v46 = vsel %vm12530_vm9, %v6082_v34, -inf  ;;  %v6088_v43 = vrot.slane %v6087_v26, 1  ;;  %vm12538_vm9 = vmmov %vm12536_vm3 }
 0x460   : > { %6555 = vst.msk [vmem:[%s11045_s14 + $0x28] sm:$0xff] %vm12531_vm5, %v6527_v63  ;;  %v6101_v57 = vmax.f32 %v6099_v11, %v6100_v54  ;;  %v6378_v37 = vmax.f32 %v11585_v17, %v11624_v46  ;;  %v6028_v49 = vrot.slane %v6027_v1, 4  ;;  %v6012_v22 = vmax.f32 %v11558_v50, %v6011_v9  ;;  %vm12540_vm5 = vmmov %vm12539_vm4 }
 0x461   : > { %v6034_v3 = vsel %vm12532_vm14, %v5079_v39, -inf  ;;  %v6041_v51 = vsel %vm12533_vm10, %v5078_v31, -inf  ;;  %v6048_v8 = vsel %vm12534_vm12, %v5080_v23, -inf  ;;  %v6096_v27 = vmax.f32 %v6094_v5, %v6095_v61  ;;  %vm12541_vm14 = vmmov %vm12539_vm4 }
 0x462   : > { %v6029_v53 = vmax.f32 %v6027_v1, %v6028_v49  ;;  %v6035_v44 = vrot.slane %v6034_v3, 4  ;;  %v6042_v62 = vrot.slane %v6041_v51, 4  ;;  %v11640_v21 = vmax.f32 %v11565_v19, %v6018_v55  ;;  %vm12542_vm10 = vmmov %vm12539_vm4 }
 0x463   : > { %v6102_v42 = vrot.slane %v6101_v57, 1  ;;  %v6049_v12 = vrot.slane %v6048_v8, 4  ;;  %v5115_v13 = vcombine.high %v4553_v18, %v4553_v18  ;;  %v6089_v7 = vmax.f32 %v6087_v26, %v6088_v43  ;;  %vm12543_vm12 = vmmov %vm12539_vm4 }
 0x464   : > { %v6030_v50 = vrot.slane %v6029_v53, 2  ;;  %v6036_v9 = vmax.f32 %v6034_v3, %v6035_v44  ;;  %v6043_v20 = vmax.f32 %v6041_v51, %v6042_v62  ;;  %v5122_v24 = vrot.slane %v4553_v18, %v10890_v40 }
 0x465   : > { %v6050_v29 = vmax.f32 %v6048_v8, %v6049_v12  ;;  %v5129_v2 = vrot.slane %v5115_v13, %v10890_v40  ;;  %v4495_v6 = vadd.f32 %v11577_v15, %v11429_v4  ;;  %v11647_v28 = vsel %vm12535_vm6, %v6096_v27, -inf  ;;  %vm12544_vm6 = vmmov %vm12539_vm4 }
 0x466   : > { %v6031_v19 = vmax.f32 %v6029_v53, %v6030_v50  ;;  %v6037_v55 = vrot.slane %v6036_v9, 2  ;;  %v6044_v47 = vrot.slane %v6043_v20, 2  ;;  %v6103_v60 = vmax.f32 %v6101_v57, %v6102_v42 }
 0x467   : > { %v6051_v32 = vrot.slane %v6050_v29, 2  ;;  %v5130_v35 = vcombine.high %v5129_v2, %v5129_v2  ;;  %v6104_v52 = vsel %vm12536_vm3, %v5122_v24, -inf  ;;  %v11651_v30 = vsel %vm12537_vm11, %v6089_v7, -inf  ;;  %vm12545_vm11 = vmmov %vm12539_vm4 }
 0x468   : > { %v6032_v14 = vrot.slane %v6031_v19, 1  ;;  %v6038_v0 = vmax.f32 %v6036_v9, %v6037_v55  ;;  %v6045_v58 = vmax.f32 %v6043_v20, %v6044_v47  ;;  %v6105_v16 = vrot.slane %v6104_v52, 4 }
 0x469   : > { %v6052_v56 = vmax.f32 %v6050_v29, %v6051_v32  ;;  %v6118_v4 = vsel %vm12538_vm9, %v5130_v35, -inf  ;;  %v4551_v36 = vmax.f32 %v4495_v6, 0.0  ;;  %v11655_v34 = vsel %vm12539_vm4, %v6103_v60, -inf  ;;  %vm12546_vm9 = vmmov %vm12536_vm3 }
 0x46a   : > { %v6033_v38 = vmax.f32 %v6031_v19, %v6032_v14  ;;  %v6039_v26 = vrot.slane %v6038_v0, 1  ;;  %v6046_v11 = vrot.slane %v6045_v58, 1  ;;  %v6106_v31 = vmax.f32 %v6104_v52, %v6105_v16  ;;  %vm12547_vm4 = vmmov %vm12536_vm3 }
 0x46b   : > { %v6053_v25 = vrot.slane %v6052_v56, 1  ;;  %v6119_v5 = vrot.slane %v6118_v4, 4  ;;  %v5081_v39 = vcombine.high %v4551_v36, %v4551_v36  ;;  %v11662_v63 = vsel %vm12541_vm14, %v11570_v33, -inf  ;;  %vm12548_vm14 = vmmov %vm12540_vm5 }
 0x46c   : > { %v6040_v41 = vmax.f32 %v6038_v0, %v6039_v26  ;;  %v6047_v54 = vmax.f32 %v6045_v58, %v6046_v11  ;;  %v11658_v23 = vsel %vm12540_vm5, %v6033_v38, -inf  ;;  %v6107_v18 = vrot.slane %v6106_v31, 2 }
 0x46d   : > { %v6054_v61 = vmax.f32 %v6052_v56, %v6053_v25  ;;  %v6381_v1 = vmax.f32 %v11658_v23, %v11651_v30  ;;  %v6120_v43 = vmax.f32 %v6118_v4, %v6119_v5  ;;  %v5088_v51 = vrot.slane %v4551_v36, %v10890_v40 }
 0x46e   : > { %v11667_v57 = vsel %vm12542_vm10, %v6040_v41, -inf  ;;  %v11670_v49 = vsel %vm12543_vm12, %v6047_v54, -inf  ;;  %v6108_v3 = vmax.f32 %v6106_v31, %v6107_v18  ;;  %v11674_v8 = vsel %vm12544_vm6, %v6012_v22, -inf  ;;  %vm12549_vm10 = vmmov %vm12536_vm3 }
 0x46f   : > { %v6384_v33 = vmax.f32 %v11667_v57, %v11647_v28  ;;  %v6387_v27 = vmax.f32 %v11670_v49, %v11655_v34  ;;  %v6121_v53 = vrot.slane %v6120_v43, 2  ;;  %v11681_v62 = vsel %vm12536_vm3, %v5129_v2, -inf  ;;  %vm12550_vm12 = vmmov %vm12540_vm5 }
 0x470   : > { %v6109_v44 = vrot.slane %v6108_v3, 1  ;;  %v5095_v42 = vrot.slane %v5081_v39, %v10890_v40  ;;  %v5096_v12 = vcombine.high %v5088_v51, %v5088_v51  ;;  %v11685_v7 = vsel %vm12545_vm11, %v6054_v61, -inf  ;;  %vm12551_vm6 = vmmov %vm12536_vm3 }
 0x471   : > { %v6122_v13 = vmax.f32 %v6120_v43, %v6121_v53  ;;  %v4516_v22 = vadd.f32 %v11577_v15, %v11523_v10  ;;  %v4508_v50 = vadd.f32 %v11577_v15, %v11528_v45  ;;  %v11695_v2 = vsel %vm12540_vm5, %v11640_v21, -inf  ;;  %vm12552_vm11 = vmmov %vm12536_vm3 }
 0x472   : > { %v6110_v9 = vmax.f32 %v6108_v3, %v6109_v44  ;;  %v5097_v20 = vcombine.high %v5095_v42, %v5095_v42  ;;  %v6055_v29 = vsel %vm12546_vm9, %v5096_v12, -inf  ;;  %v6062_v24 = vsel %vm12547_vm4, %v5095_v42, -inf  ;;  %vm12553_vm9 = vmmov %vm12536_vm3 }
 0x473   : > { %v6123_v6 = vrot.slane %v6122_v13, 1  ;;  %v6056_v19 = vrot.slane %v6055_v29, 4  ;;  %v6063_v55 = vrot.slane %v6062_v24, 4  ;;  %v4556_v60 = vmax.f32 %v4516_v22, 0.0  ;;  %vm12554_vm4 = vmmov %vm12536_vm3 }
 0x474   : > { %v11698_v47 = vsel %vm12548_vm14, %v6110_v9, -inf  ;;  %v6069_v10 = vsel %vm12549_vm10, %v5097_v20, -inf  ;;  %v4554_v45 = vmax.f32 %v4508_v50, 0.0  ;;  %v6112_v32 = vrot.slane %v11681_v62, 4  ;;  %vm12555_vm14 = vmmov %vm12540_vm5 }
 0x475   : > { %v6124_v35 = vmax.f32 %v6122_v13, %v6123_v6  ;;  %v6390_v52 = vmax.f32 %v11685_v7, %v11698_v47  ;;  %v6057_v14 = vmax.f32 %v6055_v29, %v6056_v19  ;;  %v6064_v0 = vmax.f32 %v6062_v24, %v6063_v55  ;;  %vm12556_vm10 = vmmov %vm12540_vm5 }
 0x476   : > { %v6070_v21 = vrot.slane %v6069_v10, 4  ;;  %v5165_v58 = vcombine.high %v4556_v60, %v4556_v60  ;;  %v5172_v16 = vrot.slane %v4556_v60, %v10890_v40  ;;  %v5131_v36 = vcombine.high %v4554_v45, %v4554_v45 }
 0x477   : > { %v6058_v56 = vrot.slane %v6057_v14, 2  ;;  %v11706_v4 = vsel %vm12550_vm12, %v6124_v35, -inf  ;;  %v5138_v38 = vrot.slane %v4554_v45, %v10890_v40  ;;  %v6065_v26 = vrot.slane %v6064_v0, 2  ;;  %vm12557_vm12 = vmmov %vm12536_vm3 }
 0x478   : > { %v6071_v11 = vmax.f32 %v6069_v10, %v6070_v21  ;;  %v5179_v31 = vrot.slane %v5165_v58, %v10890_v40  ;;  %v5180_v25 = vcombine.high %v5172_v16, %v5172_v16  ;;  %v6174_v39 = vsel %vm12551_vm6, %v5172_v16, -inf  ;;  %vm12558_vm6 = vmmov %vm12536_vm3 }
 0x479   : > { %v6059_v5 = vmax.f32 %v6057_v14, %v6058_v56  ;;  %v11712_v41 = vrot.slane %v5131_v36, %v10890_v40  ;;  %v5146_v54 = vcombine.high %v5138_v38, %v5138_v38  ;;  %v6066_v18 = vmax.f32 %v6064_v0, %v6065_v26 }
 0x47a   : > { %v6072_v61 = vrot.slane %v6071_v11, 2  ;;  %v5181_v43 = vcombine.high %v5179_v31, %v5179_v31  ;;  %v6175_v3 = vrot.slane %v6174_v39, 4  ;;  %v6181_v53 = vsel %vm12536_vm3, %v5180_v25, -inf  ;;  %vm12559_vm3 = vmmov %vm12540_vm5 }
 0x47b   : > { %v6060_v51 = vrot.slane %v6059_v5, 1  ;;  %v6188_v44 = vsel %vm12552_vm11, %v5179_v31, -inf  ;;  %v5147_v42 = vcombine.high %v11712_v41, %v11712_v41  ;;  %v6067_v12 = vrot.slane %v6066_v18, 1  ;;  %vm12560_vm11 = vmmov %vm12554_vm4 }
 0x47c   : > { %v6073_v13 = vmax.f32 %v6071_v11, %v6072_v61  ;;  %v6176_v22 = vmax.f32 %v6174_v39, %v6175_v3  ;;  %v6182_v50 = vrot.slane %v6181_v53, 4  ;;  %v6189_v20 = vrot.slane %v6188_v44, 4 }
 0x47d   : > { %v6061_v9 = vmax.f32 %v6059_v5, %v6060_v51  ;;  %v6195_v29 = vsel %vm12553_vm9, %v5181_v43, -inf  ;;  %v6125_v24 = vsel %vm12554_vm4, %v5138_v38, -inf  ;;  %v6068_v6 = vmax.f32 %v6066_v18, %v6067_v12  ;;  %vm12561_vm9 = vmmov %vm12559_vm3 }
 0x47e   : > { %v6074_v19 = vrot.slane %v6073_v13, 1  ;;  %v6177_v55 = vrot.slane %v6176_v22, 2  ;;  %v6183_v10 = vmax.f32 %v6181_v53, %v6182_v50  ;;  %v6190_v45 = vmax.f32 %v6188_v44, %v6189_v20  ;;  %vm12562_vm4 = vmmov %vm12559_vm3 }
 0x47f   : > { %v6368_v60 = vsel %vm12540_vm5, %v6061_v9, -inf  ;;  %v6196_v35 = vrot.slane %v6195_v29, 4  ;;  %v6126_v14 = vrot.slane %v6125_v24, 4  ;;  %v6371_v58 = vsel %vm12555_vm14, %v6068_v6, -inf  ;;  %vm12563_vm5 = vmmov %vm12559_vm3 }
 0x480   : > { %v6075_v0 = vmax.f32 %v6073_v13, %v6074_v19  ;;  %v6369_v21 = vmax.f32 %v11662_v63, %v6368_v60  ;;  %v6178_v16 = vmax.f32 %v6176_v22, %v6177_v55  ;;  %v6372_v56 = vmax.f32 %v11674_v8, %v6371_v58  ;;  %vm12564_vm14 = vmmov %vm12559_vm3 }
 0x481   : > { %v6184_v36 = vrot.slane %v6183_v10, 2  ;;  %v6191_v26 = vrot.slane %v6190_v45, 2  ;;  %v6197_v38 = vmax.f32 %v6195_v29, %v6196_v35  ;;  %v6127_v25 = vmax.f32 %v6125_v24, %v6126_v14 }
 0x482   : > { %v6374_v11 = vsel %vm12556_vm10, %v6075_v0, -inf  ;;  %v6179_v31 = vrot.slane %v6178_v16, 1  ;;  %v6132_v5 = vsel %vm12557_vm12, %v5146_v54, -inf  ;;  %v6528_v18 = vsel %vm6479_vm7, %v6372_v56, %v6369_v21  ;;  %vm12565_vm10 = vmmov %vm12559_vm3 }
 0x483   : > { %v6375_v39 = vmax.f32 %v11695_v2, %v6374_v11  ;;  %v6185_v61 = vmax.f32 %v6183_v10, %v6184_v36  ;;  %v6192_v63 = vmax.f32 %v6190_v45, %v6191_v26  ;;  %v6198_v3 = vrot.slane %v6197_v38, 2  ;;  %vm12566_vm12 = vmmov %vm12559_vm3 }
 0x484   : > { %v6180_v43 = vmax.f32 %v6178_v16, %v6179_v31  ;;  %v6128_v51 = vrot.slane %v6127_v25, 2  ;;  %v6133_v53 = vrot.slane %v6132_v5, 4  ;;  %v6139_v13 = vsel %vm12558_vm6, %v11712_v41, -inf }
 0x485   : > { %v6529_v8 = vsel %vm6481_vm1, %v6375_v39, %v6528_v18  ;;  %v6186_v44 = vrot.slane %v6185_v61, 1  ;;  %v6193_v12 = vrot.slane %v6192_v63, 1  ;;  %v6199_v54 = vmax.f32 %v6197_v38, %v6198_v3 }
 0x486   : > { %v6530_v2 = vsel %vm6483_vm8, %v6378_v37, %v6529_v8  ;;  %v11736_v22 = vsel %vm12559_vm3, %v6180_v43, -inf  ;;  %v6129_v50 = vmax.f32 %v6127_v25, %v6128_v51  ;;  %v6134_v29 = vmax.f32 %v6132_v5, %v6133_v53  ;;  %vm12567_vm3 = vmmov %vm12558_vm6 }
 0x487   : > { %v6531_v9 = vsel %vm6485_vm2, %v6381_v1, %v6530_v2  ;;  %v6187_v20 = vmax.f32 %v6185_v61, %v6186_v44  ;;  %v6396_v41 = vmax.f32 %v11706_v4, %v11736_v22  ;;  %v6200_v46 = vrot.slane %v6199_v54, 1 }
 0x488   : > { %v6532_v17 = vsel %vm6487_vm15, %v6384_v33, %v6531_v9  ;;  %v6130_v37 = vrot.slane %v6129_v50, 1  ;;  %v6113_v24 = vmax.f32 %v11681_v62, %v6112_v32  ;;  %v6140_v23 = vrot.slane %v6139_v13, 4 }
 0x489   : > { %v6533_v30 = vsel %vm6489_vm0, %v6387_v27, %v6532_v17  ;;  %v6146_v1 = vsel %vm12560_vm11, %v5147_v42, -inf  ;;  %v6194_v57 = vmax.f32 %v6192_v63, %v6193_v12  ;;  %v6135_v6 = vrot.slane %v6134_v29, 2  ;;  %vm12568_vm11 = vmmov %vm12567_vm3 }
 0x48a   : > { %v6534_v28 = vsel %vm6491_vm13, %v6390_v52, %v6533_v30  ;;  %v6131_v33 = vmax.f32 %v6129_v50, %v6130_v37  ;;  %v6141_v19 = vmax.f32 %v6139_v13, %v6140_v23  ;;  %v6147_v62 = vrot.slane %v6146_v1, 4 }
 0x48b   : > { %6556 = vst.msk [vmem:[%s11045_s14 + $0x30] sm:$0xff] %vm12561_vm9, %v6534_v28  ;;  %v11763_v32 = vsel %vm12562_vm4, %v6187_v20, -inf  ;;  %v4519_v34 = vadd.f32 %v11577_v15, %v11536_v59  ;;  %v6201_v49 = vmax.f32 %v6199_v54, %v6200_v46  ;;  %v6136_v27 = vmax.f32 %v6134_v29, %v6135_v6  ;;  %vm12569_vm9 = vmmov %vm12567_vm3 }
 0x48c   : > { %v11768_v42 = vsel %vm12563_vm5, %v6131_v33, -inf  ;;  %v4511_v7 = vadd.f32 %v11577_v15, %v11547_v48  ;;  %v6142_v47 = vrot.slane %v6141_v19, 2  ;;  %v6148_v52 = vmax.f32 %v6146_v1, %v6147_v62  ;;  %vm12570_vm5 = vmmov %vm12567_vm3 }
 0x48d   : > { %v6399_v55 = vmax.f32 %v11768_v42, %v11763_v32  ;;  %v4557_v10 = vmax.f32 %v4519_v34, 0.0  ;;  %v6114_v60 = vrot.slane %v6113_v24, 2  ;;  %v11775_v45 = vsel %vm12564_vm14, %v6194_v57, -inf  ;;  %vm12571_vm14 = vmmov %vm12567_vm3 }
 0x48e   : > { %v6137_v35 = vrot.slane %v6136_v27, 1  ;;  %v4555_v59 = vmax.f32 %v4511_v7, 0.0  ;;  %v6143_v14 = vmax.f32 %v6141_v19, %v6142_v47  ;;  %v6149_v0 = vrot.slane %v6148_v52, 2 }
 0x48f   : > { %v5182_v21 = vcombine.high %v4557_v10, %v4557_v10  ;;  %v5189_v58 = vrot.slane %v4557_v10, %v10890_v40  ;;  %v11779_v48 = vsel %vm12565_vm10, %v6201_v49, -inf  ;;  %v6115_v9 = vmax.f32 %v6113_v24, %v6114_v60  ;;  %vm12572_vm10 = vmmov %vm12562_vm4 }
 0x490   : > { %v6138_v16 = vmax.f32 %v6136_v27, %v6137_v35  ;;  %v5148_v15 = vcombine.high %v4555_v59, %v4555_v59  ;;  %v5155_v56 = vrot.slane %v4555_v59, %v10890_v40  ;;  %v6144_v36 = vrot.slane %v6143_v14, 1 }
 0x491   : > { %v6150_v26 = vmax.f32 %v6148_v52, %v6149_v0  ;;  %v5196_v38 = vrot.slane %v5182_v21, %v10890_v40  ;;  %v5197_v11 = vcombine.high %v5189_v58, %v5189_v58  ;;  %v6202_v25 = vsel %vm12558_vm6, %v5189_v58, -inf  ;;  %vm12574_vm6 = vmmov %vm12562_vm4 }
 0x492   : > { %v11784_v31 = vsel %vm12566_vm12, %v6138_v16, -inf  ;;  %v5162_v5 = vrot.slane %v5148_v15, %v10890_v40  ;;  %v5163_v39 = vcombine.high %v5155_v56, %v5155_v56  ;;  %v6145_v18 = vmax.f32 %v6143_v14, %v6144_v36  ;;  %vm12573_vm12 = vmmov %vm12562_vm4 }
 0x493   : > { %v6151_v61 = vrot.slane %v6150_v26, 1  ;;  %v6402_v63 = vmax.f32 %v11784_v31, %v11775_v45  ;;  %v6203_v43 = vrot.slane %v6202_v25, 4  ;;  %v6209_v3 = vsel %vm12567_vm3, %v5197_v11, -inf  ;;  %vm12575_vm3 = vmmov %vm12562_vm4 }
 0x494   : > { %v6216_v51 = vsel %vm12568_vm11, %v5196_v38, -inf  ;;  %v5164_v53 = vcombine.high %v5162_v5, %v5162_v5  ;;  %v6153_v8 = vsel %vm12569_vm9, %v5155_v56, -inf  ;;  %v6403_v44 = vsel %vm12562_vm4, %v6145_v18, -inf  ;;  %vm12576_vm11 = vmmov %vm12575_vm3 }
 0x495   : > { %v6204_v12 = vmax.f32 %v6202_v25, %v6203_v43  ;;  %v6210_v13 = vrot.slane %v6209_v3, 4  ;;  %v6405_v40 = vmax.f32 %v6403_v44, %v11779_v48  ;;  %v6217_v2 = vrot.slane %v6216_v51, 4  ;;  %vm12577_vm9 = vmmov %vm12575_vm3 }
 0x496   : > { %v6154_v54 = vrot.slane %v6153_v8, 4  ;;  %v6160_v50 = vsel %vm12570_vm5, %v5163_v39, -inf  ;;  %v6152_v37 = vmax.f32 %v6150_v26, %v6151_v61  ;;  %v6167_v23 = vsel %vm12571_vm14, %v5164_v53, -inf  ;;  %vm12578_vm4 = vmmov %vm12575_vm3 }
 0x497   : > { %v6205_v20 = vrot.slane %v6204_v12, 2  ;;  %v6211_v17 = vmax.f32 %v6209_v3, %v6210_v13  ;;  %v6161_v46 = vrot.slane %v6160_v50, 4  ;;  %v6218_v29 = vmax.f32 %v6216_v51, %v6217_v2  ;;  %vm12579_vm5 = vmmov %vm12575_vm3 }
 0x498   : > { %v6155_v30 = vmax.f32 %v6153_v8, %v6154_v54  ;;  %v6168_v33 = vrot.slane %v6167_v23, 4  ;;  %v6116_v7 = vrot.slane %v6115_v9, 1  ;;  %v6406_v47 = vsel %vm12572_vm10, %v6152_v37, -inf }
 0x499   : > { %v6206_v1 = vmax.f32 %v6204_v12, %v6205_v20  ;;  %v6212_v28 = vrot.slane %v6211_v17, 2  ;;  %v6162_v57 = vmax.f32 %v6160_v50, %v6161_v46  ;;  %v6219_v6 = vrot.slane %v6218_v29, 2 }
 0x49a   : > { %v6156_v19 = vrot.slane %v6155_v30, 2  ;;  %v6169_v27 = vmax.f32 %v6167_v23, %v6168_v33  ;;  %v6117_v26 = vmax.f32 %v6115_v9, %v6116_v7 }
 0x49b   : > { %v6207_v62 = vrot.slane %v6206_v1, 1  ;;  %v6213_v34 = vmax.f32 %v6211_v17, %v6212_v28  ;;  %v6163_v49 = vrot.slane %v6162_v57, 2  ;;  %v6220_v24 = vmax.f32 %v6218_v29, %v6219_v6 }
 0x49c   : > { %v6157_v52 = vmax.f32 %v6155_v30, %v6156_v19  ;;  %v6170_v59 = vrot.slane %v6169_v27, 2  ;;  %v6391_v51 = vsel %vm12578_vm4, %v6117_v26, -inf }
 0x49d   : > { %v6208_v10 = vmax.f32 %v6206_v1, %v6207_v62  ;;  %v6214_v60 = vrot.slane %v6213_v34, 1  ;;  %v6164_v35 = vmax.f32 %v6162_v57, %v6163_v49  ;;  %v6221_v14 = vrot.slane %v6220_v24, 1 }
 0x49e   : > { %v6158_v0 = vrot.slane %v6157_v52, 1  ;;  %v6171_v48 = vmax.f32 %v6169_v27, %v6170_v59 }
 0x49f   : > { %v6215_v21 = vmax.f32 %v6213_v34, %v6214_v60  ;;  %v6407_v58 = vsel %vm12573_vm12, %v6208_v10, -inf  ;;  %v6165_v16 = vrot.slane %v6164_v35, 1  ;;  %v6222_v15 = vmax.f32 %v6220_v24, %v6221_v14 }
 0x4a0   : > { %v6408_v56 = vmax.f32 %v6406_v47, %v6407_v58  ;;  %v6159_v36 = vmax.f32 %v6157_v52, %v6158_v0  ;;  %v6172_v11 = vrot.slane %v6171_v48, 1 }
 0x4a1   : > { %v6166_v38 = vmax.f32 %v6164_v35, %v6165_v16  ;;  %v6410_v25 = vsel %vm12574_vm6, %v6215_v21, -inf  ;;  %v6413_v5 = vsel %vm12575_vm3, %v6222_v15, -inf }
 0x4a2   : > { %v6409_v39 = vsel %vm12576_vm11, %v6159_v36, -inf  ;;  %v6173_v18 = vmax.f32 %v6171_v48, %v6172_v11 }
 0x4a3   : > { %v6411_v61 = vmax.f32 %v6409_v39, %v6410_v25  ;;  %v6412_v43 = vsel %vm12577_vm9, %v6166_v38, -inf }
 0x4a4   : > { %v6414_v3 = vmax.f32 %v6412_v43, %v6413_v5  ;;  %v6392_v53 = vsel %vm12579_vm5, %v6173_v18, -inf }
 0x4a5   : > { %v6393_v8 = vmax.f32 %v6391_v51, %v6392_v53 }
 0x4a7   : > { %v6535_v44 = vsel %vm6479_vm7, %v6396_v41, %v6393_v8  ;;  %vm12580_vm7 = vmmov %vm12575_vm3 }
 0x4a8   : > { %v6536_v12 = vsel %vm6481_vm1, %v6399_v55, %v6535_v44 }
 0x4a9   : > { %v6537_v13 = vsel %vm6483_vm8, %v6402_v63, %v6536_v12 }
 0x4aa   : > { %v6538_v2 = vsel %vm6485_vm2, %v6405_v40, %v6537_v13 }
 0x4ab   : > { %v6539_v54 = vsel %vm6487_vm15, %v6408_v56, %v6538_v2 }
 0x4ac   : > { %v6540_v4 = vsel %vm6489_vm0, %v6411_v61, %v6539_v54 }
 0x4ad   : > { %v6541_v22 = vsel %vm6491_vm13, %v6414_v3, %v6540_v4 }
 0x4ae   : > { %6557 = vst.msk [vmem:[%s11045_s14 + $0x38] sm:$0xff] %vm12580_vm7, %v6541_v22 }
 0x4af   : > { %7182 = shalt.err (!%p7179_p3)
}
 0x4b0   : > { %s7183_s30 = scalar_lea.hbm %s11824_s26, 1024  ;;  %s7187_s7 = scalar_lea.hbm %s11881_s5, 2048 }
 0x4b1   : > { %p7184_p4 = scmp.ne.s32.totalorder %s11824_s26, %s7183_s30  ;;  %p7188_p9 = scmp.lt.u32.totalorder %s11824_s26, %s11881_s5 }
 0x4b2   : > { %p7189_p10 = scmp.lt.u32.totalorder %s7187_s7, %s7183_s30  ;;  %p7191_p12 = scmp.lt.u32.totalorder %s7183_s30, %s11824_s26 }
 0x4b3   : > { %p7185_p7 = pnand %p7184_p4, %p7317_p5 }
 0x4b4   : > { %p7190_p11 = por %p7189_p10, %p7188_p9 }
 0x4b5   : > { %p7186_p8 = pneg %p7185_p7 }
 0x4b6   : > { %p7192_p13 = por %p7191_p12, %p7190_p11 }
 0x4b8   : > { %p7193_p0 = pnand %p7192_p13, %p7186_p8 }
 0x4ba   : > { %7196 = shalt.err (!%p7193_p0)
}
 0x4bb   : > { %s7248_s12 = smov 128  }
 0x4bc   : > { %7031 = dma.vmem_to_hbm [thread:$0]  (%p7317_p5), %s11827_s13, 1024, %s11824_s26, %s11834_s22, %s7248_s12, %s7248_s12, %s7234_s11  }
 0x4bd PF: > { %p7037_p1 = scmp.ge.s32.totalorder %s7231_s21, 2  ;;  %s6587_s16 = sand.u32 1, %s7219_s18  }
 0x4be   : > { %s6588_s17 = scalar_lea.sflag [#allocation4], %s6587_s16 }
 0x4bf   : > { %p7034_p2 = pnand %p7037_p1, %p7321_p6 }
 0x4c1   : > { %7214 = dma.done.wait (!%p7034_p2), %s6588_s17, 1024  }
 0x4c2   : > { %7216 = vsyncadd (!%p7034_p2), %s6588_s17, 4294966272  ;;  %p15_p3 = scmp.ge.s32.totalorder %s7304_s24, 4   ;;  %s12581_s18 = smov %s7223_s19 }
 0x4c3   : > { %s12582_s19 = smov %s7227_s20  ;;  %s12583_s20 = smov %s7315_s27 }
 0x4c4   : > { %s12584_s21 = smov %s7304_s24  ;;  %17 = sbr.rel (!%p15_p3) target bundleno = 3 (0x3), region = 75 }
 0x4cb   :  { %6593 = vsyncpa [#allocation4], 1 }
 0x4cc   :  { %6595 = vsyncpa [#allocation4 + $0x1], 1 }

</bundles_post_ra>
